<compile_context>
chip_gen: v7x
topology: tpu7x:2x2x1
jax: 0.10.0
libtpu: 0.0.40
codegen_flags: <defaults>
</compile_context>

<pallas_src>
import functools

import numpy as np
import jax
import jax.numpy as jnp
from jax.experimental import pallas as pl
from jax.experimental.pallas import tpu as pltpu


# activation -> (leaky-relu alpha, post-activation gain), as in bias_act()
_ACT = {
    "linear": (1.0, 1.0),
    "relu": (0.0, float(np.sqrt(2.0))),
    "lrelu": (0.2, float(np.sqrt(2.0))),
}


# ---------------------------------------------------------------------------
# Pallas kernel: 4 chained matmuls (3 folded conv layers + pooled FC) per call.
# ---------------------------------------------------------------------------
def _tostyle_kernel(x_ref, *refs, alpha, gain):
    out_ref = refs[-1]
    layer_refs = refs[:-1]          # (T1, b1, T2, b2, T3, b3, Tfc, bfc)
    h = x_ref[...]                  # (N, C*H*W) f32, batch folded into M
    n_layers = len(layer_refs) // 2
    for l in range(n_layers):
        t_ref = layer_refs[2 * l]
        b_ref = layer_refs[2 * l + 1]
        # One MXU matmul per layer (whole conv layer folded into a dense matrix).
        h = jnp.dot(h, t_ref[...],
                    precision=jax.lax.Precision.HIGHEST,
                    preferred_element_type=jnp.float32)
        h = h + b_ref[...]                                   # (1, K) bias broadcast
        h = jnp.where(h >= 0.0, h, alpha * h) * gain         # bias_act: lrelu + gain
    out_ref[...] = h.astype(out_ref.dtype)


# ---------------------------------------------------------------------------
# Host-side parameter folding (pure numpy, done once per set of weights).
# ---------------------------------------------------------------------------
def _blur_filter():
    # setup_filter([1, 3, 3, 1]) -> normalized 4x4 outer product (symmetric).
    v = np.array([1.0, 3.0, 3.0, 1.0], dtype=np.float64)
    f = np.outer(v, v)
    f /= f.sum()
    return f.astype(np.float32)


def _composite_weight(w, f):
    """Fold the 4x4 depthwise blur into the 3x3 conv -> effective 6x6 kernel."""
    cout, cin, kh, kw = w.shape
    weff = np.zeros((cout, cin, kh + 3, kw + 3), dtype=np.float32)
    for a in range(kh):
        for b in range(kw):
            weff[:, :, a:a + 4, b:b + 4] += w[:, :, a:a + 1, b:b + 1] * f[None, None]
    return weff


def _conv_toeplitz(weff, hin, win):
    """Dense matrix of the stride-2, pad-2 conv with the effective 6x6 kernel.

    Input  flattening: channel-major (ci, hi, wi)  == NCHW.reshape(N, -1)
    Output flattening: channel-major (co, ho, wo)
    """
    cout, cin, K, _ = weff.shape
    ho = (hin - 2) // 2 + 1
    wo = (win - 2) // 2 + 1
    T = np.zeros((cin * hin * win, cout * ho * wo), dtype=np.float32)
    ci_off = np.arange(cin) * (hin * win)
    co_off = np.arange(cout) * (ho * wo)
    for h in range(ho):
        for w in range(wo):
            col = co_off + h * wo + w
            for a in range(K):
                hi = 2 * h + a - 2
                if hi < 0 or hi >= hin:
                    continue
                for b in range(K):
                    wi = 2 * w + b - 2
                    if wi < 0 or wi >= win:
                        continue
                    row = ci_off + hi * win + wi
                    T[row[:, None], col[None, :]] = weff[:, :, a, b].T
    return T, ho, wo


def prepare_tostyle_params(conv_params, fc_params, H, W):
    """Fold blur / padding / stride / weight gains / avg-pool into dense matrices."""
    f = _blur_filter()
    mats, biases = [], []
    h, w = H, W
    for wt, b in conv_params:
        wt = np.asarray(wt, np.float32)
        b = np.asarray(b, np.float32)
        cout, cin, k, _ = wt.shape
        wt = wt * (1.0 / np.sqrt(cin * k * k))          # Conv2dLayer.weight_gain
        weff = _composite_weight(wt, f)
        T, h, w = _conv_toeplitz(weff, h, w)
        mats.append(T)
        biases.append(np.repeat(b, T.shape[1] // cout))  # per-channel bias, flattened
    wfc, bfc = fc_params
    wfc = np.asarray(wfc, np.float32)
    bfc = np.asarray(bfc, np.float32)
    s = h * w                                            # adaptive-avg-pool window
    wfc = wfc * (1.0 / np.sqrt(wfc.shape[1]))            # FullyConnectedLayer.weight_gain
    mats.append(np.repeat(wfc.T, s, axis=0) / float(s))  # pool folded into FC weight
    biases.append(bfc)
    return mats, biases


# ---------------------------------------------------------------------------
# Wrapper: whole module = one pallas_call, whole batch = one grid step.
# ---------------------------------------------------------------------------
def _full_spec(shape):
    zeros = (0,) * len(shape)
    return pl.BlockSpec(shape, lambda i: zeros)


def tostyle_forward(x_nchw, mats, biases, activation):
    alpha, gain = _ACT[activation]
    n = x_nchw.shape[0]
    # Plain NCHW flatten: no transpose, no jnp.pad, no extra HBM rewrite.
    x_flat = jnp.reshape(x_nchw, (n, -1)).astype(jnp.float32)
    out_dim = mats[-1].shape[1]

    operands = [x_flat]
    for T, b in zip(mats, biases):
        operands.append(jnp.asarray(T, jnp.float32))
        operands.append(jnp.asarray(b, jnp.float32).reshape(1, -1))

    kernel = functools.partial(_tostyle_kernel, alpha=alpha, gain=gain)
    out = pl.pallas_call(
        kernel,
        out_shape=jax.ShapeDtypeStruct((n, out_dim), jnp.float32),
        grid_spec=pltpu.PrefetchScalarGridSpec(
            num_scalar_prefetch=0,
            grid=(1,),                              # batch folded; single step
            in_specs=[_full_spec(op.shape) for op in operands],
            out_specs=_full_spec((n, out_dim)),
        ),
        compiler_params=pltpu.CompilerParams(
            dimension_semantics=("arbitrary",)),
    )(*operands)
    return out


# ---------------------------------------------------------------------------
# Pure-JAX reference mirroring the PyTorch op sequence (blur -> strided conv ...).
# ---------------------------------------------------------------------------
def _leaky(x, alpha):
    return jnp.where(x >= 0, x, alpha * x)


def tostyle_reference(x, conv_params, fc_params, activation):
    alpha, gain = _ACT[activation]
    f = jnp.asarray(_blur_filter())
    hp = jax.lax.Precision.HIGHEST
    h = x.astype(jnp.float32)
    for wt, b in conv_params:
        c = h.shape[1]
        fk = jnp.tile(f[None, None], (c, 1, 1, 1))           # (C,1,4,4) depthwise
        hb = jax.lax.conv_general_dilated(
            h, fk, window_strides=(1, 1), padding=[(2, 2), (2, 2)],
            dimension_numbers=("NCHW", "OIHW", "NCHW"),
            feature_group_count=c, precision=hp)
        wg = 1.0 / np.sqrt(c * 9)
        y = jax.lax.conv_general_dilated(
            hb, wt * wg, window_strides=(2, 2), padding=[(0, 0), (0, 0)],
            dimension_numbers=("NCHW", "OIHW", "NCHW"), precision=hp)
        y = y + b.reshape(1, -1, 1, 1)
        h = _leaky(y, alpha) * gain
    pooled = h.mean(axis=(2, 3))
    wfc, bfc = fc_params
    o = jnp.einsum("nc,oc->no", pooled,
                   wfc * (1.0 / np.sqrt(wfc.shape[1])), precision=hp) + bfc
    return _leaky(o, alpha) * gain


if __name__ == "__main__":
    # ToStyle(in_channels=4, out_channels=32, activation='lrelu', drop_rate=0.5)
    N, C, H, W, OUT = 2, 4, 16, 16, 32
    ACTIVATION = "lrelu"

    key = jax.random.PRNGKey(0)
    ks = jax.random.split(key, 9)
    x = jax.random.normal(ks[0], (N, C, H, W), dtype=jnp.float32)

    conv_params = []
    for i in range(3):
        wt = jax.random.normal(ks[1 + 2 * i], (C, C, 3, 3), dtype=jnp.float32)
        b = 0.1 * jax.random.normal(ks[2 + 2 * i], (C,), dtype=jnp.float32)
        conv_params.append((wt, b))
    wfc = jax.random.normal(ks[7], (OUT, C), dtype=jnp.float32)
    bfc = 0.1 * jax.random.normal(ks[8], (OUT,), dtype=jnp.float32)

    mats, biases = prepare_tostyle_params(
        [(np.asarray(w), np.asarray(b)) for w, b in conv_params],
        (np.asarray(wfc), np.asarray(bfc)), H, W)

    out = tostyle_forward(x, mats, biases, ACTIVATION)
    out = jax.block_until_ready(out)

    ref = tostyle_reference(x, conv_params, (wfc, bfc), ACTIVATION)
    ref = jax.block_until_ready(ref)

    np.testing.assert_allclose(np.asarray(out), np.asarray(ref),
                               rtol=2e-3, atol=2e-3)
    print("KERNEL_OK")
</pallas_src>

<mosaic_0001>
module attributes {stable_mosaic.version = 11 : i64} {
  func.func @_tostyle_kernel(%arg0: i32, %arg1: memref<2x1024xf32, #tpu.memory_space<vmem>>, %arg2: memref<1024x256xf32, #tpu.memory_space<vmem>>, %arg3: memref<1x256xf32, #tpu.memory_space<vmem>>, %arg4: memref<256x64xf32, #tpu.memory_space<vmem>>, %arg5: memref<1x64xf32, #tpu.memory_space<vmem>>, %arg6: memref<64x16xf32, #tpu.memory_space<vmem>>, %arg7: memref<1x16xf32, #tpu.memory_space<vmem>>, %arg8: memref<16x32xf32, #tpu.memory_space<vmem>>, %arg9: memref<1x32xf32, #tpu.memory_space<vmem>>, %arg10: memref<2x32xf32, #tpu.memory_space<vmem>>) attributes {dimension_semantics = [#tpu.dimension_semantics<arbitrary>], iteration_bounds = array<i64: 1>, scalar_prefetch = 0 : i64, scratch_operands = 0 : i64, tpu.core_type = #tpu.core_type<tc>, window_params = [{pipeline_mode = #tpu.pipeline_mode<synchronous>, transform_indices = @transform_0, window_bounds = array<i64: 2, 1024>}, {pipeline_mode = #tpu.pipeline_mode<synchronous>, transform_indices = @transform_1, window_bounds = array<i64: 1024, 256>}, {pipeline_mode = #tpu.pipeline_mode<synchronous>, transform_indices = @transform_2, window_bounds = array<i64: 1, 256>}, {pipeline_mode = #tpu.pipeline_mode<synchronous>, transform_indices = @transform_3, window_bounds = array<i64: 256, 64>}, {pipeline_mode = #tpu.pipeline_mode<synchronous>, transform_indices = @transform_4, window_bounds = array<i64: 1, 64>}, {pipeline_mode = #tpu.pipeline_mode<synchronous>, transform_indices = @transform_5, window_bounds = array<i64: 64, 16>}, {pipeline_mode = #tpu.pipeline_mode<synchronous>, transform_indices = @transform_6, window_bounds = array<i64: 1, 16>}, {pipeline_mode = #tpu.pipeline_mode<synchronous>, transform_indices = @transform_7, window_bounds = array<i64: 16, 32>}, {pipeline_mode = #tpu.pipeline_mode<synchronous>, transform_indices = @transform_8, window_bounds = array<i64: 1, 32>}, {pipeline_mode = #tpu.pipeline_mode<synchronous>, transform_indices = @transform_9, window_bounds = array<i64: 2, 32>}]} {
    %c0 = arith.constant 0 : index
    %c0_0 = arith.constant 0 : index
    %0 = vector.load %arg1[%c0, %c0_0] : memref<2x1024xf32, #tpu.memory_space<vmem>>, vector<2x1024xf32>
    %c0_1 = arith.constant 0 : index
    %c0_2 = arith.constant 0 : index
    %1 = vector.load %arg2[%c0_1, %c0_2] : memref<1024x256xf32, #tpu.memory_space<vmem>>, vector<1024x256xf32>
    %cst = arith.constant dense<0.000000e+00> : vector<2x256xf32>
    %2 = tpu.matmul %0, %1, %cst {dimension_numbers = #tpu.dot_dimension_numbers<[1], [0], [0], [1], [0, 0, 1, 1], [], []>, precision = #tpu.contract_precision<fp32>} : vector<2x1024xf32>, vector<1024x256xf32>, vector<2x256xf32> -> vector<2x256xf32>
    %c0_3 = arith.constant 0 : index
    %c0_4 = arith.constant 0 : index
    %3 = vector.load %arg3[%c0_3, %c0_4] : memref<1x256xf32, #tpu.memory_space<vmem>>, vector<1x256xf32>
    %4 = vector.broadcast %3 : vector<1x256xf32> to vector<2x256xf32>
    %5 = arith.addf %2, %4 : vector<2x256xf32>
    %cst_5 = arith.constant 0.000000e+00 : f32
    %6 = vector.broadcast %cst_5 : f32 to vector<2x256xf32>
    %7 = arith.cmpf oge, %5, %6 : vector<2x256xf32>
    %cst_6 = arith.constant 2.000000e-01 : f32
    %8 = vector.broadcast %cst_6 : f32 to vector<2x256xf32>
    %9 = arith.mulf %8, %5 : vector<2x256xf32>
    %10 = arith.select %7, %5, %9 : vector<2x256xi1>, vector<2x256xf32>
    %cst_7 = arith.constant 1.41421354 : f32
    %11 = vector.broadcast %cst_7 : f32 to vector<2x256xf32>
    %12 = arith.mulf %10, %11 : vector<2x256xf32>
    %c0_8 = arith.constant 0 : index
    %c0_9 = arith.constant 0 : index
    %13 = vector.load %arg4[%c0_8, %c0_9] : memref<256x64xf32, #tpu.memory_space<vmem>>, vector<256x64xf32>
    %cst_10 = arith.constant dense<0.000000e+00> : vector<2x64xf32>
    %14 = tpu.matmul %12, %13, %cst_10 {dimension_numbers = #tpu.dot_dimension_numbers<[1], [0], [0], [1], [0, 0, 1, 1], [], []>, precision = #tpu.contract_precision<fp32>} : vector<2x256xf32>, vector<256x64xf32>, vector<2x64xf32> -> vector<2x64xf32>
    %c0_11 = arith.constant 0 : index
    %c0_12 = arith.constant 0 : index
    %15 = vector.load %arg5[%c0_11, %c0_12] : memref<1x64xf32, #tpu.memory_space<vmem>>, vector<1x64xf32>
    %16 = vector.broadcast %15 : vector<1x64xf32> to vector<2x64xf32>
    %17 = arith.addf %14, %16 : vector<2x64xf32>
    %cst_13 = arith.constant 0.000000e+00 : f32
    %18 = vector.broadcast %cst_13 : f32 to vector<2x64xf32>
    %19 = arith.cmpf oge, %17, %18 : vector<2x64xf32>
    %cst_14 = arith.constant 2.000000e-01 : f32
    %20 = vector.broadcast %cst_14 : f32 to vector<2x64xf32>
    %21 = arith.mulf %20, %17 : vector<2x64xf32>
    %22 = arith.select %19, %17, %21 : vector<2x64xi1>, vector<2x64xf32>
    %cst_15 = arith.constant 1.41421354 : f32
    %23 = vector.broadcast %cst_15 : f32 to vector<2x64xf32>
    %24 = arith.mulf %22, %23 : vector<2x64xf32>
    %c0_16 = arith.constant 0 : index
    %c0_17 = arith.constant 0 : index
    %25 = vector.load %arg6[%c0_16, %c0_17] : memref<64x16xf32, #tpu.memory_space<vmem>>, vector<64x16xf32>
    %cst_18 = arith.constant dense<0.000000e+00> : vector<2x16xf32>
    %26 = tpu.matmul %24, %25, %cst_18 {dimension_numbers = #tpu.dot_dimension_numbers<[1], [0], [0], [1], [0, 0, 1, 1], [], []>, precision = #tpu.contract_precision<fp32>} : vector<2x64xf32>, vector<64x16xf32>, vector<2x16xf32> -> vector<2x16xf32>
    %c0_19 = arith.constant 0 : index
    %c0_20 = arith.constant 0 : index
    %27 = vector.load %arg7[%c0_19, %c0_20] : memref<1x16xf32, #tpu.memory_space<vmem>>, vector<1x16xf32>
    %28 = vector.broadcast %27 : vector<1x16xf32> to vector<2x16xf32>
    %29 = arith.addf %26, %28 : vector<2x16xf32>
    %cst_21 = arith.constant 0.000000e+00 : f32
    %30 = vector.broadcast %cst_21 : f32 to vector<2x16xf32>
    %31 = arith.cmpf oge, %29, %30 : vector<2x16xf32>
    %cst_22 = arith.constant 2.000000e-01 : f32
    %32 = vector.broadcast %cst_22 : f32 to vector<2x16xf32>
    %33 = arith.mulf %32, %29 : vector<2x16xf32>
    %34 = arith.select %31, %29, %33 : vector<2x16xi1>, vector<2x16xf32>
    %cst_23 = arith.constant 1.41421354 : f32
    %35 = vector.broadcast %cst_23 : f32 to vector<2x16xf32>
    %36 = arith.mulf %34, %35 : vector<2x16xf32>
    %c0_24 = arith.constant 0 : index
    %c0_25 = arith.constant 0 : index
    %37 = vector.load %arg8[%c0_24, %c0_25] : memref<16x32xf32, #tpu.memory_space<vmem>>, vector<16x32xf32>
    %cst_26 = arith.constant dense<0.000000e+00> : vector<2x32xf32>
    %38 = tpu.matmul %36, %37, %cst_26 {dimension_numbers = #tpu.dot_dimension_numbers<[1], [0], [0], [1], [0, 0, 1, 1], [], []>, precision = #tpu.contract_precision<fp32>} : vector<2x16xf32>, vector<16x32xf32>, vector<2x32xf32> -> vector<2x32xf32>
    %c0_27 = arith.constant 0 : index
    %c0_28 = arith.constant 0 : index
    %39 = vector.load %arg9[%c0_27, %c0_28] : memref<1x32xf32, #tpu.memory_space<vmem>>, vector<1x32xf32>
    %40 = vector.broadcast %39 : vector<1x32xf32> to vector<2x32xf32>
    %41 = arith.addf %38, %40 : vector<2x32xf32>
    %cst_29 = arith.constant 0.000000e+00 : f32
    %42 = vector.broadcast %cst_29 : f32 to vector<2x32xf32>
    %43 = arith.cmpf oge, %41, %42 : vector<2x32xf32>
    %cst_30 = arith.constant 2.000000e-01 : f32
    %44 = vector.broadcast %cst_30 : f32 to vector<2x32xf32>
    %45 = arith.mulf %44, %41 : vector<2x32xf32>
    %46 = arith.select %43, %41, %45 : vector<2x32xi1>, vector<2x32xf32>
    %cst_31 = arith.constant 1.41421354 : f32
    %47 = vector.broadcast %cst_31 : f32 to vector<2x32xf32>
    %48 = arith.mulf %46, %47 : vector<2x32xf32>
    %c0_32 = arith.constant 0 : index
    %c0_33 = arith.constant 0 : index
    %49 = vector.load %arg10[%c0_32, %c0_33] : memref<2x32xf32, #tpu.memory_space<vmem>>, vector<2x32xf32>
    tpu.vector_store %arg10[%c0_32, %c0_33], %48 {strides = array<i32>} : memref<2x32xf32, #tpu.memory_space<vmem>>, vector<2x32xf32>,
    return
  }
  func.func @transform_0(%arg0: i32) -> (i32, i32) {
    %c0_i32 = arith.constant 0 : i32
    %c0_i32_0 = arith.constant 0 : i32
    %c0_i32_1 = arith.constant 0 : i32
    return %c0_i32, %c0_i32_0 : i32, i32
  }
  func.func @transform_1(%arg0: i32) -> (i32, i32) {
    %c0_i32 = arith.constant 0 : i32
    %c0_i32_0 = arith.constant 0 : i32
    %c0_i32_1 = arith.constant 0 : i32
    return %c0_i32, %c0_i32_0 : i32, i32
  }
  func.func @transform_2(%arg0: i32) -> (i32, i32) {
    %c0_i32 = arith.constant 0 : i32
    %c0_i32_0 = arith.constant 0 : i32
    %c0_i32_1 = arith.constant 0 : i32
    return %c0_i32, %c0_i32_0 : i32, i32
  }
  func.func @transform_3(%arg0: i32) -> (i32, i32) {
    %c0_i32 = arith.constant 0 : i32
    %c0_i32_0 = arith.constant 0 : i32
    %c0_i32_1 = arith.constant 0 : i32
    return %c0_i32, %c0_i32_0 : i32, i32
  }
  func.func @transform_4(%arg0: i32) -> (i32, i32) {
    %c0_i32 = arith.constant 0 : i32
    %c0_i32_0 = arith.constant 0 : i32
    %c0_i32_1 = arith.constant 0 : i32
    return %c0_i32, %c0_i32_0 : i32, i32
  }
  func.func @transform_5(%arg0: i32) -> (i32, i32) {
    %c0_i32 = arith.constant 0 : i32
    %c0_i32_0 = arith.constant 0 : i32
    %c0_i32_1 = arith.constant 0 : i32
    return %c0_i32, %c0_i32_0 : i32, i32
  }
  func.func @transform_6(%arg0: i32) -> (i32, i32) {
    %c0_i32 = arith.constant 0 : i32
    %c0_i32_0 = arith.constant 0 : i32
    %c0_i32_1 = arith.constant 0 : i32
    return %c0_i32, %c0_i32_0 : i32, i32
  }
  func.func @transform_7(%arg0: i32) -> (i32, i32) {
    %c0_i32 = arith.constant 0 : i32
    %c0_i32_0 = arith.constant 0 : i32
    %c0_i32_1 = arith.constant 0 : i32
    return %c0_i32, %c0_i32_0 : i32, i32
  }
  func.func @transform_8(%arg0: i32) -> (i32, i32) {
    %c0_i32 = arith.constant 0 : i32
    %c0_i32_0 = arith.constant 0 : i32
    %c0_i32_1 = arith.constant 0 : i32
    return %c0_i32, %c0_i32_0 : i32, i32
  }
  func.func @transform_9(%arg0: i32) -> (i32, i32) {
    %c0_i32 = arith.constant 0 : i32
    %c0_i32_0 = arith.constant 0 : i32
    %c0_i32_1 = arith.constant 0 : i32
    return %c0_i32, %c0_i32_0 : i32, i32
  }
}

</mosaic_0001>

<bundles_post_ra>
// kernel: tpu_custom_call.1
= control target key start
LH: loop header
LB: loop body
LE: loop exit
PB: predicated region body
PF: predicated region fallthrough
CT: control target
= control target key end

     0   :  { %14 = vsyncpa [#allocation3], 0  ;;  %s15396_s0 = inlined_call_operand.vmem [shape: f32[2,1024], index: 0, kind: input, shape index: {}]   ;;  %s15397_s1 = inlined_call_operand.hbm [shape: f32[1024,256], index: 1, kind: input, shape index: {}]   ;;  %s15398_s2 = inlined_call_operand.vmem [shape: f32[1,256], index: 2, kind: input, shape index: {}]   ;;  %s15399_s3 = inlined_call_operand.vmem [shape: f32[256,64], index: 3, kind: input, shape index: {}]   ;;  %s15400_s4 = inlined_call_operand.vmem [shape: f32[1,64], index: 4, kind: input, shape index: {}]   ;;  %s15401_s5 = inlined_call_operand.vmem [shape: f32[64,16], index: 5, kind: input, shape index: {}]   ;;  %s15402_s6 = inlined_call_operand.vmem [shape: f32[1,16], index: 6, kind: input, shape index: {}]   ;;  %s15403_s7 = inlined_call_operand.vmem [shape: f32[16,32], index: 7, kind: input, shape index: {}]   ;;  %s15404_s8 = inlined_call_operand.vmem [shape: f32[1,32], index: 8, kind: input, shape index: {}]   ;;  %s15405_s9 = inlined_call_operand.hbm [shape: f32[2,32], index: 9, kind: output, shape index: {}]  }
   0x1   :  { %15 = vsyncpa [#allocation4], 0  ;;  %s9852_s30 = smov [#allocation2]   ;;  %s9804_s13 = scalar_lea.hbm %s15397_s1, 32768 }
   0x2   :  { %s23_s10 = sshll.u32 %s9852_s30, 4  ;;  %p9805_p0 = scmp.ne.s32.totalorder %s15397_s1, %s9804_s13  ;;  %s24_s10 = int_to_ptr.vmem [resolvable:$true] %s23_s10 }
   0x3   :  { %p9808_p1 = scmp.lt.u32.totalorder %s9804_s13, %s15397_s1 }
   0x5   :  { %p9810_p2 = pnand %p9808_p1, %p9805_p0 }
   0x7   :  { %9813 = shalt.err (!%p9810_p2)
}
   0x8   :  { %s9814_s18 = scalar_lea.vmem %s24_s10, 32768  ;;  %p9819_p4 = scmp.lt.s32.totalorder %s24_s10, %s24_s10 }
   0x9   :  { %p9815_p3 = scmp.ne.s32.totalorder %s24_s10, %s9814_s18  ;;  %p9820_p5 = scmp.lt.s32.totalorder %s9814_s18, %s9814_s18 }
   0xb   :  { %p9821_p6 = por %p9820_p5, %p9819_p4 }
   0xd   :  { %p9822_p7 = pnand %p9821_p6, %p9815_p3 }
   0xf   :  { %9825 = shalt.err (!%p9822_p7)
}
  0x10   :  { %s9853_s19 = smov 256   ;;  %s9854_s20 = smov 16  }
  0x11   :  { %29 = dma.hbm_to_vmem [thread:$0]  %s15397_s1, 32768, %s24_s10, [#allocation3], %s9853_s19, %s9853_s19, %s9854_s20  }
  0x12   :  { %9848 = dma.done.wait [#allocation3], 32768  }
  0x13   :  { %9849 = vsyncadd [#allocation3], 4294934528  ;;  %v50_v0 = vld [vmem:[#allocation2 + $0x8] sm:$0xff]  ;;  %v52_v1 = vld [vmem:[#allocation2 + $0x18] sm:$0xff]  ;;  %vm9857_vm2 = vmmov 0   ;;  %vm6425_vm4 = vcmask 523264  }
  0x14   :  { %v49_v2 = vld [vmem:[#allocation2] sm:$0xff]  ;;  %v361_v3 = vand.u32 4294901760, %v50_v0  ;;  %v365_v4 = vand.u32 4294901760, %v52_v1  ;;  %v51_v5 = vld [vmem:[#allocation2 + $0x10] sm:$0xff]  ;;  %v54_v7 = vld [vmem:[#allocation2 + $0x28] sm:$0xff]  ;;  %vm6979_vm6 = vcmask 130048  }
  0x15   :  { %v363_v6 = vand.u32 4294901760, %v49_v2  ;;  %v56_v8 = vld [vmem:[#allocation2 + $0x38] sm:$0xff]  ;;  %v367_v9 = vand.u32 4294901760, %v51_v5  ;;  %v369_v10 = vand.u32 4294901760, %v54_v7  ;;  %v9922_v12 = vld [vmem:[#allocation2 + $0x208] sm:$0xff]  ;;  %v53_v14 = vld [vmem:[#allocation2 + $0x20] sm:$0xff] }
  0x16   :  { %v373_v11 = vand.u32 4294901760, %v56_v8  ;;  %v9924_v13 = vld [vmem:[#allocation2 + $0x218] sm:$0xff]  ;;  %v9926_v15 = vpack.c.bf16 %v365_v4, %v361_v3  ;;  %v9928_v16 = vsub.f32 %v50_v0, %v361_v3  ;;  %v9930_v17 = vsub.f32 %v52_v1, %v365_v4  ;;  %v55_v19 = vld [vmem:[#allocation2 + $0x30] sm:$0xff]  ;;  %v9934_v20 = vld [vmem:[#allocation2 + $0x200] sm:$0xff]  ;;  %s9859_s1 = smov [#allocation5]  }
  0x17   :  { %v9932_v18 = vsub.f32 %v49_v2, %v363_v6  ;;  %v9936_v21 = vld [vmem:[#allocation2 + $0x210] sm:$0xff]  ;;  %v9938_v22 = vpack.c.bf16 %v367_v9, %v363_v6  ;;  %v9940_v23 = vsub.f32 %v51_v5, %v367_v9  ;;  %v9944_v25 = vsub.f32 %v54_v7, %v369_v10  ;;  %v58_v26 = vld [vmem:[#allocation2 + $0x48] sm:$0xff]  ;;  %v60_v27 = vld [vmem:[#allocation2 + $0x58] sm:$0xff] }
  0x18   :  { %16471 = vst [vmem:[#allocation8_spill] sm:$0xff] %v9926_v15  ;;  %16472 = vst [vmem:[#allocation9_spill] sm:$0xff] %v9928_v16  ;;  %v9942_v24 = vpack.c.bf16 %v373_v11, %v369_v10  ;;  %7905 = vmatprep.subr.bf16.mxu1 %v9926_v15  ;;  %v9947_v28 = vsub.f32 %v56_v8, %v373_v11  ;;  %v15424_v29 = vand.u32 4294901760, %v9922_v12  ;;  %v15423_v30 = vand.u32 4294901760, %v9924_v13  ;;  %v9967_v40 = vld [vmem:[#allocation2 + $0x228] sm:$0xff]  ;;  %v9983_v45 = vld [vmem:[#allocation2 + $0x238] sm:$0xff] }
  0x19   :  { %16473 = vst [vmem:[#allocation10_spill] sm:$0xff] %v9930_v17  ;;  %16474 = vst [vmem:[#allocation11_spill] sm:$0xff] %v9932_v18  ;;  %v371_v31 = vand.u32 4294901760, %v53_v14  ;;  %7907 = vmatpush1.bf16.msra.mxu1 %v9938_v22  ;;  %v375_v32 = vand.u32 4294901760, %v55_v19  ;;  %v15419_v33 = vand.u32 4294901760, %v9934_v20  ;;  %v15418_v34 = vand.u32 4294901760, %v9936_v21 }
  0x1a   :  { %16475 = vst [vmem:[#allocation12_spill] sm:$0xff] %v9938_v22  ;;  %16476 = vst [vmem:[#allocation13_spill] sm:$0xff] %v9940_v23  ;;  %v377_v35 = vand.u32 4294901760, %v58_v26  ;;  %7909 = vmatprep.subr.bf16.mxu1 %v9942_v24  ;;  %v9958_v36 = vsub.f32 %v9922_v12, %v15424_v29  ;;  %v9963_v37 = vsub.f32 %v9924_v13, %v15423_v30  ;;  %v381_v39 = vand.u32 4294901760, %v60_v27  ;;  %v57_v54 = vld [vmem:[#allocation2 + $0x40] sm:$0xff]  ;;  %v59_v57 = vld [vmem:[#allocation2 + $0x50] sm:$0xff] }
  0x1b   :  { %16477 = vst [vmem:[#allocation14_spill] sm:$0xff] %v9942_v24  ;;  %16478 = vst [vmem:[#allocation15_spill] sm:$0xff] %v9944_v25  ;;  %v9965_v38 = vsub.f32 %v53_v14, %v371_v31  ;;  %v9969_v41 = vpack.c.bf16 %v375_v32, %v371_v31  ;;  %v9971_v42 = vsub.f32 %v55_v19, %v375_v32  ;;  %v15417_v53 = vand.u32 4294901760, %v9967_v40  ;;  %v10012_v60 = vld [vmem:[#allocation2 + $0x220] sm:$0xff]  ;;  %v10014_v61 = vld [vmem:[#allocation2 + $0x230] sm:$0xff] }
  0x1c   :  { %16479 = vst [vmem:[#allocation16_spill] sm:$0xff] %v9947_v28  ;;  %16480 = vst [vmem:[#allocation17_spill] sm:$0xff] %v9958_v36  ;;  %v9976_v43 = vsub.f32 %v9934_v20, %v15419_v33  ;;  %v9981_v44 = vsub.f32 %v9936_v21, %v15418_v34  ;;  %v15411_v46 = vand.u32 4294901760, %v9958_v36  ;;  %v15410_v47 = vand.u32 4294901760, %v9963_v37  ;;  %v62_v0 = vld [vmem:[#allocation2 + $0x68] sm:$0xff]  ;;  %v64_v1 = vld [vmem:[#allocation2 + $0x78] sm:$0xff] }
  0x1d   :  { %16481 = vst [vmem:[#allocation18_spill] sm:$0xff] %v9963_v37  ;;  %16482 = vst [vmem:[#allocation19_spill] sm:$0xff] %v9965_v38  ;;  %v9987_v48 = vpack.c.bf16 %v381_v39, %v377_v35  ;;  %v9989_v49 = vsub.f32 %v58_v26, %v377_v35  ;;  %7911 = vmatpush1.bf16.msra.mxu1 %v9969_v41  ;;  %v9994_v52 = vsub.f32 %v60_v27, %v381_v39  ;;  %v10022_v4 = vld [vmem:[#allocation2 + $0x248] sm:$0xff]  ;;  %v10029_v9 = vld [vmem:[#allocation2 + $0x258] sm:$0xff]  ;;  %vm7446_vm8 = vcmask 254976  }
  0x1e   :  { %16483 = vst [vmem:[#allocation20_spill] sm:$0xff] %v9969_v41  ;;  %16484 = vst [vmem:[#allocation21_spill] sm:$0xff] %v9971_v42  ;;  %v15409_v50 = vand.u32 4294901760, %v9976_v43  ;;  %v15408_v51 = vand.u32 4294901760, %v9981_v44  ;;  %v8544_v55 = vpack.c.bf16 %v15410_v47, %v15411_v46  ;;  %v15416_v56 = vand.u32 4294901760, %v9983_v45  ;;  %v61_v26 = vld [vmem:[#allocation2 + $0x60] sm:$0xff] }
  0x1f   :  { %16485 = vst [vmem:[#allocation22_spill] sm:$0xff] %v9976_v43  ;;  %16486 = vst [vmem:[#allocation23_spill] sm:$0xff] %v9981_v44  ;;  %7913 = vmatprep.subr.bf16.mxu1 %v9987_v48  ;;  %v10010_v59 = vsub.f32 %v9967_v40, %v15417_v53  ;;  %v379_v63 = vand.u32 4294901760, %v57_v54  ;;  %v383_v3 = vand.u32 4294901760, %v59_v57  ;;  %v15414_v7 = vand.u32 4294901760, %v10012_v60  ;;  %v63_v39 = vld [vmem:[#allocation2 + $0x70] sm:$0xff] }
  0x20   :  { %16487 = vst [vmem:[#allocation24_spill] sm:$0xff] %v9987_v48  ;;  %16488 = vst [vmem:[#allocation25_spill] sm:$0xff] %v9989_v49  ;;  %v8546_v58 = vpack.c.bf16 %v15408_v51, %v15409_v50  ;;  %8545 = vmatprep.subr.bf16.mxu0 %v8544_v55  ;;  %v10019_v62 = vsub.f32 %v9983_v45, %v15416_v56  ;;  %v15413_v8 = vand.u32 4294901760, %v10014_v61  ;;  %v385_v14 = vand.u32 4294901760, %v62_v0  ;;  %v10052_v55 = vld [vmem:[#allocation2 + $0x250] sm:$0xff]  ;;  %v66_v46 = vld [vmem:[#allocation2 + $0x88] sm:$0xff] }
  0x21   :  { %16489 = vst [vmem:[#allocation26_spill] sm:$0xff] %v9994_v52  ;;  %16490 = vst [vmem:[#allocation27_spill] sm:$0xff] %v10010_v59  ;;  %v15407_v2 = vand.u32 4294901760, %v10010_v59  ;;  %v10025_v6 = vsub.f32 %v57_v54, %v379_v63  ;;  %v10031_v10 = vpack.c.bf16 %v383_v3, %v379_v63  ;;  %v10033_v11 = vsub.f32 %v59_v57, %v383_v3  ;;  %v10050_v54 = vld [vmem:[#allocation2 + $0x240] sm:$0xff]  ;;  %v10091_v34 = vld [vmem:[#allocation2 + $0x278] sm:$0xff] }
  0x22   :  { %16491 = vst [vmem:[#allocation28_spill] sm:$0xff] %v10019_v62  ;;  %8547 = vmatpush1.bf16.msra.mxu0 %v8546_v58  ;;  %v15406_v5 = vand.u32 4294901760, %v10019_v62  ;;  %v389_v19 = vand.u32 4294901760, %v64_v1  ;;  %v10042_v31 = vsub.f32 %v10012_v60, %v15414_v7  ;;  %v10047_v32 = vsub.f32 %v10014_v61, %v15413_v8  ;;  %v10082_v8 = vld [vmem:[#allocation2 + $0x268] sm:$0xff]  ;;  %v65_v33 = vld [vmem:[#allocation2 + $0x80] sm:$0xff]  ;;  %v67_v29 = vld [vmem:[#allocation2 + $0x90] sm:$0xff] }
  0x23   :  { %16492 = vst [vmem:[#allocation29_spill] sm:$0xff] %v10025_v6  ;;  %16493 = vst [vmem:[#allocation30_spill] sm:$0xff] %v10031_v10  ;;  %v15412_v35 = vand.u32 4294901760, %v10022_v4  ;;  %7915 = vmatpush1.bf16.msra.mxu1 %v10031_v10  ;;  %v10057_v58 = vsub.f32 %v62_v0, %v385_v14  ;;  %v15415_v3 = vand.u32 4294901760, %v10029_v9  ;;  %v387_v50 = vand.u32 4294901760, %v61_v26  ;;  %v10112_v62 = vld [vmem:[#allocation2 + $0x260] sm:$0xff] }
  0x24   :  { %16494 = vst [vmem:[#allocation31_spill] sm:$0xff] %v10033_v11  ;;  %v8548_v27 = vpack.c.bf16 %v15406_v5, %v15407_v2  ;;  %16495 = vst [vmem:[#allocation32_spill] sm:$0xff] %v10042_v31  ;;  %v10055_v57 = vpack.c.bf16 %v389_v19, %v385_v14  ;;  %v10059_v63 = vsub.f32 %v64_v1, %v389_v19  ;;  %v15421_v5 = vand.u32 4294901760, %v10042_v31  ;;  %v72_v31 = vld [vmem:[#allocation2 + $0xb8] sm:$0xff] }
  0x25   :  { %16496 = vst [vmem:[#allocation33_spill] sm:$0xff] %v10047_v32  ;;  %16498 = vst [vmem:[#allocation35_spill] sm:$0xff] %v10057_v58  ;;  %v15420_v2 = vand.u32 4294901760, %v10047_v32  ;;  %v10067_v51 = vsub.f32 %v10022_v4, %v15412_v35  ;;  %v10073_v0 = vsub.f32 %v10029_v9, %v15415_v3  ;;  %v391_v1 = vand.u32 4294901760, %v63_v39  ;;  %v68_v35 = vld [vmem:[#allocation2 + $0x98] sm:$0xff] }
  0x26   :  { %16497 = vst [vmem:[#allocation34_spill] sm:$0xff] %v10055_v57  ;;  %16499 = vst [vmem:[#allocation36_spill] sm:$0xff] %v10059_v63  ;;  %8549 = vmatprep.subr.bf16.mxu0 %v8548_v27  ;;  %7917 = vmatprep.subr.bf16.mxu1 %v10055_v57  ;;  %v15422_v14 = vand.u32 4294901760, %v10050_v54  ;;  %v15425_v19 = vand.u32 4294901760, %v10052_v55  ;;  %v10087_v56 = vsub.f32 %v61_v26, %v387_v50  ;;  %v393_v26 = vand.u32 4294901760, %v66_v46  ;;  %v76_v48 = vld [vmem:[#allocation2 + $0xd8] sm:$0xff] }
  0x27   :  { %16500 = vst [vmem:[#allocation37_spill] sm:$0xff] %v10067_v51  ;;  %16501 = vst [vmem:[#allocation38_spill] sm:$0xff] %v10073_v0  ;;  %v8550_v27 = vpack.c.bf16 %v15420_v2, %v15421_v5  ;;  %v15431_v47 = vand.u32 4294901760, %v10067_v51  ;;  %v15430_v7 = vand.u32 4294901760, %v10073_v0  ;;  %v10085_v3 = vpack.c.bf16 %v391_v1, %v387_v50  ;;  %v10201_v41 = vld [vmem:[#allocation2 + $0x2b8] sm:$0xff] }
  0x28   :  { %16503 = vst [vmem:[#allocation40_spill] sm:$0xff] %v10087_v56  ;;  %v10089_v53 = vsub.f32 %v63_v39, %v391_v1  ;;  %v10096_v2 = vsub.f32 %v10050_v54, %v15422_v14  ;;  %v10101_v5 = vsub.f32 %v10052_v55, %v15425_v19  ;;  %v397_v39 = vand.u32 4294901760, %v68_v35  ;;  %16531 = vst [vmem:[#allocation63_spill] sm:$0xff] %v10201_v41 }
  0x29   :  { %16502 = vst [vmem:[#allocation39_spill] sm:$0xff] %v10085_v3  ;;  %8551 = vmatpush1.bf16.msra.mxu0 %v8550_v27  ;;  %v8552_v50 = vpack.c.bf16 %v15430_v7, %v15431_v47  ;;  %7919 = vmatpush1.bf16.msra.mxu1 %v10085_v3  ;;  %v15438_v1 = vand.u32 4294901760, %v10082_v8  ;;  %v395_v19 = vand.u32 4294901760, %v65_v33  ;;  %v10116_v7 = vsub.f32 %v66_v46, %v393_v26  ;;  %v10125_v27 = vld [vmem:[#allocation2 + $0x270] sm:$0xff]  ;;  %v70_v46 = vld [vmem:[#allocation2 + $0xa8] sm:$0xff] }
  0x2a   :  { %16504 = vst [vmem:[#allocation41_spill] sm:$0xff] %v10089_v53  ;;  %16505 = vst [vmem:[#allocation42_spill] sm:$0xff] %v10096_v2  ;;  %v15443_v14 = vand.u32 4294901760, %v10101_v5  ;;  %v10114_v51 = vpack.c.bf16 %v397_v39, %v393_v26  ;;  %v10118_v47 = vsub.f32 %v68_v35, %v397_v39  ;;  %v16511_v30 = vand.u32 4294901760, %v10096_v2  ;;  %v10141_v2 = vld [vmem:[#allocation2 + $0x288] sm:$0xff] }
  0x2b   :  { %16506 = vst [vmem:[#allocation43_spill] sm:$0xff] %v10101_v5  ;;  %8553 = vmatprep.subr.bf16.mxu0 %v8552_v50  ;;  %16508 = vst [vmem:[#allocation45_spill] sm:$0xff] %v10116_v7  ;;  %v10123_v0 = vsub.f32 %v10082_v8, %v15438_v1  ;;  %v16512_v50 = vand.u32 4294901760, %v10091_v34  ;;  %v399_v26 = vand.u32 4294901760, %v67_v29  ;;  %v10138_v39 = vsub.f32 %v65_v33, %v395_v19  ;;  %v69_v5 = vld [vmem:[#allocation2 + $0xa0] sm:$0xff] }
  0x2c   :  { %16507 = vst [vmem:[#allocation44_spill] sm:$0xff] %v10114_v51  ;;  %16509 = vst [vmem:[#allocation46_spill] sm:$0xff] %v10118_v47  ;;  %v8554_v59 = vpack.c.bf16 %v15443_v14, %v16511_v30  ;;  %7921 = vmatprep.subr.bf16.mxu1 %v10114_v51  ;;  %v15454_v1 = vand.u32 4294901760, %v10112_v62  ;;  %v15464_v14 = vand.u32 4294901760, %v10125_v27  ;;  %v401_v35 = vand.u32 4294901760, %v70_v46 }
  0x2d   :  { %16510 = vst [vmem:[#allocation47_spill] sm:$0xff] %v10123_v0  ;;  %v10134_v32 = vsub.f32 %v10091_v34, %v16512_v50  ;;  %16514 = vst [vmem:[#allocation49_spill] sm:$0xff] %v10138_v39  ;;  %v10145_v50 = vld [vmem:[#allocation2 + $0x298] sm:$0xff]  ;;  %v10147_v44 = vpack.c.bf16 %v399_v26, %v395_v19  ;;  %v10149_v43 = vsub.f32 %v67_v29, %v399_v26  ;;  %v16518_v37 = vand.u32 4294901760, %v10123_v0  ;;  %v71_v26 = vld [vmem:[#allocation2 + $0xb0] sm:$0xff] }
  0x2e   :  { %8555 = vmatpush1.bf16.msra.mxu0 %v8554_v59  ;;  %v10154_v33 = vsub.f32 %v10112_v62, %v15454_v1  ;;  %v10163_v36 = vsub.f32 %v10125_v27, %v15464_v14  ;;  %v405_v19 = vand.u32 4294901760, %v72_v31  ;;  %v15469_v29 = vand.u32 4294901760, %v10141_v2 }
  0x2f   :  { %16513 = vst [vmem:[#allocation48_spill] sm:$0xff] %v10134_v32  ;;  %v15463_v30 = vand.u32 4294901760, %v10134_v32  ;;  %16515 = vst [vmem:[#allocation50_spill] sm:$0xff] %v10147_v44  ;;  %7923 = vmatpush1.bf16.msra.mxu1 %v10147_v44  ;;  %v10168_v51 = vsub.f32 %v70_v46, %v401_v35  ;;  %v15474_v0 = vand.u32 4294901760, %v10145_v50  ;;  %v403_v3 = vand.u32 4294901760, %v69_v5  ;;  %v10171_v32 = vld [vmem:[#allocation2 + $0x280] sm:$0xff] }
  0x30   :  { %16516 = vst [vmem:[#allocation51_spill] sm:$0xff] %v10149_v43  ;;  %16517 = vst [vmem:[#allocation52_spill] sm:$0xff] %v10154_v33  ;;  %v10176_v14 = vsub.f32 %v72_v31, %v405_v19  ;;  %v10181_v44 = vsub.f32 %v10141_v2, %v15469_v29  ;;  %v407_v1 = vand.u32 4294901760, %v71_v26  ;;  %v16529_v31 = vand.u32 4294901760, %v10163_v36 }
  0x31   :  { %v8556_v59 = vpack.c.bf16 %v15463_v30, %v16518_v37  ;;  %16519 = vst [vmem:[#allocation53_spill] sm:$0xff] %v10163_v36  ;;  %16520 = vst [vmem:[#allocation54_spill] sm:$0xff] %v10168_v51  ;;  %v10174_v30 = vpack.c.bf16 %v405_v19, %v401_v35  ;;  %v10186_v46 = vsub.f32 %v10145_v50, %v15474_v0  ;;  %v74_v37 = vld [vmem:[#allocation2 + $0xc8] sm:$0xff]  ;;  %v16528_v35 = vand.u32 4294901760, %v10154_v33  ;;  %v73_v33 = vld [vmem:[#allocation2 + $0xc0] sm:$0xff] }
  0x32   :  { %16521 = vst [vmem:[#allocation55_spill] sm:$0xff] %v10171_v32  ;;  %16523 = vst [vmem:[#allocation57_spill] sm:$0xff] %v10176_v14  ;;  %v10188_v57 = vsub.f32 %v69_v5, %v403_v3  ;;  %v15489_v10 = vand.u32 4294901760, %v10171_v32  ;;  %v10199_v0 = vld [vmem:[#allocation2 + $0x2a8] sm:$0xff]  ;;  %v10204_v24 = vpack.c.bf16 %v407_v1, %v403_v3  ;;  %v10206_v22 = vsub.f32 %v71_v26, %v407_v1 }
  0x33   :  { %8557 = vmatprep.subr.bf16.mxu0 %v8556_v59  ;;  %16522 = vst [vmem:[#allocation56_spill] sm:$0xff] %v10174_v30  ;;  %16524 = vst [vmem:[#allocation58_spill] sm:$0xff] %v10181_v44  ;;  %v10190_v59 = vld [vmem:[#allocation2 + $0x290] sm:$0xff]  ;;  %v8558_v19 = vpack.c.bf16 %v16529_v31, %v16528_v35  ;;  %7925 = vmatprep.subr.bf16.mxu1 %v10174_v30  ;;  %v15495_v5 = vand.u32 4294901760, %v10186_v46  ;;  %v409_v29 = vand.u32 4294901760, %v74_v37  ;;  %v16535_v36 = vand.u32 4294901760, %v10181_v44 }
  0x34   :  { %16525 = vst [vmem:[#allocation59_spill] sm:$0xff] %v10186_v46  ;;  %16526 = vst [vmem:[#allocation60_spill] sm:$0xff] %v10188_v57  ;;  %v10212_v31 = vsub.f32 %v10171_v32, %v15489_v10  ;;  %7927 = vmatpush1.bf16.msra.mxu1 %v10204_v24  ;;  %v413_v3 = vand.u32 4294901760, %v76_v48  ;;  %v16536_v15 = vand.u32 4294901760, %v10190_v59  ;;  %v411_v44 = vand.u32 4294901760, %v73_v33  ;;  %v10229_v46 = vld [vmem:[#allocation2 + $0x2a0] sm:$0xff] }
  0x35   :  { %16527 = vst [vmem:[#allocation61_spill] sm:$0xff] %v10190_v59  ;;  %16530 = vst [vmem:[#allocation62_spill] sm:$0xff] %v10199_v0  ;;  %8559 = vmatpush1.bf16.msra.mxu0 %v8558_v19  ;;  %v8560_v30 = vpack.c.bf16 %v15495_v5, %v16535_v36  ;;  %v75_v19 = vld [vmem:[#allocation2 + $0xd0] sm:$0xff]  ;;  %v10227_v32 = vsub.f32 %v74_v37, %v409_v29  ;;  %v16543_v26 = vand.u32 4294901760, %v10199_v0 }
  0x36   :  { %16532 = vst [vmem:[#allocation64_spill] sm:$0xff] %v10204_v24  ;;  %16533 = vst [vmem:[#allocation65_spill] sm:$0xff] %v10206_v22  ;;  %v10225_v10 = vsub.f32 %v10190_v59, %v16536_v15  ;;  %v10231_v36 = vld [vmem:[#allocation2 + $0x2b0] sm:$0xff]  ;;  %v10233_v5 = vpack.c.bf16 %v413_v3, %v409_v29  ;;  %v10235_v1 = vsub.f32 %v76_v48, %v413_v3  ;;  %v16545_v15 = vand.u32 4294901760, %v10201_v41 }
  0x37   :  { %16534 = vst [vmem:[#allocation66_spill] sm:$0xff] %v10212_v31  ;;  %16538 = vst [vmem:[#allocation68_spill] sm:$0xff] %v10227_v32  ;;  %8561 = vmatprep.subr.bf16.mxu0 %v8560_v30  ;;  %v10240_v35 = vsub.f32 %v10199_v0, %v16543_v26  ;;  %v415_v32 = vand.u32 4294901760, %v75_v19  ;;  %v10248_v59 = vsub.f32 %v73_v33, %v411_v44  ;;  %v78_v30 = vld [vmem:[#allocation2 + $0xe8] sm:$0xff]  ;;  %v80_v0 = vld [vmem:[#allocation2 + $0xf8] sm:$0xff]  ;;  %v16553_v26 = vand.u32 4294901760, %v10229_v46 }
  0x38   :  { %16537 = vst [vmem:[#allocation67_spill] sm:$0xff] %v10225_v10  ;;  %16539 = vst [vmem:[#allocation69_spill] sm:$0xff] %v10229_v46  ;;  %v10245_v37 = vsub.f32 %v10201_v41, %v16545_v15  ;;  %v15510_v24 = vand.u32 4294901760, %v10225_v10  ;;  %7929 = vmatprep.subr.bf16.mxu1 %v10233_v5  ;;  %v16549_v15 = vand.u32 4294901760, %v10212_v31  ;;  %v10263_v41 = vld [vmem:[#allocation2 + $0x2d8] sm:$0xff]  ;;  %v16555_v10 = vand.u32 4294901760, %v10231_v36 }
  0x39   :  { %16540 = vst [vmem:[#allocation70_spill] sm:$0xff] %v10231_v36  ;;  %16541 = vst [vmem:[#allocation71_spill] sm:$0xff] %v10233_v5  ;;  %v15514_v48 = vand.u32 4294901760, %v10240_v35  ;;  %v77_v5 = vld [vmem:[#allocation2 + $0xe0] sm:$0xff]  ;;  %v10269_v22 = vsub.f32 %v75_v19, %v415_v32  ;;  %v10274_v57 = vsub.f32 %v10229_v46, %v16553_v26 }
  0x3a   :  { %16542 = vst [vmem:[#allocation72_spill] sm:$0xff] %v10235_v1  ;;  %16544 = vst [vmem:[#allocation73_spill] sm:$0xff] %v10240_v35  ;;  %v15513_v29 = vand.u32 4294901760, %v10245_v37  ;;  %v10255_v1 = vld [vmem:[#allocation2 + $0x2c8] sm:$0xff]  ;;  %v8562_v33 = vpack.c.bf16 %v15510_v24, %v16549_v15  ;;  %v417_v15 = vand.u32 4294901760, %v78_v30  ;;  %v421_v24 = vand.u32 4294901760, %v80_v0 }
  0x3b   :  { %16546 = vst [vmem:[#allocation74_spill] sm:$0xff] %v10245_v37  ;;  %16547 = vst [vmem:[#allocation75_spill] sm:$0xff] %v10248_v59  ;;  %v10261_v59 = vpack.c.bf16 %v415_v32, %v411_v44  ;;  %v10279_v44 = vsub.f32 %v10231_v36, %v16555_v10  ;;  %v15523_v37 = vand.u32 4294901760, %v10255_v1  ;;  %v10286_v35 = vld [vmem:[#allocation2 + $0x2c0] sm:$0xff]  ;;  %v10299_v32 = vld [vmem:[#allocation2 + $0x2d0] sm:$0xff]  ;;  %v16563_v19 = vand.u32 4294901760, %v10274_v57 }
  0x3c   :  { %16548 = vst [vmem:[#allocation76_spill] sm:$0xff] %v10255_v1  ;;  %16551 = vst [vmem:[#allocation78_spill] sm:$0xff] %v10263_v41  ;;  %v8564_v3 = vpack.c.bf16 %v15513_v29, %v15514_v48  ;;  %8563 = vmatpush1.bf16.msra.mxu0 %v8562_v33  ;;  %v79_v29 = vld [vmem:[#allocation2 + $0xf0] sm:$0xff]  ;;  %v419_v48 = vand.u32 4294901760, %v77_v5  ;;  %v10288_v10 = vpack.c.bf16 %v421_v24, %v417_v15  ;;  %v16565_v36 = vand.u32 4294901760, %v10263_v41 }
  0x3d   :  { %16550 = vst [vmem:[#allocation77_spill] sm:$0xff] %v10261_v59  ;;  %16552 = vst [vmem:[#allocation79_spill] sm:$0xff] %v10269_v22  ;;  %7931 = vmatpush1.bf16.msra.mxu1 %v10261_v59  ;;  %v10290_v33 = vsub.f32 %v78_v30, %v417_v15  ;;  %v10292_v31 = vsub.f32 %v80_v0, %v421_v24  ;;  %v16564_v26 = vand.u32 4294901760, %v10279_v44  ;;  %v82_v30 = vld [vmem:[#allocation2 + $0x108] sm:$0xff]  ;;  %v423_v0 = vand.u32 4294901760, %v79_v29 }
  0x3e   :  { %16554 = vst [vmem:[#allocation80_spill] sm:$0xff] %v10274_v57  ;;  %16556 = vst [vmem:[#allocation81_spill] sm:$0xff] %v10279_v44  ;;  %8565 = vmatprep.subr.bf16.mxu0 %v8564_v3  ;;  %v10297_v3 = vsub.f32 %v10255_v1, %v15523_v37  ;;  %v10308_v46 = vsub.f32 %v10263_v41, %v16565_v36  ;;  %7933 = vmatprep.subr.bf16.mxu1 %v10288_v10  ;;  %v15534_v37 = vand.u32 4294901760, %v10286_v35  ;;  %v84_v1 = vld [vmem:[#allocation2 + $0x118] sm:$0xff]  ;;  %v10315_v57 = vld [vmem:[#allocation2 + $0x2e8] sm:$0xff] }
  0x3f   :  { %16557 = vst [vmem:[#allocation82_spill] sm:$0xff] %v10286_v35  ;;  %16558 = vst [vmem:[#allocation83_spill] sm:$0xff] %v10288_v10  ;;  %v8566_v59 = vpack.c.bf16 %v16564_v26, %v16563_v19  ;;  %v10312_v15 = vsub.f32 %v77_v5, %v419_v48  ;;  %v15542_v26 = vand.u32 4294901760, %v10299_v32  ;;  %v10319_v36 = vld [vmem:[#allocation2 + $0x2f8] sm:$0xff]  ;;  %v81_v44 = vld [vmem:[#allocation2 + $0x100] sm:$0xff]  ;;  %v10321_v41 = vpack.c.bf16 %v423_v0, %v419_v48 }
  0x40   :  { %16559 = vst [vmem:[#allocation84_spill] sm:$0xff] %v10290_v33  ;;  %16560 = vst [vmem:[#allocation85_spill] sm:$0xff] %v10292_v31  ;;  %v15541_v19 = vand.u32 4294901760, %v10308_v46  ;;  %v10323_v10 = vsub.f32 %v79_v29, %v423_v0  ;;  %v10328_v5 = vsub.f32 %v10286_v35, %v15534_v37  ;;  %v425_v24 = vand.u32 4294901760, %v82_v30  ;;  %v83_v0 = vld [vmem:[#allocation2 + $0x110] sm:$0xff] }
  0x41   :  { %16561 = vst [vmem:[#allocation86_spill] sm:$0xff] %v10297_v3  ;;  %16562 = vst [vmem:[#allocation87_spill] sm:$0xff] %v10299_v32  ;;  %8567 = vmatpush1.bf16.msra.mxu0 %v8566_v59  ;;  %v10337_v31 = vsub.f32 %v10299_v32, %v15542_v26  ;;  %v429_v48 = vand.u32 4294901760, %v84_v1  ;;  %v15546_v29 = vand.u32 4294901760, %v10315_v57  ;;  %7935 = vmatpush1.bf16.msra.mxu1 %v10321_v41  ;;  %v431_v37 = vand.u32 4294901760, %v83_v0 }
  0x42   :  { %16566 = vst [vmem:[#allocation88_spill] sm:$0xff] %v10308_v46  ;;  %16567 = vst [vmem:[#allocation89_spill] sm:$0xff] %v10312_v15  ;;  %v16573_v15 = vand.u32 4294901760, %v10297_v3  ;;  %v10342_v35 = vsub.f32 %v82_v30, %v425_v24  ;;  %v15549_v3 = vand.u32 4294901760, %v10319_v36  ;;  %v10345_v46 = vld [vmem:[#allocation2 + $0x2e0] sm:$0xff] }
  0x43   :  { %16568 = vst [vmem:[#allocation90_spill] sm:$0xff] %v10315_v57  ;;  %16569 = vst [vmem:[#allocation91_spill] sm:$0xff] %v10319_v36  ;;  %v10350_v26 = vsub.f32 %v84_v1, %v429_v48  ;;  %v16584_v1 = vand.u32 4294901760, %v10337_v31  ;;  %v10380_v32 = vsub.f32 %v83_v0, %v431_v37 }
  0x44   :  { %16570 = vst [vmem:[#allocation92_spill] sm:$0xff] %v10321_v41  ;;  %16571 = vst [vmem:[#allocation93_spill] sm:$0xff] %v10323_v10  ;;  %v8568_v59 = vpack.c.bf16 %v15541_v19, %v16573_v15  ;;  %v427_v10 = vand.u32 4294901760, %v81_v44  ;;  %v10348_v19 = vpack.c.bf16 %v429_v48, %v425_v24  ;;  %v10355_v41 = vsub.f32 %v10315_v57, %v15546_v29  ;;  %v86_v15 = vld [vmem:[#allocation2 + $0x128] sm:$0xff] }
  0x45   :  { %16572 = vst [vmem:[#allocation94_spill] sm:$0xff] %v10328_v5  ;;  %16574 = vst [vmem:[#allocation95_spill] sm:$0xff] %v10337_v31  ;;  %v10360_v30 = vsub.f32 %v10319_v36, %v15549_v3  ;;  %v16583_v24 = vand.u32 4294901760, %v10328_v5  ;;  %v15560_v57 = vand.u32 4294901760, %v10345_v46  ;;  %v10373_v3 = vld [vmem:[#allocation2 + $0x308] sm:$0xff]  ;;  %v10375_v36 = vld [vmem:[#allocation2 + $0x318] sm:$0xff] }
  0x46   :  { %16575 = vst [vmem:[#allocation96_spill] sm:$0xff] %v10342_v35  ;;  %16576 = vst [vmem:[#allocation97_spill] sm:$0xff] %v10345_v46  ;;  %8569 = vmatprep.subr.bf16.mxu0 %v8568_v59  ;;  %v10362_v35 = vsub.f32 %v81_v44, %v427_v10  ;;  %v10364_v59 = vld [vmem:[#allocation2 + $0x2f0] sm:$0xff]  ;;  %7937 = vmatprep.subr.bf16.mxu1 %v10348_v19  ;;  %v85_v5 = vld [vmem:[#allocation2 + $0x120] sm:$0xff]  ;;  %v433_v29 = vand.u32 4294901760, %v86_v15  ;;  %v16590_v31 = vand.u32 4294901760, %v10355_v41 }
  0x47   :  { %16577 = vst [vmem:[#allocation98_spill] sm:$0xff] %v10348_v19  ;;  %16578 = vst [vmem:[#allocation99_spill] sm:$0xff] %v10350_v26  ;;  %v8570_v48 = vpack.c.bf16 %v16584_v1, %v16583_v24  ;;  %v88_v26 = vld [vmem:[#allocation2 + $0x138] sm:$0xff]  ;;  %v15566_v44 = vand.u32 4294901760, %v10360_v30  ;;  %v10386_v1 = vsub.f32 %v10345_v46, %v15560_v57  ;;  %v16598_v0 = vand.u32 4294901760, %v10373_v3 }
  0x48   :  { %16579 = vst [vmem:[#allocation100_spill] sm:$0xff] %v10355_v41  ;;  %16580 = vst [vmem:[#allocation101_spill] sm:$0xff] %v10360_v30  ;;  %v10401_v46 = vsub.f32 %v86_v15, %v433_v29  ;;  %v435_v41 = vand.u32 4294901760, %v85_v5  ;;  %v10403_v30 = vld [vmem:[#allocation2 + $0x300] sm:$0xff] }
  0x49   :  { %16581 = vst [vmem:[#allocation102_spill] sm:$0xff] %v10362_v35  ;;  %16582 = vst [vmem:[#allocation103_spill] sm:$0xff] %v10364_v59  ;;  %v10378_v35 = vpack.c.bf16 %v431_v37, %v427_v10  ;;  %8571 = vmatpush1.bf16.msra.mxu0 %v8570_v48  ;;  %v8572_v19 = vpack.c.bf16 %v15566_v44, %v16590_v31  ;;  %v437_v10 = vand.u32 4294901760, %v88_v26  ;;  %v87_v48 = vld [vmem:[#allocation2 + $0x130] sm:$0xff] }
  0x4a   :  { %16585 = vst [vmem:[#allocation104_spill] sm:$0xff] %v10373_v3  ;;  %16586 = vst [vmem:[#allocation105_spill] sm:$0xff] %v10375_v36  ;;  %v10405_v31 = vld [vmem:[#allocation2 + $0x310] sm:$0xff]  ;;  %v10414_v24 = vsub.f32 %v10373_v3, %v16598_v0  ;;  %v92_v3 = vld [vmem:[#allocation2 + $0x158] sm:$0xff]  ;;  %v16608_v0 = vand.u32 4294901760, %v10403_v30 }
  0x4b   :  { %16587 = vst [vmem:[#allocation106_spill] sm:$0xff] %v10378_v35  ;;  %16588 = vst [vmem:[#allocation107_spill] sm:$0xff] %v10380_v32  ;;  %7939 = vmatpush1.bf16.msra.mxu1 %v10378_v35  ;;  %v16591_v32 = vand.u32 4294901760, %v10364_v59  ;;  %8573 = vmatprep.subr.bf16.mxu0 %v8572_v19  ;;  %v10407_v44 = vpack.c.bf16 %v437_v10, %v433_v29  ;;  %v10409_v37 = vsub.f32 %v88_v26, %v437_v10  ;;  %v90_v19 = vld [vmem:[#allocation2 + $0x148] sm:$0xff] }
  0x4c   :  { %16589 = vst [vmem:[#allocation108_spill] sm:$0xff] %v10386_v1  ;;  %16593 = vst [vmem:[#allocation110_spill] sm:$0xff] %v10401_v46  ;;  %v439_v46 = vand.u32 4294901760, %v87_v48  ;;  %v15585_v26 = vand.u32 4294901760, %v10414_v24  ;;  %v10448_v22 = vsub.f32 %v10403_v30, %v16608_v0 }
  0x4d   :  { %v10399_v57 = vsub.f32 %v10364_v59, %v16591_v32  ;;  %16594 = vst [vmem:[#allocation111_spill] sm:$0xff] %v10403_v30  ;;  %16595 = vst [vmem:[#allocation112_spill] sm:$0xff] %v10405_v31  ;;  %v16600_v32 = vand.u32 4294901760, %v10375_v36  ;;  %v10422_v59 = vsub.f32 %v85_v5, %v435_v41  ;;  %7941 = vmatprep.subr.bf16.mxu1 %v10407_v44 }
  0x4e   :  { %16596 = vst [vmem:[#allocation113_spill] sm:$0xff] %v10407_v44  ;;  %16597 = vst [vmem:[#allocation114_spill] sm:$0xff] %v10409_v37  ;;  %v10429_v37 = vld [vmem:[#allocation2 + $0x328] sm:$0xff]  ;;  %v89_v44 = vld [vmem:[#allocation2 + $0x140] sm:$0xff]  ;;  %v10443_v33 = vsub.f32 %v87_v48, %v439_v46  ;;  %v16618_v48 = vand.u32 4294901760, %v10448_v22 }
  0x4f   :  { %16592 = vst [vmem:[#allocation109_spill] sm:$0xff] %v10399_v57  ;;  %16599 = vst [vmem:[#allocation115_spill] sm:$0xff] %v10414_v24  ;;  %v10419_v15 = vsub.f32 %v10375_v36, %v16600_v32  ;;  %v15581_v35 = vand.u32 4294901760, %v10399_v57  ;;  %v16604_v32 = vand.u32 4294901760, %v10386_v1  ;;  %v10437_v36 = vld [vmem:[#allocation2 + $0x338] sm:$0xff]  ;;  %v16610_v57 = vand.u32 4294901760, %v10405_v31 }
  0x50   :  { %16602 = vst [vmem:[#allocation117_spill] sm:$0xff] %v10422_v59  ;;  %16603 = vst [vmem:[#allocation118_spill] sm:$0xff] %v10429_v37  ;;  %v10435_v59 = vpack.c.bf16 %v439_v46, %v435_v41  ;;  %v10460_v24 = vld [vmem:[#allocation2 + $0x320] sm:$0xff]  ;;  %v10473_v46 = vld [vmem:[#allocation2 + $0x330] sm:$0xff] }
  0x51   :  { %16601 = vst [vmem:[#allocation116_spill] sm:$0xff] %v10419_v15  ;;  %v15584_v29 = vand.u32 4294901760, %v10419_v15  ;;  %v8574_v5 = vpack.c.bf16 %v15581_v35, %v16604_v32  ;;  %16606 = vst [vmem:[#allocation120_spill] sm:$0xff] %v10437_v36  ;;  %v10453_v41 = vsub.f32 %v10405_v31, %v16610_v57  ;;  %v441_v32 = vand.u32 4294901760, %v90_v19 }
  0x52   :  { %16605 = vst [vmem:[#allocation119_spill] sm:$0xff] %v10435_v59  ;;  %16607 = vst [vmem:[#allocation121_spill] sm:$0xff] %v10443_v33  ;;  %7943 = vmatpush1.bf16.msra.mxu1 %v10435_v59  ;;  %v445_v35 = vand.u32 4294901760, %v92_v3  ;;  %v15594_v15 = vand.u32 4294901760, %v10429_v37  ;;  %v16620_v31 = vand.u32 4294901760, %v10437_v36 }
  0x53   :  { %v8576_v10 = vpack.c.bf16 %v15584_v29, %v15585_v26  ;;  %16609 = vst [vmem:[#allocation122_spill] sm:$0xff] %v10448_v22  ;;  %16611 = vst [vmem:[#allocation123_spill] sm:$0xff] %v10453_v41  ;;  %8575 = vmatpush1.bf16.msra.mxu0 %v8574_v5  ;;  %v91_v29 = vld [vmem:[#allocation2 + $0x150] sm:$0xff]  ;;  %v443_v26 = vand.u32 4294901760, %v89_v44  ;;  %v10464_v5 = vsub.f32 %v90_v19, %v441_v32  ;;  %v16619_v0 = vand.u32 4294901760, %v10453_v41  ;;  %v94_v19 = vld [vmem:[#allocation2 + $0x168] sm:$0xff] }
  0x54   :  { %16612 = vst [vmem:[#allocation124_spill] sm:$0xff] %v10460_v24  ;;  %v10462_v57 = vpack.c.bf16 %v445_v35, %v441_v32  ;;  %v10466_v1 = vsub.f32 %v92_v3, %v445_v35  ;;  %16617 = vst [vmem:[#allocation129_spill] sm:$0xff] %v10473_v46  ;;  %v10482_v30 = vsub.f32 %v10437_v36, %v16620_v31  ;;  %v447_v3 = vand.u32 4294901760, %v91_v29  ;;  %v10489_v22 = vld [vmem:[#allocation2 + $0x348] sm:$0xff]  ;;  %v10493_v31 = vld [vmem:[#allocation2 + $0x358] sm:$0xff] }
  0x55   :  { %8577 = vmatprep.subr.bf16.mxu0 %v8576_v10  ;;  %16614 = vst [vmem:[#allocation126_spill] sm:$0xff] %v10464_v5  ;;  %v10471_v10 = vsub.f32 %v10429_v37, %v15594_v15  ;;  %v8578_v59 = vpack.c.bf16 %v16619_v0, %v16618_v48  ;;  %v10486_v32 = vsub.f32 %v89_v44, %v443_v26  ;;  %v15605_v15 = vand.u32 4294901760, %v10460_v24  ;;  %v96_v37 = vld [vmem:[#allocation2 + $0x178] sm:$0xff]  ;;  %v93_v41 = vld [vmem:[#allocation2 + $0x160] sm:$0xff] }
  0x56   :  { %16613 = vst [vmem:[#allocation125_spill] sm:$0xff] %v10462_v57  ;;  %16615 = vst [vmem:[#allocation127_spill] sm:$0xff] %v10466_v1  ;;  %7945 = vmatprep.subr.bf16.mxu1 %v10462_v57  ;;  %v15612_v48 = vand.u32 4294901760, %v10482_v30  ;;  %v15613_v0 = vand.u32 4294901760, %v10473_v46  ;;  %v10495_v36 = vpack.c.bf16 %v447_v3, %v443_v26  ;;  %v10497_v57 = vsub.f32 %v91_v29, %v447_v3  ;;  %v95_v3 = vld [vmem:[#allocation2 + $0x170] sm:$0xff] }
  0x57   :  { %16616 = vst [vmem:[#allocation128_spill] sm:$0xff] %v10471_v10  ;;  %16621 = vst [vmem:[#allocation130_spill] sm:$0xff] %v10482_v30  ;;  %8579 = vmatpush1.bf16.msra.mxu0 %v8578_v59  ;;  %v10502_v44 = vsub.f32 %v10460_v24, %v15605_v15  ;;  %v449_v35 = vand.u32 4294901760, %v94_v19  ;;  %v453_v26 = vand.u32 4294901760, %v96_v37  ;;  %v15617_v29 = vand.u32 4294901760, %v10489_v22  ;;  %v10519_v30 = vld [vmem:[#allocation2 + $0x340] sm:$0xff] }
  0x58   :  { %16622 = vst [vmem:[#allocation131_spill] sm:$0xff] %v10486_v32  ;;  %16623 = vst [vmem:[#allocation132_spill] sm:$0xff] %v10489_v22  ;;  %v16628_v32 = vand.u32 4294901760, %v10471_v10  ;;  %v10511_v1 = vsub.f32 %v10473_v46, %v15613_v0  ;;  %7947 = vmatpush1.bf16.msra.mxu1 %v10495_v36  ;;  %v15620_v10 = vand.u32 4294901760, %v10493_v31  ;;  %v455_v15 = vand.u32 4294901760, %v95_v3 }
  0x59   :  { %16624 = vst [vmem:[#allocation133_spill] sm:$0xff] %v10493_v31  ;;  %16625 = vst [vmem:[#allocation134_spill] sm:$0xff] %v10495_v36  ;;  %v10516_v24 = vsub.f32 %v94_v19, %v449_v35  ;;  %v10524_v0 = vsub.f32 %v96_v37, %v453_v26  ;;  %v10529_v36 = vsub.f32 %v10489_v22, %v15617_v29  ;;  %v15631_v22 = vand.u32 4294901760, %v10519_v30 }
  0x5a   :  { %16626 = vst [vmem:[#allocation135_spill] sm:$0xff] %v10497_v57  ;;  %16627 = vst [vmem:[#allocation136_spill] sm:$0xff] %v10502_v44  ;;  %v8580_v59 = vpack.c.bf16 %v15612_v48, %v16628_v32  ;;  %v451_v57 = vand.u32 4294901760, %v93_v41  ;;  %v10522_v48 = vpack.c.bf16 %v453_v26, %v449_v35  ;;  %v10534_v19 = vsub.f32 %v10493_v31, %v15620_v10  ;;  %v98_v32 = vld [vmem:[#allocation2 + $0x188] sm:$0xff]  ;;  %v10549_v31 = vld [vmem:[#allocation2 + $0x378] sm:$0xff] }
  0x5b   :  { %16629 = vst [vmem:[#allocation137_spill] sm:$0xff] %v10511_v1  ;;  %16630 = vst [vmem:[#allocation138_spill] sm:$0xff] %v10516_v24  ;;  %v16638_v35 = vand.u32 4294901760, %v10502_v44  ;;  %v16639_v37 = vand.u32 4294901760, %v10511_v1  ;;  %v10547_v10 = vld [vmem:[#allocation2 + $0x368] sm:$0xff]  ;;  %v10554_v46 = vsub.f32 %v95_v3, %v455_v15  ;;  %v97_v44 = vld [vmem:[#allocation2 + $0x180] sm:$0xff] }
  0x5c   :  { %16631 = vst [vmem:[#allocation139_spill] sm:$0xff] %v10519_v30  ;;  %8581 = vmatprep.subr.bf16.mxu0 %v8580_v59  ;;  %16632 = vst [vmem:[#allocation140_spill] sm:$0xff] %v10522_v48  ;;  %v10536_v24 = vsub.f32 %v93_v41, %v451_v57  ;;  %v10538_v59 = vld [vmem:[#allocation2 + $0x350] sm:$0xff]  ;;  %7949 = vmatprep.subr.bf16.mxu1 %v10522_v48  ;;  %v15637_v41 = vand.u32 4294901760, %v10534_v19  ;;  %v457_v29 = vand.u32 4294901760, %v98_v32  ;;  %v16645_v1 = vand.u32 4294901760, %v10529_v36 }
  0x5d   :  { %16633 = vst [vmem:[#allocation141_spill] sm:$0xff] %v10524_v0  ;;  %16634 = vst [vmem:[#allocation142_spill] sm:$0xff] %v10529_v36  ;;  %v8582_v26 = vpack.c.bf16 %v16639_v37, %v16638_v35  ;;  %v100_v0 = vld [vmem:[#allocation2 + $0x198] sm:$0xff]  ;;  %v10560_v37 = vsub.f32 %v10519_v30, %v15631_v22  ;;  %v459_v36 = vand.u32 4294901760, %v97_v44  ;;  %v16653_v3 = vand.u32 4294901760, %v10547_v10 }
  0x5e   :  { %16635 = vst [vmem:[#allocation143_spill] sm:$0xff] %v10534_v19  ;;  %16636 = vst [vmem:[#allocation144_spill] sm:$0xff] %v10536_v24  ;;  %v10552_v24 = vpack.c.bf16 %v455_v15, %v451_v57  ;;  %v8584_v48 = vpack.c.bf16 %v15637_v41, %v16645_v1  ;;  %v461_v57 = vand.u32 4294901760, %v100_v0  ;;  %v10575_v30 = vsub.f32 %v98_v32, %v457_v29  ;;  %v10577_v19 = vld [vmem:[#allocation2 + $0x360] sm:$0xff]  ;;  %v10579_v1 = vld [vmem:[#allocation2 + $0x370] sm:$0xff] }
  0x5f   :  { %16637 = vst [vmem:[#allocation145_spill] sm:$0xff] %v10538_v59  ;;  %16640 = vst [vmem:[#allocation146_spill] sm:$0xff] %v10547_v10  ;;  %8583 = vmatpush1.bf16.msra.mxu0 %v8582_v26  ;;  %v99_v26 = vld [vmem:[#allocation2 + $0x190] sm:$0xff]  ;;  %v10588_v35 = vsub.f32 %v10547_v10, %v16653_v3  ;;  %v104_v10 = vld [vmem:[#allocation2 + $0x1b8] sm:$0xff]  ;;  %v16663_v3 = vand.u32 4294901760, %v10577_v19 }
  0x60   :  { %16641 = vst [vmem:[#allocation147_spill] sm:$0xff] %v10549_v31  ;;  %16642 = vst [vmem:[#allocation148_spill] sm:$0xff] %v10552_v24  ;;  %7951 = vmatpush1.bf16.msra.mxu1 %v10552_v24  ;;  %8585 = vmatprep.subr.bf16.mxu0 %v8584_v48  ;;  %v10581_v41 = vpack.c.bf16 %v461_v57, %v457_v29  ;;  %v10583_v15 = vsub.f32 %v100_v0, %v461_v57  ;;  %v102_v48 = vld [vmem:[#allocation2 + $0x1a8] sm:$0xff] }
  0x61   :  { %16643 = vst [vmem:[#allocation149_spill] sm:$0xff] %v10554_v46  ;;  %16644 = vst [vmem:[#allocation150_spill] sm:$0xff] %v10560_v37  ;;  %v16646_v46 = vand.u32 4294901760, %v10538_v59  ;;  %v15656_v0 = vand.u32 4294901760, %v10588_v35  ;;  %v10622_v33 = vsub.f32 %v10577_v19, %v16663_v3 }
  0x62   :  { %16648 = vst [vmem:[#allocation152_spill] sm:$0xff] %v10575_v30  ;;  %16649 = vst [vmem:[#allocation153_spill] sm:$0xff] %v10577_v19  ;;  %v463_v30 = vand.u32 4294901760, %v99_v26  ;;  %7953 = vmatprep.subr.bf16.mxu1 %v10581_v41 }
  0x63   :  { %v10573_v22 = vsub.f32 %v10538_v59, %v16646_v46  ;;  %16650 = vst [vmem:[#allocation154_spill] sm:$0xff] %v10579_v1  ;;  %16651 = vst [vmem:[#allocation155_spill] sm:$0xff] %v10581_v41  ;;  %v16655_v46 = vand.u32 4294901760, %v10549_v31  ;;  %v10596_v59 = vsub.f32 %v97_v44, %v459_v36  ;;  %v101_v41 = vld [vmem:[#allocation2 + $0x1a0] sm:$0xff] }
  0x64   :  { %16652 = vst [vmem:[#allocation156_spill] sm:$0xff] %v10583_v15  ;;  %16654 = vst [vmem:[#allocation157_spill] sm:$0xff] %v10588_v35  ;;  %v10603_v15 = vld [vmem:[#allocation2 + $0x388] sm:$0xff]  ;;  %v10617_v5 = vsub.f32 %v99_v26, %v463_v30  ;;  %v10634_v35 = vld [vmem:[#allocation2 + $0x380] sm:$0xff]  ;;  %v16673_v26 = vand.u32 4294901760, %v10622_v33 }
  0x65   :  { %16647 = vst [vmem:[#allocation151_spill] sm:$0xff] %v10573_v22  ;;  %v10593_v32 = vsub.f32 %v10549_v31, %v16655_v46  ;;  %v15652_v24 = vand.u32 4294901760, %v10573_v22  ;;  %16657 = vst [vmem:[#allocation159_spill] sm:$0xff] %v10596_v59  ;;  %v16659_v46 = vand.u32 4294901760, %v10560_v37  ;;  %v10609_v59 = vpack.c.bf16 %v463_v30, %v459_v36  ;;  %v10611_v31 = vld [vmem:[#allocation2 + $0x398] sm:$0xff]  ;;  %v10647_v30 = vld [vmem:[#allocation2 + $0x390] sm:$0xff] }
  0x66   :  { %16658 = vst [vmem:[#allocation160_spill] sm:$0xff] %v10603_v15  ;;  %16661 = vst [vmem:[#allocation162_spill] sm:$0xff] %v10611_v31  ;;  %v16665_v22 = vand.u32 4294901760, %v10579_v1 }
  0x67   :  { %16656 = vst [vmem:[#allocation158_spill] sm:$0xff] %v10593_v32  ;;  %v15655_v29 = vand.u32 4294901760, %v10593_v32  ;;  %v8586_v44 = vpack.c.bf16 %v15652_v24, %v16659_v46  ;;  %16660 = vst [vmem:[#allocation161_spill] sm:$0xff] %v10609_v59  ;;  %7955 = vmatpush1.bf16.msra.mxu1 %v10609_v59  ;;  %v465_v46 = vand.u32 4294901760, %v102_v48  ;;  %v469_v24 = vand.u32 4294901760, %v104_v10 }
  0x68   :  { %16662 = vst [vmem:[#allocation163_spill] sm:$0xff] %v10617_v5  ;;  %16664 = vst [vmem:[#allocation164_spill] sm:$0xff] %v10622_v33  ;;  %v10627_v36 = vsub.f32 %v10579_v1, %v16665_v22  ;;  %v15665_v32 = vand.u32 4294901760, %v10603_v15  ;;  %v16675_v1 = vand.u32 4294901760, %v10611_v31  ;;  %v10663_v33 = vld [vmem:[#allocation2 + $0x3a8] sm:$0xff]  ;;  %v16685_v5 = vand.u32 4294901760, %v10647_v30 }
  0x69   :  { %v8588_v57 = vpack.c.bf16 %v15655_v29, %v15656_v0  ;;  %8587 = vmatpush1.bf16.msra.mxu0 %v8586_v44  ;;  %v103_v29 = vld [vmem:[#allocation2 + $0x1b0] sm:$0xff]  ;;  %v467_v0 = vand.u32 4294901760, %v101_v41  ;;  %16667 = vst [vmem:[#allocation166_spill] sm:$0xff] %v10634_v35  ;;  %v10636_v22 = vpack.c.bf16 %v469_v24, %v465_v46  ;;  %v10638_v44 = vsub.f32 %v102_v48, %v465_v46  ;;  %v106_v48 = vld [vmem:[#allocation2 + $0x1c8] sm:$0xff] }
  0x6a   :  { %16666 = vst [vmem:[#allocation165_spill] sm:$0xff] %v10627_v36  ;;  %v10640_v37 = vsub.f32 %v104_v10, %v469_v24  ;;  %16672 = vst [vmem:[#allocation171_spill] sm:$0xff] %v10647_v30  ;;  %v16674_v3 = vand.u32 4294901760, %v10627_v36  ;;  %v10656_v19 = vsub.f32 %v10611_v31, %v16675_v1  ;;  %v471_v10 = vand.u32 4294901760, %v103_v29  ;;  %v10667_v1 = vld [vmem:[#allocation2 + $0x3b8] sm:$0xff]  ;;  %v105_v36 = vld [vmem:[#allocation2 + $0x1c0] sm:$0xff] }
  0x6b   :  { %8589 = vmatprep.subr.bf16.mxu0 %v8588_v57  ;;  %16668 = vst [vmem:[#allocation167_spill] sm:$0xff] %v10636_v22  ;;  %16669 = vst [vmem:[#allocation168_spill] sm:$0xff] %v10638_v44  ;;  %v10645_v57 = vsub.f32 %v10603_v15, %v15665_v32  ;;  %7957 = vmatprep.subr.bf16.mxu1 %v10636_v22  ;;  %v10660_v46 = vsub.f32 %v101_v41, %v467_v0  ;;  %v15678_v32 = vand.u32 4294901760, %v10634_v35  ;;  %v108_v15 = vld [vmem:[#allocation2 + $0x1d8] sm:$0xff]  ;;  %v307_v31 = vlaneseq }
  0x6c   :  { %16670 = vst [vmem:[#allocation169_spill] sm:$0xff] %v10640_v37  ;;  %v8590_v59 = vpack.c.bf16 %v16674_v3, %v16673_v26  ;;  %16676 = vst [vmem:[#allocation172_spill] sm:$0xff] %v10656_v19  ;;  %v9855_v22 = vmov 1983009808   ;;  %v10671_v24 = vpack.c.bf16 %v471_v10, %v467_v0  ;;  %v10673_v41 = vsub.f32 %v103_v29, %v471_v10  ;;  %v107_v10 = vld [vmem:[#allocation2 + $0x1d0] sm:$0xff] }
  0x6d   :  { %16671 = vst [vmem:[#allocation170_spill] sm:$0xff] %v10645_v57  ;;  %16677 = vst [vmem:[#allocation173_spill] sm:$0xff] %v10660_v46  ;;  %v10669_v37 = vunpack.c.l.s4 %v9855_v22  ;;  %v10678_v46 = vsub.f32 %v10634_v35, %v15678_v32  ;;  %v16683_v26 = vand.u32 4294901760, %v10645_v57  ;;  %v16684_v3 = vand.u32 4294901760, %v10656_v19  ;;  %v10695_v19 = vld [vmem:[#allocation2 + $0x3a0] sm:$0xff] }
  0x6e   :  { %16678 = vst [vmem:[#allocation174_spill] sm:$0xff] %v10663_v33  ;;  %8591 = vmatpush1.bf16.msra.mxu0 %v8590_v59  ;;  %16679 = vst [vmem:[#allocation175_spill] sm:$0xff] %v10667_v1  ;;  %v473_v59 = vand.u32 4294901760, %v106_v48  ;;  %v10687_v22 = vsub.f32 %v10647_v30, %v16685_v5  ;;  %v477_v0 = vand.u32 4294901760, %v108_v15  ;;  %v15688_v29 = vand.u32 4294901760, %v10663_v33  ;;  %7959 = vmatpush1.bf16.msra.mxu1 %v10671_v24 }
  0x6f   :  { %16680 = vst [vmem:[#allocation176_spill] sm:$0xff] %v10671_v24  ;;  %16681 = vst [vmem:[#allocation177_spill] sm:$0xff] %v10673_v41  ;;  %v8592_v44 = vpack.c.bf16 %v16684_v3, %v16683_v26  ;;  %v15691_v57 = vand.u32 4294901760, %v10667_v1  ;;  %v475_v41 = vand.u32 4294901760, %v105_v36  ;;  %v479_v32 = vand.u32 4294901760, %v107_v10  ;;  %v110_v26 = vld [vmem:[#allocation2 + $0x1e8] sm:$0xff] }
  0x70   :  { %16682 = vst [vmem:[#allocation178_spill] sm:$0xff] %v10678_v46  ;;  %16686 = vst [vmem:[#allocation179_spill] sm:$0xff] %v10687_v22  ;;  %v10692_v35 = vsub.f32 %v106_v48, %v473_v59  ;;  %v10698_v5 = vpack.c.bf16 %v477_v0, %v473_v59  ;;  %v10700_v3 = vsub.f32 %v108_v15, %v477_v0  ;;  %v16695_v59 = vand.u32 4294901760, %v10678_v46  ;;  %v109_v46 = vld [vmem:[#allocation2 + $0x1e0] sm:$0xff] }
  0x71   :  { %16688 = vst [vmem:[#allocation181_spill] sm:$0xff] %v10695_v19  ;;  %8593 = vmatprep.subr.bf16.mxu0 %v8592_v44  ;;  %v10705_v24 = vsub.f32 %v10663_v33, %v15688_v29  ;;  %v10710_v48 = vsub.f32 %v10667_v1, %v15691_v57  ;;  %v10714_v44 = vld [vmem:[#allocation2 + $0x3b0] sm:$0xff]  ;;  %v16696_v15 = vand.u32 4294901760, %v10687_v22  ;;  %v15702_v33 = vand.u32 4294901760, %v10695_v19  ;;  %v10723_v57 = vld [vmem:[#allocation2 + $0x3c8] sm:$0xff]  ;;  %v10725_v1 = vld [vmem:[#allocation2 + $0x3d8] sm:$0xff] }
  0x72   :  { %16687 = vst [vmem:[#allocation180_spill] sm:$0xff] %v10692_v35  ;;  %16689 = vst [vmem:[#allocation182_spill] sm:$0xff] %v10698_v5  ;;  %v10712_v35 = vsub.f32 %v105_v36, %v475_v41  ;;  %7961 = vmatprep.subr.bf16.mxu1 %v10698_v5  ;;  %v10730_v30 = vsub.f32 %v107_v10, %v479_v32  ;;  %v10732_v22 = vshrl.u32 %v307_v31, 7  ;;  %v481_v29 = vand.u32 4294901760, %v110_v26 }
  0x73   :  { %16690 = vst [vmem:[#allocation183_spill] sm:$0xff] %v10700_v3  ;;  %16691 = vst [vmem:[#allocation184_spill] sm:$0xff] %v10705_v24  ;;  %v8594_v0 = vpack.c.bf16 %v16696_v15, %v16695_v59  ;;  %v112_v3 = vld [vmem:[#allocation2 + $0x1f8] sm:$0xff]  ;;  %v10738_v15 = vsub.f32 %v10695_v19, %v15702_v33  ;;  %v322_v5 = vunpack.c.0.s8 %v10669_v37  ;;  %v16702_v36 = vand.u32 4294901760, %v10705_v24  ;;  %v111_v59 = vld [vmem:[#allocation2 + $0x1f0] sm:$0xff] }
  0x74   :  { %16692 = vst [vmem:[#allocation185_spill] sm:$0xff] %v10710_v48  ;;  %16693 = vst [vmem:[#allocation186_spill] sm:$0xff] %v10712_v35  ;;  %v10728_v35 = vpack.c.bf16 %v479_v32, %v475_v41  ;;  %v16703_v41 = vand.u32 4294901760, %v10710_v48  ;;  %v485_v31 = vand.u32 4294901760, %v112_v3  ;;  %v16704_v33 = vand.u32 4294901760, %v10714_v44  ;;  %v10756_v48 = vld [vmem:[#allocation2 + $0x3c0] sm:$0xff] }
  0x75   :  { %16694 = vst [vmem:[#allocation187_spill] sm:$0xff] %v10714_v44  ;;  %16697 = vst [vmem:[#allocation188_spill] sm:$0xff] %v10725_v1  ;;  %8595 = vmatpush1.bf16.msra.mxu0 %v8594_v0  ;;  %v10754_v37 = vsub.f32 %v110_v26, %v481_v29  ;;  %v483_v24 = vand.u32 4294901760, %v109_v46  ;;  %v16711_v0 = vand.u32 4294901760, %v10723_v57 }
  0x76   :  { %16698 = vst [vmem:[#allocation189_spill] sm:$0xff] %v10728_v35  ;;  %16699 = vst [vmem:[#allocation190_spill] sm:$0xff] %v10730_v30  ;;  %v8596_v32 = vpack.c.bf16 %v16703_v41, %v16702_v36  ;;  %7963 = vmatpush1.bf16.msra.mxu1 %v10728_v35  ;;  %v10752_v19 = vsub.f32 %v10714_v44, %v16704_v33  ;;  %v10758_v36 = vld [vmem:[#allocation2 + $0x3d0] sm:$0xff]  ;;  %v10760_v41 = vpack.c.bf16 %v485_v31, %v481_v29 }
  0x77   :  { %16700 = vst [vmem:[#allocation191_spill] sm:$0xff] %v10732_v22  ;;  %16701 = vst [vmem:[#allocation192_spill] sm:$0xff] %v10738_v15  ;;  %v10762_v10 = vsub.f32 %v112_v3, %v485_v31  ;;  %v10767_v30 = vsub.f32 %v10723_v57, %v16711_v0  ;;  %v16713_v33 = vand.u32 4294901760, %v10725_v1  ;;  %v10775_v44 = vsub.f32 %v109_v46, %v483_v24 }
  0x78   :  { %16705 = vst [vmem:[#allocation193_spill] sm:$0xff] %v10752_v19  ;;  %16706 = vst [vmem:[#allocation194_spill] sm:$0xff] %v10754_v37  ;;  %8597 = vmatprep.subr.bf16.mxu0 %v8596_v32  ;;  %v15722_v35 = vand.u32 4294901760, %v10752_v19  ;;  %v487_v37 = vand.u32 4294901760, %v111_v59  ;;  %v10778_v29 = vsub.s32 %v322_v5, %v10732_v22  ;;  %7965 = vmatprep.subr.bf16.mxu1 %v10760_v41  ;;  %v16717_v46 = vand.u32 4294901760, %v10738_v15 }
  0x79   :  { %16707 = vst [vmem:[#allocation195_spill] sm:$0xff] %v10756_v48  ;;  %16708 = vst [vmem:[#allocation196_spill] sm:$0xff] %v10758_v36  ;;  %v10772_v26 = vsub.f32 %v10725_v1, %v16713_v33  ;;  %v15721_v3 = vand.u32 4294901760, %v10767_v30  ;;  %v10788_v33 = vld [vmem:[%s15396_s0] sm:$0xff]  ;;  %v16722_v15 = vand.u32 4294901760, %v10758_v36 }
  0x7a   :  { %16709 = vst [vmem:[#allocation197_spill] sm:$0xff] %v10760_v41  ;;  %16710 = vst [vmem:[#allocation198_spill] sm:$0xff] %v10762_v10  ;;  %v8598_v5 = vpack.c.bf16 %v15722_v35, %v16717_v46  ;;  %v10794_v22 = vpack.c.bf16 %v487_v37, %v483_v24  ;;  %v10796_v41 = vld [vmem:[#allocation2 + $0x3e8] sm:$0xff]  ;;  %v10802_v0 = vsub.f32 %v111_v59, %v487_v37  ;;  %v10814_v24 = vld [vmem:[#allocation2 + $0x3f8] sm:$0xff]  ;;  %v15733_v59 = vand.u32 4294901760, %v9928_v16 }
  0x7b   :  { %16712 = vst [vmem:[#allocation199_spill] sm:$0xff] %v10767_v30  ;;  %16714 = vst [vmem:[#allocation200_spill] sm:$0xff] %v10772_v26  ;;  %v15720_v32 = vand.u32 4294901760, %v10772_v26  ;;  %v10812_v46 = vsub.f32 %v10758_v36, %v16722_v15  ;;  %v15741_v30 = vand.u32 4294901760, %v10814_v24  ;;  %v16727_v36 = vand.u32 4294901760, %v10796_v41 }
  0x7c   :  { %16715 = vst [vmem:[#allocation201_spill] sm:$0xff] %v10775_v44  ;;  %16716 = vst [vmem:[#allocation202_spill] sm:$0xff] %v10778_v29  ;;  %v16720_v44 = vand.u32 4294901760, %v10756_v48  ;;  %8599 = vmatpush1.bf16.msra.mxu0 %v8598_v5  ;;  %7967 = vmatpush1.bf16.msra.mxu1 %v10794_v22  ;;  %v509_v5 = vsub.f32 %v9928_v16, %v15733_v59 }
  0x7d   :  { %16718 = vst [vmem:[#allocation203_spill] sm:$0xff] %v10794_v22  ;;  %v8600_v31 = vpack.c.bf16 %v15720_v32, %v15721_v3  ;;  %16719 = vst [vmem:[#allocation204_spill] sm:$0xff] %v10802_v0  ;;  %v326_v32 = vrot.slane %v10788_v33, %v10778_v29  ;;  %v15738_v3 = vand.u32 4294901760, %v9930_v17  ;;  %v10847_v59 = vsub.f32 %v10814_v24, %v15741_v30 }
  0x7e   :  { %v10807_v1 = vsub.f32 %v10756_v48, %v16720_v44  ;;  %16723 = vst [vmem:[#allocation206_spill] sm:$0xff] %v10812_v46  ;;  %16724 = vst [vmem:[#allocation207_spill] sm:$0xff] %v10814_v24  ;;  %v15736_v44 = vand.u32 4294901760, %v10812_v46  ;;  %v510_v15 = vand.u32 4294901760, %v509_v5  ;;  %v10842_v48 = vsub.f32 %v10796_v41, %v16727_v36  ;;  %v10856_v5 = vld [vmem:[#allocation2 + $0x3f0] sm:$0xff] }
  0x7f   :  { %8601 = vmatprep.subr.bf16.mxu0 %v8600_v31  ;;  %v334_v35 = vcombine.high %v326_v32, %v326_v32  ;;  %v10824_v26 = vand.u32 4294901760, %v326_v32  ;;  %v521_v19 = vsub.f32 %v9930_v17, %v15738_v3  ;;  %16729 = vst [vmem:[#allocation211_spill] sm:$0xff] %v10847_v59  ;;  %v15749_v30 = vand.u32 4294901760, %v10847_v59 }
  0x80   :  { %16721 = vst [vmem:[#allocation205_spill] sm:$0xff] %v10807_v1  ;;  %v15737_v37 = vand.u32 4294901760, %v10807_v1  ;;  %16728 = vst [vmem:[#allocation210_spill] sm:$0xff] %v10842_v48  ;;  %v10849_v1 = vld [vmem:[#allocation2 + $0x3e0] sm:$0xff]  ;;  %v15750_v46 = vand.u32 4294901760, %v10842_v48  ;;  %v15751_v17 = vand.u32 4294901760, %v9932_v18 }
  0x81   :  { %16725 = vst [vmem:[#allocation208_spill] sm:$0xff] %v10824_v26  ;;  %v10837_v22 = vand.u32 4294901760, %v334_v35  ;;  %v10854_v3 = vsub.f32 %v326_v32, %v10824_v26  ;;  %v15763_v24 = vand.u32 4294901760, %v10856_v5 }
  0x82   :  { %v8602_v31 = vpack.c.bf16 %v15736_v44, %v15737_v37  ;;  %v319_v44 = vcombine.high %v10788_v33, %v10788_v33  ;;  %v522_v37 = vand.u32 4294901760, %v521_v19  ;;  %v15753_v33 = vand.u32 4294901760, %v9940_v23 }
  0x83   :  { %16726 = vst [vmem:[#allocation209_spill] sm:$0xff] %v10837_v22  ;;  %16730 = vst [vmem:[#allocation212_spill] sm:$0xff] %v10854_v3  ;;  %v10859_v36 = vsub.f32 %v334_v35, %v10837_v22  ;;  %v15758_v19 = vand.u32 4294901760, %v10849_v1  ;;  %v8604_v35 = vpack.c.bf16 %v15749_v30, %v15750_v46  ;;  %v515_v26 = vsub.f32 %v9932_v18, %v15751_v17 }
  0x84   :  { %8603 = vmatpush1.bf16.msra.mxu0 %v8602_v31  ;;  %v7968_v16 = vpack.c.bf16 %v522_v37, %v510_v15  ;;  %v15752_v31 = vand.u32 4294901760, %v10854_v3  ;;  %v527_v15 = vsub.f32 %v9940_v23, %v15753_v33  ;;  %v15766_v30 = vand.u32 4294901760, %v9944_v25 }
  0x85   :  { %16731 = vst [vmem:[#allocation213_spill] sm:$0xff] %v10859_v36  ;;  %v10885_v32 = vsub.f32 %v10849_v1, %v15758_v19  ;;  %v16733_v46 = vand.u32 4294901760, %v10859_v36  ;;  %8605 = vmatprep.subr.bf16.mxu0 %v8604_v35  ;;  %v15769_v33 = vand.u32 4294901760, %v9947_v28  ;;  %v10906_v35 = vrot.slane %v319_v44, %v10778_v29 }
  0x86   :  { %7969 = vmatprep.subr.bf16.mxu1 %v7968_v16  ;;  %v498_v37 = vsub.f32 %v10854_v3, %v15752_v31  ;;  %v516_v16 = vand.u32 4294901760, %v515_v26  ;;  %v10894_v31 = vsub.f32 %v10856_v5, %v15763_v24  ;;  %v528_v48 = vand.u32 4294901760, %v527_v15 }
  0x87   :  { %16732 = vst [vmem:[#allocation214_spill] sm:$0xff] %v10885_v32  ;;  %v492_v17 = vsub.f32 %v10859_v36, %v16733_v46  ;;  %v533_v3 = vsub.f32 %v9944_v25, %v15766_v30  ;;  %v545_v26 = vsub.f32 %v9947_v28, %v15769_v33  ;;  %16735 = vst [vmem:[#allocation216_spill] sm:$0xff] %v10906_v35  ;;  %v16737_v15 = vand.u32 4294901760, %v9924_v13 }
  0x88   :  { %16734 = vst [vmem:[#allocation215_spill] sm:$0xff] %v10894_v31  ;;  %v499_v59 = vand.u32 4294901760, %v498_v37  ;;  %v15770_v46 = vand.u32 4294901760, %v10894_v31  ;;  %v7970_v24 = vpack.c.bf16 %v528_v48, %v516_v16  ;;  %v16736_v37 = vand.u32 4294901760, %v9922_v12 }
  0x89   :  { %v493_v23 = vand.u32 4294901760, %v492_v17  ;;  %v534_v36 = vand.u32 4294901760, %v533_v3  ;;  %v16739_v17 = vand.u32 4294901760, %v10885_v32  ;;  %v546_v25 = vand.u32 4294901760, %v545_v26  ;;  %v16825_v32 = vld [vmem:[#allocation117_spill] sm:$0xff] }
  0x8a   :  { %v10912_v19 = vpack.c.bf16 %v16737_v15, %v16736_v37  ;;  %v10920_v33 = vcombine.high %v10906_v35, %v10906_v35  ;;  %v15787_v48 = vand.u32 4294901760, %v9965_v38  ;;  %v15774_v12 = vand.u32 4294901760, %v9971_v42 }
  0x8b   :  { %494 = vmatprep.mubr.f32.mxu1 %v493_v23  ;;  %v8606_v30 = vpack.c.bf16 %v15770_v46, %v16739_v17  ;;  %v10925_v13 = vand.u32 4294901760, %v10906_v35  ;;  %v7972_v23 = vpack.c.bf16 %v546_v25, %v534_v36  ;;  %v16743_v44 = vand.u32 4294901760, %v9934_v20 }
  0x8c   :  { %16738 = vst [vmem:[#allocation217_spill] sm:$0xff] %v10912_v19  ;;  %16740 = vst [vmem:[#allocation218_spill] sm:$0xff] %v10920_v33  ;;  %500 = vmatmul.mubr.f32.vlgmr.msra.gmra.mrb[0].mxu1 %v499_v59  ;;  %v10928_v3 = vand.u32 4294901760, %v10920_v33  ;;  %v16744_v16 = vand.u32 4294901760, %v9936_v21  ;;  %v539_v59 = vsub.f32 %v9965_v38, %v15787_v48  ;;  %v15773_v25 = vand.u32 4294901760, %v9989_v49  ;;  %v16782_v48 = vld [vmem:[#allocation79_spill] sm:$0xff] }
  0x8d   :  { %16741 = vst [vmem:[#allocation219_spill] sm:$0xff] %v10925_v13  ;;  %7971 = vmatpush1.bf16.msra.mxu1 %v7970_v24  ;;  %8607 = vmatpush1.bf16.msra.mxu0 %v8606_v30  ;;  %v551_v30 = vsub.f32 %v9971_v42, %v15774_v12  ;;  %v15771_v24 = vand.u32 4294901760, %v9994_v52  ;;  %v16746_v20 = vand.u32 4294901760, %v9967_v40  ;;  %v16747_v21 = vand.u32 4294901760, %v9983_v45 }
  0x8e   :  { %16742 = vst [vmem:[#allocation220_spill] sm:$0xff] %v10928_v3  ;;  %v10934_v26 = vpack.c.bf16 %v16744_v16, %v16743_v44  ;;  %8609 = vmatprep.subr.bf16.mxu0 %v10912_v19  ;;  %891 = vmatprep.mubr.f32.mxu1 %v10837_v22  ;;  %v15772_v37 = vand.u32 4294901760, %v10025_v6  ;;  %v15775_v15 = vand.u32 4294901760, %v10033_v11  ;;  %v16749_v17 = vand.u32 4294901760, %v10012_v60  ;;  %v16812_v19 = vld [vmem:[#allocation97_spill] sm:$0xff] }
  0x8f   :  { %7973 = vmatprep.subr.bf16.mxu1 %v7972_v23  ;;  %2784 = vmatprep.mubr.f32.mxu0 %v10928_v3  ;;  %v10951_v36 = vpack.c.bf16 %v16747_v21, %v16746_v20  ;;  %v16750_v44 = vand.u32 4294901760, %v10014_v61  ;;  %v540_v46 = vand.u32 4294901760, %v539_v59  ;;  %v552_v23 = vand.u32 4294901760, %v551_v30 }
  0x90   :  { %16745 = vst [vmem:[#allocation221_spill] sm:$0xff] %v10934_v26  ;;  %2786 = vmatmul.mubr.f32.vlgmr.msra.gmra.mrb[0].mxu0 %v10925_v13  ;;  %v557_v40 = vsub.f32 %v9989_v49, %v15773_v25  ;;  %v569_v45 = vsub.f32 %v9994_v52, %v15771_v24  ;;  %v563_v60 = vsub.f32 %v10025_v6, %v15772_v37  ;;  %v15776_v59 = vand.u32 4294901760, %v10057_v58 }
  0x91   :  { %16748 = vst [vmem:[#allocation222_spill] sm:$0xff] %v10951_v36  ;;  %v10959_v16 = vpack.c.bf16 %v16750_v44, %v16749_v17  ;;  %8611 = vmatpush1.bf16.msra.mxu0 %v10934_v26  ;;  %v575_v61 = vsub.f32 %v10033_v11, %v15775_v15  ;;  %v15785_v30 = vand.u32 4294901760, %v10059_v63  ;;  %2921 = vmatprep.mubr.f32.mxu0 %v10928_v3  ;;  %v16752_v44 = vand.u32 4294901760, %v10022_v4 }
  0x92   :  { %v7974_v20 = vpack.c.bf16 %v552_v23, %v540_v46  ;;  %v558_v21 = vand.u32 4294901760, %v557_v40  ;;  %v570_v17 = vand.u32 4294901760, %v569_v45  ;;  %8613 = vmatprep.subr.bf16.mxu0 %v10951_v36  ;;  %v16753_v24 = vand.u32 4294901760, %v10029_v9 }
  0x93   :  { %16751 = vst [vmem:[#allocation223_spill] sm:$0xff] %v10959_v16  ;;  %v564_v25 = vand.u32 4294901760, %v563_v60  ;;  %v576_v12 = vand.u32 4294901760, %v575_v61  ;;  %v581_v15 = vsub.f32 %v10057_v58, %v15776_v59  ;;  %v593_v46 = vsub.f32 %v10059_v63, %v15785_v30 }
  0x94   :  { %v10983_v37 = vpack.c.bf16 %v16753_v24, %v16752_v44  ;;  %7975 = vmatpush1.bf16.msra.mxu1 %v7974_v20  ;;  %v7976_v23 = vpack.c.bf16 %v570_v17, %v558_v21  ;;  %v15784_v40 = vand.u32 4294901760, %v10087_v56  ;;  %v15781_v4 = vand.u32 4294901760, %v10089_v53 }
  0x95   :  { %v16755_v9 = vand.u32 4294901760, %v10050_v54  ;;  %v16756_v24 = vand.u32 4294901760, %v10052_v55  ;;  %v7978_v60 = vpack.c.bf16 %v576_v12, %v564_v25  ;;  %8615 = vmatpush1.bf16.msra.mxu0 %v10959_v16  ;;  %v582_v61 = vand.u32 4294901760, %v581_v15 }
  0x96   :  { %16754 = vst [vmem:[#allocation224_spill] sm:$0xff] %v10983_v37  ;;  %v594_v44 = vand.u32 4294901760, %v593_v46  ;;  %v15780_v59 = vand.u32 4294901760, %v10116_v7  ;;  %7977 = vmatprep.subr.bf16.mxu1 %v7976_v23  ;;  %8617 = vmatprep.subr.bf16.mxu0 %v10983_v37  ;;  %v587_v20 = vsub.f32 %v10087_v56, %v15784_v40  ;;  %v599_v54 = vsub.f32 %v10089_v53, %v15781_v4  ;;  %v16769_v4 = vld [vmem:[#allocation55_spill] sm:$0xff]  ;;  %v16796_v37 = vld [vmem:[#allocation89_spill] sm:$0xff] }
  0x97   :  { %v10997_v45 = vpack.c.bf16 %v16756_v24, %v16755_v9  ;;  %v15779_v55 = vand.u32 4294901760, %v10118_v47  ;;  %v16758_v12 = vand.u32 4294901760, %v10082_v8  ;;  %v16759_v25 = vand.u32 4294901760, %v10091_v34 }
  0x98   :  { %v7980_v21 = vpack.c.bf16 %v594_v44, %v582_v61  ;;  %v605_v17 = vsub.f32 %v10116_v7, %v15780_v59  ;;  %v15777_v46 = vand.u32 4294901760, %v10138_v39  ;;  %v15778_v23 = vand.u32 4294901760, %v10149_v43  ;;  %7979 = vmatpush1.bf16.msra.mxu1 %v7978_v60 }
  0x99   :  { %16757 = vst [vmem:[#allocation225_spill] sm:$0xff] %v10997_v45  ;;  %v11013_v15 = vpack.c.bf16 %v16759_v25, %v16758_v12  ;;  %v588_v9 = vand.u32 4294901760, %v587_v20  ;;  %v600_v24 = vand.u32 4294901760, %v599_v54  ;;  %v617_v8 = vsub.f32 %v10118_v47, %v15779_v55  ;;  %8619 = vmatpush1.bf16.msra.mxu0 %v10997_v45  ;;  %v16767_v55 = vld [vmem:[#allocation60_spill] sm:$0xff] }
  0x9a   :  { %v16761_v34 = vand.u32 4294901760, %v10112_v62  ;;  %v16762_v12 = vand.u32 4294901760, %v10125_v27  ;;  %7981 = vmatprep.subr.bf16.mxu1 %v7980_v21  ;;  %v606_v44 = vand.u32 4294901760, %v605_v17  ;;  %v611_v60 = vsub.f32 %v10138_v39, %v15777_v46 }
  0x9b   :  { %16760 = vst [vmem:[#allocation226_spill] sm:$0xff] %v11013_v15  ;;  %v623_v20 = vsub.f32 %v10149_v43, %v15778_v23  ;;  %v15782_v54 = vand.u32 4294901760, %v10168_v51  ;;  %v7982_v25 = vpack.c.bf16 %v600_v24, %v588_v9  ;;  %v618_v62 = vand.u32 4294901760, %v617_v8  ;;  %8621 = vmatprep.subr.bf16.mxu0 %v11013_v15  ;;  %v16768_v8 = vld [vmem:[#allocation65_spill] sm:$0xff] }
  0x9c   :  { %v11027_v61 = vpack.c.bf16 %v16762_v12, %v16761_v34  ;;  %v15783_v27 = vand.u32 4294901760, %v10176_v14  ;;  %v16764_v21 = vand.u32 4294901760, %v10141_v2  ;;  %v16765_v17 = vand.u32 4294901760, %v10145_v50 }
  0x9d   :  { %v612_v12 = vand.u32 4294901760, %v611_v60  ;;  %v624_v46 = vand.u32 4294901760, %v623_v20  ;;  %v629_v23 = vsub.f32 %v10168_v51, %v15782_v54  ;;  %v15786_v59 = vand.u32 4294901760, %v16767_v55  ;;  %7983 = vmatpush1.bf16.msra.mxu1 %v7982_v25  ;;  %v16774_v25 = vld [vmem:[#allocation68_spill] sm:$0xff] }
  0x9e   :  { %16763 = vst [vmem:[#allocation227_spill] sm:$0xff] %v11027_v61  ;;  %v11043_v34 = vpack.c.bf16 %v16765_v17, %v16764_v21  ;;  %v7984_v9 = vpack.c.bf16 %v618_v62, %v606_v44  ;;  %v641_v24 = vsub.f32 %v10176_v14, %v15783_v27  ;;  %v15790_v2 = vand.u32 4294901760, %v16768_v8  ;;  %v16771_v21 = vld [vmem:[#allocation61_spill] sm:$0xff]  ;;  %8623 = vmatpush1.bf16.msra.mxu0 %v11027_v61 }
  0x9f   :  { %v16770_v50 = vand.u32 4294901760, %v16769_v4  ;;  %v16772_v17 = vand.u32 4294901760, %v16771_v21  ;;  %v7986_v20 = vpack.c.bf16 %v624_v46, %v612_v12  ;;  %v630_v54 = vand.u32 4294901760, %v629_v23  ;;  %v16776_v46 = vld [vmem:[#allocation62_spill] sm:$0xff] }
  0xa0   :  { %16766 = vst [vmem:[#allocation228_spill] sm:$0xff] %v11043_v34  ;;  %v635_v44 = vsub.f32 %v16767_v55, %v15786_v59  ;;  %v15793_v62 = vand.u32 4294901760, %v16774_v25  ;;  %7985 = vmatprep.subr.bf16.mxu1 %v7984_v9  ;;  %v642_v27 = vand.u32 4294901760, %v641_v24  ;;  %8625 = vmatprep.subr.bf16.mxu0 %v11043_v34  ;;  %v647_v4 = vsub.f32 %v16768_v8, %v15790_v2  ;;  %v16781_v24 = vld [vmem:[#allocation75_spill] sm:$0xff]  ;;  %v16783_v34 = vld [vmem:[#allocation69_spill] sm:$0xff] }
  0xa1   :  { %v11057_v60 = vpack.c.bf16 %v16772_v17, %v16770_v50  ;;  %v16775_v50 = vld [vmem:[#allocation72_spill] sm:$0xff]  ;;  %v16777_v12 = vand.u32 4294901760, %v16776_v46  ;;  %v16778_v17 = vld [vmem:[#allocation63_spill] sm:$0xff]  ;;  %v15801_v59 = vand.u32 4294901760, %v16781_v24  ;;  %7987 = vmatpush1.bf16.msra.mxu1 %v7986_v20 }
  0xa2   :  { %v15794_v21 = vand.u32 4294901760, %v16775_v50  ;;  %v16779_v23 = vand.u32 4294901760, %v16778_v17  ;;  %v636_v30 = vand.u32 4294901760, %v635_v44  ;;  %v653_v9 = vsub.f32 %v16774_v25, %v15793_v62  ;;  %v16789_v20 = vld [vmem:[#allocation84_spill] sm:$0xff] }
  0xa3   :  { %16773 = vst [vmem:[#allocation55_spill] sm:$0xff] %v11057_v60  ;;  %v7988_v35 = vpack.c.bf16 %v642_v27, %v630_v54  ;;  %v648_v2 = vand.u32 4294901760, %v647_v4  ;;  %v16784_v17 = vand.u32 4294901760, %v16783_v34  ;;  %8627 = vmatpush1.bf16.msra.mxu0 %v11057_v60  ;;  %v659_v29 = vsub.f32 %v16781_v24, %v15801_v59 }
  0xa4   :  { %v11073_v40 = vpack.c.bf16 %v16779_v23, %v16777_v12  ;;  %v665_v46 = vsub.f32 %v16775_v50, %v15794_v21  ;;  %v16785_v12 = vld [vmem:[#allocation70_spill] sm:$0xff]  ;;  %v654_v62 = vand.u32 4294901760, %v653_v9  ;;  %v16788_v54 = vand.u32 4294901760, %v16782_v48 }
  0xa5   :  { %v16786_v23 = vand.u32 4294901760, %v16785_v12  ;;  %v15808_v4 = vand.u32 4294901760, %v16789_v20  ;;  %7989 = vmatprep.subr.bf16.mxu1 %v7988_v35  ;;  %v7990_v21 = vpack.c.bf16 %v648_v2, %v636_v30  ;;  %v16793_v9 = vld [vmem:[#allocation78_spill] sm:$0xff]  ;;  %v660_v59 = vand.u32 4294901760, %v659_v29 }
  0xa6   :  { %16780 = vst [vmem:[#allocation61_spill] sm:$0xff] %v11073_v40  ;;  %v671_v27 = vsub.f32 %v16782_v48, %v16788_v54  ;;  %v666_v34 = vand.u32 4294901760, %v665_v46  ;;  %8629 = vmatprep.subr.bf16.mxu0 %v11073_v40  ;;  %v16794_v61 = vand.u32 4294901760, %v16793_v9  ;;  %v15814_v35 = vand.u32 4294901760, %v16796_v37  ;;  %v16797_v46 = vld [vmem:[#allocation93_spill] sm:$0xff]  ;;  %v16798_v40 = vld [vmem:[#allocation82_spill] sm:$0xff] }
  0xa7   :  { %v11087_v44 = vpack.c.bf16 %v16786_v23, %v16784_v17  ;;  %v16790_v17 = vld [vmem:[#allocation85_spill] sm:$0xff]  ;;  %v16791_v23 = vld [vmem:[#allocation76_spill] sm:$0xff]  ;;  %v677_v54 = vsub.f32 %v16789_v20, %v15808_v4  ;;  %7991 = vmatpush1.bf16.msra.mxu1 %v7990_v21  ;;  %v16799_v9 = vand.u32 4294901760, %v16798_v40 }
  0xa8   :  { %v15809_v12 = vand.u32 4294901760, %v16790_v17  ;;  %v16792_v60 = vand.u32 4294901760, %v16791_v23  ;;  %v672_v45 = vand.u32 4294901760, %v671_v27  ;;  %v7992_v30 = vpack.c.bf16 %v666_v34, %v654_v62  ;;  %v16803_v21 = vld [vmem:[#allocation96_spill] sm:$0xff] }
  0xa9   :  { %16787 = vst [vmem:[#allocation62_spill] sm:$0xff] %v11087_v44  ;;  %v15821_v23 = vand.u32 4294901760, %v16797_v46  ;;  %8631 = vmatpush1.bf16.msra.mxu0 %v11087_v44  ;;  %v678_v4 = vand.u32 4294901760, %v677_v54  ;;  %v683_v62 = vsub.f32 %v16796_v37, %v15814_v35  ;;  %v15824_v34 = vand.u32 4294901760, %v16803_v21 }
  0xaa   :  { %v11103_v15 = vpack.c.bf16 %v16794_v61, %v16792_v60  ;;  %v689_v2 = vsub.f32 %v16790_v17, %v15809_v12  ;;  %v16800_v61 = vld [vmem:[#allocation87_spill] sm:$0xff]  ;;  %v7994_v27 = vpack.c.bf16 %v672_v45, %v660_v59  ;;  %7993 = vmatprep.subr.bf16.mxu1 %v7992_v30  ;;  %v16805_v59 = vld [vmem:[#allocation90_spill] sm:$0xff] }
  0xab   :  { %v16801_v60 = vand.u32 4294901760, %v16800_v61  ;;  %v695_v40 = vsub.f32 %v16797_v46, %v15821_v23  ;;  %v16806_v45 = vand.u32 4294901760, %v16805_v59  ;;  %v684_v16 = vand.u32 4294901760, %v683_v62 }
  0xac   :  { %16795 = vst [vmem:[#allocation63_spill] sm:$0xff] %v11103_v15  ;;  %v690_v12 = vand.u32 4294901760, %v689_v2  ;;  %8633 = vmatprep.subr.bf16.mxu0 %v11103_v15  ;;  %v701_v30 = vsub.f32 %v16803_v21, %v15824_v34  ;;  %v16810_v2 = vld [vmem:[#allocation102_spill] sm:$0xff]  ;;  %v16811_v15 = vld [vmem:[#allocation107_spill] sm:$0xff]  ;;  %7995 = vmatpush1.bf16.msra.mxu1 %v7994_v27 }
  0xad   :  { %v11117_v29 = vpack.c.bf16 %v16801_v60, %v16799_v9  ;;  %v16804_v9 = vld [vmem:[#allocation99_spill] sm:$0xff]  ;;  %v15831_v35 = vand.u32 4294901760, %v16810_v2  ;;  %v696_v23 = vand.u32 4294901760, %v695_v40  ;;  %v16818_v27 = vld [vmem:[#allocation110_spill] sm:$0xff] }
  0xae   :  { %v15825_v61 = vand.u32 4294901760, %v16804_v9  ;;  %v16807_v60 = vld [vmem:[#allocation91_spill] sm:$0xff]  ;;  %v7996_v26 = vpack.c.bf16 %v690_v12, %v678_v4  ;;  %v702_v34 = vand.u32 4294901760, %v701_v30  ;;  %v16817_v4 = vand.u32 4294901760, %v16811_v15  ;;  %v16822_v30 = vld [vmem:[#allocation105_spill] sm:$0xff] }
  0xaf   :  { %16802 = vst [vmem:[#allocation69_spill] sm:$0xff] %v11117_v29  ;;  %v16808_v54 = vand.u32 4294901760, %v16807_v60  ;;  %v16813_v60 = vand.u32 4294901760, %v16812_v19  ;;  %8635 = vmatpush1.bf16.msra.mxu0 %v11117_v29  ;;  %v707_v36 = vsub.f32 %v16810_v2, %v15831_v35  ;;  %v15838_v40 = vand.u32 4294901760, %v16818_v27 }
  0xb0   :  { %v713_v59 = vsub.f32 %v16804_v9, %v15825_v61  ;;  %v719_v12 = vsub.f32 %v16811_v15, %v16817_v4  ;;  %7997 = vmatprep.subr.bf16.mxu1 %v7996_v26  ;;  %v7998_v61 = vpack.c.bf16 %v696_v23, %v684_v16  ;;  %v16823_v33 = vand.u32 4294901760, %v16822_v30 }
  0xb1   :  { %v11133_v44 = vpack.c.bf16 %v16808_v54, %v16806_v45  ;;  %v16814_v45 = vld [vmem:[#allocation103_spill] sm:$0xff]  ;;  %v708_v35 = vand.u32 4294901760, %v707_v36  ;;  %v725_v4 = vsub.f32 %v16818_v27, %v15838_v40  ;;  %v15844_v26 = vand.u32 4294901760, %v16825_v32 }
  0xb2   :  { %v16815_v54 = vand.u32 4294901760, %v16814_v45  ;;  %v714_v19 = vand.u32 4294901760, %v713_v59  ;;  %v720_v31 = vand.u32 4294901760, %v719_v12  ;;  %7999 = vmatpush1.bf16.msra.mxu1 %v7998_v61  ;;  %v16826_v59 = vld [vmem:[#allocation121_spill] sm:$0xff]  ;;  %v16832_v61 = vld [vmem:[#allocation126_spill] sm:$0xff] }
  0xb3   :  { %16809 = vst [vmem:[#allocation70_spill] sm:$0xff] %v11133_v44  ;;  %8637 = vmatprep.subr.bf16.mxu0 %v11133_v44  ;;  %v16827_v44 = vld [vmem:[#allocation111_spill] sm:$0xff]  ;;  %v726_v40 = vand.u32 4294901760, %v725_v4 }
  0xb4   :  { %v11147_v62 = vpack.c.bf16 %v16815_v54, %v16813_v60  ;;  %v16819_v60 = vld [vmem:[#allocation114_spill] sm:$0xff]  ;;  %v16820_v54 = vld [vmem:[#allocation104_spill] sm:$0xff]  ;;  %v8000_v16 = vpack.c.bf16 %v714_v19, %v702_v34  ;;  %v16828_v30 = vand.u32 4294901760, %v16827_v44  ;;  %v8002_v12 = vpack.c.bf16 %v720_v31, %v708_v35 }
  0xb5   :  { %v15839_v45 = vand.u32 4294901760, %v16819_v60  ;;  %v16821_v29 = vand.u32 4294901760, %v16820_v54  ;;  %v15849_v54 = vand.u32 4294901760, %v16826_v59  ;;  %v731_v34 = vsub.f32 %v16825_v32, %v15844_v26  ;;  %v16834_v31 = vld [vmem:[#allocation118_spill] sm:$0xff] }
  0xb6   :  { %16816 = vst [vmem:[#allocation76_spill] sm:$0xff] %v11147_v62  ;;  %8639 = vmatpush1.bf16.msra.mxu0 %v11147_v62  ;;  %v15851_v19 = vand.u32 4294901760, %v16832_v61  ;;  %8001 = vmatprep.subr.bf16.mxu1 %v8000_v16  ;;  %v16835_v35 = vand.u32 4294901760, %v16834_v31 }
  0xb7   :  { %v11163_v3 = vpack.c.bf16 %v16823_v33, %v16821_v29  ;;  %v737_v23 = vsub.f32 %v16819_v60, %v15839_v45  ;;  %v16829_v33 = vld [vmem:[#allocation112_spill] sm:$0xff]  ;;  %v743_v44 = vsub.f32 %v16826_v59, %v15849_v54  ;;  %v732_v22 = vand.u32 4294901760, %v731_v34  ;;  %8003 = vmatpush1.bf16.msra.mxu1 %v8002_v12  ;;  %v16847_v12 = vld [vmem:[#allocation138_spill] sm:$0xff] }
  0xb8   :  { %v16830_v29 = vand.u32 4294901760, %v16829_v33  ;;  %v749_v16 = vsub.f32 %v16832_v61, %v15851_v19  ;;  %v16841_v59 = vld [vmem:[#allocation124_spill] sm:$0xff] }
  0xb9   :  { %16824 = vst [vmem:[#allocation78_spill] sm:$0xff] %v11163_v3  ;;  %v738_v45 = vand.u32 4294901760, %v737_v23  ;;  %8641 = vmatprep.subr.bf16.mxu0 %v11163_v3  ;;  %v16839_v23 = vld [vmem:[#allocation131_spill] sm:$0xff]  ;;  %v744_v54 = vand.u32 4294901760, %v743_v44  ;;  %v15862_v44 = vand.u32 4294901760, %v16847_v12 }
  0xba   :  { %v11177_v36 = vpack.c.bf16 %v16830_v29, %v16828_v30  ;;  %v16833_v30 = vld [vmem:[#allocation127_spill] sm:$0xff]  ;;  %v16836_v29 = vld [vmem:[#allocation120_spill] sm:$0xff]  ;;  %v15857_v26 = vand.u32 4294901760, %v16839_v23  ;;  %v750_v19 = vand.u32 4294901760, %v749_v16  ;;  %v16851_v16 = vld [vmem:[#allocation133_spill] sm:$0xff] }
  0xbb   :  { %v15852_v33 = vand.u32 4294901760, %v16833_v30  ;;  %v16837_v4 = vand.u32 4294901760, %v16836_v29  ;;  %v16840_v3 = vld [vmem:[#allocation135_spill] sm:$0xff]  ;;  %v8004_v60 = vpack.c.bf16 %v738_v45, %v726_v40  ;;  %v16842_v29 = vand.u32 4294901760, %v16841_v59 }
  0xbc   :  { %16831 = vst [vmem:[#allocation82_spill] sm:$0xff] %v11177_v36  ;;  %8643 = vmatpush1.bf16.msra.mxu0 %v11177_v36  ;;  %v755_v32 = vsub.f32 %v16839_v23, %v15857_v26  ;;  %v16846_v40 = vand.u32 4294901760, %v16840_v3 }
  0xbd   :  { %v11193_v62 = vpack.c.bf16 %v16837_v4, %v16835_v35  ;;  %v761_v31 = vsub.f32 %v16833_v30, %v15852_v33  ;;  %v16843_v35 = vld [vmem:[#allocation129_spill] sm:$0xff]  ;;  %8005 = vmatprep.subr.bf16.mxu1 %v8004_v60  ;;  %v8006_v33 = vpack.c.bf16 %v744_v54, %v732_v22  ;;  %v16852_v30 = vand.u32 4294901760, %v16851_v16 }
  0xbe   :  { %v16844_v4 = vand.u32 4294901760, %v16843_v35  ;;  %v767_v45 = vsub.f32 %v16840_v3, %v16846_v40  ;;  %v756_v26 = vand.u32 4294901760, %v755_v32  ;;  %v773_v40 = vsub.f32 %v16847_v12, %v15862_v44  ;;  %v16854_v3 = vld [vmem:[#allocation144_spill] sm:$0xff] }
  0xbf   :  { %16838 = vst [vmem:[#allocation87_spill] sm:$0xff] %v11193_v62  ;;  %v762_v59 = vand.u32 4294901760, %v761_v31  ;;  %8645 = vmatprep.subr.bf16.mxu0 %v11193_v62  ;;  %v15867_v60 = vand.u32 4294901760, %v16854_v3  ;;  %8007 = vmatpush1.bf16.msra.mxu1 %v8006_v33  ;;  %v16855_v31 = vld [vmem:[#allocation149_spill] sm:$0xff]  ;;  %v16856_v62 = vld [vmem:[#allocation139_spill] sm:$0xff]  ;;  %v16861_v33 = vld [vmem:[#allocation152_spill] sm:$0xff] }
  0xc0   :  { %v11207_v34 = vpack.c.bf16 %v16844_v4, %v16842_v29  ;;  %v16848_v29 = vld [vmem:[#allocation141_spill] sm:$0xff]  ;;  %v16849_v4 = vld [vmem:[#allocation132_spill] sm:$0xff]  ;;  %v768_v23 = vand.u32 4294901760, %v767_v45  ;;  %v16857_v16 = vand.u32 4294901760, %v16856_v62  ;;  %v774_v44 = vand.u32 4294901760, %v773_v40 }
  0xc1   :  { %v15863_v35 = vand.u32 4294901760, %v16848_v29  ;;  %v16850_v36 = vand.u32 4294901760, %v16849_v4  ;;  %v8008_v22 = vpack.c.bf16 %v762_v59, %v750_v19  ;;  %v15872_v4 = vand.u32 4294901760, %v16855_v31 }
  0xc2   :  { %16845 = vst [vmem:[#allocation90_spill] sm:$0xff] %v11207_v34  ;;  %v8010_v45 = vpack.c.bf16 %v768_v23, %v756_v26  ;;  %8647 = vmatpush1.bf16.msra.mxu0 %v11207_v34  ;;  %v779_v19 = vsub.f32 %v16854_v3, %v15867_v60  ;;  %v15874_v59 = vand.u32 4294901760, %v16861_v33  ;;  %v16863_v26 = vld [vmem:[#allocation146_spill] sm:$0xff] }
  0xc3   :  { %v11223_v61 = vpack.c.bf16 %v16852_v30, %v16850_v36  ;;  %v785_v54 = vsub.f32 %v16848_v29, %v15863_v35  ;;  %v16858_v36 = vld [vmem:[#allocation145_spill] sm:$0xff]  ;;  %8009 = vmatprep.subr.bf16.mxu1 %v8008_v22  ;;  %v791_v62 = vsub.f32 %v16855_v31, %v15872_v4  ;;  %v16864_v23 = vand.u32 4294901760, %v16863_v26 }
  0xc4   :  { %v16859_v30 = vand.u32 4294901760, %v16858_v36  ;;  %v780_v29 = vand.u32 4294901760, %v779_v19  ;;  %v797_v22 = vsub.f32 %v16861_v33, %v15874_v59  ;;  %8011 = vmatpush1.bf16.msra.mxu1 %v8010_v45  ;;  %v16870_v31 = vld [vmem:[#allocation153_spill] sm:$0xff]  ;;  %v16876_v45 = vld [vmem:[#allocation168_spill] sm:$0xff] }
  0xc5   :  { %16853 = vst [vmem:[#allocation91_spill] sm:$0xff] %v11223_v61  ;;  %v786_v35 = vand.u32 4294901760, %v785_v54  ;;  %8649 = vmatprep.subr.bf16.mxu0 %v11223_v61  ;;  %v16868_v54 = vld [vmem:[#allocation159_spill] sm:$0xff]  ;;  %v792_v4 = vand.u32 4294901760, %v791_v62  ;;  %v15885_v62 = vand.u32 4294901760, %v16876_v45 }
  0xc6   :  { %v11237_v32 = vpack.c.bf16 %v16859_v30, %v16857_v16  ;;  %v16862_v16 = vld [vmem:[#allocation156_spill] sm:$0xff]  ;;  %v16865_v30 = vld [vmem:[#allocation147_spill] sm:$0xff]  ;;  %v15880_v60 = vand.u32 4294901760, %v16868_v54  ;;  %v798_v59 = vand.u32 4294901760, %v797_v22  ;;  %v16880_v22 = vld [vmem:[#allocation162_spill] sm:$0xff] }
  0xc7   :  { %v15875_v36 = vand.u32 4294901760, %v16862_v16  ;;  %v16866_v40 = vand.u32 4294901760, %v16865_v30  ;;  %v16869_v61 = vld [vmem:[#allocation163_spill] sm:$0xff]  ;;  %v8012_v12 = vpack.c.bf16 %v786_v35, %v774_v44  ;;  %v16871_v30 = vand.u32 4294901760, %v16870_v31 }
  0xc8   :  { %16860 = vst [vmem:[#allocation97_spill] sm:$0xff] %v11237_v32  ;;  %8651 = vmatpush1.bf16.msra.mxu0 %v11237_v32  ;;  %v803_v3 = vsub.f32 %v16868_v54, %v15880_v60  ;;  %v16875_v44 = vand.u32 4294901760, %v16869_v61 }
  0xc9   :  { %v11253_v34 = vpack.c.bf16 %v16866_v40, %v16864_v23  ;;  %v809_v26 = vsub.f32 %v16862_v16, %v15875_v36  ;;  %v16872_v23 = vld [vmem:[#allocation154_spill] sm:$0xff]  ;;  %8013 = vmatprep.subr.bf16.mxu1 %v8012_v12  ;;  %v8014_v36 = vpack.c.bf16 %v792_v4, %v780_v29  ;;  %v16881_v16 = vand.u32 4294901760, %v16880_v22 }
  0xca   :  { %v16873_v40 = vand.u32 4294901760, %v16872_v23  ;;  %v815_v35 = vsub.f32 %v16869_v61, %v16875_v44  ;;  %v804_v60 = vand.u32 4294901760, %v803_v3  ;;  %v821_v44 = vsub.f32 %v16876_v45, %v15885_v62  ;;  %v16883_v61 = vld [vmem:[#allocation173_spill] sm:$0xff] }
  0xcb   :  { %16867 = vst [vmem:[#allocation103_spill] sm:$0xff] %v11253_v34  ;;  %v810_v31 = vand.u32 4294901760, %v809_v26  ;;  %8653 = vmatprep.subr.bf16.mxu0 %v11253_v34  ;;  %v15890_v12 = vand.u32 4294901760, %v16883_v61  ;;  %8015 = vmatpush1.bf16.msra.mxu1 %v8014_v36  ;;  %v16884_v26 = vld [vmem:[#allocation177_spill] sm:$0xff]  ;;  %v16885_v34 = vld [vmem:[#allocation166_spill] sm:$0xff]  ;;  %v16890_v36 = vld [vmem:[#allocation180_spill] sm:$0xff] }
  0xcc   :  { %v11267_v19 = vpack.c.bf16 %v16873_v40, %v16871_v30  ;;  %v16877_v30 = vld [vmem:[#allocation169_spill] sm:$0xff]  ;;  %v16878_v40 = vld [vmem:[#allocation160_spill] sm:$0xff]  ;;  %v816_v54 = vand.u32 4294901760, %v815_v35  ;;  %v16886_v22 = vand.u32 4294901760, %v16885_v34  ;;  %v822_v62 = vand.u32 4294901760, %v821_v44 }
  0xcd   :  { %v15886_v23 = vand.u32 4294901760, %v16877_v30  ;;  %v16879_v32 = vand.u32 4294901760, %v16878_v40  ;;  %v8016_v29 = vpack.c.bf16 %v810_v31, %v798_v59  ;;  %v15895_v40 = vand.u32 4294901760, %v16884_v26 }
  0xce   :  { %16874 = vst [vmem:[#allocation104_spill] sm:$0xff] %v11267_v19  ;;  %v8018_v35 = vpack.c.bf16 %v816_v54, %v804_v60  ;;  %8655 = vmatpush1.bf16.msra.mxu0 %v11267_v19  ;;  %v827_v59 = vsub.f32 %v16883_v61, %v15890_v12  ;;  %v15897_v31 = vand.u32 4294901760, %v16890_v36  ;;  %v16892_v60 = vld [vmem:[#allocation174_spill] sm:$0xff] }
  0xcf   :  { %v11283_v33 = vpack.c.bf16 %v16881_v16, %v16879_v32  ;;  %v833_v4 = vsub.f32 %v16877_v30, %v15886_v23  ;;  %v16887_v32 = vld [vmem:[#allocation171_spill] sm:$0xff]  ;;  %8017 = vmatprep.subr.bf16.mxu1 %v8016_v29  ;;  %v839_v34 = vsub.f32 %v16884_v26, %v15895_v40  ;;  %v16893_v54 = vand.u32 4294901760, %v16892_v60  ;;  %v16899_v26 = vld [vmem:[#allocation181_spill] sm:$0xff] }
  0xd0   :  { %v16888_v16 = vand.u32 4294901760, %v16887_v32  ;;  %v828_v30 = vand.u32 4294901760, %v827_v59  ;;  %v845_v29 = vsub.f32 %v16890_v36, %v15897_v31  ;;  %8019 = vmatpush1.bf16.msra.mxu1 %v8018_v35  ;;  %v16905_v35 = vld [vmem:[#allocation194_spill] sm:$0xff] }
  0xd1   :  { %16882 = vst [vmem:[#allocation105_spill] sm:$0xff] %v11283_v33  ;;  %v834_v23 = vand.u32 4294901760, %v833_v4  ;;  %8657 = vmatprep.subr.bf16.mxu0 %v11283_v33  ;;  %v16897_v4 = vld [vmem:[#allocation186_spill] sm:$0xff]  ;;  %v840_v40 = vand.u32 4294901760, %v839_v34  ;;  %v15904_v34 = vand.u32 4294901760, %v16905_v35 }
  0xd2   :  { %v11297_v3 = vpack.c.bf16 %v16888_v16, %v16886_v22  ;;  %v16891_v22 = vld [vmem:[#allocation183_spill] sm:$0xff]  ;;  %v15901_v12 = vand.u32 4294901760, %v16897_v4  ;;  %v16898_v33 = vld [vmem:[#allocation190_spill] sm:$0xff]  ;;  %v846_v31 = vand.u32 4294901760, %v845_v29  ;;  %v16907_v29 = vld [vmem:[#allocation188_spill] sm:$0xff] }
  0xd3   :  { %v15898_v32 = vand.u32 4294901760, %v16891_v22  ;;  %v16894_v16 = vld [vmem:[#allocation175_spill] sm:$0xff]  ;;  %v8020_v45 = vpack.c.bf16 %v834_v23, %v822_v62  ;;  %v16904_v62 = vand.u32 4294901760, %v16898_v33 }
  0xd4   :  { %16889 = vst [vmem:[#allocation111_spill] sm:$0xff] %v11297_v3  ;;  %v16895_v44 = vand.u32 4294901760, %v16894_v16  ;;  %v16900_v16 = vand.u32 4294901760, %v16899_v26  ;;  %8659 = vmatpush1.bf16.msra.mxu0 %v11297_v3  ;;  %v851_v61 = vsub.f32 %v16897_v4, %v15901_v12 }
  0xd5   :  { %v857_v60 = vsub.f32 %v16891_v22, %v15898_v32  ;;  %v863_v23 = vsub.f32 %v16898_v33, %v16904_v62  ;;  %8021 = vmatprep.subr.bf16.mxu1 %v8020_v45  ;;  %v8022_v32 = vpack.c.bf16 %v840_v40, %v828_v30  ;;  %v869_v62 = vsub.f32 %v16905_v35, %v15904_v34  ;;  %v16910_v33 = vld [vmem:[#allocation201_spill] sm:$0xff]  ;;  %v11365_v34 = vld [vmem:[#allocation2 + $0x418] sm:$0xff] }
  0xd6   :  { %v11313_v19 = vpack.c.bf16 %v16895_v44, %v16893_v54  ;;  %v16901_v54 = vld [vmem:[#allocation187_spill] sm:$0xff]  ;;  %v852_v12 = vand.u32 4294901760, %v851_v61  ;;  %v15906_v45 = vand.u32 4294901760, %v16910_v33 }
  0xd7   :  { %v16902_v44 = vand.u32 4294901760, %v16901_v54  ;;  %v858_v26 = vand.u32 4294901760, %v857_v60  ;;  %v16906_v54 = vand.u32 4294901760, %v10723_v57  ;;  %v864_v4 = vand.u32 4294901760, %v863_v23  ;;  %8023 = vmatpush1.bf16.msra.mxu1 %v8022_v32  ;;  %v11353_v60 = vld [vmem:[#allocation2 + $0x408] sm:$0xff] }
  0xd8   :  { %16896 = vst [vmem:[#allocation112_spill] sm:$0xff] %v11313_v19  ;;  %8661 = vmatprep.subr.bf16.mxu0 %v11313_v19  ;;  %v15913_v57 = vand.u32 4294901760, %v10802_v0  ;;  %v870_v61 = vand.u32 4294901760, %v869_v62  ;;  %v875_v23 = vsub.f32 %v16910_v33, %v15906_v45  ;;  %v16913_v32 = vld [vmem:[#allocation196_spill] sm:$0xff]  ;;  %v16917_v62 = vld [vmem:[#allocation207_spill] sm:$0xff] }
  0xd9   :  { %v11327_v59 = vpack.c.bf16 %v16902_v44, %v16900_v16  ;;  %v15905_v16 = vand.u32 4294901760, %v10762_v10  ;;  %v16908_v44 = vand.u32 4294901760, %v16907_v29  ;;  %v8024_v30 = vpack.c.bf16 %v858_v26, %v846_v31  ;;  %v16911_v29 = vld [vmem:[#allocation195_spill] sm:$0xff]  ;;  %v11384_v19 = vld [vmem:[#allocation2 + $0x428] sm:$0xff] }
  0xda   :  { %v16914_v31 = vand.u32 4294901760, %v16913_v32  ;;  %v16918_v45 = vand.u32 4294901760, %v16917_v62  ;;  %v876_v32 = vand.u32 4294901760, %v875_v23  ;;  %v16922_v23 = vand.u32 4294901760, %v10849_v1 }
  0xdb   :  { %16903 = vst [vmem:[#allocation118_spill] sm:$0xff] %v11327_v59  ;;  %v11343_v3 = vpack.c.bf16 %v16908_v44, %v16906_v54  ;;  %v881_v40 = vsub.f32 %v10762_v10, %v15905_v16  ;;  %v8026_v54 = vpack.c.bf16 %v864_v4, %v852_v12  ;;  %8663 = vmatpush1.bf16.msra.mxu0 %v11327_v59  ;;  %v16912_v44 = vand.u32 4294901760, %v16911_v29  ;;  %v11377_v29 = vld [vmem:[#allocation2 + $0x400] sm:$0xff] }
  0xdc   :  { %8025 = vmatprep.subr.bf16.mxu1 %v8024_v30  ;;  %v887_v12 = vsub.f32 %v10802_v0, %v15913_v57  ;;  %v16916_v4 = vand.u32 4294901760, %v10796_v41  ;;  %v16921_v30 = vld [vmem:[#allocation10_spill] sm:$0xff]  ;;  %v15918_v41 = vand.u32 4294901760, %v11365_v34  ;;  %v16923_v62 = vand.u32 4294901760, %v10856_v5 }
  0xdd   :  { %16909 = vst [vmem:[#allocation120_spill] sm:$0xff] %v11343_v3  ;;  %v11363_v26 = vpack.c.bf16 %v16914_v31, %v16912_v44  ;;  %v882_v16 = vand.u32 4294901760, %v881_v40  ;;  %8665 = vmatprep.subr.bf16.mxu0 %v11343_v3  ;;  %v11379_v44 = vld [vmem:[#allocation2 + $0x410] sm:$0xff]  ;;  %8027 = vmatpush1.bf16.msra.mxu1 %v8026_v54  ;;  %v8040_v54 = vpack.c.bf16 %v9994_v52, %v9989_v49  ;;  %v11415_v3 = vld [vmem:[#allocation2 + $0x448] sm:$0xff]  ;;  %v16929_v5 = vand.u32 4294901760, %v11377_v29 }
  0xde   :  { %v11375_v59 = vpack.c.bf16 %v16918_v45, %v16916_v4  ;;  %v16920_v31 = vld [vmem:[#allocation9_spill] sm:$0xff]  ;;  %v888_v0 = vand.u32 4294901760, %v887_v12  ;;  %v8038_v45 = vpack.c.bf16 %v9971_v42, %v9965_v38  ;;  %v11389_v4 = vld [vmem:[#allocation2 + $0x438] sm:$0xff]  ;;  %v16925_v12 = vand.u32 4294901760, %v11353_v60  ;;  %v16935_v52 = vld [vmem:[#allocation208_spill] sm:$0xff] }
  0xdf   :  { %16915 = vst [vmem:[#allocation124_spill] sm:$0xff] %v11363_v26  ;;  %v8032_v40 = vpack.c.bf16 %v16921_v30, %v16920_v31  ;;  %v8028_v57 = vpack.c.bf16 %v882_v16, %v870_v61  ;;  %8667 = vmatpush1.bf16.msra.mxu0 %v11363_v26  ;;  %v11396_v30 = vpack.c.bf16 %v16923_v62, %v16922_v23  ;;  %v11410_v23 = vld [vmem:[#allocation2 + $0x420] sm:$0xff]  ;;  %v11412_v62 = vld [vmem:[#allocation2 + $0x430] sm:$0xff]  ;;  %v16930_v16 = vand.u32 4294901760, %v11379_v44 }
  0xe0   :  { %16919 = vst [vmem:[#allocation129_spill] sm:$0xff] %v11375_v59  ;;  %v8030_v61 = vpack.c.bf16 %v888_v0, %v876_v32  ;;  %8669 = vmatprep.subr.bf16.mxu0 %v11375_v59  ;;  %v11407_v1 = vpack.c.bf16 %v15918_v41, %v16925_v12  ;;  %v16927_v0 = vld [vmem:[#allocation13_spill] sm:$0xff]  ;;  %v16928_v59 = vld [vmem:[#allocation15_spill] sm:$0xff]  ;;  %v8042_v41 = vpack.c.bf16 %v10033_v11, %v10025_v6  ;;  %v16932_v11 = vand.u32 4294901760, %v11384_v19 }
  0xe1   :  { %16924 = vst [vmem:[#allocation132_spill] sm:$0xff] %v11396_v30  ;;  %8029 = vmatprep.subr.bf16.mxu1 %v8028_v57  ;;  %v11417_v57 = vld [vmem:[#allocation2 + $0x458] sm:$0xff]  ;;  %v8034_v32 = vpack.c.bf16 %v16927_v0, %v9932_v18  ;;  %v8036_v12 = vpack.c.bf16 %v9947_v28, %v16928_v59  ;;  %v11430_v26 = vpack.c.bf16 %v16930_v16, %v16929_v5  ;;  %v11445_v5 = vld [vmem:[#allocation2 + $0x440] sm:$0xff]  ;;  %v16937_v16 = vand.u32 4294901760, %v11412_v62  ;;  %v11544_v38 = vld [vmem:[#allocation2 + $0x4b0] sm:$0xff] }
  0xe2   :  { %16926 = vst [vmem:[#allocation133_spill] sm:$0xff] %v11407_v1  ;;  %8031 = vmatpush1.bf16.msra.mxu1 %v8030_v61  ;;  %v8044_v49 = vpack.c.bf16 %v10059_v63, %v10057_v58  ;;  %v11447_v61 = vld [vmem:[#allocation2 + $0x450] sm:$0xff]  ;;  %v8046_v63 = vpack.c.bf16 %v10089_v53, %v10087_v56  ;;  %v11454_v58 = vld [vmem:[#allocation2 + $0x478] sm:$0xff]  ;;  %v11546_v56 = vld [vmem:[#allocation2 + $0x4c8] sm:$0xff]  ;;  %v16961_v28 = vand.u32 4294901760, %v11379_v44 }
  0xe3   :  { %8033 = vmatprep.subr.bf16.mxu1 %v8032_v40  ;;  %8671 = vmatpush1.bf16.msra.mxu0 %v11396_v30  ;;  %16931 = vst [vmem:[#allocation139_spill] sm:$0xff] %v11430_v26  ;;  %v16933_v40 = vand.u32 4294901760, %v11389_v4  ;;  %v16942_v53 = vld [vmem:[#allocation213_spill] sm:$0xff]  ;;  %v11548_v59 = vld [vmem:[#allocation2 + $0x4d8] sm:$0xff]  ;;  %v11592_v18 = vld [vmem:[#allocation2 + $0x4c0] sm:$0xff] }
  0xe4   :  { %8673 = vmatprep.subr.bf16.mxu0 %v11407_v1  ;;  %v11452_v1 = vld [vmem:[#allocation2 + $0x468] sm:$0xff]  ;;  %v11572_v31 = vsub.f32 %v11379_v44, %v16961_v28 }
  0xe5   :  { %v11441_v30 = vpack.c.bf16 %v16933_v40, %v16932_v11  ;;  %893 = vmatmul.mubr.f32.vlgmr.msra.gmra.mrb[0].mxu1 %v16935_v52  ;;  %v8048_v11 = vpack.c.bf16 %v10118_v47, %v10116_v7  ;;  %v16936_v40 = vand.u32 4294901760, %v11410_v23  ;;  %v11481_v52 = vld [vmem:[#allocation2 + $0x470] sm:$0xff]  ;;  %v11486_v7 = vld [vmem:[#allocation2 + $0x488] sm:$0xff] }
  0xe6   :  { %8035 = vmatpush1.bf16.msra.mxu1 %v8034_v32  ;;  %2923 = vmatmul.mubr.f32.vlgmr.msra.gmra.mrb[0].mxu0 %v10925_v13  ;;  %v16939_v32 = vand.u32 4294901760, %v11415_v3  ;;  %v16940_v13 = vand.u32 4294901760, %v11417_v57  ;;  %16962 = vst [vmem:[#allocation175_spill] sm:$0xff] %v11572_v31  ;;  %v16984_v31 = vpack.c.bf16 %v10149_v43, %v10138_v39  ;;  %v16994_v39 = vld [vmem:[#allocation127_spill] sm:$0xff]  ;;  %v16997_v43 = vand.u32 4294901760, %v11452_v1 }
  0xe7   :  { %16934 = vst [vmem:[#allocation145_spill] sm:$0xff] %v11441_v30  ;;  %8037 = vmatprep.subr.bf16.mxu1 %v8036_v12  ;;  %8675 = vmatpush1.bf16.msra.mxu0 %v11430_v26  ;;  %v11464_v6 = vpack.c.bf16 %v16937_v16, %v16936_v40  ;;  %v11479_v40 = vld [vmem:[#allocation2 + $0x460] sm:$0xff]  ;;  %v16944_v16 = vand.u32 4294901760, %v11447_v61  ;;  %v11512_v12 = vld [vmem:[#allocation2 + $0x490] sm:$0xff] }
  0xe8   :  { %8677 = vmatprep.subr.bf16.mxu0 %v11441_v30  ;;  %v11473_v47 = vpack.c.bf16 %v16940_v13, %v16939_v32  ;;  %1093 = vmatprep.mubr.f32.mxu1 %v16942_v53  ;;  %v11488_v13 = vld [vmem:[#allocation2 + $0x498] sm:$0xff]  ;;  %v16943_v32 = vand.u32 4294901760, %v11445_v5  ;;  %v11516_v30 = vld [vmem:[#allocation2 + $0x4a8] sm:$0xff] }
  0xe9   :  { %16938 = vst [vmem:[#allocation146_spill] sm:$0xff] %v11464_v6  ;;  %v11615_v53 = vld [vmem:[#allocation2 + $0x4f8] sm:$0xff] }
  0xea   :  { %16941 = vst [vmem:[#allocation147_spill] sm:$0xff] %v11473_v47  ;;  %8039 = vmatpush1.bf16.msra.mxu1 %v8038_v45  ;;  %v11495_v26 = vpack.c.bf16 %v16944_v16, %v16943_v32  ;;  %v16946_v45 = vand.u32 4294901760, %v11452_v1  ;;  %v11510_v32 = vld [vmem:[#allocation2 + $0x480] sm:$0xff]  ;;  %v16950_v16 = vand.u32 4294901760, %v11481_v52 }
  0xeb   :  { %8041 = vmatprep.subr.bf16.mxu1 %v8040_v54  ;;  %8679 = vmatpush1.bf16.msra.mxu0 %v11464_v6  ;;  %v16947_v54 = vand.u32 4294901760, %v11454_v58 }
  0xec   :  { %16945 = vst [vmem:[#allocation153_spill] sm:$0xff] %v11495_v26  ;;  %8681 = vmatprep.subr.bf16.mxu0 %v11473_v47  ;;  %v11518_v47 = vld [vmem:[#allocation2 + $0x4b8] sm:$0xff] }
  0xed   :  { %v11506_v6 = vpack.c.bf16 %v16947_v54, %v16946_v45  ;;  %v16949_v54 = vand.u32 4294901760, %v11479_v40  ;;  %v16967_v28 = vand.u32 4294901760, %v11518_v47 }
  0xee   :  { %8043 = vmatpush1.bf16.msra.mxu1 %v8042_v41  ;;  %v16952_v41 = vand.u32 4294901760, %v11486_v7 }
  0xef   :  { %16948 = vst [vmem:[#allocation154_spill] sm:$0xff] %v11506_v6  ;;  %8045 = vmatprep.subr.bf16.mxu1 %v8044_v49  ;;  %8683 = vmatpush1.bf16.msra.mxu0 %v11495_v26  ;;  %v11527_v42 = vpack.c.bf16 %v16950_v16, %v16949_v54  ;;  %v16953_v49 = vand.u32 4294901760, %v11488_v13  ;;  %v11542_v54 = vld [vmem:[#allocation2 + $0x4a0] sm:$0xff]  ;;  %v16959_v26 = vand.u32 4294901760, %v11377_v29 }
  0xf0   :  { %8685 = vmatprep.subr.bf16.mxu0 %v11506_v6  ;;  %v16955_v6 = vand.u32 4294901760, %v11353_v60 }
  0xf1   :  { %16951 = vst [vmem:[#allocation160_spill] sm:$0xff] %v11527_v42  ;;  %v11538_v45 = vpack.c.bf16 %v16953_v49, %v16952_v41  ;;  %v16957_v49 = vand.u32 4294901760, %v11365_v34  ;;  %v11565_v0 = vsub.f32 %v11377_v29, %v16959_v26  ;;  %v16966_v29 = vand.u32 4294901760, %v11516_v30 }
  0xf2   :  { %v11555_v41 = vsub.f32 %v11353_v60, %v16955_v6  ;;  %8047 = vmatpush1.bf16.msra.mxu1 %v8046_v63  ;;  %v16963_v6 = vand.u32 4294901760, %v11510_v32  ;;  %v16969_v63 = vand.u32 4294901760, %v11384_v19 }
  0xf3   :  { %16954 = vst [vmem:[#allocation162_spill] sm:$0xff] %v11538_v45  ;;  %v11560_v16 = vsub.f32 %v11365_v34, %v16957_v49  ;;  %16960 = vst [vmem:[#allocation174_spill] sm:$0xff] %v11565_v0  ;;  %8049 = vmatprep.subr.bf16.mxu1 %v8048_v11  ;;  %8687 = vmatpush1.bf16.msra.mxu0 %v11527_v42  ;;  %v16964_v34 = vand.u32 4294901760, %v11512_v12  ;;  %v11588_v44 = vpack.c.bf16 %v16967_v28, %v16966_v29  ;;  %v11613_v42 = vld [vmem:[#allocation2 + $0x4e8] sm:$0xff] }
  0xf4   :  { %16956 = vst [vmem:[#allocation166_spill] sm:$0xff] %v11555_v41  ;;  %8689 = vmatprep.subr.bf16.mxu0 %v11538_v45  ;;  %v2977_v11 = vand.u32 4294901760, %v11546_v56  ;;  %v11601_v26 = vsub.f32 %v11384_v19, %v16969_v63  ;;  %v16971_v45 = vand.u32 4294901760, %v11389_v4  ;;  %v16973_v28 = vand.u32 4294901760, %v11410_v23 }
  0xf5   :  { %16958 = vst [vmem:[#allocation171_spill] sm:$0xff] %v11560_v16  ;;  %v11579_v60 = vpack.c.bf16 %v16964_v34, %v16963_v6  ;;  %16968 = vst [vmem:[#allocation187_spill] sm:$0xff] %v11588_v44  ;;  %v11594_v6 = vld [vmem:[#allocation2 + $0x4d0] sm:$0xff]  ;;  %v16976_v19 = vand.u32 4294901760, %v11412_v62  ;;  %v11685_v16 = vld [vmem:[#allocation2 + $0x518] sm:$0xff] }
  0xf6   :  { %16970 = vst [vmem:[#allocation188_spill] sm:$0xff] %v11601_v26  ;;  %v11606_v29 = vsub.f32 %v11389_v4, %v16971_v45  ;;  %v11611_v49 = vsub.f32 %v11410_v23, %v16973_v28  ;;  %v16975_v34 = vld [vmem:[#allocation114_spill] sm:$0xff]  ;;  %v16978_v4 = vand.u32 4294901760, %v11415_v3  ;;  %v16980_v23 = vand.u32 4294901760, %v11417_v57  ;;  %8051 = vmatpush1.bf16.msra.mxu1 %v16984_v31 }
  0xf7   :  { %16965 = vst [vmem:[#allocation181_spill] sm:$0xff] %v11579_v60  ;;  %v11622_v63 = vsub.f32 %v11412_v62, %v16976_v19  ;;  %v16985_v62 = vpack.c.bf16 %v10176_v14, %v10168_v51  ;;  %8691 = vmatpush1.bf16.msra.mxu0 %v11579_v60  ;;  %v16991_v31 = vand.u32 4294901760, %v11548_v59  ;;  %v2985_v60 = vand.u32 4294901760, %v11613_v42  ;;  %v205_v51 = vld [vmem:[#allocation2 + $0x4e0] sm:$0xff] }
  0xf8   :  { %16972 = vst [vmem:[#allocation195_spill] sm:$0xff] %v11606_v29  ;;  %16974 = vst [vmem:[#allocation196_spill] sm:$0xff] %v11611_v49  ;;  %v11627_v45 = vsub.f32 %v11415_v3, %v16978_v4  ;;  %v11632_v28 = vsub.f32 %v11417_v57, %v16980_v23  ;;  %v16982_v49 = vand.u32 4294901760, %v11445_v5  ;;  %v16986_v3 = vand.u32 4294901760, %v11542_v54  ;;  %v16990_v23 = vld [vmem:[#allocation121_spill] sm:$0xff]  ;;  %8693 = vmatprep.subr.bf16.mxu0 %v11588_v44 }
  0xf9   :  { %16977 = vst [vmem:[#allocation207_spill] sm:$0xff] %v11622_v63  ;;  %8053 = vmatprep.subr.bf16.mxu1 %v16985_v62  ;;  %v16987_v57 = vand.u32 4294901760, %v11544_v38  ;;  %v2979_v4 = vand.u32 4294901760, %v11592_v18  ;;  %v11659_v62 = vpack.c.bf16 %v16991_v31, %v2977_v11  ;;  %v2989_v14 = vand.u32 4294901760, %v11615_v53 }
  0xfa   :  { %16979 = vst [vmem:[#allocation229_spill] sm:$0xff] %v11627_v45  ;;  %16981 = vst [vmem:[#allocation230_spill] sm:$0xff] %v11632_v28  ;;  %v11637_v29 = vsub.f32 %v11445_v5, %v16982_v49  ;;  %v2983_v5 = vand.u32 4294901760, %v11594_v6  ;;  %v16989_v49 = vld [vmem:[#allocation117_spill] sm:$0xff]  ;;  %v16995_v28 = vand.u32 4294901760, %v11447_v61  ;;  %v11673_v44 = vsub.f32 %v11452_v1, %v16997_v43 }
  0xfb   :  { %v11650_v19 = vpack.c.bf16 %v16987_v57, %v16986_v3  ;;  %16992 = vst [vmem:[#allocation233_spill] sm:$0xff] %v11659_v62  ;;  %v207_v3 = vld [vmem:[#allocation2 + $0x4f0] sm:$0xff]  ;;  %v16999_v31 = vand.u32 4294901760, %v11454_v58  ;;  %v17001_v26 = vand.u32 4294901760, %v11479_v40  ;;  %v17005_v43 = vand.u32 4294901760, %v11486_v7 }
  0xfc   :  { %16983 = vst [vmem:[#allocation231_spill] sm:$0xff] %v11637_v29  ;;  %v16993_v57 = vld [vmem:[#allocation126_spill] sm:$0xff]  ;;  %v11668_v45 = vsub.f32 %v11447_v61, %v16995_v28  ;;  %16998 = vst [vmem:[#allocation235_spill] sm:$0xff] %v11673_v44  ;;  %v210_v29 = vld [vmem:[#allocation2 + $0x508] sm:$0xff]  ;;  %v17003_v61 = vand.u32 4294901760, %v11481_v52 }
  0xfd   :  { %16988 = vst [vmem:[#allocation232_spill] sm:$0xff] %v11650_v19  ;;  %v11678_v63 = vsub.f32 %v11454_v58, %v16999_v31  ;;  %v11683_v0 = vsub.f32 %v11479_v40, %v17001_v26  ;;  %v11695_v1 = vsub.f32 %v11486_v7, %v17005_v43  ;;  %v17007_v58 = vand.u32 4294901760, %v11488_v13  ;;  %v17010_v26 = vld [vmem:[#allocation131_spill] sm:$0xff]  ;;  %8695 = vmatpush1.bf16.msra.mxu0 %v11650_v19  ;;  %v17025_v44 = vld [vmem:[#allocation144_spill] sm:$0xff] }
  0xfe   :  { %16996 = vst [vmem:[#allocation234_spill] sm:$0xff] %v11668_v45  ;;  %v11690_v28 = vsub.f32 %v11481_v52, %v17003_v61  ;;  %v17009_v40 = vpack.c.bf16 %v16768_v8, %v16767_v55  ;;  %v17012_v52 = vpack.c.bf16 %v16775_v50, %v16774_v25  ;;  %v11711_v7 = vpack.c.bf16 %v2983_v5, %v2979_v4  ;;  %v209_v19 = vld [vmem:[#allocation2 + $0x500] sm:$0xff]  ;;  %v211_v25 = vld [vmem:[#allocation2 + $0x510] sm:$0xff] }
  0xff   :  { %17000 = vst [vmem:[#allocation236_spill] sm:$0xff] %v11678_v63  ;;  %17002 = vst [vmem:[#allocation237_spill] sm:$0xff] %v11683_v0  ;;  %v11700_v31 = vsub.f32 %v11488_v13, %v17007_v58  ;;  %v17011_v0 = vld [vmem:[#allocation135_spill] sm:$0xff]  ;;  %v2987_v61 = vand.u32 4294901760, %v205_v51  ;;  %v2991_v43 = vand.u32 4294901760, %v207_v3  ;;  %v17015_v13 = vld [vmem:[#allocation141_spill] sm:$0xff]  ;;  %8697 = vmatprep.subr.bf16.mxu0 %v11659_v62  ;;  %v11721_v63 = vpack.c.bf16 %v2989_v14, %v2985_v60 }
 0x100   :  { %17004 = vst [vmem:[#allocation238_spill] sm:$0xff] %v11690_v28  ;;  %17006 = vst [vmem:[#allocation239_spill] sm:$0xff] %v11695_v1  ;;  %8055 = vmatpush1.bf16.msra.mxu1 %v17009_v40  ;;  %v2993_v50 = vand.u32 4294901760, %v210_v29  ;;  %v17019_v8 = vand.u32 4294901760, %v11512_v12  ;;  %v17021_v58 = vand.u32 4294901760, %v11516_v30  ;;  %v214_v62 = vld [vmem:[#allocation2 + $0x528] sm:$0xff]  ;;  %v17027_v1 = vpack.c.bf16 %v16782_v48, %v16781_v24 }
 0x101   :  { %17008 = vst [vmem:[#allocation240_spill] sm:$0xff] %v11700_v31  ;;  %8057 = vmatprep.subr.bf16.mxu1 %v17012_v52  ;;  %17013 = vst [vmem:[#allocation241_spill] sm:$0xff] %v11711_v7  ;;  %v17016_v31 = vand.u32 4294901760, %v11510_v32  ;;  %v2997_v52 = vand.u32 4294901760, %v11685_v16  ;;  %v17026_v45 = vld [vmem:[#allocation149_spill] sm:$0xff]  ;;  %v17035_v48 = vpack.c.bf16 %v16790_v17, %v16789_v20  ;;  %8699 = vmatpush1.bf16.msra.mxu0 %v11711_v7  ;;  %v213_v24 = vld [vmem:[#allocation2 + $0x520] sm:$0xff] }
 0x102   :  { %17018 = vst [vmem:[#allocation243_spill] sm:$0xff] %v11721_v63  ;;  %v11727_v55 = vsub.f32 %v11512_v12, %v17019_v8  ;;  %v11732_v28 = vsub.f32 %v11516_v30, %v17021_v58  ;;  %v17028_v8 = vand.u32 4294901760, %v11542_v54  ;;  %v17030_v30 = vand.u32 4294901760, %v11544_v38  ;;  %8701 = vmatprep.subr.bf16.mxu0 %v11721_v63  ;;  %v215_v17 = vld [vmem:[#allocation2 + $0x530] sm:$0xff]  ;;  %v17041_v20 = vld [vmem:[#allocation163_spill] sm:$0xff] }
 0x103   :  { %v11718_v40 = vsub.f32 %v11510_v32, %v17016_v31  ;;  %v17023_v32 = vand.u32 4294901760, %v11518_v47  ;;  %v11782_v7 = vsub.f32 %v11613_v42, %v2985_v60  ;;  %v220_v63 = vld [vmem:[#allocation2 + $0x558] sm:$0xff]  ;;  %v17051_v42 = vpack.c.bf16 %v16804_v9, %v16803_v21  ;;  %v222_v21 = vld [vmem:[#allocation2 + $0x568] sm:$0xff] }
 0x104   :  { %17020 = vst [vmem:[#allocation244_spill] sm:$0xff] %v11727_v55  ;;  %17022 = vst [vmem:[#allocation245_spill] sm:$0xff] %v11732_v28  ;;  %8059 = vmatpush1.bf16.msra.mxu1 %v17027_v1  ;;  %v11747_v12 = vsub.f32 %v11542_v54, %v17028_v8  ;;  %v11752_v58 = vsub.f32 %v11544_v38, %v17030_v30  ;;  %v17036_v1 = vand.u32 4294901760, %v11548_v59  ;;  %v2995_v38 = vand.u32 4294901760, %v209_v19 }
 0x105   :  { %17017 = vst [vmem:[#allocation242_spill] sm:$0xff] %v11718_v40  ;;  %v11737_v31 = vsub.f32 %v11518_v47, %v17023_v32  ;;  %v216_v40 = vld [vmem:[#allocation2 + $0x538] sm:$0xff]  ;;  %v11755_v47 = vsub.f32 %v11546_v56, %v2977_v11  ;;  %v17033_v32 = vld [vmem:[#allocation152_spill] sm:$0xff]  ;;  %8061 = vmatprep.subr.bf16.mxu1 %v17035_v48  ;;  %v11768_v8 = vpack.c.bf16 %v2991_v43, %v2987_v61  ;;  %v2999_v30 = vand.u32 4294901760, %v211_v25 }
 0x106   :  { %17029 = vst [vmem:[#allocation247_spill] sm:$0xff] %v11747_v12  ;;  %17031 = vst [vmem:[#allocation248_spill] sm:$0xff] %v11752_v58  ;;  %v11765_v54 = vsub.f32 %v11548_v59, %v17036_v1  ;;  %v11771_v56 = vpack.c.bf16 %v2997_v52, %v2993_v50  ;;  %v3001_v11 = vand.u32 4294901760, %v214_v62  ;;  %v3005_v41 = vand.u32 4294901760, %v216_v40  ;;  %v17040_v48 = vld [vmem:[#allocation159_spill] sm:$0xff]  ;;  %v17044_v58 = vld [vmem:[#allocation168_spill] sm:$0xff] }
 0x107   :  { %17024 = vst [vmem:[#allocation246_spill] sm:$0xff] %v11737_v31  ;;  %17032 = vst [vmem:[#allocation249_spill] sm:$0xff] %v11755_v47  ;;  %v17034_v31 = vld [vmem:[#allocation156_spill] sm:$0xff]  ;;  %v11776_v59 = vsub.f32 %v11592_v18, %v2979_v4  ;;  %v11779_v1 = vsub.f32 %v11594_v6, %v2983_v5  ;;  %v17045_v12 = vld [vmem:[#allocation169_spill] sm:$0xff]  ;;  %v17046_v55 = vpack.c.bf16 %v16797_v46, %v16796_v37  ;;  %8703 = vmatpush1.bf16.msra.mxu0 %v11768_v8 }
 0x108   :  { %17037 = vst [vmem:[#allocation250_spill] sm:$0xff] %v11765_v54  ;;  %17038 = vst [vmem:[#allocation251_spill] sm:$0xff] %v11768_v8  ;;  %v218_v54 = vld [vmem:[#allocation2 + $0x548] sm:$0xff]  ;;  %v11790_v47 = vsub.f32 %v11615_v53, %v2989_v14  ;;  %v11792_v18 = vsub.f32 %v205_v51, %v2987_v61  ;;  %v11794_v4 = vsub.f32 %v207_v3, %v2991_v43  ;;  %v3003_v5 = vand.u32 4294901760, %v213_v24  ;;  %v219_v46 = vld [vmem:[#allocation2 + $0x550] sm:$0xff] }
 0x109   :  { %17039 = vst [vmem:[#allocation252_spill] sm:$0xff] %v11771_v56  ;;  %17042 = vst [vmem:[#allocation253_spill] sm:$0xff] %v11779_v1  ;;  %8063 = vmatpush1.bf16.msra.mxu1 %v17046_v55  ;;  %v11796_v6 = vsub.f32 %v210_v29, %v2993_v50  ;;  %v11802_v60 = vpack.c.bf16 %v2999_v30, %v2995_v38  ;;  %v3007_v28 = vand.u32 4294901760, %v215_v17  ;;  %v217_v55 = vld [vmem:[#allocation2 + $0x540] sm:$0xff]  ;;  %v17053_v53 = vld [vmem:[#allocation173_spill] sm:$0xff]  ;;  %8705 = vmatprep.subr.bf16.mxu0 %v11771_v56 }
 0x10a   :  { %17043 = vst [vmem:[#allocation254_spill] sm:$0xff] %v11782_v7  ;;  %17047 = vst [vmem:[#allocation255_spill] sm:$0xff] %v11790_v47  ;;  %8065 = vmatprep.subr.bf16.mxu1 %v17051_v42  ;;  %v17054_v14 = vld [vmem:[#allocation177_spill] sm:$0xff]  ;;  %v11807_v3 = vpack.c.bf16 %v3005_v41, %v3001_v11  ;;  %v3009_v50 = vand.u32 4294901760, %v218_v54  ;;  %v3013_v29 = vand.u32 4294901760, %v220_v63  ;;  %v11812_v43 = vsub.f32 %v11685_v16, %v2997_v52  ;;  %v224_v51 = vld [vmem:[#allocation2 + $0x578] sm:$0xff] }
 0x10b   :  { %17048 = vst [vmem:[#allocation256_spill] sm:$0xff] %v11792_v18  ;;  %17049 = vst [vmem:[#allocation257_spill] sm:$0xff] %v11794_v4  ;;  %v11814_v42 = vsub.f32 %v209_v19, %v2995_v38  ;;  %v11816_v8 = vsub.f32 %v211_v25, %v2999_v30  ;;  %v11818_v9 = vsub.f32 %v214_v62, %v3001_v11  ;;  %v3015_v4 = vand.u32 4294901760, %v219_v46  ;;  %v221_v61 = vld [vmem:[#allocation2 + $0x560] sm:$0xff]  ;;  %v223_v18 = vld [vmem:[#allocation2 + $0x570] sm:$0xff] }
 0x10c   :  { %17050 = vst [vmem:[#allocation258_spill] sm:$0xff] %v11796_v6  ;;  %17052 = vst [vmem:[#allocation259_spill] sm:$0xff] %v11802_v60  ;;  %v17060_v56 = vpack.c.bf16 %v16811_v15, %v16810_v2  ;;  %v11823_v37 = vsub.f32 %v216_v40, %v3005_v41  ;;  %v3011_v6 = vand.u32 4294901760, %v217_v55  ;;  %v17062_v16 = vld [vmem:[#allocation186_spill] sm:$0xff]  ;;  %v17064_v25 = vpack.c.bf16 %v16975_v34, %v16818_v27  ;;  %v226_v30 = vld [vmem:[#allocation2 + $0x588] sm:$0xff] }
 0x10d   :  { %17055 = vst [vmem:[#allocation260_spill] sm:$0xff] %v11807_v3  ;;  %17056 = vst [vmem:[#allocation261_spill] sm:$0xff] %v11812_v43  ;;  %v17063_v52 = vld [vmem:[#allocation190_spill] sm:$0xff]  ;;  %8707 = vmatpush1.bf16.msra.mxu0 %v11802_v60  ;;  %v11831_v62 = vpack.c.bf16 %v3007_v28, %v3003_v5  ;;  %v11833_v38 = vsub.f32 %v213_v24, %v3003_v5  ;;  %v11840_v11 = vpack.c.bf16 %v3013_v29, %v3009_v50  ;;  %v225_v15 = vld [vmem:[#allocation2 + $0x580] sm:$0xff] }
 0x10e   :  { %17057 = vst [vmem:[#allocation262_spill] sm:$0xff] %v11814_v42  ;;  %17058 = vst [vmem:[#allocation263_spill] sm:$0xff] %v11816_v8  ;;  %8067 = vmatpush1.bf16.msra.mxu1 %v17060_v56  ;;  %v228_v41 = vld [vmem:[#allocation2 + $0x598] sm:$0xff]  ;;  %8709 = vmatprep.subr.bf16.mxu0 %v11807_v3  ;;  %v11838_v56 = vsub.f32 %v215_v17, %v3007_v28  ;;  %v3017_v19 = vand.u32 4294901760, %v222_v21  ;;  %v3021_v34 = vand.u32 4294901760, %v224_v51  ;;  %v3019_v60 = vand.u32 4294901760, %v221_v61 }
 0x10f   :  { %17059 = vst [vmem:[#allocation264_spill] sm:$0xff] %v11818_v9  ;;  %17061 = vst [vmem:[#allocation265_spill] sm:$0xff] %v11823_v37  ;;  %8069 = vmatprep.subr.bf16.mxu1 %v17064_v25  ;;  %v11842_v25 = vsub.f32 %v218_v54, %v3009_v50  ;;  %v3023_v27 = vand.u32 4294901760, %v223_v18  ;;  %v227_v24 = vld [vmem:[#allocation2 + $0x590] sm:$0xff]  ;;  %v17070_v5 = vld [vmem:[#allocation204_spill] sm:$0xff]  ;;  %v17071_v40 = vpack.c.bf16 %v16990_v23, %v16989_v49  ;;  %v3025_v28 = vand.u32 4294901760, %v226_v30 }
 0x110   :  { %17065 = vst [vmem:[#allocation266_spill] sm:$0xff] %v11831_v62  ;;  %17066 = vst [vmem:[#allocation267_spill] sm:$0xff] %v11833_v38  ;;  %v11849_v3 = vsub.f32 %v220_v63, %v3013_v29  ;;  %v11851_v17 = vpack.c.bf16 %v3015_v4, %v3011_v6  ;;  %v230_v38 = vld [vmem:[#allocation2 + $0x5a8] sm:$0xff]  ;;  %v232_v54 = vld [vmem:[#allocation2 + $0x5b8] sm:$0xff]  ;;  %v11860_v2 = vsub.f32 %v217_v55, %v3011_v6  ;;  %v3027_v49 = vand.u32 4294901760, %v225_v15 }
 0x111   :  { %17067 = vst [vmem:[#allocation268_spill] sm:$0xff] %v11838_v56  ;;  %17068 = vst [vmem:[#allocation269_spill] sm:$0xff] %v11840_v11  ;;  %v3029_v56 = vand.u32 4294901760, %v228_v41  ;;  %v9803_v50 = vld.sshfl [vmem:[%s15396_s0 + $0x8] sm:$0xff pattern:$0x76325410]  ;;  %8711 = vmatpush1.bf16.msra.mxu0 %v11831_v62  ;;  %v11862_v63 = vsub.f32 %v219_v46, %v3015_v4  ;;  %v11864_v29 = vsub.f32 %v222_v21, %v3017_v19 }
 0x112   :  { %17069 = vst [vmem:[#allocation270_spill] sm:$0xff] %v11842_v25  ;;  %8071 = vmatpush1.bf16.msra.mxu1 %v17071_v40  ;;  %17072 = vst [vmem:[#allocation271_spill] sm:$0xff] %v11849_v3  ;;  %v17074_v25 = vpack.c.bf16 %v16994_v39, %v16993_v57  ;;  %8713 = vmatprep.subr.bf16.mxu0 %v11840_v11  ;;  %v11867_v40 = vpack.c.bf16 %v3021_v34, %v3017_v19  ;;  %v3031_v3 = vand.u32 4294901760, %v227_v24  ;;  %v229_v37 = vld [vmem:[#allocation2 + $0x5a0] sm:$0xff]  ;;  %v231_v9 = vld [vmem:[#allocation2 + $0x5b0] sm:$0xff] }
 0x113   :  { %17073 = vst [vmem:[#allocation272_spill] sm:$0xff] %v11851_v17  ;;  %17075 = vst [vmem:[#allocation273_spill] sm:$0xff] %v11860_v2  ;;  %v11869_v23 = vsub.f32 %v224_v51, %v3021_v34  ;;  %v11871_v39 = vpack.c.bf16 %v3023_v27, %v3019_v60  ;;  %v3037_v62 = vand.u32 4294901760, %v232_v54  ;;  %v17081_v46 = vpack.c.bf16 %v17011_v0, %v17010_v26  ;;  %v17086_v55 = vld [vmem:[#allocation138_spill] sm:$0xff] }
 0x114   :  { %8073 = vmatprep.subr.bf16.mxu1 %v17074_v25  ;;  %17076 = vst [vmem:[#allocation274_spill] sm:$0xff] %v11862_v63  ;;  %17077 = vst [vmem:[#allocation275_spill] sm:$0xff] %v11864_v29  ;;  %v3033_v25 = vand.u32 4294901760, %v230_v38  ;;  %v11876_v21 = vsub.f32 %v221_v61, %v3019_v60  ;;  %v11878_v4 = vsub.f32 %v223_v18, %v3023_v27  ;;  %v3035_v11 = vand.u32 4294901760, %v229_v37  ;;  %v11897_v61 = vld [vmem:[#allocation2 + $0x5c8] sm:$0xff] }
 0x115   :  { %17078 = vst [vmem:[#allocation276_spill] sm:$0xff] %v11867_v40  ;;  %17079 = vst [vmem:[#allocation277_spill] sm:$0xff] %v11869_v23  ;;  %v11880_v6 = vpack.c.bf16 %v3029_v56, %v3025_v28  ;;  %v11882_v34 = vsub.f32 %v226_v30, %v3025_v28  ;;  %v17087_v51 = vpack.c.bf16 %v17015_v13, %v17086_v55  ;;  %8715 = vmatpush1.bf16.msra.mxu0 %v11851_v17  ;;  %v11899_v30 = vld [vmem:[#allocation2 + $0x5d8] sm:$0xff]  ;;  %v11901_v28 = vld [vmem:[#allocation2 + $0x5c0] sm:$0xff] }
 0x116   :  { %17080 = vst [vmem:[#allocation278_spill] sm:$0xff] %v11871_v39  ;;  %8075 = vmatpush1.bf16.msra.mxu1 %v17081_v46  ;;  %17082 = vst [vmem:[#allocation279_spill] sm:$0xff] %v11876_v21  ;;  %v11888_v19 = vsub.f32 %v228_v41, %v3029_v56  ;;  %v3039_v57 = vand.u32 4294901760, %v231_v9  ;;  %v351_v0 = vcombine.high %v9803_v50, %v9803_v50  ;;  %8717 = vmatprep.subr.bf16.mxu0 %v11867_v40  ;;  %v11911_v40 = vld [vmem:[#allocation2 + $0x5d0] sm:$0xff]  ;;  %v11922_v17 = vld [vmem:[#allocation2 + $0x5e0] sm:$0xff] }
 0x117   :  { %17083 = vst [vmem:[#allocation280_spill] sm:$0xff] %v11878_v4  ;;  %17084 = vst [vmem:[#allocation281_spill] sm:$0xff] %v11880_v6  ;;  %8077 = vmatprep.subr.bf16.mxu1 %v17087_v51  ;;  %v11891_v60 = vpack.c.bf16 %v3031_v3, %v3027_v49  ;;  %v11893_v27 = vsub.f32 %v225_v15, %v3027_v49  ;;  %v11895_v18 = vsub.f32 %v227_v24, %v3031_v3  ;;  %v11913_v15 = vld [vmem:[#allocation2 + $0x5e8] sm:$0xff]  ;;  %v11915_v49 = vld [vmem:[#allocation2 + $0x5f8] sm:$0xff] }
 0x118   :  { %17085 = vst [vmem:[#allocation282_spill] sm:$0xff] %v11882_v34  ;;  %17088 = vst [vmem:[#allocation283_spill] sm:$0xff] %v11888_v19  ;;  %v11903_v46 = vand.u32 4294901760, %v9803_v50  ;;  %v11905_v41 = vpack.c.bf16 %v3037_v62, %v3033_v25  ;;  %v11907_v56 = vsub.f32 %v230_v38, %v3033_v25  ;;  %v11909_v51 = vsub.f32 %v232_v54, %v3037_v62  ;;  %v11924_v13 = vld [vmem:[#allocation2 + $0x5f0] sm:$0xff]  ;;  %v17099_v62 = vld [vmem:[#allocation171_spill] sm:$0xff] }
 0x119   :  { %17089 = vst [vmem:[#allocation284_spill] sm:$0xff] %v11891_v60  ;;  %17090 = vst [vmem:[#allocation285_spill] sm:$0xff] %v11893_v27  ;;  %v11917_v3 = vand.u32 4294901760, %v351_v0  ;;  %v17097_v24 = vpack.c.bf16 %v17026_v45, %v17025_v44  ;;  %v17098_v38 = vld [vmem:[#allocation166_spill] sm:$0xff]  ;;  %8719 = vmatpush1.bf16.msra.mxu0 %v11871_v39  ;;  %v11934_v45 = vpack.c.bf16 %v3039_v57, %v3035_v11  ;;  %v17108_v54 = vand.u32 4294901760, %v17099_v62 }
 0x11a   :  { %17091 = vst [vmem:[#allocation286_spill] sm:$0xff] %v11895_v18  ;;  %17092 = vst [vmem:[#allocation287_spill] sm:$0xff] %v11903_v46  ;;  %v17100_v55 = vld [vmem:[#allocation174_spill] sm:$0xff]  ;;  %v17102_v18 = vpack.c.bf16 %v17034_v31, %v17033_v32  ;;  %8721 = vmatprep.subr.bf16.mxu0 %v11880_v6  ;;  %v17106_v6 = vpack.c.bf16 %v17041_v20, %v17040_v48  ;;  %v17107_v26 = vand.u32 4294901760, %v17098_v38  ;;  %v17115_v31 = vld [vmem:[#allocation188_spill] sm:$0xff]  ;;  %v17117_v32 = vand.u32 4294901760, %v11899_v30 }
 0x11b   :  { %17093 = vst [vmem:[#allocation288_spill] sm:$0xff] %v11905_v41  ;;  %17094 = vst [vmem:[#allocation289_spill] sm:$0xff] %v11907_v56  ;;  %8079 = vmatpush1.bf16.msra.mxu1 %v17097_v24  ;;  %v11939_v25 = vsub.f32 %v351_v0, %v11917_v3  ;;  %v17109_v39 = vand.u32 4294901760, %v17100_v55  ;;  %v17111_v20 = vpack.c.bf16 %v17045_v12, %v17044_v58 }
 0x11c   :  { %17095 = vst [vmem:[#allocation290_spill] sm:$0xff] %v11909_v51  ;;  %17096 = vst [vmem:[#allocation291_spill] sm:$0xff] %v11917_v3  ;;  %v17101_v51 = vld [vmem:[#allocation175_spill] sm:$0xff]  ;;  %8081 = vmatprep.subr.bf16.mxu1 %v17102_v18  ;;  %v11946_v18 = vsub.f32 %v9803_v50, %v11903_v46  ;;  %v3077_v56 = vsub.f32 %v17098_v38, %v17107_v26  ;;  %v3089_v50 = vsub.f32 %v17099_v62, %v17108_v54  ;;  %v17140_v62 = vld [vmem:[#allocation234_spill] sm:$0xff] }
 0x11d   :  { %17103 = vst [vmem:[#allocation292_spill] sm:$0xff] %v11934_v45  ;;  %17104 = vst [vmem:[#allocation293_spill] sm:$0xff] %v11939_v25  ;;  %v3083_v24 = vsub.f32 %v17100_v55, %v17109_v39  ;;  %v17110_v44 = vand.u32 4294901760, %v17101_v51  ;;  %8723 = vmatpush1.bf16.msra.mxu0 %v11891_v60  ;;  %v11973_v26 = vsub.f32 %v231_v9, %v3039_v57  ;;  %v17114_v54 = vand.u32 4294901760, %v11939_v25  ;;  %v17120_v9 = vld [vmem:[#allocation196_spill] sm:$0xff] }
 0x11e   :  { %17105 = vst [vmem:[#allocation294_spill] sm:$0xff] %v11946_v18  ;;  %8725 = vmatprep.subr.bf16.mxu0 %v11905_v41  ;;  %v17121_v60 = vand.u32 4294901760, %v11901_v28  ;;  %v17124_v39 = vand.u32 4294901760, %v11913_v15  ;;  %v17125_v41 = vand.u32 4294901760, %v11915_v49  ;;  %v17130_v57 = vpack.c.bf16 %v17054_v14, %v17053_v53  ;;  %v17135_v14 = vld [vmem:[#allocation230_spill] sm:$0xff] }
 0x11f   :  { %8083 = vmatpush1.bf16.msra.mxu1 %v17106_v6  ;;  %v3095_v0 = vsub.f32 %v17101_v51, %v17110_v44  ;;  %v11971_v6 = vsub.f32 %v229_v37, %v3035_v11  ;;  %17113 = vst [vmem:[#allocation296_spill] sm:$0xff] %v11973_v26  ;;  %v3060_v48 = vsub.f32 %v11939_v25, %v17114_v54  ;;  %v17116_v44 = vand.u32 4294901760, %v11897_v61  ;;  %v17119_v37 = vld [vmem:[#allocation195_spill] sm:$0xff] }
 0x120   :  { %8085 = vmatprep.subr.bf16.mxu1 %v17111_v20  ;;  %v17122_v54 = vand.u32 4294901760, %v11911_v40  ;;  %v11999_v25 = vpack.c.bf16 %v17125_v41, %v17124_v39  ;;  %v3078_v46 = vand.u32 4294901760, %v3077_v56  ;;  %v17131_v55 = vpack.c.bf16 %v16891_v22, %v16890_v36 }
 0x121   :  { %17112 = vst [vmem:[#allocation295_spill] sm:$0xff] %v11971_v6  ;;  %v11984_v12 = vpack.c.bf16 %v17117_v32, %v17116_v44  ;;  %v17127_v32 = vand.u32 4294901760, %v11922_v17  ;;  %v17128_v44 = vand.u32 4294901760, %v11924_v13  ;;  %v3061_v11 = vand.u32 4294901760, %v3060_v48  ;;  %8727 = vmatpush1.bf16.msra.mxu0 %v11934_v45  ;;  %v17139_v48 = vld [vmem:[#allocation231_spill] sm:$0xff] }
 0x122   :  { %v11993_v58 = vpack.c.bf16 %v17122_v54, %v17121_v60  ;;  %17126 = vst [vmem:[#allocation299_spill] sm:$0xff] %v11999_v25  ;;  %v3090_v60 = vand.u32 4294901760, %v3089_v50  ;;  %v3084_v54 = vand.u32 4294901760, %v3083_v24  ;;  %v3096_v51 = vand.u32 4294901760, %v3095_v0 }
 0x123   :  { %17118 = vst [vmem:[#allocation297_spill] sm:$0xff] %v11984_v12  ;;  %v12005_v20 = vpack.c.bf16 %v17128_v44, %v17127_v32  ;;  %8087 = vmatpush1.bf16.msra.mxu1 %v17130_v57  ;;  %v17132_v41 = vand.u32 4294901760, %v17115_v31  ;;  %v17133_v32 = vld [vmem:[#allocation207_spill] sm:$0xff]  ;;  %v17134_v44 = vld [vmem:[#allocation229_spill] sm:$0xff]  ;;  %8729 = vmatprep.subr.bf16.mxu0 %v11984_v12  ;;  %v17136_v56 = vand.u32 4294901760, %v11946_v18  ;;  %v17138_v50 = vand.u32 4294901760, %v17120_v9 }
 0x124   :  { %17123 = vst [vmem:[#allocation298_spill] sm:$0xff] %v11993_v58  ;;  %8089 = vmatprep.subr.bf16.mxu1 %v17131_v55  ;;  %3062 = vmatprep.mubr.f32.mxu0 %v3061_v11  ;;  %v17137_v55 = vand.u32 4294901760, %v17119_v37  ;;  %v16091_v45 = vand.u32 4294901760, %v17139_v48  ;;  %v17141_v57 = vld [vmem:[#allocation235_spill] sm:$0xff]  ;;  %v17142_v12 = vld [vmem:[#allocation236_spill] sm:$0xff]  ;;  %v17143_v53 = vpack.c.bf16 %v17063_v52, %v17062_v16  ;;  %v17147_v36 = vand.u32 4294901760, %v17133_v32 }
 0x125   :  { %17129 = vst [vmem:[#allocation300_spill] sm:$0xff] %v12005_v20  ;;  %v3101_v39 = vsub.f32 %v17115_v31, %v17132_v41  ;;  %v3066_v24 = vsub.f32 %v11946_v18, %v17136_v56  ;;  %v3107_v41 = vsub.f32 %v17120_v9, %v17138_v50  ;;  %v8736_v56 = vpack.c.bf16 %v3090_v60, %v3078_v46  ;;  %v17144_v31 = vld [vmem:[#allocation237_spill] sm:$0xff]  ;;  %v17157_v52 = vld [vmem:[#allocation240_spill] sm:$0xff]  ;;  %v17283_v9 = vld [vmem:[#allocation274_spill] sm:$0xff] }
 0x126   :  { %v3113_v0 = vsub.f32 %v17119_v37, %v17137_v55  ;;  %v8738_v18 = vpack.c.bf16 %v3096_v51, %v3084_v54  ;;  %v17145_v37 = vld [vmem:[#allocation238_spill] sm:$0xff]  ;;  %v17146_v50 = vpack.c.bf16 %v10762_v10, %v16905_v35  ;;  %8731 = vmatpush1.bf16.msra.mxu0 %v11993_v58  ;;  %v3119_v11 = vsub.f32 %v17133_v32, %v17147_v36  ;;  %v17158_v16 = vld [vmem:[#allocation8_spill] sm:$0xff] }
 0x127   :  { %8091 = vmatpush1.bf16.msra.mxu1 %v17143_v53  ;;  %v17148_v22 = vand.u32 4294901760, %v17134_v44  ;;  %v17149_v46 = vand.u32 4294901760, %v17135_v14  ;;  %8733 = vmatprep.subr.bf16.mxu0 %v11999_v25  ;;  %v3067_v60 = vand.u32 4294901760, %v3066_v24  ;;  %v3102_v54 = vand.u32 4294901760, %v3101_v39 }
 0x128   :  { %8093 = vmatprep.subr.bf16.mxu1 %v17146_v50  ;;  %v3114_v38 = vand.u32 4294901760, %v3113_v0  ;;  %v3108_v50 = vand.u32 4294901760, %v3107_v41  ;;  %v3131_v55 = vsub.f32 %v17139_v48, %v16091_v45  ;;  %v17150_v36 = vand.u32 4294901760, %v17140_v62  ;;  %v17156_v45 = vld [vmem:[#allocation239_spill] sm:$0xff] }
 0x129   :  { %v3125_v53 = vsub.f32 %v17134_v44, %v17148_v22  ;;  %v3137_v51 = vsub.f32 %v17135_v14, %v17149_v46  ;;  %v17151_v22 = vand.u32 4294901760, %v17141_v57  ;;  %v17152_v46 = vand.u32 4294901760, %v17142_v12 }
 0x12a   :  { %v3143_v58 = vsub.f32 %v17140_v62, %v17150_v36  ;;  %v17153_v39 = vpack.c.bf16 %v17070_v5, %v16910_v33  ;;  %v17154_v24 = vand.u32 4294901760, %v17144_v31  ;;  %v17155_v41 = vand.u32 4294901760, %v17145_v37  ;;  %8735 = vmatpush1.bf16.msra.mxu0 %v12005_v20  ;;  %v17163_v20 = vld [vmem:[#allocation212_spill] sm:$0xff] }
 0x12b   :  { %v3149_v10 = vsub.f32 %v17141_v57, %v17151_v22  ;;  %v3161_v25 = vsub.f32 %v17142_v12, %v17152_v46  ;;  %v3120_v46 = vand.u32 4294901760, %v3119_v11  ;;  %v3126_v12 = vand.u32 4294901760, %v3125_v53  ;;  %8737 = vmatprep.subr.bf16.mxu0 %v8736_v56 }
 0x12c   :  { %8095 = vmatpush1.bf16.msra.mxu1 %v17153_v39  ;;  %v3155_v0 = vsub.f32 %v17144_v31, %v17154_v24  ;;  %v3167_v36 = vsub.f32 %v17145_v37, %v17155_v41  ;;  %v3138_v5 = vand.u32 4294901760, %v3137_v51  ;;  %v17159_v39 = vld [vmem:[#allocation242_spill] sm:$0xff]  ;;  %v17160_v57 = vand.u32 4294901760, %v11897_v61  ;;  %v17164_v31 = vld [vmem:[#allocation12_spill] sm:$0xff] }
 0x12d   :  { %8097 = vmatprep.subr.bf16.mxu1 %v17158_v16  ;;  %v17161_v41 = vand.u32 4294901760, %v11899_v30  ;;  %v8740_v22 = vpack.c.bf16 %v3114_v38, %v3102_v54  ;;  %v17162_v16 = vld [vmem:[#allocation244_spill] sm:$0xff]  ;;  %v3132_v11 = vand.u32 4294901760, %v3131_v55  ;;  %v3144_v53 = vand.u32 4294901760, %v3143_v58  ;;  %3068 = vmatmul.mubr.f32.vlgmr.msra.gmra.mrb[0].mxu0 %v3067_v60  ;;  %v17167_v54 = vld [vmem:[#allocation14_spill] sm:$0xff] }
 0x12e   :  { %v12082_v24 = vsub.f32 %v11897_v61, %v17160_v57  ;;  %v16104_v37 = vand.u32 4294901760, %v17162_v16  ;;  %v3150_v51 = vand.u32 4294901760, %v3149_v10  ;;  %v3162_v33 = vand.u32 4294901760, %v3161_v25  ;;  %8739 = vmatpush1.bf16.msra.mxu0 %v8738_v18  ;;  %3459 = vmatprep.mubr.f32.mxu0 %v11917_v3 }
 0x12f   :  { %v12087_v35 = vsub.f32 %v11899_v30, %v17161_v41  ;;  %1096 = vmatmul.mubr.f32.vlgmr.msra.gmra.mrb[0].mxu1 %v17163_v20  ;;  %v3156_v61 = vand.u32 4294901760, %v3155_v0  ;;  %v3168_v57 = vand.u32 4294901760, %v3167_v36  ;;  %v17165_v62 = vand.u32 4294901760, %v17156_v45  ;;  %8741 = vmatprep.subr.bf16.mxu0 %v8740_v22  ;;  %v17169_v0 = vld [vmem:[#allocation245_spill] sm:$0xff]  ;;  %v17170_v36 = vld [vmem:[#allocation246_spill] sm:$0xff] }
 0x130   :  { %8099 = vmatpush1.bf16.msra.mxu1 %v17164_v31  ;;  %v17166_v56 = vand.u32 4294901760, %v17157_v52  ;;  %v8742_v55 = vpack.c.bf16 %v3120_v46, %v3108_v50  ;;  %v8744_v58 = vpack.c.bf16 %v3138_v5, %v3126_v12  ;;  %v17168_v10 = vand.u32 4294901760, %v17159_v39  ;;  %v17171_v31 = vld [vmem:[#allocation247_spill] sm:$0xff]  ;;  %v17172_v20 = vld [vmem:[#allocation213_spill] sm:$0xff] }
 0x131   :  { %v3173_v30 = vsub.f32 %v17156_v45, %v17165_v62  ;;  %8101 = vmatprep.subr.bf16.mxu1 %v17167_v54  ;;  %v3191_v60 = vsub.f32 %v17162_v16, %v16104_v37  ;;  %v17173_v54 = vand.u32 4294901760, %v17172_v20  ;;  %v17174_v12 = vand.u32 4294901760, %v11901_v28  ;;  %v17178_v20 = vld [vmem:[#allocation20_spill] sm:$0xff]  ;;  %v17181_v62 = vld [vmem:[#allocation249_spill] sm:$0xff] }
 0x132   :  { %v3185_v38 = vsub.f32 %v17157_v52, %v17166_v56  ;;  %v3179_v25 = vsub.f32 %v17159_v39, %v17168_v10  ;;  %v17175_v18 = vand.u32 4294901760, %v11911_v40  ;;  %v17176_v22 = vand.u32 4294901760, %v11913_v15  ;;  %8743 = vmatpush1.bf16.msra.mxu0 %v8742_v55  ;;  %v17182_v39 = vld [vmem:[#allocation250_spill] sm:$0xff]  ;;  %v17274_v52 = vld [vmem:[#allocation257_spill] sm:$0xff] }
 0x133   :  { %1233 = vmatprep.mubr.f32.mxu1 %v17173_v54  ;;  %v12113_v5 = vsub.f32 %v11901_v28, %v17174_v12  ;;  %v8746_v10 = vpack.c.bf16 %v3144_v53, %v3132_v11  ;;  %v8748_v54 = vpack.c.bf16 %v3162_v33, %v3150_v51  ;;  %v8750_v37 = vpack.c.bf16 %v3168_v57, %v3156_v61  ;;  %v17179_v12 = vld [vmem:[#allocation24_spill] sm:$0xff] }
 0x134   :  { %v12118_v50 = vsub.f32 %v11911_v40, %v17175_v18  ;;  %v12123_v46 = vsub.f32 %v11913_v15, %v17176_v22  ;;  %8103 = vmatpush1.bf16.msra.mxu1 %v17178_v20  ;;  %v3174_v56 = vand.u32 4294901760, %v3173_v30  ;;  %v3186_v28 = vand.u32 4294901760, %v3185_v38  ;;  %v17180_v40 = vld [vmem:[#allocation248_spill] sm:$0xff]  ;;  %8745 = vmatprep.subr.bf16.mxu0 %v8744_v58  ;;  %v17188_v15 = vld [vmem:[#allocation257_spill] sm:$0xff]  ;;  %v17189_v18 = vld [vmem:[#allocation258_spill] sm:$0xff] }
 0x135   :  { %8105 = vmatprep.subr.bf16.mxu1 %v17179_v12  ;;  %v3180_v41 = vand.u32 4294901760, %v3179_v25  ;;  %v3192_v11 = vand.u32 4294901760, %v3191_v60  ;;  %v17183_v53 = vand.u32 4294901760, %v17169_v0  ;;  %v17184_v33 = vand.u32 4294901760, %v17170_v36  ;;  %v17186_v25 = vld [vmem:[#allocation30_spill] sm:$0xff]  ;;  %v17187_v60 = vld [vmem:[#allocation256_spill] sm:$0xff] }
 0x136   :  { %17177 = vst [vmem:[#allocation207_spill] sm:$0xff] %v12123_v46  ;;  %v17185_v61 = vand.u32 4294901760, %v17171_v31  ;;  %v17190_v12 = vld [vmem:[#allocation34_spill] sm:$0xff]  ;;  %8747 = vmatpush1.bf16.msra.mxu0 %v8746_v10  ;;  %v17192_v55 = vand.u32 4294901760, %v17181_v62  ;;  %v17193_v30 = vand.u32 4294901760, %v17182_v39  ;;  %v8752_v16 = vpack.c.bf16 %v3186_v28, %v3174_v56  ;;  %v17198_v56 = vld [vmem:[#allocation39_spill] sm:$0xff] }
 0x137   :  { %v3197_v22 = vsub.f32 %v17169_v0, %v17183_v53  ;;  %v3209_v51 = vsub.f32 %v17170_v36, %v17184_v33  ;;  %8749 = vmatprep.subr.bf16.mxu0 %v8748_v54  ;;  %v8754_v33 = vpack.c.bf16 %v3192_v11, %v3180_v41  ;;  %v17195_v20 = vand.u32 4294901760, %v11779_v1  ;;  %v17271_v0 = vld [vmem:[#allocation254_spill] sm:$0xff]  ;;  %v17272_v36 = vld [vmem:[#allocation255_spill] sm:$0xff] }
 0x138   :  { %v3203_v57 = vsub.f32 %v17171_v31, %v17185_v61  ;;  %8107 = vmatpush1.bf16.msra.mxu1 %v17186_v25  ;;  %v17191_v61 = vand.u32 4294901760, %v17180_v40  ;;  %v3221_v58 = vsub.f32 %v17181_v62, %v17192_v55  ;;  %v3233_v53 = vsub.f32 %v17182_v39, %v17193_v30  ;;  %v17203_v30 = vld [vmem:[#allocation44_spill] sm:$0xff]  ;;  %v17290_v31 = vld [vmem:[#allocation283_spill] sm:$0xff] }
 0x139   :  { %8109 = vmatprep.subr.bf16.mxu1 %v17190_v12  ;;  %v3198_v25 = vand.u32 4294901760, %v3197_v22  ;;  %v3210_v3 = vand.u32 4294901760, %v3209_v51  ;;  %v17194_v12 = vand.u32 4294901760, %v11776_v59  ;;  %v17196_v46 = vand.u32 4294901760, %v11782_v7 }
 0x13a   :  { %v3215_v38 = vsub.f32 %v17180_v40, %v17191_v61  ;;  %v3239_v61 = vsub.f32 %v11779_v1, %v17195_v20  ;;  %v17197_v62 = vand.u32 4294901760, %v11790_v47  ;;  %v17199_v41 = vand.u32 4294901760, %v17187_v60  ;;  %8751 = vmatpush1.bf16.msra.mxu0 %v8750_v37  ;;  %v17206_v37 = vld [vmem:[#allocation50_spill] sm:$0xff]  ;;  %v17207_v1 = vld [vmem:[#allocation56_spill] sm:$0xff] }
 0x13b   :  { %v3227_v10 = vsub.f32 %v11776_v59, %v17194_v12  ;;  %v3245_v55 = vsub.f32 %v11782_v7, %v17196_v46  ;;  %v17200_v12 = vand.u32 4294901760, %v17188_v15  ;;  %v17201_v20 = vand.u32 4294901760, %v17189_v18  ;;  %8753 = vmatprep.subr.bf16.mxu0 %v8752_v16 }
 0x13c   :  { %v3257_v54 = vsub.f32 %v11790_v47, %v17197_v62  ;;  %8111 = vmatpush1.bf16.msra.mxu1 %v17198_v56  ;;  %v3251_v28 = vsub.f32 %v17187_v60, %v17199_v41  ;;  %v17202_v46 = vand.u32 4294901760, %v11812_v43  ;;  %v3204_v62 = vand.u32 4294901760, %v3203_v57 }
 0x13d   :  { %v3263_v11 = vsub.f32 %v17188_v15, %v17200_v12  ;;  %v3269_v22 = vsub.f32 %v17189_v18, %v17201_v20  ;;  %8113 = vmatprep.subr.bf16.mxu1 %v17203_v30  ;;  %v3216_v56 = vand.u32 4294901760, %v3215_v38  ;;  %v3222_v47 = vand.u32 4294901760, %v3221_v58  ;;  %v17218_v20 = vld [vmem:[#allocation64_spill] sm:$0xff] }
 0x13e   :  { %v3281_v51 = vsub.f32 %v11812_v43, %v17202_v46  ;;  %v3234_v7 = vand.u32 4294901760, %v3233_v53  ;;  %v17204_v41 = vand.u32 4294901760, %v11915_v49  ;;  %v8756_v12 = vpack.c.bf16 %v3210_v3, %v3198_v25  ;;  %8755 = vmatpush1.bf16.msra.mxu0 %v8754_v33  ;;  %v17208_v3 = vld [vmem:[#allocation264_spill] sm:$0xff] }
 0x13f   :  { %v16122_v18 = vand.u32 4294901760, %v11816_v8  ;;  %v3228_v15 = vand.u32 4294901760, %v3227_v10  ;;  %v3240_v46 = vand.u32 4294901760, %v3239_v61  ;;  %v3246_v43 = vand.u32 4294901760, %v3245_v55 }
 0x140   :  { %v12188_v60 = vsub.f32 %v11915_v49, %v17204_v41  ;;  %v3258_v30 = vand.u32 4294901760, %v3257_v54  ;;  %8115 = vmatpush1.bf16.msra.mxu1 %v17206_v37  ;;  %v3252_v57 = vand.u32 4294901760, %v3251_v28  ;;  %v3264_v38 = vand.u32 4294901760, %v3263_v11  ;;  %v17209_v41 = vld [vmem:[#allocation265_spill] sm:$0xff]  ;;  %8757 = vmatprep.subr.bf16.mxu0 %v8756_v12  ;;  %v17211_v54 = vld [vmem:[#allocation267_spill] sm:$0xff]  ;;  %v17212_v11 = vld [vmem:[#allocation268_spill] sm:$0xff] }
 0x141   :  { %v3270_v58 = vand.u32 4294901760, %v3269_v22  ;;  %v3282_v53 = vand.u32 4294901760, %v3281_v51  ;;  %8117 = vmatprep.subr.bf16.mxu1 %v17207_v1  ;;  %v8758_v49 = vpack.c.bf16 %v3216_v56, %v3204_v62  ;;  %v8760_v16 = vpack.c.bf16 %v3234_v7, %v3222_v47  ;;  %v17216_v51 = vld [vmem:[#allocation270_spill] sm:$0xff]  ;;  %v17217_v12 = vld [vmem:[#allocation271_spill] sm:$0xff] }
 0x142   :  { %17205 = vst [vmem:[#allocation229_spill] sm:$0xff] %v12188_v60  ;;  %v17210_v10 = vand.u32 4294901760, %v11814_v42  ;;  %v3287_v55 = vsub.f32 %v11816_v8, %v16122_v18  ;;  %v17213_v33 = vand.u32 4294901760, %v11922_v17  ;;  %v17215_v47 = vand.u32 4294901760, %v11924_v13  ;;  %v17219_v1 = vld [vmem:[#allocation71_spill] sm:$0xff]  ;;  %v17289_v8 = vld [vmem:[#allocation282_spill] sm:$0xff] }
 0x143   :  { %v8762_v18 = vpack.c.bf16 %v3240_v46, %v3228_v15  ;;  %v8764_v28 = vpack.c.bf16 %v3258_v30, %v3246_v43  ;;  %v8766_v25 = vpack.c.bf16 %v3264_v38, %v3252_v57  ;;  %v8768_v22 = vpack.c.bf16 %v3282_v53, %v3270_v58  ;;  %8759 = vmatpush1.bf16.msra.mxu0 %v8758_v49  ;;  %v17227_v62 = vld [vmem:[#allocation83_spill] sm:$0xff] }
 0x144   :  { %v3275_v61 = vsub.f32 %v11814_v42, %v17210_v10  ;;  %v12207_v7 = vsub.f32 %v11922_v17, %v17213_v33  ;;  %v12212_v56 = vsub.f32 %v11924_v13, %v17215_v47  ;;  %8119 = vmatpush1.bf16.msra.mxu1 %v17218_v20  ;;  %v17220_v17 = vand.u32 4294901760, %v17208_v3  ;;  %8761 = vmatprep.subr.bf16.mxu0 %v8760_v16  ;;  %v17230_v20 = vld [vmem:[#allocation286_spill] sm:$0xff] }
 0x145   :  { %8121 = vmatprep.subr.bf16.mxu1 %v17219_v1  ;;  %v17221_v13 = vand.u32 4294901760, %v17209_v41  ;;  %v3288_v43 = vand.u32 4294901760, %v3287_v55  ;;  %v17222_v30 = vand.u32 4294901760, %v17211_v54  ;;  %v17223_v57 = vand.u32 4294901760, %v17212_v11  ;;  %v17226_v55 = vld [vmem:[#allocation77_spill] sm:$0xff] }
 0x146   :  { %17214 = vst [vmem:[#allocation213_spill] sm:$0xff] %v12207_v7  ;;  %v3293_v33 = vsub.f32 %v17208_v3, %v17220_v17  ;;  %v3276_v15 = vand.u32 4294901760, %v3275_v61  ;;  %v17224_v58 = vand.u32 4294901760, %v17216_v51  ;;  %v17225_v49 = vand.u32 4294901760, %v17217_v12  ;;  %v17285_v3 = vld [vmem:[#allocation277_spill] sm:$0xff] }
 0x147   :  { %v3305_v47 = vsub.f32 %v17209_v41, %v17221_v13  ;;  %v3299_v46 = vsub.f32 %v17211_v54, %v17222_v30  ;;  %v3311_v38 = vsub.f32 %v17212_v11, %v17223_v57  ;;  %8763 = vmatpush1.bf16.msra.mxu0 %v8762_v18  ;;  %v17229_v61 = vand.u32 4294901760, %v11862_v63  ;;  %v17238_v57 = vld [vmem:[#allocation98_spill] sm:$0xff]  ;;  %v17288_v11 = vld [vmem:[#allocation161_spill] sm:$0xff] }
 0x148   :  { %v3317_v53 = vsub.f32 %v17216_v51, %v17224_v58  ;;  %v3329_v17 = vsub.f32 %v17217_v12, %v17225_v49  ;;  %8123 = vmatpush1.bf16.msra.mxu1 %v17226_v55  ;;  %v3294_v58 = vand.u32 4294901760, %v3293_v33  ;;  %v17228_v49 = vand.u32 4294901760, %v11860_v2  ;;  %8765 = vmatprep.subr.bf16.mxu0 %v8764_v28  ;;  %v17291_v51 = vld [vmem:[#allocation167_spill] sm:$0xff] }
 0x149   :  { %8125 = vmatprep.subr.bf16.mxu1 %v17227_v62  ;;  %v3306_v1 = vand.u32 4294901760, %v3305_v47  ;;  %v3335_v55 = vsub.f32 %v11862_v63, %v17229_v61  ;;  %v3300_v13 = vand.u32 4294901760, %v3299_v46  ;;  %v3312_v30 = vand.u32 4294901760, %v3311_v38 }
 0x14a   :  { %v3323_v16 = vsub.f32 %v11860_v2, %v17228_v49  ;;  %v3318_v37 = vand.u32 4294901760, %v3317_v53  ;;  %v3330_v62 = vand.u32 4294901760, %v3329_v17  ;;  %v17231_v18 = vand.u32 4294901760, %v11864_v29  ;;  %v17233_v2 = vld [vmem:[#allocation92_spill] sm:$0xff] }
 0x14b   :  { %v17232_v47 = vand.u32 4294901760, %v11869_v23  ;;  %v17234_v28 = vand.u32 4294901760, %v11876_v21  ;;  %v17235_v38 = vand.u32 4294901760, %v11878_v4  ;;  %v17236_v53 = vand.u32 4294901760, %v11882_v34  ;;  %8767 = vmatpush1.bf16.msra.mxu0 %v8766_v25  ;;  %v17242_v25 = vld [vmem:[#allocation290_spill] sm:$0xff] }
 0x14c   :  { %v3341_v33 = vsub.f32 %v11864_v29, %v17231_v18  ;;  %8127 = vmatpush1.bf16.msra.mxu1 %v17233_v2  ;;  %v17237_v18 = vand.u32 4294901760, %v11888_v19  ;;  %v8772_v2 = vpack.c.bf16 %v3306_v1, %v3294_v58  ;;  %v3336_v29 = vand.u32 4294901760, %v3335_v55  ;;  %8769 = vmatprep.subr.bf16.mxu0 %v8768_v22  ;;  %v17243_v1 = vld [vmem:[#allocation106_spill] sm:$0xff] }
 0x14d   :  { %v3353_v49 = vsub.f32 %v11869_v23, %v17232_v47  ;;  %v3347_v46 = vsub.f32 %v11876_v21, %v17234_v28  ;;  %v3359_v61 = vsub.f32 %v11878_v4, %v17235_v38  ;;  %v3365_v17 = vsub.f32 %v11882_v34, %v17236_v53  ;;  %8129 = vmatprep.subr.bf16.mxu1 %v17238_v57  ;;  %v17241_v34 = vld [vmem:[#allocation289_spill] sm:$0xff]  ;;  %v17245_v58 = vld [vmem:[#allocation166_spill] sm:$0xff] }
 0x14e   :  { %v3377_v10 = vsub.f32 %v11888_v19, %v17237_v18  ;;  %v8770_v47 = vpack.c.bf16 %v3288_v43, %v3276_v15  ;;  %v3324_v23 = vand.u32 4294901760, %v3323_v16  ;;  %v8774_v28 = vpack.c.bf16 %v3312_v30, %v3300_v13  ;;  %v17244_v13 = vld [vmem:[#allocation113_spill] sm:$0xff]  ;;  %v17251_v30 = vld [vmem:[#allocation195_spill] sm:$0xff] }
 0x14f   :  { %v17239_v21 = vand.u32 4294901760, %v11893_v27  ;;  %v17240_v4 = vand.u32 4294901760, %v17230_v20  ;;  %v16139_v63 = vand.u32 4294901760, %v17241_v34  ;;  %v8776_v18 = vpack.c.bf16 %v3330_v62, %v3318_v37  ;;  %v17246_v37 = vld [vmem:[#allocation171_spill] sm:$0xff] }
 0x150   :  { %v3342_v19 = vand.u32 4294901760, %v3341_v33  ;;  %v3354_v57 = vand.u32 4294901760, %v3353_v49  ;;  %8131 = vmatpush1.bf16.msra.mxu1 %v17243_v1  ;;  %v3348_v43 = vand.u32 4294901760, %v3347_v46  ;;  %v3360_v22 = vand.u32 4294901760, %v3359_v61  ;;  %8771 = vmatpush1.bf16.msra.mxu0 %v8770_v47  ;;  %v17247_v61 = vld [vmem:[#allocation174_spill] sm:$0xff] }
 0x151   :  { %v3371_v38 = vsub.f32 %v11893_v27, %v17239_v21  ;;  %v3383_v53 = vsub.f32 %v17230_v20, %v17240_v4  ;;  %v3366_v16 = vand.u32 4294901760, %v3365_v17  ;;  %v3378_v55 = vand.u32 4294901760, %v3377_v10  ;;  %8133 = vmatprep.subr.bf16.mxu1 %v17244_v13  ;;  %8773 = vmatprep.subr.bf16.mxu0 %v8772_v2  ;;  %v17248_v10 = vld [vmem:[#allocation175_spill] sm:$0xff]  ;;  %v17250_v4 = vld [vmem:[#allocation188_spill] sm:$0xff]  ;;  %v17253_v17 = vld [vmem:[#allocation125_spill] sm:$0xff] }
 0x152   :  { %v8778_v21 = vpack.c.bf16 %v3336_v29, %v3324_v23  ;;  %v3389_v46 = vsub.f32 %v17241_v34, %v16139_v63  ;;  %v8780_v15 = vpack.c.bf16 %v3354_v57, %v3342_v19  ;;  %v17249_v23 = vand.u32 4294901760, %v17242_v25  ;;  %v17252_v2 = vld [vmem:[#allocation119_spill] sm:$0xff]  ;;  %v17258_v13 = vld [vmem:[#allocation236_spill] sm:$0xff] }
 0x153   :  { %v3372_v33 = vand.u32 4294901760, %v3371_v38  ;;  %v3384_v49 = vand.u32 4294901760, %v3383_v53  ;;  %v8782_v38 = vpack.c.bf16 %v3360_v22, %v3348_v43  ;;  %v8784_v53 = vpack.c.bf16 %v3378_v55, %v3366_v16  ;;  %v17256_v55 = vld [vmem:[#allocation234_spill] sm:$0xff] }
 0x154   :  { %v3401_v29 = vsub.f32 %v17242_v25, %v17249_v23  ;;  %8135 = vmatpush1.bf16.msra.mxu1 %v17252_v2  ;;  %8775 = vmatpush1.bf16.msra.mxu0 %v8774_v28  ;;  %v17254_v19 = vand.u32 4294901760, %v11971_v6  ;;  %v17255_v23 = vand.u32 4294901760, %v11973_v26  ;;  %v3390_v16 = vand.u32 4294901760, %v3389_v46  ;;  %v17266_v28 = vld [vmem:[#allocation140_spill] sm:$0xff]  ;;  %v17268_v46 = vld [vmem:[#allocation207_spill] sm:$0xff] }
 0x155   :  { %8137 = vmatprep.subr.bf16.mxu1 %v17253_v17  ;;  %8777 = vmatprep.subr.bf16.mxu0 %v8776_v18  ;;  %v8786_v22 = vpack.c.bf16 %v3384_v49, %v3372_v33  ;;  %v17262_v18 = vld [vmem:[#allocation134_spill] sm:$0xff]  ;;  %v17263_v33 = vand.u32 4294901760, %v12087_v35  ;;  %v17267_v43 = vand.u32 4294901760, %v12113_v5  ;;  %v17276_v45 = vand.u32 4294901760, %v12118_v50 }
 0x156   :  { %v3395_v57 = vsub.f32 %v11971_v6, %v17254_v19  ;;  %v3407_v62 = vsub.f32 %v11973_v26, %v17255_v23  ;;  %v3402_v2 = vand.u32 4294901760, %v3401_v29  ;;  %v17259_v19 = vand.u32 4294901760, %v12082_v24  ;;  %v17286_v29 = vld [vmem:[#allocation279_spill] sm:$0xff] }
 0x157   :  { %v3425_v49 = vsub.f32 %v12087_v35, %v17263_v33  ;;  %v17275_v33 = vld [vmem:[#allocation148_spill] sm:$0xff]  ;;  %v3431_v63 = vsub.f32 %v12118_v50, %v17276_v45  ;;  %v17280_v45 = vand.u32 4294901760, %v17268_v46  ;;  %v17293_v54 = vand.u32 4294901760, %v12212_v56 }
 0x158   :  { %v3413_v1 = vsub.f32 %v12082_v24, %v17259_v19  ;;  %8139 = vmatpush1.bf16.msra.mxu1 %v17262_v18  ;;  %8779 = vmatpush1.bf16.msra.mxu0 %v8778_v21  ;;  %v3396_v47 = vand.u32 4294901760, %v3395_v57  ;;  %v3408_v23 = vand.u32 4294901760, %v3407_v62  ;;  %v3419_v18 = vsub.f32 %v12113_v5, %v17267_v43  ;;  %v17273_v43 = vld [vmem:[#allocation256_spill] sm:$0xff]  ;;  %v17278_v19 = vld [vmem:[#allocation261_spill] sm:$0xff] }
 0x159   :  { %8141 = vmatprep.subr.bf16.mxu1 %v17266_v28  ;;  %8781 = vmatprep.subr.bf16.mxu0 %v8780_v15  ;;  %v17270_v28 = vld [vmem:[#allocation253_spill] sm:$0xff]  ;;  %v8788_v57 = vpack.c.bf16 %v3402_v2, %v3390_v16  ;;  %v3426_v15 = vand.u32 4294901760, %v3425_v49  ;;  %v3437_v17 = vsub.f32 %v17268_v46, %v17280_v45  ;;  %v17281_v2 = vand.u32 4294901760, %v12188_v60  ;;  %v17284_v49 = vld [vmem:[#allocation275_spill] sm:$0xff] }
 0x15a   :  { %v3414_v62 = vand.u32 4294901760, %v3413_v1  ;;  %v17279_v1 = vld [vmem:[#allocation155_spill] sm:$0xff]  ;;  %v17282_v16 = vld [vmem:[#allocation273_spill] sm:$0xff]  ;;  %v3420_v42 = vand.u32 4294901760, %v3419_v18 }
 0x15b   :  { %v3449_v21 = vsub.f32 %v12188_v60, %v17281_v2  ;;  %v17294_v2 = vld [vmem:[#allocation176_spill] sm:$0xff] }
 0x15c   :  { %8143 = vmatpush1.bf16.msra.mxu1 %v17275_v33  ;;  %8783 = vmatpush1.bf16.msra.mxu0 %v8782_v38  ;;  %v8790_v33 = vpack.c.bf16 %v3408_v23, %v3396_v47  ;;  %v8792_v45 = vpack.c.bf16 %v3426_v15, %v3414_v62  ;;  %v3432_v47 = vand.u32 4294901760, %v3431_v63  ;;  %v17292_v23 = vand.u32 4294901760, %v12207_v7  ;;  %v17296_v63 = vld [vmem:[#allocation189_spill] sm:$0xff] }
 0x15d   :  { %8145 = vmatprep.subr.bf16.mxu1 %v17279_v1  ;;  %8785 = vmatprep.subr.bf16.mxu0 %v8784_v53  ;;  %v17287_v53 = vld [vmem:[#allocation280_spill] sm:$0xff]  ;;  %v3455_v1 = vsub.f32 %v12212_v56, %v17293_v54  ;;  %v3438_v62 = vand.u32 4294901760, %v3437_v17  ;;  %v3450_v15 = vand.u32 4294901760, %v3449_v21 }
 0x15e   :  { %v3443_v41 = vsub.f32 %v12207_v7, %v17292_v23  ;;  %v8794_v17 = vpack.c.bf16 %v3432_v47, %v3420_v42  ;;  %v17307_v47 = vld [vmem:[#allocation15_spill] sm:$0xff] }
 0x15f   :  { %v3456_v38 = vand.u32 4294901760, %v3455_v1  ;;  %v8796_v18 = vpack.c.bf16 %v3450_v15, %v3438_v62  ;;  %v17308_v62 = vand.u32 4294901760, %v17307_v47  ;;  %v17309_v15 = vld [vmem:[#allocation16_spill] sm:$0xff] }
 0x160   :  { %8147 = vmatpush1.bf16.msra.mxu1 %v17288_v11  ;;  %8787 = vmatpush1.bf16.msra.mxu0 %v8786_v22  ;;  %v3444_v21 = vand.u32 4294901760, %v3443_v41  ;;  %v17298_v22 = vld [vmem:[#allocation9_spill] sm:$0xff]  ;;  %v17300_v11 = vld [vmem:[#allocation10_spill] sm:$0xff] }
 0x161   :  { %8149 = vmatprep.subr.bf16.mxu1 %v17291_v51  ;;  %8789 = vmatprep.subr.bf16.mxu0 %v8788_v57  ;;  %v17295_v57 = vld [vmem:[#allocation182_spill] sm:$0xff]  ;;  %v17297_v51 = vld [vmem:[#allocation197_spill] sm:$0xff]  ;;  %v17299_v23 = vand.u32 4294901760, %v17298_v22  ;;  %v17301_v46 = vand.u32 4294901760, %v17300_v11  ;;  %v17311_v11 = vpack.c.bf16 %v17246_v37, %v17245_v58 }
 0x162   :  { %v8798_v7 = vpack.c.bf16 %v3456_v38, %v3444_v21  ;;  %v17305_v41 = vld [vmem:[#allocation13_spill] sm:$0xff] }
 0x163   :  { %v8160_v54 = vpack.c.bf16 %v17301_v46, %v17299_v23  ;;  %v17306_v1 = vand.u32 4294901760, %v17305_v41  ;;  %v17312_v46 = vld [vmem:[#allocation212_spill] sm:$0xff]  ;;  %v17316_v23 = vld [vmem:[#allocation21_spill] sm:$0xff] }
 0x164   :  { %8151 = vmatpush1.bf16.msra.mxu1 %v17294_v2  ;;  %8791 = vmatpush1.bf16.msra.mxu0 %v8790_v33  ;;  %v17302_v2 = vld [vmem:[#allocation203_spill] sm:$0xff]  ;;  %v17313_v38 = vand.u32 4294901760, %v17312_v46  ;;  %v17317_v21 = vand.u32 4294901760, %v17316_v23 }
 0x165   :  { %8153 = vmatprep.subr.bf16.mxu1 %v17295_v57  ;;  %8793 = vmatprep.subr.bf16.mxu0 %v8792_v45  ;;  %v17303_v33 = vld [vmem:[#allocation11_spill] sm:$0xff] }
 0x166   :  { %v17304_v42 = vand.u32 4294901760, %v17303_v33  ;;  %v17329_v46 = vld [vmem:[#allocation31_spill] sm:$0xff] }
 0x168   :  { %8155 = vmatpush1.bf16.msra.mxu1 %v17296_v63  ;;  %8795 = vmatpush1.bf16.msra.mxu0 %v8794_v17  ;;  %v8162_v45 = vpack.c.bf16 %v17306_v1, %v17304_v42  ;;  %v17310_v17 = vand.u32 4294901760, %v17309_v15  ;;  %v17320_v42 = vld [vmem:[#allocation25_spill] sm:$0xff]  ;;  %v17322_v1 = vld [vmem:[#allocation26_spill] sm:$0xff] }
 0x169   :  { %8157 = vmatprep.subr.bf16.mxu1 %v17297_v51  ;;  %8797 = vmatprep.subr.bf16.mxu0 %v8796_v18  ;;  %v17314_v18 = vld [vmem:[#allocation19_spill] sm:$0xff]  ;;  %v17321_v41 = vand.u32 4294901760, %v17320_v42  ;;  %v17323_v47 = vand.u32 4294901760, %v17322_v1  ;;  %v17325_v15 = vld [vmem:[#allocation209_spill] sm:$0xff]  ;;  %v17335_v42 = vld [vmem:[#allocation36_spill] sm:$0xff] }
 0x16a   :  { %v8164_v51 = vpack.c.bf16 %v17310_v17, %v17308_v62  ;;  %v17315_v22 = vand.u32 4294901760, %v17314_v18  ;;  %v17326_v17 = vld [vmem:[#allocation293_spill] sm:$0xff] }
 0x16b   :  { %v8168_v62 = vpack.c.bf16 %v17323_v47, %v17321_v41  ;;  %v17336_v41 = vand.u32 4294901760, %v17335_v42  ;;  %v17337_v47 = vpack.c.bf16 %v17135_v14, %v17134_v44  ;;  %v17361_v14 = vld [vmem:[#allocation239_spill] sm:$0xff] }
 0x16c   :  { %8159 = vmatpush1.bf16.msra.mxu1 %v17302_v2  ;;  %8799 = vmatpush1.bf16.msra.mxu0 %v8798_v7  ;;  %v8166_v33 = vpack.c.bf16 %v17317_v21, %v17315_v22  ;;  %v17319_v7 = vpack.c.bf16 %v17248_v10, %v17247_v61  ;;  %v17331_v22 = vld [vmem:[#allocation196_spill] sm:$0xff]  ;;  %v17333_v21 = vld [vmem:[#allocation35_spill] sm:$0xff] }
 0x16d   :  { %8161 = vmatprep.subr.bf16.mxu1 %v8160_v54  ;;  %8801 = vmatprep.subr.bf16.mxu0 %v17311_v11  ;;  %v17318_v54 = vld [vmem:[#allocation287_spill] sm:$0xff]  ;;  %v17327_v11 = vld [vmem:[#allocation29_spill] sm:$0xff]  ;;  %v17332_v23 = vpack.c.bf16 %v17133_v32, %v17331_v22 }
 0x16f   :  { %1237 = vmatmul.mubr.f32.vlgmr.msra.gmra.mrb[0].mxu1 %v17313_v38  ;;  %3461 = vmatmul.mubr.f32.vlgmr.msra.gmra.mrb[0].mxu0 %v17318_v54  ;;  %v17330_v38 = vand.u32 4294901760, %v17329_v46 }
 0x170   :  { %8163 = vmatpush1.bf16.msra.mxu1 %v8162_v45  ;;  %8803 = vmatpush1.bf16.msra.mxu0 %v17319_v7  ;;  %v17324_v45 = vpack.c.bf16 %v17251_v30, %v17250_v4  ;;  %v17334_v7 = vand.u32 4294901760, %v17333_v21  ;;  %v17345_v21 = vld [vmem:[#allocation46_spill] sm:$0xff] }
 0x171   :  { %8165 = vmatprep.subr.bf16.mxu1 %v8164_v51  ;;  %1500 = vmatprep.mubr.f32.mxu1 %v17325_v15  ;;  %v17328_v51 = vand.u32 4294901760, %v17327_v11  ;;  %v17340_v11 = vld [vmem:[#allocation41_spill] sm:$0xff]  ;;  %v17346_v42 = vand.u32 4294901760, %v17345_v21 }
 0x172   :  { %8805 = vmatprep.subr.bf16.mxu0 %v17324_v45  ;;  %3661 = vmatprep.mubr.f32.mxu0 %v17326_v17  ;;  %v8172_v1 = vpack.c.bf16 %v17336_v41, %v17334_v7  ;;  %v17341_v46 = vand.u32 4294901760, %v17340_v11  ;;  %v17347_v41 = vld [vmem:[#allocation235_spill] sm:$0xff] }
 0x173   :  { %v8170_v18 = vpack.c.bf16 %v17330_v38, %v17328_v51  ;;  %v17343_v38 = vld [vmem:[#allocation45_spill] sm:$0xff]  ;;  %v17348_v54 = vpack.c.bf16 %v17258_v13, %v17347_v41 }
 0x174   :  { %8167 = vmatpush1.bf16.msra.mxu1 %v8166_v33  ;;  %8807 = vmatpush1.bf16.msra.mxu0 %v17332_v23  ;;  %v17338_v33 = vld [vmem:[#allocation40_spill] sm:$0xff]  ;;  %v17344_v23 = vand.u32 4294901760, %v17343_v38  ;;  %v17375_v41 = vld [vmem:[#allocation245_spill] sm:$0xff] }
 0x175   :  { %8169 = vmatprep.subr.bf16.mxu1 %v8168_v62  ;;  %8809 = vmatprep.subr.bf16.mxu0 %v17337_v47  ;;  %v17339_v45 = vand.u32 4294901760, %v17338_v33  ;;  %v17342_v62 = vpack.c.bf16 %v17256_v55, %v17139_v48  ;;  %v17351_v33 = vld [vmem:[#allocation51_spill] sm:$0xff]  ;;  %v17358_v48 = vld [vmem:[#allocation57_spill] sm:$0xff] }
 0x176   :  { %v8176_v7 = vpack.c.bf16 %v17346_v42, %v17344_v23  ;;  %v17352_v11 = vand.u32 4294901760, %v17351_v33  ;;  %v17359_v21 = vand.u32 4294901760, %v17358_v48  ;;  %v17360_v42 = vld [vmem:[#allocation240_spill] sm:$0xff] }
 0x177   :  { %v8174_v51 = vpack.c.bf16 %v17341_v46, %v17339_v45  ;;  %v17354_v46 = vld [vmem:[#allocation237_spill] sm:$0xff]  ;;  %v17362_v13 = vpack.c.bf16 %v17360_v42, %v17361_v14 }
 0x178   :  { %8171 = vmatpush1.bf16.msra.mxu1 %v8170_v18  ;;  %8811 = vmatpush1.bf16.msra.mxu0 %v17342_v62  ;;  %v17349_v18 = vld [vmem:[#allocation49_spill] sm:$0xff]  ;;  %v17356_v62 = vld [vmem:[#allocation54_spill] sm:$0xff] }
 0x179   :  { %8173 = vmatprep.subr.bf16.mxu1 %v8172_v1  ;;  %8813 = vmatprep.subr.bf16.mxu0 %v17348_v54  ;;  %v17350_v47 = vand.u32 4294901760, %v17349_v18  ;;  %v17353_v1 = vld [vmem:[#allocation238_spill] sm:$0xff]  ;;  %v17357_v38 = vand.u32 4294901760, %v17356_v62  ;;  %v17363_v54 = vld [vmem:[#allocation60_spill] sm:$0xff]  ;;  %v17365_v18 = vld [vmem:[#allocation65_spill] sm:$0xff] }
 0x17a   :  { %v17355_v55 = vpack.c.bf16 %v17353_v1, %v17354_v46  ;;  %v17366_v33 = vand.u32 4294901760, %v17365_v18  ;;  %v17372_v46 = vld [vmem:[#allocation72_spill] sm:$0xff] }
 0x17b   :  { %v8178_v45 = vpack.c.bf16 %v17352_v11, %v17350_v47  ;;  %v8180_v23 = vpack.c.bf16 %v17359_v21, %v17357_v38  ;;  %v17368_v11 = vld [vmem:[#allocation242_spill] sm:$0xff]  ;;  %v17373_v48 = vand.u32 4294901760, %v17372_v46 }
 0x17c   :  { %8175 = vmatpush1.bf16.msra.mxu1 %v8174_v51  ;;  %8815 = vmatpush1.bf16.msra.mxu0 %v17355_v55  ;;  %v17364_v51 = vand.u32 4294901760, %v17363_v54  ;;  %v17370_v55 = vld [vmem:[#allocation68_spill] sm:$0xff]  ;;  %v17374_v21 = vld [vmem:[#allocation246_spill] sm:$0xff]  ;;  %v17379_v54 = vld [vmem:[#allocation79_spill] sm:$0xff] }
 0x17d   :  { %8177 = vmatprep.subr.bf16.mxu1 %v8176_v7  ;;  %8817 = vmatprep.subr.bf16.mxu0 %v17362_v13  ;;  %v17367_v7 = vld [vmem:[#allocation244_spill] sm:$0xff]  ;;  %v17371_v62 = vand.u32 4294901760, %v17370_v55  ;;  %v17376_v42 = vpack.c.bf16 %v17374_v21, %v17375_v41  ;;  %v17377_v13 = vld [vmem:[#allocation75_spill] sm:$0xff]  ;;  %v17380_v18 = vand.u32 4294901760, %v17379_v54 }
 0x17e   :  { %v8182_v47 = vpack.c.bf16 %v17366_v33, %v17364_v51  ;;  %v17369_v1 = vpack.c.bf16 %v17367_v7, %v17368_v11  ;;  %v17385_v7 = vld [vmem:[#allocation85_spill] sm:$0xff] }
 0x17f   :  { %v8184_v38 = vpack.c.bf16 %v17373_v48, %v17371_v62  ;;  %v17386_v46 = vand.u32 4294901760, %v17385_v7  ;;  %v17387_v48 = vld [vmem:[#allocation249_spill] sm:$0xff] }
 0x180   :  { %8179 = vmatpush1.bf16.msra.mxu1 %v8178_v45  ;;  %8819 = vmatpush1.bf16.msra.mxu0 %v17369_v1  ;;  %v17378_v45 = vand.u32 4294901760, %v17377_v13  ;;  %v17383_v1 = vld [vmem:[#allocation84_spill] sm:$0xff]  ;;  %v17388_v21 = vpack.c.bf16 %v17182_v39, %v17387_v48  ;;  %v17391_v13 = vld [vmem:[#allocation93_spill] sm:$0xff] }
 0x181   :  { %8181 = vmatprep.subr.bf16.mxu1 %v8180_v23  ;;  %8821 = vmatprep.subr.bf16.mxu0 %v17376_v42  ;;  %v17381_v23 = vld [vmem:[#allocation247_spill] sm:$0xff]  ;;  %v17384_v55 = vand.u32 4294901760, %v17383_v1  ;;  %v17389_v42 = vld [vmem:[#allocation89_spill] sm:$0xff]  ;;  %v17392_v54 = vand.u32 4294901760, %v17391_v13 }
 0x182   :  { %v8186_v51 = vpack.c.bf16 %v17380_v18, %v17378_v45  ;;  %v17382_v33 = vpack.c.bf16 %v17180_v40, %v17381_v23  ;;  %v17394_v18 = vld [vmem:[#allocation96_spill] sm:$0xff]  ;;  %v17396_v1 = vld [vmem:[#allocation99_spill] sm:$0xff] }
 0x183   :  { %v8188_v62 = vpack.c.bf16 %v17386_v46, %v17384_v55  ;;  %v17397_v7 = vand.u32 4294901760, %v17396_v1  ;;  %v17398_v46 = vpack.c.bf16 %v17272_v36, %v17271_v0  ;;  %v17422_v0 = vld [vmem:[#allocation264_spill] sm:$0xff] }
 0x184   :  { %8183 = vmatpush1.bf16.msra.mxu1 %v8182_v47  ;;  %8823 = vmatpush1.bf16.msra.mxu0 %v17382_v33  ;;  %v17390_v47 = vand.u32 4294901760, %v17389_v42  ;;  %v17395_v33 = vand.u32 4294901760, %v17394_v18  ;;  %v17401_v42 = vld [vmem:[#allocation107_spill] sm:$0xff]  ;;  %v17406_v18 = vld [vmem:[#allocation114_spill] sm:$0xff] }
 0x185   :  { %8185 = vmatprep.subr.bf16.mxu1 %v8184_v38  ;;  %8825 = vmatprep.subr.bf16.mxu0 %v17388_v21  ;;  %v17393_v38 = vpack.c.bf16 %v17270_v28, %v11776_v59  ;;  %v17399_v21 = vld [vmem:[#allocation102_spill] sm:$0xff]  ;;  %v17402_v13 = vand.u32 4294901760, %v17401_v42  ;;  %v17407_v1 = vand.u32 4294901760, %v17406_v18 }
 0x186   :  { %v8190_v45 = vpack.c.bf16 %v17392_v54, %v17390_v47  ;;  %v8192_v55 = vpack.c.bf16 %v17397_v7, %v17395_v33  ;;  %v17404_v54 = vld [vmem:[#allocation110_spill] sm:$0xff] }
 0x187   :  { %v17408_v7 = vld [vmem:[#allocation258_spill] sm:$0xff] }
 0x188   :  { %8187 = vmatpush1.bf16.msra.mxu1 %v8186_v51  ;;  %8827 = vmatpush1.bf16.msra.mxu0 %v17393_v38  ;;  %v17400_v51 = vand.u32 4294901760, %v17399_v21  ;;  %v17405_v38 = vand.u32 4294901760, %v17404_v54  ;;  %v17409_v36 = vpack.c.bf16 %v17278_v19, %v17408_v7  ;;  %v17412_v21 = vld [vmem:[#allocation121_spill] sm:$0xff] }
 0x189   :  { %8189 = vmatprep.subr.bf16.mxu1 %v8188_v62  ;;  %8829 = vmatprep.subr.bf16.mxu0 %v17398_v46  ;;  %v17403_v62 = vpack.c.bf16 %v17274_v52, %v17273_v43  ;;  %v17413_v42 = vand.u32 4294901760, %v17412_v21  ;;  %v17419_v43 = vld [vmem:[#allocation127_spill] sm:$0xff] }
 0x18a   :  { %v8194_v47 = vpack.c.bf16 %v17402_v13, %v17400_v51  ;;  %v8196_v33 = vpack.c.bf16 %v17407_v1, %v17405_v38  ;;  %v17415_v13 = vld [vmem:[#allocation262_spill] sm:$0xff]  ;;  %v17420_v18 = vand.u32 4294901760, %v17419_v43  ;;  %v17421_v1 = vld [vmem:[#allocation265_spill] sm:$0xff] }
 0x18b   :  { %v17423_v19 = vpack.c.bf16 %v17421_v1, %v17422_v0 }
 0x18c   :  { %8191 = vmatpush1.bf16.msra.mxu1 %v8190_v45  ;;  %8831 = vmatpush1.bf16.msra.mxu0 %v17403_v62  ;;  %v17410_v45 = vld [vmem:[#allocation117_spill] sm:$0xff]  ;;  %v17417_v62 = vld [vmem:[#allocation126_spill] sm:$0xff] }
 0x18d   :  { %8193 = vmatprep.subr.bf16.mxu1 %v8192_v55  ;;  %8833 = vmatprep.subr.bf16.mxu0 %v17409_v36  ;;  %v17411_v46 = vand.u32 4294901760, %v17410_v45  ;;  %v17414_v55 = vld [vmem:[#allocation263_spill] sm:$0xff]  ;;  %v17418_v54 = vand.u32 4294901760, %v17417_v62 }
 0x18e   :  { %v17416_v52 = vpack.c.bf16 %v17414_v55, %v17415_v13  ;;  %v17424_v36 = vld [vmem:[#allocation131_spill] sm:$0xff]  ;;  %v17433_v13 = vld [vmem:[#allocation141_spill] sm:$0xff] }
 0x18f   :  { %v8198_v51 = vpack.c.bf16 %v17413_v42, %v17411_v46  ;;  %v8200_v38 = vpack.c.bf16 %v17420_v18, %v17418_v54  ;;  %v17426_v45 = vld [vmem:[#allocation135_spill] sm:$0xff]  ;;  %v17434_v43 = vand.u32 4294901760, %v17433_v13  ;;  %v17435_v18 = vld [vmem:[#allocation270_spill] sm:$0xff] }
 0x190   :  { %8195 = vmatpush1.bf16.msra.mxu1 %v8194_v47  ;;  %8835 = vmatpush1.bf16.msra.mxu0 %v17416_v52  ;;  %v17425_v47 = vand.u32 4294901760, %v17424_v36  ;;  %v17427_v21 = vand.u32 4294901760, %v17426_v45  ;;  %v17429_v42 = vld [vmem:[#allocation267_spill] sm:$0xff]  ;;  %v17431_v52 = vld [vmem:[#allocation138_spill] sm:$0xff]  ;;  %v17436_v1 = vpack.c.bf16 %v17217_v12, %v17435_v18  ;;  %v17439_v36 = vld [vmem:[#allocation149_spill] sm:$0xff] }
 0x191   :  { %8197 = vmatprep.subr.bf16.mxu1 %v8196_v33  ;;  %8837 = vmatprep.subr.bf16.mxu0 %v17423_v19  ;;  %v17428_v33 = vld [vmem:[#allocation268_spill] sm:$0xff]  ;;  %v17432_v62 = vand.u32 4294901760, %v17431_v52  ;;  %v17440_v45 = vand.u32 4294901760, %v17439_v36 }
 0x192   :  { %v8202_v46 = vpack.c.bf16 %v17427_v21, %v17425_v47  ;;  %v17430_v55 = vpack.c.bf16 %v17428_v33, %v17429_v42  ;;  %v17437_v19 = vld [vmem:[#allocation144_spill] sm:$0xff] }
 0x193   :  { %v8204_v54 = vpack.c.bf16 %v17434_v43, %v17432_v62  ;;  %v17444_v52 = vld [vmem:[#allocation156_spill] sm:$0xff]  ;;  %v17446_v43 = vpack.c.bf16 %v17285_v3, %v17284_v49 }
 0x194   :  { %8199 = vmatpush1.bf16.msra.mxu1 %v8198_v51  ;;  %8839 = vmatpush1.bf16.msra.mxu0 %v17430_v55  ;;  %v17438_v51 = vand.u32 4294901760, %v17437_v19  ;;  %v17442_v55 = vld [vmem:[#allocation152_spill] sm:$0xff]  ;;  %v17445_v13 = vand.u32 4294901760, %v17444_v52  ;;  %v17449_v19 = vld [vmem:[#allocation163_spill] sm:$0xff] }
 0x195   :  { %8201 = vmatprep.subr.bf16.mxu1 %v8200_v38  ;;  %8841 = vmatprep.subr.bf16.mxu0 %v17436_v1  ;;  %v17441_v38 = vpack.c.bf16 %v17283_v9, %v17282_v16  ;;  %v17443_v21 = vand.u32 4294901760, %v17442_v55  ;;  %v17447_v1 = vld [vmem:[#allocation159_spill] sm:$0xff]  ;;  %v17450_v36 = vand.u32 4294901760, %v17449_v19  ;;  %v17454_v55 = vld [vmem:[#allocation169_spill] sm:$0xff] }
 0x196   :  { %v8206_v47 = vpack.c.bf16 %v17440_v45, %v17438_v51  ;;  %v17452_v45 = vld [vmem:[#allocation168_spill] sm:$0xff]  ;;  %v17455_v52 = vand.u32 4294901760, %v17454_v55 }
 0x197   :  { %v8208_v62 = vpack.c.bf16 %v17445_v13, %v17443_v21  ;;  %v17456_v13 = vpack.c.bf16 %v17290_v31, %v17289_v8 }
 0x198   :  { %8203 = vmatpush1.bf16.msra.mxu1 %v8202_v46  ;;  %8843 = vmatpush1.bf16.msra.mxu0 %v17441_v38  ;;  %v17448_v46 = vand.u32 4294901760, %v17447_v1  ;;  %v17453_v38 = vand.u32 4294901760, %v17452_v45  ;;  %v17459_v1 = vld [vmem:[#allocation177_spill] sm:$0xff]  ;;  %v17464_v45 = vld [vmem:[#allocation183_spill] sm:$0xff] }
 0x199   :  { %8205 = vmatprep.subr.bf16.mxu1 %v8204_v54  ;;  %8845 = vmatprep.subr.bf16.mxu0 %v17446_v43  ;;  %v17451_v54 = vpack.c.bf16 %v17287_v53, %v17286_v29  ;;  %v17460_v19 = vand.u32 4294901760, %v17459_v1  ;;  %v17465_v55 = vand.u32 4294901760, %v17464_v45  ;;  %v17469_v1 = vld [vmem:[#allocation18_spill] sm:$0xff] }
 0x19a   :  { %v8210_v51 = vpack.c.bf16 %v17450_v36, %v17448_v46  ;;  %v8212_v21 = vpack.c.bf16 %v17455_v52, %v17453_v38  ;;  %v17462_v36 = vld [vmem:[#allocation180_spill] sm:$0xff]  ;;  %v17466_v52 = vpack.c.bf16 %v17242_v25, %v17241_v34  ;;  %v17476_v45 = vld [vmem:[#allocation194_spill] sm:$0xff] }
 0x19c   :  { %8207 = vmatpush1.bf16.msra.mxu1 %v8206_v47  ;;  %8847 = vmatpush1.bf16.msra.mxu0 %v17451_v54  ;;  %v17457_v47 = vld [vmem:[#allocation173_spill] sm:$0xff]  ;;  %v17463_v54 = vand.u32 4294901760, %v17462_v36 }
 0x19d   :  { %8209 = vmatprep.subr.bf16.mxu1 %v8208_v62  ;;  %8849 = vmatprep.subr.bf16.mxu0 %v17456_v13  ;;  %v17458_v43 = vand.u32 4294901760, %v17457_v47  ;;  %v17461_v62 = vpack.c.bf16 %v17230_v20, %v11893_v27  ;;  %v17473_v20 = vld [vmem:[#allocation190_spill] sm:$0xff] }
 0x19e   :  { %v8216_v38 = vpack.c.bf16 %v17465_v55, %v17463_v54  ;;  %v17474_v36 = vand.u32 4294901760, %v17473_v20  ;;  %v17475_v54 = vpack.c.bf16 %v11973_v26, %v11971_v6  ;;  %v17477_v55 = vand.u32 4294901760, %v17476_v45  ;;  %v17487_v45 = vld [vmem:[#allocation204_spill] sm:$0xff] }
 0x19f   :  { %v8214_v46 = vpack.c.bf16 %v17460_v19, %v17458_v43  ;;  %v17470_v43 = vand.u32 4294901760, %v17469_v1  ;;  %v17471_v19 = vld [vmem:[#allocation186_spill] sm:$0xff]  ;;  %v17484_v20 = vpack.c.bf16 %v12087_v35, %v12082_v24 }
 0x1a0   :  { %8211 = vmatpush1.bf16.msra.mxu1 %v8210_v51  ;;  %8851 = vmatpush1.bf16.msra.mxu0 %v17461_v62  ;;  %v17467_v51 = vld [vmem:[#allocation17_spill] sm:$0xff]  ;;  %v17472_v62 = vand.u32 4294901760, %v17471_v19 }
 0x1a1   :  { %8213 = vmatprep.subr.bf16.mxu1 %v8212_v21  ;;  %8853 = vmatprep.subr.bf16.mxu0 %v17466_v52  ;;  %v17468_v13 = vand.u32 4294901760, %v17467_v51  ;;  %v1805_v21 = vsub.f32 %v17469_v1, %v17470_v43  ;;  %v17478_v52 = vld [vmem:[#allocation198_spill] sm:$0xff] }
 0x1a2   :  { %v8218_v27 = vpack.c.bf16 %v17474_v36, %v17472_v62  ;;  %v17479_v25 = vand.u32 4294901760, %v17478_v52  ;;  %v17485_v36 = vld [vmem:[#allocation201_spill] sm:$0xff]  ;;  %v17488_v52 = vand.u32 4294901760, %v17487_v45 }
 0x1a3   :  { %v1793_v47 = vsub.f32 %v17467_v51, %v17468_v13  ;;  %v17480_v51 = vld [vmem:[#allocation22_spill] sm:$0xff]  ;;  %v1806_v62 = vand.u32 4294901760, %v1805_v21  ;;  %v17494_v21 = vld [vmem:[#allocation207_spill] sm:$0xff] }
 0x1a4   :  { %8215 = vmatpush1.bf16.msra.mxu1 %v8214_v46  ;;  %8855 = vmatpush1.bf16.msra.mxu0 %v17475_v54  ;;  %v8220_v13 = vpack.c.bf16 %v17479_v25, %v17477_v55  ;;  %v17481_v34 = vand.u32 4294901760, %v17480_v51  ;;  %v17482_v46 = vld [vmem:[#allocation23_spill] sm:$0xff]  ;;  %v17486_v54 = vand.u32 4294901760, %v17485_v36  ;;  %v17489_v55 = vld [vmem:[#allocation32_spill] sm:$0xff]  ;;  %v17495_v36 = vpack.c.bf16 %v12188_v60, %v17494_v21 }
 0x1a5   :  { %8217 = vmatprep.subr.bf16.mxu1 %v8216_v38  ;;  %v17483_v1 = vand.u32 4294901760, %v17482_v46  ;;  %8857 = vmatprep.subr.bf16.mxu0 %v17484_v20  ;;  %v1794_v38 = vand.u32 4294901760, %v1793_v47  ;;  %v17490_v26 = vand.u32 4294901760, %v17489_v55  ;;  %v17493_v20 = vpack.c.bf16 %v12118_v50, %v12113_v5 }
 0x1a6   :  { %v1799_v43 = vsub.f32 %v17480_v51, %v17481_v34  ;;  %v8222_v25 = vpack.c.bf16 %v17488_v52, %v17486_v54  ;;  %v17491_v51 = vld [vmem:[#allocation33_spill] sm:$0xff]  ;;  %v17496_v54 = vld [vmem:[#allocation42_spill] sm:$0xff] }
 0x1a7   :  { %v1811_v19 = vsub.f32 %v17482_v46, %v17483_v1  ;;  %v1823_v34 = vsub.f32 %v17489_v55, %v17490_v26  ;;  %v17492_v6 = vand.u32 4294901760, %v17491_v51  ;;  %v17497_v45 = vand.u32 4294901760, %v17496_v54 }
 0x1a8   :  { %8219 = vmatpush1.bf16.msra.mxu1 %v8218_v27  ;;  %8859 = vmatpush1.bf16.msra.mxu0 %v17493_v20  ;;  %v1800_v47 = vand.u32 4294901760, %v1799_v43  ;;  %v12654_v26 = vpack.c.bf16 %v1806_v62, %v1794_v38  ;;  %v17501_v20 = vld [vmem:[#allocation8_spill] sm:$0xff]  ;;  %v17502_v43 = vld [vmem:[#allocation213_spill] sm:$0xff] }
 0x1a9   :  { %v1835_v1 = vsub.f32 %v17491_v51, %v17492_v6  ;;  %8221 = vmatprep.subr.bf16.mxu1 %v8220_v13  ;;  %v1812_v27 = vand.u32 4294901760, %v1811_v19  ;;  %8861 = vmatprep.subr.bf16.mxu0 %v17495_v36  ;;  %v1847_v52 = vsub.f32 %v17496_v54, %v17497_v45  ;;  %v1824_v55 = vand.u32 4294901760, %v1823_v34  ;;  %v17499_v13 = vld [vmem:[#allocation43_spill] sm:$0xff]  ;;  %v17504_v36 = vld [vmem:[#allocation133_spill] sm:$0xff]  ;;  %v17506_v45 = vld [vmem:[#allocation208_spill] sm:$0xff] }
 0x1aa   :  { %17498 = vst [vmem:[#allocation248_spill] sm:$0xff] %v12654_v26  ;;  %v17500_v51 = vand.u32 4294901760, %v17499_v13  ;;  %v17503_v19 = vpack.c.bf16 %v12212_v56, %v17502_v43  ;;  %v17507_v62 = vld [vmem:[#allocation12_spill] sm:$0xff]  ;;  %v17513_v26 = vld [vmem:[#allocation14_spill] sm:$0xff] }
 0x1ab   :  { %v1836_v6 = vand.u32 4294901760, %v1835_v1  ;;  %v12664_v60 = vpack.c.bf16 %v1812_v27, %v1800_v47  ;;  %v1848_v38 = vand.u32 4294901760, %v1847_v52  ;;  %v17509_v1 = vld [vmem:[#allocation52_spill] sm:$0xff]  ;;  %v17514_v47 = vld [vmem:[#allocation139_spill] sm:$0xff]  ;;  %v17516_v52 = vld [vmem:[#allocation145_spill] sm:$0xff] }
 0x1ac   :  { %8223 = vmatpush1.bf16.msra.mxu1 %v8222_v25  ;;  %v1859_v46 = vsub.f32 %v17499_v13, %v17500_v51  ;;  %8863 = vmatpush1.bf16.msra.mxu0 %v17503_v19  ;;  %v17508_v25 = vld [vmem:[#allocation294_spill] sm:$0xff]  ;;  %v17510_v51 = vand.u32 4294901760, %v17509_v1  ;;  %v17511_v13 = vld [vmem:[#allocation53_spill] sm:$0xff] }
 0x1ad   :  { %8225 = vmatprep.subr.bf16.mxu1 %v17501_v20  ;;  %8865 = vmatprep.subr.bf16.mxu0 %v17504_v36  ;;  %17505 = vst [vmem:[#allocation250_spill] sm:$0xff] %v12664_v60  ;;  %v17512_v54 = vand.u32 4294901760, %v17511_v13  ;;  %v12677_v27 = vpack.c.bf16 %v1836_v6, %v1824_v55  ;;  %v17523_v6 = vld [vmem:[#allocation24_spill] sm:$0xff] }
 0x1ae   :  { %v1860_v34 = vand.u32 4294901760, %v1859_v46  ;;  %v1871_v20 = vsub.f32 %v17509_v1, %v17510_v51  ;;  %v17517_v46 = vand.u32 4294901760, %v17326_v17  ;;  %v17520_v1 = vld [vmem:[#allocation20_spill] sm:$0xff]  ;;  %v17526_v17 = vld [vmem:[#allocation147_spill] sm:$0xff] }
 0x1af   :  { %1502 = vmatmul.mubr.f32.vlgmr.msra.gmra.mrb[0].mxu1 %v17506_v45  ;;  %3664 = vmatmul.mubr.f32.vlgmr.msra.gmra.mrb[0].mxu0 %v17508_v25  ;;  %v1883_v19 = vsub.f32 %v17511_v13, %v17512_v54  ;;  %17515 = vst [vmem:[#allocation271_spill] sm:$0xff] %v12677_v27  ;;  %v17524_v27 = vld [vmem:[#allocation146_spill] sm:$0xff] }
 0x1b0   :  { %8227 = vmatpush1.bf16.msra.mxu1 %v17507_v62  ;;  %8867 = vmatpush1.bf16.msra.mxu0 %v17514_v47  ;;  %v17518_v62 = vld [vmem:[#allocation66_spill] sm:$0xff]  ;;  %v1872_v54 = vand.u32 4294901760, %v1871_v20 }
 0x1b1   :  { %8229 = vmatprep.subr.bf16.mxu1 %v17513_v26  ;;  %8869 = vmatprep.subr.bf16.mxu0 %v17516_v52  ;;  %v17519_v60 = vand.u32 4294901760, %v17518_v62  ;;  %v1884_v13 = vand.u32 4294901760, %v1883_v19  ;;  %v17521_v26 = vld [vmem:[#allocation67_spill] sm:$0xff]  ;;  %v17527_v52 = vld [vmem:[#allocation30_spill] sm:$0xff]  ;;  %v17530_v19 = vld [vmem:[#allocation81_spill] sm:$0xff] }
 0x1b2   :  { %1637 = vmatprep.mubr.f32.mxu1 %v17325_v15  ;;  %3801 = vmatprep.mubr.f32.mxu0 %v17517_v46  ;;  %v17522_v36 = vand.u32 4294901760, %v17521_v26  ;;  %v12692_v15 = vpack.c.bf16 %v1860_v34, %v1848_v38  ;;  %v17531_v47 = vand.u32 4294901760, %v17530_v19  ;;  %v17535_v34 = vld [vmem:[#allocation154_spill] sm:$0xff] }
 0x1b3   :  { %v1895_v51 = vsub.f32 %v17518_v62, %v17519_v60  ;;  %v17528_v62 = vld [vmem:[#allocation80_spill] sm:$0xff]  ;;  %v12704_v38 = vpack.c.bf16 %v1884_v13, %v1872_v54  ;;  %v17544_v54 = vld [vmem:[#allocation162_spill] sm:$0xff] }
 0x1b4   :  { %8231 = vmatpush1.bf16.msra.mxu1 %v17520_v1  ;;  %v1907_v55 = vsub.f32 %v17521_v26, %v17522_v36  ;;  %8871 = vmatpush1.bf16.msra.mxu0 %v17524_v27  ;;  %17525 = vst [vmem:[#allocation166_spill] sm:$0xff] %v12692_v15  ;;  %v17529_v1 = vand.u32 4294901760, %v17528_v62  ;;  %v1931_v36 = vsub.f32 %v17530_v19, %v17531_v47  ;;  %v17532_v26 = vld [vmem:[#allocation34_spill] sm:$0xff]  ;;  %v17541_v19 = vld [vmem:[#allocation44_spill] sm:$0xff] }
 0x1b5   :  { %8233 = vmatprep.subr.bf16.mxu1 %v17523_v6  ;;  %8873 = vmatprep.subr.bf16.mxu0 %v17526_v17  ;;  %v1896_v46 = vand.u32 4294901760, %v1895_v51  ;;  %v17533_v6 = vld [vmem:[#allocation153_spill] sm:$0xff]  ;;  %17534 = vst [vmem:[#allocation171_spill] sm:$0xff] %v12704_v38  ;;  %v17536_v51 = vld [vmem:[#allocation94_spill] sm:$0xff] }
 0x1b6   :  { %v1908_v60 = vand.u32 4294901760, %v1907_v55  ;;  %v1919_v20 = vsub.f32 %v17528_v62, %v17529_v1  ;;  %v17537_v15 = vand.u32 4294901760, %v17536_v51  ;;  %v17538_v55 = vld [vmem:[#allocation39_spill] sm:$0xff]  ;;  %v1932_v1 = vand.u32 4294901760, %v1931_v36  ;;  %v17548_v36 = vld [vmem:[#allocation109_spill] sm:$0xff] }
 0x1b7   :  { %v17539_v62 = vld [vmem:[#allocation95_spill] sm:$0xff] }
 0x1b8   :  { %8235 = vmatpush1.bf16.msra.mxu1 %v17527_v52  ;;  %8875 = vmatpush1.bf16.msra.mxu0 %v17533_v6  ;;  %v1943_v52 = vsub.f32 %v17536_v51, %v17537_v15  ;;  %v1920_v17 = vand.u32 4294901760, %v1919_v20  ;;  %v17540_v27 = vand.u32 4294901760, %v17539_v62  ;;  %v12716_v13 = vpack.c.bf16 %v1908_v60, %v1896_v46  ;;  %v17546_v51 = vld [vmem:[#allocation108_spill] sm:$0xff]  ;;  %v17553_v60 = vld [vmem:[#allocation187_spill] sm:$0xff] }
 0x1b9   :  { %8237 = vmatprep.subr.bf16.mxu1 %v17532_v26  ;;  %8877 = vmatprep.subr.bf16.mxu0 %v17535_v34  ;;  %v17542_v26 = vld [vmem:[#allocation160_spill] sm:$0xff]  ;;  %v17545_v34 = vld [vmem:[#allocation50_spill] sm:$0xff]  ;;  %v17549_v6 = vand.u32 4294901760, %v17548_v36 }
 0x1ba   :  { %v1955_v47 = vsub.f32 %v17539_v62, %v17540_v27  ;;  %17543 = vst [vmem:[#allocation174_spill] sm:$0xff] %v12716_v13  ;;  %v1944_v38 = vand.u32 4294901760, %v1943_v52  ;;  %v17550_v62 = vld [vmem:[#allocation56_spill] sm:$0xff]  ;;  %v12728_v46 = vpack.c.bf16 %v1932_v1, %v1920_v17  ;;  %v17554_v52 = vld [vmem:[#allocation122_spill] sm:$0xff]  ;;  %v17562_v1 = vld [vmem:[#allocation233_spill] sm:$0xff] }
 0x1bb   :  { %v1979_v27 = vsub.f32 %v17548_v36, %v17549_v6  ;;  %v17555_v13 = vand.u32 4294901760, %v17554_v52  ;;  %v17559_v36 = vld [vmem:[#allocation71_spill] sm:$0xff] }
 0x1bc   :  { %8239 = vmatpush1.bf16.msra.mxu1 %v17538_v55  ;;  %8879 = vmatpush1.bf16.msra.mxu0 %v17542_v26  ;;  %v1956_v15 = vand.u32 4294901760, %v1955_v47  ;;  %v17547_v55 = vand.u32 4294901760, %v17546_v51  ;;  %17552 = vst [vmem:[#allocation175_spill] sm:$0xff] %v12728_v46  ;;  %v17556_v47 = vld [vmem:[#allocation64_spill] sm:$0xff] }
 0x1bd   :  { %8241 = vmatprep.subr.bf16.mxu1 %v17541_v19  ;;  %8881 = vmatprep.subr.bf16.mxu0 %v17544_v54  ;;  %v17551_v19 = vld [vmem:[#allocation181_spill] sm:$0xff] }
 0x1be   :  { %v1967_v20 = vsub.f32 %v17546_v51, %v17547_v55  ;;  %v1980_v55 = vand.u32 4294901760, %v1979_v27  ;;  %v17557_v51 = vld [vmem:[#allocation123_spill] sm:$0xff]  ;;  %v12740_v17 = vpack.c.bf16 %v1956_v15, %v1944_v38  ;;  %v17566_v27 = vld [vmem:[#allocation137_spill] sm:$0xff] }
 0x1bf   :  { %v17558_v26 = vand.u32 4294901760, %v17557_v51  ;;  %v17571_v15 = vld [vmem:[#allocation243_spill] sm:$0xff] }
 0x1c0   :  { %8243 = vmatpush1.bf16.msra.mxu1 %v17545_v34  ;;  %8883 = vmatpush1.bf16.msra.mxu0 %v17551_v19  ;;  %v1991_v34 = vsub.f32 %v17554_v52, %v17555_v13  ;;  %v1968_v54 = vand.u32 4294901760, %v1967_v20  ;;  %17561 = vst [vmem:[#allocation188_spill] sm:$0xff] %v12740_v17  ;;  %v17564_v52 = vld [vmem:[#allocation136_spill] sm:$0xff]  ;;  %v17567_v19 = vand.u32 4294901760, %v17566_v27 }
 0x1c1   :  { %8245 = vmatprep.subr.bf16.mxu1 %v17550_v62  ;;  %8885 = vmatprep.subr.bf16.mxu0 %v17553_v60  ;;  %v2003_v6 = vsub.f32 %v17557_v51, %v17558_v26  ;;  %v17560_v62 = vld [vmem:[#allocation232_spill] sm:$0xff]  ;;  %v17563_v60 = vld [vmem:[#allocation77_spill] sm:$0xff]  ;;  %v17568_v51 = vld [vmem:[#allocation83_spill] sm:$0xff] }
 0x1c2   :  { %v1992_v46 = vand.u32 4294901760, %v1991_v34  ;;  %v2027_v26 = vsub.f32 %v17566_v27, %v17567_v19  ;;  %v12752_v38 = vpack.c.bf16 %v1980_v55, %v1968_v54  ;;  %v17572_v34 = vld [vmem:[#allocation150_spill] sm:$0xff]  ;;  %v17580_v55 = vld [vmem:[#allocation252_spill] sm:$0xff] }
 0x1c3   :  { %v2004_v13 = vand.u32 4294901760, %v2003_v6  ;;  %v17573_v17 = vand.u32 4294901760, %v17572_v34  ;;  %v17574_v6 = vld [vmem:[#allocation92_spill] sm:$0xff]  ;;  %v17577_v27 = vld [vmem:[#allocation98_spill] sm:$0xff] }
 0x1c4   :  { %8247 = vmatpush1.bf16.msra.mxu1 %v17556_v47  ;;  %8887 = vmatpush1.bf16.msra.mxu0 %v17560_v62  ;;  %v17565_v47 = vand.u32 4294901760, %v17564_v52  ;;  %17570 = vst [vmem:[#allocation195_spill] sm:$0xff] %v12752_v38 }
 0x1c5   :  { %8249 = vmatprep.subr.bf16.mxu1 %v17559_v36  ;;  %8889 = vmatprep.subr.bf16.mxu0 %v17562_v1  ;;  %v17569_v36 = vld [vmem:[#allocation241_spill] sm:$0xff]  ;;  %v12764_v54 = vpack.c.bf16 %v2004_v13, %v1992_v46  ;;  %v17589_v13 = vld [vmem:[#allocation260_spill] sm:$0xff] }
 0x1c6   :  { %v2015_v20 = vsub.f32 %v17564_v52, %v17565_v47  ;;  %v2028_v47 = vand.u32 4294901760, %v2027_v26  ;;  %v17575_v52 = vld [vmem:[#allocation151_spill] sm:$0xff]  ;;  %v17584_v26 = vld [vmem:[#allocation165_spill] sm:$0xff] }
 0x1c7   :  { %v17576_v62 = vand.u32 4294901760, %v17575_v52  ;;  %17579 = vst [vmem:[#allocation253_spill] sm:$0xff] %v12764_v54 }
 0x1c8   :  { %8251 = vmatpush1.bf16.msra.mxu1 %v17563_v60  ;;  %8891 = vmatpush1.bf16.msra.mxu0 %v17569_v36  ;;  %v2039_v60 = vsub.f32 %v17572_v34, %v17573_v17  ;;  %v2016_v1 = vand.u32 4294901760, %v2015_v20  ;;  %v17582_v34 = vld [vmem:[#allocation164_spill] sm:$0xff]  ;;  %v17585_v36 = vand.u32 4294901760, %v17584_v26 }
 0x1c9   :  { %8253 = vmatprep.subr.bf16.mxu1 %v17568_v51  ;;  %8893 = vmatprep.subr.bf16.mxu0 %v17571_v15  ;;  %v2051_v19 = vsub.f32 %v17575_v52, %v17576_v62  ;;  %v17578_v51 = vld [vmem:[#allocation251_spill] sm:$0xff]  ;;  %v17581_v15 = vld [vmem:[#allocation106_spill] sm:$0xff]  ;;  %v17586_v52 = vld [vmem:[#allocation113_spill] sm:$0xff] }
 0x1ca   :  { %v2040_v38 = vand.u32 4294901760, %v2039_v60  ;;  %v2075_v62 = vsub.f32 %v17584_v26, %v17585_v36  ;;  %v12776_v46 = vpack.c.bf16 %v2028_v47, %v2016_v1  ;;  %v17590_v60 = vld [vmem:[#allocation178_spill] sm:$0xff]  ;;  %v17595_v26 = vld [vmem:[#allocation125_spill] sm:$0xff] }
 0x1cb   :  { %v2052_v17 = vand.u32 4294901760, %v2051_v19  ;;  %v17591_v54 = vand.u32 4294901760, %v17590_v60  ;;  %v17592_v19 = vld [vmem:[#allocation119_spill] sm:$0xff]  ;;  %v17598_v47 = vld [vmem:[#allocation269_spill] sm:$0xff] }
 0x1cc   :  { %8255 = vmatpush1.bf16.msra.mxu1 %v17574_v6  ;;  %8895 = vmatpush1.bf16.msra.mxu0 %v17578_v51  ;;  %v17583_v6 = vand.u32 4294901760, %v17582_v34  ;;  %17588 = vst [vmem:[#allocation273_spill] sm:$0xff] %v12776_v46 }
 0x1cd   :  { %8257 = vmatprep.subr.bf16.mxu1 %v17577_v27  ;;  %8897 = vmatprep.subr.bf16.mxu0 %v17580_v55  ;;  %v17587_v27 = vld [vmem:[#allocation259_spill] sm:$0xff]  ;;  %v12788_v1 = vpack.c.bf16 %v2052_v17, %v2040_v38  ;;  %v17607_v17 = vld [vmem:[#allocation276_spill] sm:$0xff] }
 0x1ce   :  { %v2063_v20 = vsub.f32 %v17582_v34, %v17583_v6  ;;  %v2076_v6 = vand.u32 4294901760, %v2075_v62  ;;  %v17593_v34 = vld [vmem:[#allocation179_spill] sm:$0xff]  ;;  %v17602_v62 = vld [vmem:[#allocation193_spill] sm:$0xff] }
 0x1cf   :  { %v17594_v51 = vand.u32 4294901760, %v17593_v34  ;;  %17597 = vst [vmem:[#allocation274_spill] sm:$0xff] %v12788_v1 }
 0x1d0   :  { %8259 = vmatpush1.bf16.msra.mxu1 %v17581_v15  ;;  %8899 = vmatpush1.bf16.msra.mxu0 %v17587_v27  ;;  %v2087_v15 = vsub.f32 %v17590_v60, %v17591_v54  ;;  %v2064_v55 = vand.u32 4294901760, %v2063_v20  ;;  %v17600_v60 = vld [vmem:[#allocation192_spill] sm:$0xff]  ;;  %v17603_v27 = vand.u32 4294901760, %v17602_v62 }
 0x1d1   :  { %8261 = vmatprep.subr.bf16.mxu1 %v17586_v52  ;;  %8901 = vmatprep.subr.bf16.mxu0 %v17589_v13  ;;  %v2099_v36 = vsub.f32 %v17593_v34, %v17594_v51  ;;  %v17596_v52 = vld [vmem:[#allocation266_spill] sm:$0xff]  ;;  %v17604_v34 = vld [vmem:[#allocation140_spill] sm:$0xff] }
 0x1d2   :  { %v2088_v46 = vand.u32 4294901760, %v2087_v15  ;;  %v17599_v13 = vld [vmem:[#allocation134_spill] sm:$0xff]  ;;  %v2123_v51 = vsub.f32 %v17602_v62, %v17603_v27  ;;  %v12800_v38 = vpack.c.bf16 %v2076_v6, %v2064_v55  ;;  %v17608_v15 = vld [vmem:[#allocation205_spill] sm:$0xff]  ;;  %v17613_v62 = vld [vmem:[#allocation155_spill] sm:$0xff] }
 0x1d3   :  { %v2100_v54 = vand.u32 4294901760, %v2099_v36  ;;  %v17609_v1 = vand.u32 4294901760, %v17608_v15  ;;  %v17610_v36 = vld [vmem:[#allocation148_spill] sm:$0xff]  ;;  %v17616_v6 = vld [vmem:[#allocation281_spill] sm:$0xff] }
 0x1d4   :  { %8263 = vmatpush1.bf16.msra.mxu1 %v17592_v19  ;;  %8903 = vmatpush1.bf16.msra.mxu0 %v17596_v52  ;;  %v17601_v19 = vand.u32 4294901760, %v17600_v60  ;;  %17606 = vst [vmem:[#allocation275_spill] sm:$0xff] %v12800_v38 }
 0x1d5   :  { %8265 = vmatprep.subr.bf16.mxu1 %v17595_v26  ;;  %8905 = vmatprep.subr.bf16.mxu0 %v17598_v47  ;;  %v17605_v26 = vld [vmem:[#allocation272_spill] sm:$0xff]  ;;  %v12812_v55 = vpack.c.bf16 %v2100_v54, %v2088_v46 }
 0x1d6   :  { %v2111_v20 = vsub.f32 %v17600_v60, %v17601_v19  ;;  %v2124_v19 = vand.u32 4294901760, %v2123_v51  ;;  %v17611_v60 = vld [vmem:[#allocation206_spill] sm:$0xff]  ;;  %v17620_v51 = vld [vmem:[#allocation215_spill] sm:$0xff]  ;;  %v17624_v54 = vld [vmem:[#allocation288_spill] sm:$0xff] }
 0x1d7   :  { %v17612_v52 = vand.u32 4294901760, %v17611_v60  ;;  %17615 = vst [vmem:[#allocation277_spill] sm:$0xff] %v12812_v55  ;;  %v17626_v55 = vld [vmem:[#allocation218_spill] sm:$0xff] }
 0x1d8   :  { %8267 = vmatpush1.bf16.msra.mxu1 %v17599_v13  ;;  %8907 = vmatpush1.bf16.msra.mxu0 %v17605_v26  ;;  %v2135_v13 = vsub.f32 %v17608_v15, %v17609_v1  ;;  %v2112_v47 = vand.u32 4294901760, %v2111_v20  ;;  %v17618_v15 = vld [vmem:[#allocation214_spill] sm:$0xff]  ;;  %v17621_v26 = vand.u32 4294901760, %v17620_v51 }
 0x1d9   :  { %8269 = vmatprep.subr.bf16.mxu1 %v17604_v34  ;;  %8909 = vmatprep.subr.bf16.mxu0 %v17607_v17  ;;  %v2147_v27 = vsub.f32 %v17611_v60, %v17612_v52  ;;  %v17614_v34 = vld [vmem:[#allocation278_spill] sm:$0xff]  ;;  %v17617_v17 = vld [vmem:[#allocation161_spill] sm:$0xff]  ;;  %v17622_v60 = vld [vmem:[#allocation167_spill] sm:$0xff] }
 0x1da   :  { %v2136_v38 = vand.u32 4294901760, %v2135_v13  ;;  %v2171_v52 = vsub.f32 %v17620_v51, %v17621_v26  ;;  %v12824_v46 = vpack.c.bf16 %v2124_v19, %v2112_v47  ;;  %v17625_v13 = vld [vmem:[#allocation220_spill] sm:$0xff]  ;;  %v17631_v19 = vld [vmem:[#allocation197_spill] sm:$0xff] }
 0x1db   :  { %v2148_v1 = vand.u32 4294901760, %v2147_v27  ;;  %v17628_v27 = vld [vmem:[#allocation176_spill] sm:$0xff] }
 0x1dc   :  { %8271 = vmatpush1.bf16.msra.mxu1 %v17610_v36  ;;  %8911 = vmatpush1.bf16.msra.mxu0 %v17614_v34  ;;  %v17619_v36 = vand.u32 4294901760, %v17618_v15 }
 0x1dd   :  { %8273 = vmatprep.subr.bf16.mxu1 %v17613_v62  ;;  %8913 = vmatprep.subr.bf16.mxu0 %v17616_v6  ;;  %v17623_v62 = vld [vmem:[#allocation284_spill] sm:$0xff]  ;;  %v12834_v26 = vpack.c.bf16 %v2148_v1, %v2136_v38 }
 0x1de   :  { %v2159_v20 = vsub.f32 %v17618_v15, %v17619_v36  ;;  %v2172_v36 = vand.u32 4294901760, %v2171_v52  ;;  %v17629_v15 = vld [vmem:[#allocation292_spill] sm:$0xff]  ;;  %v17635_v52 = vand.u32 4294901760, %v17246_v37  ;;  %v17641_v37 = vand.u32 4294901760, %v17251_v30 }
 0x1df   :  { %v17647_v30 = vand.u32 4294901760, %v17134_v44  ;;  %v17659_v44 = vld [vmem:[#allocation236_spill] sm:$0xff] }
 0x1e0   :  { %8275 = vmatpush1.bf16.msra.mxu1 %v17617_v17  ;;  %8915 = vmatpush1.bf16.msra.mxu0 %v17623_v62  ;;  %v12829_v17 = vsub.f32 %v17626_v55, %v17625_v13  ;;  %v2160_v6 = vand.u32 4294901760, %v2159_v20  ;;  %v17632_v55 = vld [vmem:[#allocation298_spill] sm:$0xff]  ;;  %v17633_v20 = vld [vmem:[#allocation299_spill] sm:$0xff] }
 0x1e1   :  { %8277 = vmatprep.subr.bf16.mxu1 %v17622_v60  ;;  %8917 = vmatprep.subr.bf16.mxu0 %v17624_v54  ;;  %v17630_v60 = vld [vmem:[#allocation297_spill] sm:$0xff] }
 0x1e2   :  { %17627 = vst [vmem:[#allocation279_spill] sm:$0xff] %v12829_v17  ;;  %v16208_v47 = vand.u32 4294901760, %v12829_v17  ;;  %v12841_v51 = vpack.c.bf16 %v2172_v36, %v2160_v6  ;;  %v17638_v6 = vand.u32 4294901760, %v17247_v61  ;;  %v17639_v36 = vand.u32 4294901760, %v17248_v10 }
 0x1e3   :  { %v17645_v61 = vand.u32 4294901760, %v17331_v22  ;;  %v17646_v10 = vand.u32 4294901760, %v17133_v32  ;;  %v17655_v22 = vld [vmem:[#allocation234_spill] sm:$0xff] }
 0x1e4   :  { %8279 = vmatpush1.bf16.msra.mxu1 %v17628_v27  ;;  %8919 = vmatpush1.bf16.msra.mxu0 %v17629_v15  ;;  %v1776_v1 = vsub.f32 %v12829_v17, %v16208_v47  ;;  %v17637_v27 = vld [vmem:[#allocation300_spill] sm:$0xff]  ;;  %v17642_v47 = vld [vmem:[#allocation221_spill] sm:$0xff] }
 0x1e5   :  { %8281 = vmatprep.subr.bf16.mxu1 %v17295_v57  ;;  %8921 = vmatprep.subr.bf16.mxu0 %v17630_v60  ;;  %v17634_v57 = vand.u32 4294901760, %v17245_v58  ;;  %v17640_v58 = vand.u32 4294901760, %v17250_v4  ;;  %v17648_v4 = vld [vmem:[#allocation230_spill] sm:$0xff] }
 0x1e7   :  { %v8928_v38 = vpack.c.bf16 %v17635_v52, %v17634_v57  ;;  %v8932_v57 = vpack.c.bf16 %v17641_v37, %v17640_v58  ;;  %v1777_v52 = vand.u32 4294901760, %v1776_v1  ;;  %v17649_v1 = vand.u32 4294901760, %v17648_v4  ;;  %v17663_v4 = vld [vmem:[#allocation237_spill] sm:$0xff] }
 0x1e8   :  { %8283 = vmatpush1.bf16.msra.mxu1 %v17296_v63  ;;  %8923 = vmatpush1.bf16.msra.mxu0 %v17632_v55  ;;  %v17636_v63 = vld [vmem:[#allocation217_spill] sm:$0xff]  ;;  %v17656_v37 = vand.u32 4294901760, %v17655_v22 }
 0x1e9   :  { %8285 = vmatprep.subr.bf16.mxu1 %v17631_v19  ;;  %8925 = vmatprep.subr.bf16.mxu0 %v17633_v20  ;;  %v8930_v19 = vpack.c.bf16 %v17639_v36, %v17638_v6  ;;  %v8936_v6 = vpack.c.bf16 %v17649_v1, %v17647_v30  ;;  %v17651_v36 = vld [vmem:[#allocation223_spill] sm:$0xff]  ;;  %v17661_v30 = vld [vmem:[#allocation225_spill] sm:$0xff]  ;;  %v17664_v1 = vand.u32 4294901760, %v17663_v4  ;;  %v17676_v4 = vld [vmem:[#allocation246_spill] sm:$0xff] }
 0x1ec   :  { %8287 = vmatpush1.bf16.msra.mxu1 %v17302_v2  ;;  %8927 = vmatpush1.bf16.msra.mxu0 %v17637_v27  ;;  %v17643_v2 = vand.u32 4294901760, %v17508_v25  ;;  %v17652_v25 = vld [vmem:[#allocation224_spill] sm:$0xff] }
 0x1ed   :  { %8289 = vmatprep.subr.bf16.mxu1 %v17636_v63  ;;  %8929 = vmatprep.subr.bf16.mxu0 %v8928_v38  ;;  %v17644_v63 = vld [vmem:[#allocation222_spill] sm:$0xff]  ;;  %v8934_v38 = vpack.c.bf16 %v17646_v10, %v17645_v61  ;;  %v17660_v61 = vand.u32 4294901760, %v17659_v44  ;;  %v17673_v44 = vld [vmem:[#allocation244_spill] sm:$0xff] }
 0x1ef   :  { %1639 = vmatmul.mubr.f32.vlgmr.msra.gmra.mrb[0].mxu1 %v17506_v45  ;;  %3805 = vmatmul.mubr.f32.vlgmr.msra.gmra.mrb[0].mxu0 %v17643_v2  ;;  %v17650_v45 = vld [vmem:[#allocation291_spill] sm:$0xff] }
 0x1f0   :  { %8291 = vmatpush1.bf16.msra.mxu1 %v17642_v47  ;;  %8931 = vmatpush1.bf16.msra.mxu0 %v8930_v19  ;;  %v17653_v19 = vld [vmem:[#allocation231_spill] sm:$0xff] }
 0x1f1   :  { %8293 = vmatprep.subr.bf16.mxu1 %v17644_v63  ;;  %8933 = vmatprep.subr.bf16.mxu0 %v8932_v57  ;;  %v17654_v58 = vand.u32 4294901760, %v17653_v19  ;;  %v17657_v57 = vld [vmem:[#allocation235_spill] sm:$0xff]  ;;  %v17667_v19 = vand.u32 4294901760, %v17361_v14  ;;  %v17861_v63 = vld [vmem:[#allocation277_spill] sm:$0xff] }
 0x1f2   :  { %1778 = vmatprep.mubr.f32.mxu1 %v1777_v52  ;;  %4068 = vmatprep.mubr.f32.mxu0 %v17650_v45  ;;  %v17658_v2 = vand.u32 4294901760, %v17657_v57  ;;  %v17662_v52 = vld [vmem:[#allocation226_spill] sm:$0xff]  ;;  %v17671_v57 = vld [vmem:[#allocation228_spill] sm:$0xff]  ;;  %v17678_v14 = vld [vmem:[#allocation55_spill] sm:$0xff] }
 0x1f3   :  { %v8938_v32 = vpack.c.bf16 %v17656_v37, %v17654_v58  ;;  %v17668_v58 = vld [vmem:[#allocation240_spill] sm:$0xff]  ;;  %v17670_v37 = vld [vmem:[#allocation227_spill] sm:$0xff] }
 0x1f4   :  { %8295 = vmatpush1.bf16.msra.mxu1 %v17651_v36  ;;  %8935 = vmatpush1.bf16.msra.mxu0 %v8934_v38  ;;  %v8940_v10 = vpack.c.bf16 %v17660_v61, %v17658_v2  ;;  %v17672_v2 = vand.u32 4294901760, %v17368_v11  ;;  %v17682_v11 = vand.u32 4294901760, %v17387_v48  ;;  %v17692_v48 = vld [vmem:[#allocation69_spill] sm:$0xff] }
 0x1f5   :  { %8297 = vmatprep.subr.bf16.mxu1 %v17652_v25  ;;  %8937 = vmatprep.subr.bf16.mxu0 %v8936_v6  ;;  %v17665_v25 = vld [vmem:[#allocation238_spill] sm:$0xff]  ;;  %v17669_v6 = vand.u32 4294901760, %v17668_v58 }
 0x1f6   :  { %v17666_v38 = vand.u32 4294901760, %v17665_v25  ;;  %v17675_v25 = vand.u32 4294901760, %v17375_v41  ;;  %v17684_v41 = vld [vmem:[#allocation62_spill] sm:$0xff] }
 0x1f7   :  { %v8944_v22 = vpack.c.bf16 %v17669_v6, %v17667_v19  ;;  %v17680_v19 = vand.u32 4294901760, %v17381_v23  ;;  %v17683_v6 = vand.u32 4294901760, %v17182_v39  ;;  %v17688_v23 = vld [vmem:[#allocation254_spill] sm:$0xff] }
 0x1f8   :  { %8299 = vmatpush1.bf16.msra.mxu1 %v17661_v30  ;;  %8939 = vmatpush1.bf16.msra.mxu0 %v8938_v32  ;;  %v8942_v36 = vpack.c.bf16 %v17666_v38, %v17664_v1  ;;  %v17674_v32 = vand.u32 4294901760, %v17673_v44  ;;  %v17679_v38 = vld [vmem:[#allocation61_spill] sm:$0xff]  ;;  %v17686_v44 = vand.u32 4294901760, %v11776_v59  ;;  %v17693_v39 = vld [vmem:[#allocation70_spill] sm:$0xff]  ;;  %v17698_v59 = vand.u32 4294901760, %v17408_v7 }
 0x1f9   :  { %8301 = vmatprep.subr.bf16.mxu1 %v17662_v52  ;;  %8941 = vmatprep.subr.bf16.mxu0 %v8940_v10  ;;  %v17677_v10 = vand.u32 4294901760, %v17676_v4  ;;  %v17710_v7 = vld [vmem:[#allocation82_spill] sm:$0xff] }
 0x1fa   :  { %v8946_v61 = vpack.c.bf16 %v17674_v32, %v17672_v2  ;;  %v17685_v2 = vld [vmem:[#allocation63_spill] sm:$0xff]  ;;  %v17687_v32 = vand.u32 4294901760, %v17270_v28  ;;  %v17699_v28 = vld [vmem:[#allocation261_spill] sm:$0xff] }
 0x1fb   :  { %v8948_v1 = vpack.c.bf16 %v17677_v10, %v17675_v25  ;;  %v17690_v25 = vld [vmem:[#allocation255_spill] sm:$0xff] }
 0x1fc   :  { %8303 = vmatpush1.bf16.msra.mxu1 %v17670_v37  ;;  %8943 = vmatpush1.bf16.msra.mxu0 %v8942_v36  ;;  %v17681_v36 = vand.u32 4294901760, %v17180_v40  ;;  %v17689_v40 = vand.u32 4294901760, %v17688_v23  ;;  %v17691_v4 = vand.u32 4294901760, %v17690_v25  ;;  %v17703_v23 = vld [vmem:[#allocation262_spill] sm:$0xff]  ;;  %v17705_v25 = vld [vmem:[#allocation263_spill] sm:$0xff] }
 0x1fd   :  { %8305 = vmatprep.subr.bf16.mxu1 %v17671_v57  ;;  %8945 = vmatprep.subr.bf16.mxu0 %v8944_v22  ;;  %v8952_v22 = vpack.c.bf16 %v17683_v6, %v17682_v11  ;;  %v17700_v6 = vand.u32 4294901760, %v17699_v28  ;;  %v17846_v57 = vld [vmem:[#allocation202_spill] sm:$0xff] }
 0x1fe   :  { %v8950_v58 = vpack.c.bf16 %v17681_v36, %v17680_v19  ;;  %v8956_v10 = vpack.c.bf16 %v17691_v4, %v17689_v40  ;;  %v17696_v36 = vld [vmem:[#allocation257_spill] sm:$0xff]  ;;  %v17704_v40 = vand.u32 4294901760, %v17703_v23 }
 0x200   :  { %8307 = vmatpush1.bf16.msra.mxu1 %v17678_v14  ;;  %8947 = vmatpush1.bf16.msra.mxu0 %v8946_v61  ;;  %v8954_v61 = vpack.c.bf16 %v17687_v32, %v17686_v44  ;;  %v17701_v44 = vld [vmem:[#allocation76_spill] sm:$0xff]  ;;  %v17702_v32 = vld [vmem:[#allocation78_spill] sm:$0xff]  ;;  %v17845_v14 = vld [vmem:[#allocation269_spill] sm:$0xff] }
 0x201   :  { %8309 = vmatprep.subr.bf16.mxu1 %v17679_v38  ;;  %8949 = vmatprep.subr.bf16.mxu0 %v8948_v1  ;;  %v17694_v1 = vld [vmem:[#allocation256_spill] sm:$0xff] }
 0x202   :  { %v17695_v19 = vand.u32 4294901760, %v17694_v1  ;;  %v17707_v1 = vand.u32 4294901760, %v17422_v0  ;;  %v17716_v0 = vld [vmem:[#allocation90_spill] sm:$0xff] }
 0x204   :  { %8311 = vmatpush1.bf16.msra.mxu1 %v17684_v41  ;;  %8951 = vmatpush1.bf16.msra.mxu0 %v8950_v58  ;;  %v17697_v58 = vand.u32 4294901760, %v17696_v36 }
 0x205   :  { %8313 = vmatprep.subr.bf16.mxu1 %v17685_v2  ;;  %8953 = vmatprep.subr.bf16.mxu0 %v8952_v22  ;;  %v8960_v22 = vpack.c.bf16 %v17700_v6, %v17698_v59  ;;  %v17712_v59 = vand.u32 4294901760, %v17429_v42  ;;  %v17714_v6 = vand.u32 4294901760, %v17435_v18  ;;  %v17721_v42 = vand.u32 4294901760, %v17285_v3  ;;  %v17722_v18 = vld [vmem:[#allocation97_spill] sm:$0xff] }
 0x206   :  { %v8958_v11 = vpack.c.bf16 %v17697_v58, %v17695_v19  ;;  %v17708_v19 = vld [vmem:[#allocation265_spill] sm:$0xff]  ;;  %v17711_v58 = vld [vmem:[#allocation87_spill] sm:$0xff] }
 0x207   :  { %v17729_v3 = vld [vmem:[#allocation105_spill] sm:$0xff] }
 0x208   :  { %8315 = vmatpush1.bf16.msra.mxu1 %v17692_v48  ;;  %8955 = vmatpush1.bf16.msra.mxu0 %v8954_v61  ;;  %v17706_v61 = vand.u32 4294901760, %v17705_v25  ;;  %v17718_v25 = vand.u32 4294901760, %v17282_v16  ;;  %v17727_v16 = vand.u32 4294901760, %v17290_v31  ;;  %v17827_v48 = vld [vmem:[#allocation157_spill] sm:$0xff] }
 0x209   :  { %8317 = vmatprep.subr.bf16.mxu1 %v17693_v39  ;;  %8957 = vmatprep.subr.bf16.mxu0 %v8956_v10  ;;  %v17709_v10 = vand.u32 4294901760, %v17708_v19  ;;  %v17724_v19 = vand.u32 4294901760, %v17286_v29  ;;  %v17734_v29 = vld [vmem:[#allocation289_spill] sm:$0xff]  ;;  %v17826_v39 = vld [vmem:[#allocation251_spill] sm:$0xff]  ;;  %v17828_v2 = vand.u32 4294901760, %v17827_v48 }
 0x20a   :  { %v8962_v4 = vpack.c.bf16 %v17706_v61, %v17704_v40  ;;  %v17717_v40 = vld [vmem:[#allocation91_spill] sm:$0xff]  ;;  %v17719_v61 = vand.u32 4294901760, %v17283_v9  ;;  %v17726_v9 = vand.u32 4294901760, %v17289_v8 }
 0x20b   :  { %v8964_v36 = vpack.c.bf16 %v17709_v10, %v17707_v1  ;;  %v17725_v10 = vand.u32 4294901760, %v17287_v53  ;;  %v17735_v53 = vand.u32 4294901760, %v17734_v29  ;;  %v17738_v8 = vld [vmem:[#allocation219_spill] sm:$0xff] }
 0x20c   :  { %8319 = vmatpush1.bf16.msra.mxu1 %v17701_v44  ;;  %8959 = vmatpush1.bf16.msra.mxu0 %v8958_v11  ;;  %v17713_v11 = vand.u32 4294901760, %v17428_v33  ;;  %v17720_v33 = vand.u32 4294901760, %v17284_v49  ;;  %v17728_v49 = vld [vmem:[#allocation104_spill] sm:$0xff]  ;;  %v17750_v29 = vld [vmem:[#allocation27_spill] sm:$0xff] }
 0x20d   :  { %8321 = vmatprep.subr.bf16.mxu1 %v17702_v32  ;;  %8961 = vmatprep.subr.bf16.mxu0 %v8960_v22  ;;  %v17715_v22 = vand.u32 4294901760, %v17217_v12  ;;  %v17723_v12 = vld [vmem:[#allocation103_spill] sm:$0xff] }
 0x20e   :  { %v8966_v28 = vpack.c.bf16 %v17713_v11, %v17712_v59  ;;  %v8972_v1 = vpack.c.bf16 %v17721_v42, %v17720_v33  ;;  %v8976_v59 = vpack.c.bf16 %v17727_v16, %v17726_v9  ;;  %v17730_v11 = vld [vmem:[#allocation285_spill] sm:$0xff]  ;;  %v17739_v33 = vld [vmem:[#allocation216_spill] sm:$0xff]  ;;  %v17741_v42 = vld [vmem:[#allocation111_spill] sm:$0xff] }
 0x20f   :  { %v8968_v23 = vpack.c.bf16 %v17715_v22, %v17714_v6  ;;  %v17732_v6 = vld [vmem:[#allocation286_spill] sm:$0xff]  ;;  %v12988_v31 = vsub.f32 %v17739_v33, %v17738_v8  ;;  %v17824_v44 = vld [vmem:[#allocation243_spill] sm:$0xff] }
 0x210   :  { %8323 = vmatpush1.bf16.msra.mxu1 %v17710_v7  ;;  %8963 = vmatpush1.bf16.msra.mxu0 %v8962_v4  ;;  %v8970_v4 = vpack.c.bf16 %v17719_v61, %v17718_v25  ;;  %v17733_v22 = vand.u32 4294901760, %v17732_v6  ;;  %v17736_v25 = vld [vmem:[#allocation290_spill] sm:$0xff] }
 0x211   :  { %8325 = vmatprep.subr.bf16.mxu1 %v17711_v58  ;;  %8965 = vmatprep.subr.bf16.mxu0 %v8964_v36  ;;  %v8974_v36 = vpack.c.bf16 %v17725_v10, %v17724_v19  ;;  %v17737_v61 = vand.u32 4294901760, %v17736_v25  ;;  %17740 = vst [vmem:[#allocation280_spill] sm:$0xff] %v12988_v31  ;;  %v17743_v19 = vld [vmem:[#allocation295_spill] sm:$0xff]  ;;  %v16209_v6 = vand.u32 4294901760, %v12988_v31 }
 0x212   :  { %v17744_v10 = vand.u32 4294901760, %v17743_v19  ;;  %v17754_v19 = vld [vmem:[#allocation120_spill] sm:$0xff] }
 0x214   :  { %8327 = vmatpush1.bf16.msra.mxu1 %v17716_v0  ;;  %8967 = vmatpush1.bf16.msra.mxu0 %v8966_v28  ;;  %v17731_v28 = vand.u32 4294901760, %v17730_v11  ;;  %v17748_v11 = vand.u32 4294901760, %v12087_v35  ;;  %v17756_v35 = vand.u32 4294901760, %v12118_v50  ;;  %v17763_v50 = vand.u32 4294901760, %v12212_v56  ;;  %v17770_v56 = vld [vmem:[#allocation47_spill] sm:$0xff] }
 0x215   :  { %8329 = vmatprep.subr.bf16.mxu1 %v17717_v40  ;;  %8969 = vmatprep.subr.bf16.mxu0 %v8968_v23  ;;  %v17805_v40 = vld [vmem:[#allocation181_spill] sm:$0xff]  ;;  %v17806_v0 = vld [vmem:[#allocation115_spill] sm:$0xff] }
 0x216   :  { %v8978_v23 = vpack.c.bf16 %v17733_v22, %v17731_v28  ;;  %v17749_v22 = vld [vmem:[#allocation118_spill] sm:$0xff]  ;;  %v17807_v58 = vand.u32 4294901760, %v17806_v0 }
 0x218   :  { %8331 = vmatpush1.bf16.msra.mxu1 %v17722_v18  ;;  %8971 = vmatpush1.bf16.msra.mxu0 %v8970_v4  ;;  %v8980_v4 = vpack.c.bf16 %v17737_v61, %v17735_v53  ;;  %v17751_v53 = vand.u32 4294901760, %v17750_v29  ;;  %v17803_v18 = vld [vmem:[#allocation162_spill] sm:$0xff] }
 0x219   :  { %8333 = vmatprep.subr.bf16.mxu1 %v17723_v12  ;;  %8973 = vmatprep.subr.bf16.mxu0 %v8972_v1  ;;  %v17742_v1 = vld [vmem:[#allocation112_spill] sm:$0xff] }
 0x21a   :  { %v1817_v25 = vsub.f32 %v17750_v29, %v17751_v53  ;;  %v17760_v53 = vld [vmem:[#allocation124_spill] sm:$0xff] }
 0x21c   :  { %8335 = vmatpush1.bf16.msra.mxu1 %v17728_v49  ;;  %8975 = vmatpush1.bf16.msra.mxu0 %v8974_v36  ;;  %v17745_v36 = vld [vmem:[#allocation296_spill] sm:$0xff]  ;;  %v17796_v49 = vld [vmem:[#allocation154_spill] sm:$0xff] }
 0x21d   :  { %8337 = vmatprep.subr.bf16.mxu1 %v17729_v3  ;;  %8977 = vmatprep.subr.bf16.mxu0 %v8976_v59  ;;  %v17746_v9 = vand.u32 4294901760, %v17745_v36  ;;  %v17747_v59 = vand.u32 4294901760, %v12082_v24  ;;  %v17755_v24 = vand.u32 4294901760, %v12113_v5  ;;  %v17758_v36 = vld [vmem:[#allocation229_spill] sm:$0xff]  ;;  %v17762_v5 = vand.u32 4294901760, %v17502_v43 }
 0x21f   :  { %v8982_v16 = vpack.c.bf16 %v17746_v9, %v17744_v10  ;;  %v8984_v28 = vpack.c.bf16 %v17748_v11, %v17747_v59  ;;  %v17757_v10 = vand.u32 4294901760, %v17494_v21  ;;  %v17759_v9 = vand.u32 4294901760, %v17758_v36  ;;  %v17764_v21 = vld [vmem:[#allocation37_spill] sm:$0xff] }
 0x220   :  { %8339 = vmatpush1.bf16.msra.mxu1 %v17741_v42  ;;  %8979 = vmatpush1.bf16.msra.mxu0 %v8978_v23  ;;  %v17752_v23 = vld [vmem:[#allocation28_spill] sm:$0xff]  ;;  %v1782_v11 = vsub.f32 %v12988_v31, %v16209_v6  ;;  %v17784_v42 = vld [vmem:[#allocation146_spill] sm:$0xff] }
 0x221   :  { %8341 = vmatprep.subr.bf16.mxu1 %v17742_v1  ;;  %8981 = vmatprep.subr.bf16.mxu0 %v8980_v4  ;;  %v17753_v61 = vand.u32 4294901760, %v17752_v23  ;;  %v8986_v4 = vpack.c.bf16 %v17756_v35, %v17755_v24  ;;  %v8988_v59 = vpack.c.bf16 %v17759_v9, %v17757_v10  ;;  %v17765_v24 = vand.u32 4294901760, %v17764_v21  ;;  %v17766_v10 = vld [vmem:[#allocation38_spill] sm:$0xff]  ;;  %v17774_v1 = vld [vmem:[#allocation133_spill] sm:$0xff] }
 0x222   :  { %v17767_v36 = vand.u32 4294901760, %v17766_v10  ;;  %v1783_v6 = vand.u32 4294901760, %v1782_v11  ;;  %v17776_v11 = vld [vmem:[#allocation287_spill] sm:$0xff]  ;;  %v17895_v31 = vld [vmem:[#allocation66_spill] sm:$0xff] }
 0x223   :  { %v1829_v33 = vsub.f32 %v17752_v23, %v17753_v61  ;;  %v1818_v61 = vand.u32 4294901760, %v1817_v25  ;;  %v1841_v35 = vsub.f32 %v17764_v21, %v17765_v24  ;;  %v17768_v25 = vld [vmem:[#allocation132_spill] sm:$0xff] }
 0x224   :  { %8343 = vmatpush1.bf16.msra.mxu1 %v17749_v22  ;;  %8983 = vmatpush1.bf16.msra.mxu0 %v8982_v16  ;;  %v17761_v16 = vld [vmem:[#allocation129_spill] sm:$0xff]  ;;  %v1853_v9 = vsub.f32 %v17766_v10, %v17767_v36 }
 0x225   :  { %8345 = vmatprep.subr.bf16.mxu1 %v17754_v19  ;;  %8985 = vmatprep.subr.bf16.mxu0 %v8984_v28  ;;  %v1830_v19 = vand.u32 4294901760, %v1829_v33  ;;  %v8990_v28 = vpack.c.bf16 %v17763_v50, %v17762_v5  ;;  %v1842_v43 = vand.u32 4294901760, %v1841_v35  ;;  %v17771_v5 = vand.u32 4294901760, %v17770_v56 }
 0x227   :  { %v8356_v33 = vpack.c.bf16 %v1830_v19, %v1818_v61  ;;  %v1865_v50 = vsub.f32 %v17770_v56, %v17771_v5  ;;  %v17777_v19 = vld [vmem:[#allocation58_spill] sm:$0xff] }
 0x228   :  { %8347 = vmatpush1.bf16.msra.mxu1 %v17760_v53  ;;  %8987 = vmatpush1.bf16.msra.mxu0 %v8986_v4  ;;  %v1854_v4 = vand.u32 4294901760, %v1853_v9  ;;  %v17772_v53 = vld [vmem:[#allocation48_spill] sm:$0xff]  ;;  %v17778_v61 = vand.u32 4294901760, %v17777_v19  ;;  %v17781_v9 = vld [vmem:[#allocation139_spill] sm:$0xff] }
 0x229   :  { %8349 = vmatprep.subr.bf16.mxu1 %v17761_v16  ;;  %8989 = vmatprep.subr.bf16.mxu0 %v8988_v59  ;;  %v17769_v16 = vld [vmem:[#allocation248_spill] sm:$0xff]  ;;  %v17773_v24 = vand.u32 4294901760, %v17772_v53  ;;  %v17775_v59 = vld [vmem:[#allocation250_spill] sm:$0xff] }
 0x22a   :  { %v8360_v5 = vpack.c.bf16 %v1854_v4, %v1842_v43  ;;  %v17787_v4 = vld [vmem:[#allocation74_spill] sm:$0xff] }
 0x22b   :  { %v1877_v22 = vsub.f32 %v17772_v53, %v17773_v24  ;;  %v1866_v24 = vand.u32 4294901760, %v1865_v50 }
 0x22c   :  { %8351 = vmatpush1.bf16.msra.mxu1 %v17768_v25  ;;  %8991 = vmatpush1.bf16.msra.mxu0 %v8990_v28  ;;  %v17779_v28 = vld [vmem:[#allocation59_spill] sm:$0xff] }
 0x22d   :  { %8353 = vmatprep.subr.bf16.mxu1 %v17769_v16  ;;  %8993 = vmatprep.subr.bf16.mxu0 %v17774_v1  ;;  %v1889_v16 = vsub.f32 %v17777_v19, %v17778_v61  ;;  %v17780_v35 = vand.u32 4294901760, %v17779_v28  ;;  %v1878_v25 = vand.u32 4294901760, %v1877_v22  ;;  %v17782_v1 = vld [vmem:[#allocation145_spill] sm:$0xff]  ;;  %v17788_v22 = vand.u32 4294901760, %v17787_v4 }
 0x22f   :  { %1784 = vmatmul.mubr.f32.vlgmr.msra.gmra.mrb[0].mxu1 %v1783_v6  ;;  %4070 = vmatmul.mubr.f32.vlgmr.msra.gmra.mrb[0].mxu0 %v17776_v11  ;;  %v1901_v36 = vsub.f32 %v17779_v28, %v17780_v35  ;;  %v17783_v6 = vld [vmem:[#allocation271_spill] sm:$0xff]  ;;  %v8364_v35 = vpack.c.bf16 %v1878_v25, %v1866_v24  ;;  %v1925_v50 = vsub.f32 %v17787_v4, %v17788_v22 }
 0x230   :  { %8355 = vmatpush1.bf16.msra.mxu1 %v17775_v59  ;;  %8995 = vmatpush1.bf16.msra.mxu0 %v17781_v9  ;;  %v1890_v59 = vand.u32 4294901760, %v1889_v16  ;;  %v17789_v9 = vld [vmem:[#allocation147_spill] sm:$0xff]  ;;  %v17791_v16 = vld [vmem:[#allocation153_spill] sm:$0xff] }
 0x231   :  { %8357 = vmatprep.subr.bf16.mxu1 %v8356_v33  ;;  %8997 = vmatprep.subr.bf16.mxu0 %v17782_v1  ;;  %v1902_v61 = vand.u32 4294901760, %v1901_v36  ;;  %v17785_v33 = vld [vmem:[#allocation73_spill] sm:$0xff]  ;;  %v17794_v1 = vld [vmem:[#allocation88_spill] sm:$0xff]  ;;  %v17797_v22 = vld [vmem:[#allocation171_spill] sm:$0xff] }
 0x232   :  { %2175 = vmatprep.mubr.f32.mxu1 %v17625_v13  ;;  %4205 = vmatprep.mubr.f32.mxu0 %v17650_v45  ;;  %v17786_v3 = vand.u32 4294901760, %v17785_v33  ;;  %v17790_v13 = vld [vmem:[#allocation166_spill] sm:$0xff] }
 0x233   :  { %v8368_v45 = vpack.c.bf16 %v1902_v61, %v1890_v59  ;;  %v17800_v61 = vld [vmem:[#allocation101_spill] sm:$0xff] }
 0x234   :  { %8359 = vmatpush1.bf16.msra.mxu1 %v17783_v6  ;;  %8999 = vmatpush1.bf16.msra.mxu0 %v17784_v42  ;;  %v1913_v43 = vsub.f32 %v17785_v33, %v17786_v3  ;;  %v17792_v42 = vld [vmem:[#allocation86_spill] sm:$0xff]  ;;  %v17795_v3 = vand.u32 4294901760, %v17794_v1 }
 0x235   :  { %8361 = vmatprep.subr.bf16.mxu1 %v8360_v5  ;;  %9001 = vmatprep.subr.bf16.mxu0 %v17789_v9  ;;  %v1926_v5 = vand.u32 4294901760, %v1925_v50  ;;  %v17793_v25 = vand.u32 4294901760, %v17792_v42  ;;  %v17798_v9 = vld [vmem:[#allocation100_spill] sm:$0xff] }
 0x236   :  { %v1914_v36 = vand.u32 4294901760, %v1913_v43  ;;  %v1949_v6 = vsub.f32 %v17794_v1, %v17795_v3  ;;  %v17802_v50 = vld [vmem:[#allocation160_spill] sm:$0xff]  ;;  %v17804_v3 = vld [vmem:[#allocation174_spill] sm:$0xff] }
 0x237   :  { %v1937_v24 = vsub.f32 %v17792_v42, %v17793_v25 }
 0x238   :  { %8363 = vmatpush1.bf16.msra.mxu1 %v17790_v13  ;;  %9003 = vmatpush1.bf16.msra.mxu0 %v17791_v16  ;;  %v17799_v13 = vand.u32 4294901760, %v17798_v9  ;;  %v8372_v16 = vpack.c.bf16 %v1926_v5, %v1914_v36  ;;  %v1950_v12 = vand.u32 4294901760, %v1949_v6  ;;  %v17810_v5 = vld [vmem:[#allocation187_spill] sm:$0xff]  ;;  %v17812_v6 = vld [vmem:[#allocation232_spill] sm:$0xff] }
 0x239   :  { %8365 = vmatprep.subr.bf16.mxu1 %v8364_v35  ;;  %9005 = vmatprep.subr.bf16.mxu0 %v17796_v49  ;;  %v17801_v35 = vand.u32 4294901760, %v17800_v61  ;;  %v1938_v25 = vand.u32 4294901760, %v1937_v24  ;;  %v17811_v24 = vld [vmem:[#allocation175_spill] sm:$0xff] }
 0x23a   :  { %v1961_v59 = vsub.f32 %v17798_v9, %v17799_v13 }
 0x23b   :  { %v1973_v43 = vsub.f32 %v17800_v61, %v17801_v35  ;;  %v8376_v13 = vpack.c.bf16 %v1950_v12, %v1938_v25  ;;  %v1985_v35 = vsub.f32 %v17806_v0, %v17807_v58 }
 0x23c   :  { %8367 = vmatpush1.bf16.msra.mxu1 %v17797_v22  ;;  %9007 = vmatpush1.bf16.msra.mxu0 %v17802_v50  ;;  %v1962_v49 = vand.u32 4294901760, %v1961_v59 }
 0x23d   :  { %8369 = vmatprep.subr.bf16.mxu1 %v8368_v45  ;;  %9009 = vmatprep.subr.bf16.mxu0 %v17803_v18  ;;  %v1974_v22 = vand.u32 4294901760, %v1973_v43  ;;  %v17808_v45 = vld [vmem:[#allocation116_spill] sm:$0xff]  ;;  %v1986_v59 = vand.u32 4294901760, %v1985_v35 }
 0x23e   :  { %v17809_v7 = vand.u32 4294901760, %v17808_v45 }
 0x23f   :  { %v8380_v18 = vpack.c.bf16 %v1974_v22, %v1962_v49  ;;  %v17821_v22 = vld [vmem:[#allocation143_spill] sm:$0xff] }
 0x240   :  { %8371 = vmatpush1.bf16.msra.mxu1 %v17804_v3  ;;  %9011 = vmatpush1.bf16.msra.mxu0 %v17805_v40  ;;  %v1997_v36 = vsub.f32 %v17808_v45, %v17809_v7  ;;  %v17813_v40 = vld [vmem:[#allocation128_spill] sm:$0xff]  ;;  %v17817_v3 = vld [vmem:[#allocation233_spill] sm:$0xff] }
 0x241   :  { %8373 = vmatprep.subr.bf16.mxu1 %v8372_v16  ;;  %9013 = vmatprep.subr.bf16.mxu0 %v17810_v5  ;;  %v17814_v12 = vand.u32 4294901760, %v17813_v40  ;;  %v17815_v16 = vld [vmem:[#allocation130_spill] sm:$0xff]  ;;  %v17818_v7 = vld [vmem:[#allocation188_spill] sm:$0xff] }
 0x242   :  { %v1998_v43 = vand.u32 4294901760, %v1997_v36  ;;  %v17816_v58 = vand.u32 4294901760, %v17815_v16  ;;  %v17819_v5 = vld [vmem:[#allocation142_spill] sm:$0xff]  ;;  %v17823_v36 = vld [vmem:[#allocation241_spill] sm:$0xff] }
 0x243   :  { %v2009_v50 = vsub.f32 %v17813_v40, %v17814_v12 }
 0x244   :  { %8375 = vmatpush1.bf16.msra.mxu1 %v17811_v24  ;;  %9015 = vmatpush1.bf16.msra.mxu0 %v17812_v6  ;;  %v2021_v25 = vsub.f32 %v17815_v16, %v17816_v58  ;;  %v17820_v24 = vand.u32 4294901760, %v17819_v5  ;;  %v8384_v6 = vpack.c.bf16 %v1998_v43, %v1986_v59  ;;  %v17825_v58 = vld [vmem:[#allocation195_spill] sm:$0xff]  ;;  %v17831_v43 = vld [vmem:[#allocation252_spill] sm:$0xff] }
 0x245   :  { %8377 = vmatprep.subr.bf16.mxu1 %v8376_v13  ;;  %9017 = vmatprep.subr.bf16.mxu0 %v17817_v3  ;;  %v17822_v13 = vand.u32 4294901760, %v17821_v22  ;;  %v2010_v12 = vand.u32 4294901760, %v2009_v50  ;;  %v17832_v50 = vld [vmem:[#allocation253_spill] sm:$0xff] }
 0x246   :  { %v2033_v49 = vsub.f32 %v17819_v5, %v17820_v24  ;;  %v2022_v32 = vand.u32 4294901760, %v2021_v25  ;;  %v17833_v25 = vld [vmem:[#allocation259_spill] sm:$0xff] }
 0x247   :  { %v2045_v35 = vsub.f32 %v17821_v22, %v17822_v13  ;;  %v2057_v13 = vsub.f32 %v17827_v48, %v17828_v2 }
 0x248   :  { %8379 = vmatpush1.bf16.msra.mxu1 %v17818_v7  ;;  %9019 = vmatpush1.bf16.msra.mxu0 %v17823_v36  ;;  %v2034_v3 = vand.u32 4294901760, %v2033_v49  ;;  %v8388_v24 = vpack.c.bf16 %v2022_v32, %v2010_v12 }
 0x249   :  { %8381 = vmatprep.subr.bf16.mxu1 %v8380_v18  ;;  %9021 = vmatprep.subr.bf16.mxu0 %v17824_v44  ;;  %v2046_v7 = vand.u32 4294901760, %v2045_v35  ;;  %v17829_v18 = vld [vmem:[#allocation158_spill] sm:$0xff]  ;;  %v2058_v49 = vand.u32 4294901760, %v2057_v13 }
 0x24a   :  { %v17830_v41 = vand.u32 4294901760, %v17829_v18 }
 0x24b   :  { %v8392_v44 = vpack.c.bf16 %v2046_v7, %v2034_v3  ;;  %v17839_v7 = vld [vmem:[#allocation273_spill] sm:$0xff] }
 0x24c   :  { %8383 = vmatpush1.bf16.msra.mxu1 %v17825_v58  ;;  %9023 = vmatpush1.bf16.msra.mxu0 %v17826_v39  ;;  %v2069_v59 = vsub.f32 %v17829_v18, %v17830_v41  ;;  %v17834_v39 = vld [vmem:[#allocation170_spill] sm:$0xff]  ;;  %v17838_v58 = vld [vmem:[#allocation260_spill] sm:$0xff] }
 0x24d   :  { %8385 = vmatprep.subr.bf16.mxu1 %v8384_v6  ;;  %9025 = vmatprep.subr.bf16.mxu0 %v17831_v43  ;;  %v17835_v32 = vand.u32 4294901760, %v17834_v39  ;;  %v17836_v6 = vld [vmem:[#allocation172_spill] sm:$0xff]  ;;  %v17842_v43 = vld [vmem:[#allocation185_spill] sm:$0xff] }
 0x24e   :  { %v2070_v35 = vand.u32 4294901760, %v2069_v59  ;;  %v17837_v2 = vand.u32 4294901760, %v17836_v6  ;;  %v9802_v41 = vld [vmem:[%s15396_s0 + $0x8] sm:$0xff] }
 0x24f   :  { %v2081_v36 = vsub.f32 %v17834_v39, %v17835_v32  ;;  %v336_v3 = vcombine.high %v9802_v41, %v9802_v41  ;;  %v17844_v32 = vld [vmem:[#allocation266_spill] sm:$0xff] }
 0x250   :  { %8387 = vmatpush1.bf16.msra.mxu1 %v17832_v50  ;;  %9027 = vmatpush1.bf16.msra.mxu0 %v17833_v25  ;;  %v2093_v12 = vsub.f32 %v17836_v6, %v17837_v2  ;;  %v17843_v50 = vand.u32 4294901760, %v17842_v43  ;;  %v8396_v2 = vpack.c.bf16 %v2070_v35, %v2058_v49  ;;  %v17851_v49 = vld [vmem:[#allocation200_spill] sm:$0xff] }
 0x251   :  { %8389 = vmatprep.subr.bf16.mxu1 %v8388_v24  ;;  %9029 = vmatprep.subr.bf16.mxu0 %v17838_v58  ;;  %v17840_v24 = vld [vmem:[#allocation184_spill] sm:$0xff]  ;;  %v2082_v58 = vand.u32 4294901760, %v2081_v36  ;;  %v13138_v41 = vrot.slane %v336_v3, %v17846_v57  ;;  %v17852_v35 = vand.u32 4294901760, %v17851_v49 }
 0x252   :  { %v17841_v13 = vand.u32 4294901760, %v17840_v24  ;;  %v2117_v25 = vsub.f32 %v17842_v43, %v17843_v50  ;;  %v2094_v38 = vand.u32 4294901760, %v2093_v12  ;;  %v17849_v50 = vld [vmem:[#allocation199_spill] sm:$0xff] }
 0x253   :  { %v2141_v36 = vsub.f32 %v17851_v49, %v17852_v35  ;;  %v352_v57 = vcombine.high %v13138_v41, %v13138_v41  ;;  %v17854_v12 = vld [vmem:[#allocation275_spill] sm:$0xff]  ;;  %v17859_v35 = vld [vmem:[#allocation281_spill] sm:$0xff] }
 0x254   :  { %8391 = vmatpush1.bf16.msra.mxu1 %v17839_v7  ;;  %v2105_v59 = vsub.f32 %v17840_v24, %v17841_v13  ;;  %9031 = vmatpush1.bf16.msra.mxu0 %v17844_v32  ;;  %v17847_v7 = vld [vmem:[#allocation274_spill] sm:$0xff]  ;;  %v2118_v52 = vand.u32 4294901760, %v2117_v25  ;;  %v17848_v13 = vld [vmem:[#allocation272_spill] sm:$0xff]  ;;  %v8400_v30 = vpack.c.bf16 %v2094_v38, %v2082_v58 }
 0x255   :  { %8393 = vmatprep.subr.bf16.mxu1 %v8392_v44  ;;  %9033 = vmatprep.subr.bf16.mxu0 %v17845_v14  ;;  %v17850_v44 = vand.u32 4294901760, %v17849_v50  ;;  %v17853_v14 = vld [vmem:[#allocation276_spill] sm:$0xff]  ;;  %v17855_v25 = vld [vmem:[#allocation210_spill] sm:$0xff] }
 0x256   :  { %v2106_v37 = vand.u32 4294901760, %v2105_v59  ;;  %v2142_v59 = vand.u32 4294901760, %v2141_v36 }
 0x257   :  { %v2129_v32 = vsub.f32 %v17849_v50, %v17850_v44 }
 0x258   :  { %8395 = vmatpush1.bf16.msra.mxu1 %v17847_v7  ;;  %9035 = vmatpush1.bf16.msra.mxu0 %v17848_v13  ;;  %v8404_v3 = vpack.c.bf16 %v2118_v52, %v2106_v37  ;;  %v17857_v7 = vld [vmem:[#allocation211_spill] sm:$0xff]  ;;  %v13165_v37 = vld [vmem:[#allocation2 + $0x608] sm:$0xff] }
 0x259   :  { %8397 = vmatprep.subr.bf16.mxu1 %v8396_v2  ;;  %9037 = vmatprep.subr.bf16.mxu0 %v17853_v14  ;;  %v2130_v38 = vand.u32 4294901760, %v2129_v32  ;;  %v17856_v2 = vand.u32 4294901760, %v17855_v25  ;;  %v17858_v13 = vand.u32 4294901760, %v17857_v7  ;;  %v13160_v14 = vand.u32 4294901760, %v352_v57  ;;  %v13167_v32 = vld [vmem:[#allocation2 + $0x618] sm:$0xff] }
 0x25b   :  { %v2153_v58 = vsub.f32 %v17855_v25, %v17856_v2  ;;  %v2165_v44 = vsub.f32 %v17857_v7, %v17858_v13  ;;  %17860 = vst [vmem:[#allocation282_spill] sm:$0xff] %v13160_v14  ;;  %v13170_v36 = vsub.f32 %v352_v57, %v13160_v14  ;;  %v13183_v57 = vld [vmem:[#allocation2 + $0x638] sm:$0xff] }
 0x25c   :  { %8399 = vmatpush1.bf16.msra.mxu1 %v17854_v12  ;;  %9039 = vmatpush1.bf16.msra.mxu0 %v17614_v34  ;;  %v8408_v34 = vpack.c.bf16 %v2142_v59, %v2130_v38  ;;  %v16210_v12 = vand.u32 4294901760, %v13167_v32  ;;  %v13181_v38 = vld [vmem:[#allocation2 + $0x628] sm:$0xff] }
 0x25d   :  { %8401 = vmatprep.subr.bf16.mxu1 %v8400_v30  ;;  %9041 = vmatprep.subr.bf16.mxu0 %v17859_v35  ;;  %v2154_v30 = vand.u32 4294901760, %v2153_v58  ;;  %v2166_v52 = vand.u32 4294901760, %v2165_v44  ;;  %17862 = vst [vmem:[#allocation283_spill] sm:$0xff] %v13170_v36  ;;  %v247_v35 = vld [vmem:[#allocation2 + $0x630] sm:$0xff] }
 0x25e   :  { %v4227_v44 = vand.u32 4294901760, %v247_v35 }
 0x260   :  { %8403 = vmatpush1.bf16.msra.mxu1 %v17861_v63  ;;  %9043 = vmatpush1.bf16.msra.mxu0 %v17623_v62  ;;  %v8412_v63 = vpack.c.bf16 %v2166_v52, %v2154_v30  ;;  %v16211_v62 = vand.u32 4294901760, %v13165_v37  ;;  %v252_v30 = vld [vmem:[#allocation2 + $0x658] sm:$0xff] }
 0x261   :  { %8405 = vmatprep.subr.bf16.mxu1 %v8404_v3  ;;  %9045 = vmatprep.subr.bf16.mxu0 %v17624_v54  ;;  %v13177_v54 = vld [vmem:[#allocation2 + $0x600] sm:$0xff]  ;;  %v13179_v3 = vld [vmem:[#allocation2 + $0x610] sm:$0xff] }
 0x262   :  { %v16214_v2 = vand.u32 4294901760, %v13177_v54  ;;  %v16213_v58 = vand.u32 4294901760, %v13179_v3  ;;  %v13197_v13 = vpack.c.bf16 %v16210_v12, %v16211_v62 }
 0x264   :  { %8407 = vmatpush1.bf16.msra.mxu1 %v12824_v46  ;;  %9047 = vmatpush1.bf16.msra.mxu0 %v17629_v15  ;;  %v16212_v46 = vand.u32 4294901760, %v13170_v36  ;;  %v17863_v15 = vld [vmem:[#allocation17_spill] sm:$0xff]  ;;  %17865 = vst [vmem:[#allocation182_spill] sm:$0xff] %v13197_v13  ;;  %v13214_v12 = vpack.c.bf16 %v16213_v58, %v16214_v2  ;;  %v17871_v2 = vld [vmem:[#allocation32_spill] sm:$0xff] }
 0x265   :  { %8409 = vmatprep.subr.bf16.mxu1 %v8408_v34  ;;  %9049 = vmatprep.subr.bf16.mxu0 %v17630_v60  ;;  %v17864_v60 = vld [vmem:[#allocation18_spill] sm:$0xff]  ;;  %v250_v34 = vld [vmem:[#allocation2 + $0x648] sm:$0xff] }
 0x266   :  { %v8416_v59 = vpack.c.bf16 %v17864_v60, %v17863_v15  ;;  %v4344_v52 = vsub.f32 %v13170_v36, %v16212_v46  ;;  %v8420_v60 = vpack.c.bf16 %v17752_v23, %v17750_v29  ;;  %17868 = vst [vmem:[#allocation189_spill] sm:$0xff] %v13214_v12  ;;  %v251_v29 = vld [vmem:[#allocation2 + $0x650] sm:$0xff]  ;;  %v13224_v23 = vld [vmem:[#allocation2 + $0x668] sm:$0xff]  ;;  %v13226_v46 = vld [vmem:[#allocation2 + $0x678] sm:$0xff] }
 0x268   :  { %8411 = vmatpush1.bf16.msra.mxu1 %v12834_v26  ;;  %9051 = vmatpush1.bf16.msra.mxu0 %v17632_v55  ;;  %v16221_v26 = vand.u32 4294901760, %v13181_v38  ;;  %v245_v55 = vld [vmem:[#allocation2 + $0x620] sm:$0xff]  ;;  %v4345_v58 = vand.u32 4294901760, %v4344_v52  ;;  %v4235_v52 = vand.u32 4294901760, %v251_v29 }
 0x269   :  { %8413 = vmatprep.subr.bf16.mxu1 %v8412_v63  ;;  %9053 = vmatprep.subr.bf16.mxu0 %v17633_v20  ;;  %v17866_v20 = vld [vmem:[#allocation22_spill] sm:$0xff]  ;;  %v17867_v63 = vld [vmem:[#allocation23_spill] sm:$0xff]  ;;  %v4223_v62 = vand.u32 4294901760, %v245_v55 }
 0x26a   :  { %v8418_v15 = vpack.c.bf16 %v17867_v63, %v17866_v20  ;;  %v4233_v20 = vand.u32 4294901760, %v252_v30  ;;  %v249_v63 = vld [vmem:[#allocation2 + $0x640] sm:$0xff] }
 0x26b   :  { %v13231_v14 = vsub.f32 %v245_v55, %v4223_v62  ;;  %v4231_v47 = vand.u32 4294901760, %v249_v63  ;;  %v255_v55 = vld [vmem:[#allocation2 + $0x670] sm:$0xff] }
 0x26c   :  { %8415 = vmatpush1.bf16.msra.mxu1 %v12841_v51  ;;  %9055 = vmatpush1.bf16.msra.mxu0 %v17637_v27  ;;  %v17869_v51 = vand.u32 4294901760, %v13183_v57  ;;  %v4229_v27 = vand.u32 4294901760, %v250_v34 }
 0x26d   :  { %8417 = vmatprep.subr.bf16.mxu1 %v8416_v59  ;;  %9057 = vmatprep.subr.bf16.mxu0 %v13197_v13  ;;  %v17872_v13 = vld [vmem:[#allocation33_spill] sm:$0xff]  ;;  %17873 = vst [vmem:[#allocation10_spill] sm:$0xff] %v13231_v14 }
 0x26e   :  { %v13221_v59 = vpack.c.bf16 %v17869_v51, %v16221_v26  ;;  %v8422_v36 = vpack.c.bf16 %v17872_v13, %v17871_v2  ;;  %v13233_v51 = vsub.f32 %v247_v35, %v4227_v44  ;;  %v13238_v26 = vpack.c.bf16 %v4227_v44, %v4223_v62  ;;  %v253_v13 = vld [vmem:[#allocation2 + $0x660] sm:$0xff]  ;;  %v258_v62 = vld [vmem:[#allocation2 + $0x688] sm:$0xff]  ;;  %v260_v44 = vld [vmem:[#allocation2 + $0x698] sm:$0xff] }
 0x26f   :  { %2177 = vmatmul.mubr.f32.vlgmr.msra.gmra.mrb[0].mxu1 %v17738_v8  ;;  %4207 = vmatmul.mubr.f32.vlgmr.msra.gmra.mrb[0].mxu0 %v17776_v11  ;;  %v8424_v8 = vpack.c.bf16 %v17766_v10, %v17764_v21  ;;  %v13248_v21 = vsub.f32 %v250_v34, %v4229_v27  ;;  %v13250_v10 = vsub.f32 %v252_v30, %v4233_v20  ;;  %v4239_v30 = vand.u32 4294901760, %v253_v13 }
 0x270   :  { %17870 = vst [vmem:[#allocation9_spill] sm:$0xff] %v13221_v59  ;;  %8419 = vmatpush1.bf16.msra.mxu1 %v8418_v15  ;;  %17874 = vst [vmem:[#allocation203_spill] sm:$0xff] %v13233_v51  ;;  %9059 = vmatpush1.bf16.msra.mxu0 %v13214_v12  ;;  %v13241_v15 = vpack.c.bf16 %v4233_v20, %v4229_v27  ;;  %v8428_v2 = vpack.c.bf16 %v17772_v53, %v17770_v56  ;;  %v4243_v27 = vand.u32 4294901760, %v255_v55 }
 0x271   :  { %8421 = vmatprep.subr.bf16.mxu1 %v8420_v60  ;;  %17875 = vst [vmem:[#allocation11_spill] sm:$0xff] %v13238_v26  ;;  %9061 = vmatprep.subr.bf16.mxu0 %v13221_v59  ;;  %17877 = vst [vmem:[#allocation15_spill] sm:$0xff] %v13248_v21  ;;  %v17879_v60 = vld [vmem:[#allocation42_spill] sm:$0xff]  ;;  %v17880_v59 = vld [vmem:[#allocation43_spill] sm:$0xff]  ;;  %v13256_v12 = vsub.f32 %v249_v63, %v4231_v47  ;;  %v13261_v34 = vpack.c.bf16 %v4235_v52, %v4231_v47  ;;  %v17885_v53 = vand.u32 4294901760, %v13226_v46 }
 0x272   :  { %17876 = vst [vmem:[#allocation13_spill] sm:$0xff] %v13241_v15  ;;  %2377 = vmatprep.mubr.f32.mxu1 %v12829_v17  ;;  %17878 = vst [vmem:[#allocation16_spill] sm:$0xff] %v13250_v10  ;;  %4346 = vmatprep.mubr.f32.mxu0 %v4345_v58  ;;  %v8426_v11 = vpack.c.bf16 %v17880_v59, %v17879_v60  ;;  %v13258_v17 = vsub.f32 %v251_v29, %v4235_v52  ;;  %v17884_v58 = vand.u32 4294901760, %v13224_v23  ;;  %v13272_v63 = vld [vmem:[#allocation2 + $0x680] sm:$0xff]  ;;  %v13274_v29 = vld [vmem:[#allocation2 + $0x690] sm:$0xff] }
 0x273   :  { %17881 = vst [vmem:[#allocation212_spill] sm:$0xff] %v13256_v12  ;;  %17883 = vst [vmem:[#allocation21_spill] sm:$0xff] %v13261_v34  ;;  %v4245_v59 = vand.u32 4294901760, %v258_v62  ;;  %v4249_v20 = vand.u32 4294901760, %v260_v44  ;;  %v13280_v52 = vld [vmem:[#allocation2 + $0x6b8] sm:$0xff]  ;;  %v17887_v60 = vld [vmem:[#allocation52_spill] sm:$0xff] }
 0x274   :  { %8423 = vmatpush1.bf16.msra.mxu1 %v8422_v36  ;;  %17882 = vst [vmem:[#allocation19_spill] sm:$0xff] %v13258_v17  ;;  %9063 = vmatpush1.bf16.msra.mxu0 %v13238_v26  ;;  %v13270_v56 = vpack.c.bf16 %v17885_v53, %v17884_v58  ;;  %v17888_v36 = vld [vmem:[#allocation53_spill] sm:$0xff]  ;;  %v13286_v58 = vsub.f32 %v255_v55, %v4243_v27 }
 0x275   :  { %8425 = vmatprep.subr.bf16.mxu1 %v8424_v8  ;;  %9065 = vmatprep.subr.bf16.mxu0 %v13241_v15  ;;  %v13278_v8 = vld [vmem:[#allocation2 + $0x6a8] sm:$0xff]  ;;  %v8430_v35 = vpack.c.bf16 %v17888_v36, %v17887_v60  ;;  %v13284_v15 = vsub.f32 %v253_v13, %v4239_v30  ;;  %v8432_v53 = vpack.c.bf16 %v17779_v28, %v17777_v19  ;;  %v13302_v36 = vld [vmem:[#allocation2 + $0x6b0] sm:$0xff]  ;;  %v13312_v60 = vld [vmem:[#allocation2 + $0x6d8] sm:$0xff]  ;;  %v17897_v19 = vand.u32 4294901760, %v13272_v63 }
 0x276   :  { %17886 = vst [vmem:[#allocation25_spill] sm:$0xff] %v13270_v56  ;;  %17890 = vst [vmem:[#allocation209_spill] sm:$0xff] %v13286_v58  ;;  %v13291_v26 = vpack.c.bf16 %v4243_v27, %v4239_v30  ;;  %v13306_v28 = vsub.f32 %v258_v62, %v4245_v59  ;;  %v13308_v30 = vsub.f32 %v260_v44, %v4249_v20  ;;  %v13310_v27 = vld [vmem:[#allocation2 + $0x6c8] sm:$0xff]  ;;  %v17896_v13 = vld [vmem:[#allocation67_spill] sm:$0xff]  ;;  %v17898_v62 = vand.u32 4294901760, %v13274_v29 }
 0x277   :  { %17889 = vst [vmem:[#allocation26_spill] sm:$0xff] %v13284_v15  ;;  %v8434_v47 = vpack.c.bf16 %v17896_v13, %v17895_v31  ;;  %v8436_v55 = vpack.c.bf16 %v17787_v4, %v17785_v33  ;;  %v17900_v31 = vand.u32 4294901760, %v13278_v8  ;;  %v17901_v33 = vand.u32 4294901760, %v13280_v52  ;;  %v13434_v58 = vld [vmem:[#allocation2 + $0x758] sm:$0xff] }
 0x278   :  { %8427 = vmatpush1.bf16.msra.mxu1 %v8426_v11  ;;  %9067 = vmatpush1.bf16.msra.mxu0 %v13261_v34  ;;  %17891 = vst [vmem:[#allocation293_spill] sm:$0xff] %v13291_v26  ;;  %v13296_v11 = vpack.c.bf16 %v4249_v20, %v4245_v59  ;;  %17893 = vst [vmem:[#allocation31_spill] sm:$0xff] %v13306_v28  ;;  %v13323_v44 = vpack.c.bf16 %v17898_v62, %v17897_v19  ;;  %v13338_v19 = vld [vmem:[#allocation2 + $0x6c0] sm:$0xff]  ;;  %v13340_v62 = vld [vmem:[#allocation2 + $0x6d0] sm:$0xff]  ;;  %v17906_v13 = vand.u32 4294901760, %v13302_v36 }
 0x279   :  { %8429 = vmatprep.subr.bf16.mxu1 %v8428_v2  ;;  %9069 = vmatprep.subr.bf16.mxu0 %v13270_v56  ;;  %v13300_v2 = vld [vmem:[#allocation2 + $0x6a0] sm:$0xff]  ;;  %17894 = vst [vmem:[#allocation196_spill] sm:$0xff] %v13308_v30  ;;  %v13334_v4 = vpack.c.bf16 %v17901_v33, %v17900_v31  ;;  %v13342_v20 = vld [vmem:[#allocation2 + $0x6e8] sm:$0xff]  ;;  %v13344_v59 = vld [vmem:[#allocation2 + $0x6f8] sm:$0xff]  ;;  %v8440_v31 = vpack.c.bf16 %v17794_v1, %v17792_v42  ;;  %v17914_v1 = vand.u32 4294901760, %v13340_v62  ;;  %v17927_v15 = vand.u32 4294901760, %v13165_v37 }
 0x27a   :  { %17892 = vst [vmem:[#allocation29_spill] sm:$0xff] %v13296_v11  ;;  %17899 = vst [vmem:[#allocation35_spill] sm:$0xff] %v13323_v44  ;;  %v17905_v33 = vand.u32 4294901760, %v13300_v2  ;;  %v13374_v56 = vld [vmem:[#allocation2 + $0x718] sm:$0xff]  ;;  %v17919_v28 = vld [vmem:[#allocation108_spill] sm:$0xff]  ;;  %v8452_v17 = vpack.c.bf16 %v17815_v16, %v17813_v40 }
 0x27b   :  { %17902 = vst [vmem:[#allocation36_spill] sm:$0xff] %v13334_v4  ;;  %v17911_v34 = vld [vmem:[#allocation94_spill] sm:$0xff] }
 0x27c   :  { %8431 = vmatpush1.bf16.msra.mxu1 %v8430_v35  ;;  %9071 = vmatpush1.bf16.msra.mxu0 %v13291_v26  ;;  %v17903_v35 = vld [vmem:[#allocation80_spill] sm:$0xff]  ;;  %v13404_v30 = vld [vmem:[#allocation2 + $0x738] sm:$0xff] }
 0x27d   :  { %8433 = vmatprep.subr.bf16.mxu1 %v8432_v53  ;;  %9073 = vmatprep.subr.bf16.mxu0 %v13296_v11  ;;  %v17904_v11 = vld [vmem:[#allocation81_spill] sm:$0xff]  ;;  %v13355_v53 = vpack.c.bf16 %v17906_v13, %v17905_v33  ;;  %v17939_v40 = vand.u32 4294901760, %v13404_v30 }
 0x27e   :  { %v8438_v26 = vpack.c.bf16 %v17904_v11, %v17903_v35  ;;  %v17909_v11 = vand.u32 4294901760, %v13312_v60  ;;  %v13368_v35 = vld [vmem:[#allocation2 + $0x6e0] sm:$0xff]  ;;  %v13370_v13 = vld [vmem:[#allocation2 + $0x6f0] sm:$0xff]  ;;  %v13372_v33 = vld [vmem:[#allocation2 + $0x708] sm:$0xff] }
 0x27f   :  { %17907 = vst [vmem:[#allocation40_spill] sm:$0xff] %v13355_v53 }
 0x280   :  { %8435 = vmatpush1.bf16.msra.mxu1 %v8434_v47  ;;  %9075 = vmatpush1.bf16.msra.mxu0 %v13323_v44  ;;  %v17908_v47 = vand.u32 4294901760, %v13310_v27 }
 0x281   :  { %8437 = vmatprep.subr.bf16.mxu1 %v8436_v55  ;;  %9077 = vmatprep.subr.bf16.mxu0 %v13334_v4  ;;  %v17912_v4 = vld [vmem:[#allocation95_spill] sm:$0xff] }
 0x282   :  { %v13364_v55 = vpack.c.bf16 %v17909_v11, %v17908_v47  ;;  %v8442_v44 = vpack.c.bf16 %v17912_v4, %v17911_v34  ;;  %v8444_v47 = vpack.c.bf16 %v17800_v61, %v17798_v9  ;;  %v17913_v11 = vand.u32 4294901760, %v13338_v19 }
 0x283   :  { %v17917_v34 = vand.u32 4294901760, %v13344_v59  ;;  %v17922_v61 = vand.u32 4294901760, %v13370_v13 }
 0x284   :  { %17910 = vst [vmem:[#allocation41_spill] sm:$0xff] %v13364_v55  ;;  %8439 = vmatpush1.bf16.msra.mxu1 %v8438_v26  ;;  %9079 = vmatpush1.bf16.msra.mxu0 %v13355_v53  ;;  %v13385_v42 = vpack.c.bf16 %v17914_v1, %v17913_v11  ;;  %v17916_v26 = vand.u32 4294901760, %v13342_v20  ;;  %v13400_v1 = vld [vmem:[#allocation2 + $0x710] sm:$0xff]  ;;  %v13402_v11 = vld [vmem:[#allocation2 + $0x728] sm:$0xff] }
 0x285   :  { %8441 = vmatprep.subr.bf16.mxu1 %v8440_v31  ;;  %9081 = vmatprep.subr.bf16.mxu0 %v13364_v55  ;;  %v13398_v31 = vld [vmem:[#allocation2 + $0x700] sm:$0xff]  ;;  %v17920_v55 = vld [vmem:[#allocation109_spill] sm:$0xff] }
 0x286   :  { %17915 = vst [vmem:[#allocation45_spill] sm:$0xff] %v13385_v42  ;;  %v13394_v4 = vpack.c.bf16 %v17917_v34, %v17916_v26  ;;  %v8446_v53 = vpack.c.bf16 %v17920_v55, %v17919_v28  ;;  %v8448_v26 = vpack.c.bf16 %v17808_v45, %v17806_v0  ;;  %v17921_v34 = vand.u32 4294901760, %v13368_v35  ;;  %v17931_v45 = vld [vmem:[#allocation122_spill] sm:$0xff]  ;;  %v17932_v0 = vld [vmem:[#allocation123_spill] sm:$0xff] }
 0x287   :  { %v17924_v28 = vand.u32 4294901760, %v13372_v33  ;;  %v17933_v12 = vand.u32 4294901760, %v13398_v31 }
 0x288   :  { %17918 = vst [vmem:[#allocation46_spill] sm:$0xff] %v13394_v4  ;;  %8443 = vmatpush1.bf16.msra.mxu1 %v8442_v44  ;;  %9083 = vmatpush1.bf16.msra.mxu0 %v13385_v42  ;;  %v13415_v9 = vpack.c.bf16 %v17922_v61, %v17921_v34  ;;  %v17925_v44 = vand.u32 4294901760, %v13374_v56  ;;  %v13430_v61 = vld [vmem:[#allocation2 + $0x730] sm:$0xff]  ;;  %v13432_v34 = vld [vmem:[#allocation2 + $0x748] sm:$0xff]  ;;  %v8450_v42 = vpack.c.bf16 %v17932_v0, %v17931_v45  ;;  %v17947_v45 = vand.u32 4294901760, %v13224_v23 }
 0x289   :  { %8445 = vmatprep.subr.bf16.mxu1 %v8444_v47  ;;  %9085 = vmatprep.subr.bf16.mxu0 %v13394_v4  ;;  %v13428_v47 = vld [vmem:[#allocation2 + $0x720] sm:$0xff]  ;;  %v13439_v4 = vsub.f32 %v13165_v37, %v17927_v15  ;;  %v17934_v37 = vand.u32 4294901760, %v13400_v1 }
 0x28a   :  { %17923 = vst [vmem:[#allocation49_spill] sm:$0xff] %v13415_v9  ;;  %v13424_v55 = vpack.c.bf16 %v17925_v44, %v17924_v28  ;;  %v17929_v28 = vand.u32 4294901760, %v13167_v32 }
 0x28b   :  { %17928 = vst [vmem:[#allocation54_spill] sm:$0xff] %v13439_v4  ;;  %v13455_v15 = vpack.c.bf16 %v17934_v37, %v17933_v12  ;;  %v13475_v37 = vld [vmem:[#allocation2 + $0x750] sm:$0xff]  ;;  %v13495_v12 = vsub.f32 %v13224_v23, %v17947_v45  ;;  %v17954_v23 = vld [vmem:[#allocation136_spill] sm:$0xff] }
 0x28c   :  { %17926 = vst [vmem:[#allocation51_spill] sm:$0xff] %v13424_v55  ;;  %v13444_v44 = vsub.f32 %v13167_v32, %v17929_v28  ;;  %8447 = vmatpush1.bf16.msra.mxu1 %v8446_v53  ;;  %9087 = vmatpush1.bf16.msra.mxu0 %v13415_v9  ;;  %v17936_v53 = vand.u32 4294901760, %v13177_v54  ;;  %v13473_v28 = vld [vmem:[#allocation2 + $0x740] sm:$0xff]  ;;  %v17941_v32 = vand.u32 4294901760, %v13179_v3  ;;  %v13499_v9 = vld [vmem:[#allocation2 + $0x778] sm:$0xff]  ;;  %v17955_v45 = vld [vmem:[#allocation137_spill] sm:$0xff] }
 0x28d   :  { %8449 = vmatprep.subr.bf16.mxu1 %v8448_v26  ;;  %17935 = vst [vmem:[#allocation239_spill] sm:$0xff] %v13455_v15  ;;  %9089 = vmatprep.subr.bf16.mxu0 %v13424_v55  ;;  %v17938_v26 = vand.u32 4294901760, %v13402_v11  ;;  %17948 = vst [vmem:[#allocation245_spill] sm:$0xff] %v13495_v12  ;;  %v13497_v55 = vld [vmem:[#allocation2 + $0x768] sm:$0xff]  ;;  %v8454_v12 = vpack.c.bf16 %v17955_v45, %v17954_v23  ;;  %v17969_v45 = vand.u32 4294901760, %v13310_v27 }
 0x28e   :  { %17930 = vst [vmem:[#allocation57_spill] sm:$0xff] %v13444_v44  ;;  %v13462_v0 = vsub.f32 %v13177_v54, %v17936_v53  ;;  %v13480_v54 = vsub.f32 %v13179_v3, %v17941_v32  ;;  %v17943_v53 = vand.u32 4294901760, %v13181_v38  ;;  %v17949_v3 = vand.u32 4294901760, %v13226_v46 }
 0x28f   :  { %v13469_v16 = vpack.c.bf16 %v17939_v40, %v17938_v26  ;;  %v17945_v26 = vand.u32 4294901760, %v13183_v57  ;;  %v13565_v23 = vsub.f32 %v13310_v27, %v17969_v45  ;;  %v17977_v27 = vld [vmem:[#allocation150_spill] sm:$0xff]  ;;  %v17978_v45 = vld [vmem:[#allocation151_spill] sm:$0xff] }
 0x290   :  { %17937 = vst [vmem:[#allocation60_spill] sm:$0xff] %v13462_v0  ;;  %17942 = vst [vmem:[#allocation242_spill] sm:$0xff] %v13480_v54  ;;  %v13485_v10 = vsub.f32 %v13181_v38, %v17943_v53  ;;  %v13504_v32 = vsub.f32 %v13226_v46, %v17949_v3  ;;  %v17950_v38 = vand.u32 4294901760, %v13272_v63  ;;  %8451 = vmatpush1.bf16.msra.mxu1 %v8450_v42  ;;  %9091 = vmatpush1.bf16.msra.mxu0 %v13455_v15  ;;  %v13569_v15 = vld [vmem:[#allocation2 + $0x798] sm:$0xff] }
 0x291   :  { %17940 = vst [vmem:[#allocation65_spill] sm:$0xff] %v13469_v16  ;;  %v13490_v40 = vsub.f32 %v13183_v57, %v17945_v26  ;;  %v17952_v57 = vand.u32 4294901760, %v13274_v29  ;;  %8453 = vmatprep.subr.bf16.mxu1 %v8452_v17  ;;  %v8456_v46 = vpack.c.bf16 %v17821_v22, %v17819_v5  ;;  %v17956_v3 = vand.u32 4294901760, %v13428_v47  ;;  %9093 = vmatprep.subr.bf16.mxu0 %v13469_v16  ;;  %v13567_v16 = vld [vmem:[#allocation2 + $0x788] sm:$0xff] }
 0x292   :  { %17944 = vst [vmem:[#allocation68_spill] sm:$0xff] %v13485_v10  ;;  %v13509_v53 = vsub.f32 %v13272_v63, %v17950_v38  ;;  %v17957_v63 = vand.u32 4294901760, %v13430_v61  ;;  %v17959_v42 = vand.u32 4294901760, %v13278_v8  ;;  %v17961_v17 = vand.u32 4294901760, %v13432_v34  ;;  %17970 = vst [vmem:[#allocation93_spill] sm:$0xff] %v13565_v23 }
 0x293   :  { %17946 = vst [vmem:[#allocation72_spill] sm:$0xff] %v13490_v40  ;;  %v13514_v26 = vsub.f32 %v13274_v29, %v17952_v57  ;;  %v17962_v5 = vand.u32 4294901760, %v13434_v58  ;;  %v17964_v29 = vand.u32 4294901760, %v13280_v52  ;;  %v8458_v23 = vpack.c.bf16 %v17978_v45, %v17977_v27 }
 0x294   :  { %17951 = vst [vmem:[#allocation75_spill] sm:$0xff] %v13509_v53  ;;  %v13525_v38 = vpack.c.bf16 %v17957_v63, %v17956_v3  ;;  %v13532_v57 = vsub.f32 %v13278_v8, %v17959_v42  ;;  %v13543_v3 = vld [vmem:[#allocation2 + $0x760] sm:$0xff]  ;;  %v13545_v63 = vld [vmem:[#allocation2 + $0x770] sm:$0xff]  ;;  %v17966_v42 = vand.u32 4294901760, %v13300_v2  ;;  %8455 = vmatpush1.bf16.msra.mxu1 %v8454_v12  ;;  %v17982_v12 = vand.u32 4294901760, %v13342_v20 }
 0x295   :  { %17953 = vst [vmem:[#allocation79_spill] sm:$0xff] %v13514_v26  ;;  %v13539_v22 = vpack.c.bf16 %v17962_v5, %v17961_v17  ;;  %v13550_v8 = vsub.f32 %v13280_v52, %v17964_v29  ;;  %v17967_v17 = vand.u32 4294901760, %v13302_v36  ;;  %v17971_v52 = vand.u32 4294901760, %v13312_v60  ;;  %8457 = vmatprep.subr.bf16.mxu1 %v8456_v46 }
 0x296   :  { %17958 = vst [vmem:[#allocation247_spill] sm:$0xff] %v13525_v38  ;;  %17960 = vst [vmem:[#allocation84_spill] sm:$0xff] %v13532_v57  ;;  %v13555_v53 = vsub.f32 %v13300_v2, %v17966_v42  ;;  %v17973_v2 = vand.u32 4294901760, %v13338_v19  ;;  %9095 = vmatpush1.bf16.msra.mxu0 %v13525_v38  ;;  %v17983_v46 = vand.u32 4294901760, %v13497_v55  ;;  %v17991_v45 = vand.u32 4294901760, %v13372_v33  ;;  %v13639_v38 = vld [vmem:[#allocation2 + $0x7b8] sm:$0xff] }
 0x297   :  { %17963 = vst [vmem:[#allocation85_spill] sm:$0xff] %v13539_v22  ;;  %17965 = vst [vmem:[#allocation249_spill] sm:$0xff] %v13550_v8  ;;  %v13560_v5 = vsub.f32 %v13302_v36, %v17967_v17  ;;  %v13574_v29 = vsub.f32 %v13312_v60, %v17971_v52  ;;  %v17975_v36 = vand.u32 4294901760, %v13340_v62  ;;  %v8460_v60 = vpack.c.bf16 %v17829_v18, %v17827_v48 }
 0x298   :  { %v13579_v42 = vsub.f32 %v13338_v19, %v17973_v2  ;;  %v17979_v52 = vand.u32 4294901760, %v13473_v28  ;;  %v17980_v19 = vand.u32 4294901760, %v13475_v37  ;;  %9097 = vmatprep.subr.bf16.mxu0 %v13539_v22  ;;  %v17984_v48 = vand.u32 4294901760, %v13499_v9  ;;  %v13637_v22 = vld [vmem:[#allocation2 + $0x7a8] sm:$0xff]  ;;  %17993 = vst [vmem:[#allocation121_spill] sm:$0xff] %v13639_v38  ;;  %8459 = vmatpush1.bf16.msra.mxu1 %v8458_v23  ;;  %v13669_v23 = vld [vmem:[#allocation2 + $0x7a0] sm:$0xff] }
 0x299   :  { %17968 = vst [vmem:[#allocation89_spill] sm:$0xff] %v13560_v5  ;;  %17972 = vst [vmem:[#allocation96_spill] sm:$0xff] %v13574_v29  ;;  %v13584_v17 = vsub.f32 %v13340_v62, %v17975_v36  ;;  %v13602_v36 = vsub.f32 %v13342_v20, %v17982_v12  ;;  %v17986_v62 = vand.u32 4294901760, %v13344_v59  ;;  %v17987_v12 = vand.u32 4294901760, %v13368_v35  ;;  %8461 = vmatprep.subr.bf16.mxu1 %v8460_v60 }
 0x29a   :  { %17974 = vst [vmem:[#allocation99_spill] sm:$0xff] %v13579_v42  ;;  %v13595_v2 = vpack.c.bf16 %v17980_v19, %v17979_v52  ;;  %v13609_v18 = vpack.c.bf16 %v17984_v48, %v17983_v46  ;;  %v13613_v52 = vld [vmem:[#allocation2 + $0x780] sm:$0xff]  ;;  %v13615_v19 = vld [vmem:[#allocation2 + $0x790] sm:$0xff]  ;;  %v17989_v46 = vand.u32 4294901760, %v13370_v13  ;;  %v13635_v27 = vsub.f32 %v13372_v33, %v17991_v45 }
 0x29b   :  { %17976 = vst [vmem:[#allocation102_spill] sm:$0xff] %v13584_v17  ;;  %v13620_v20 = vsub.f32 %v13344_v59, %v17986_v62  ;;  %v13625_v42 = vsub.f32 %v13368_v35, %v17987_v12  ;;  %v17994_v59 = vand.u32 4294901760, %v13374_v56  ;;  %v17996_v35 = vand.u32 4294901760, %v13398_v31  ;;  %v17999_v33 = vld [vmem:[#allocation164_spill] sm:$0xff]  ;;  %v18000_v45 = vld [vmem:[#allocation165_spill] sm:$0xff] }
 0x29c   :  { %17981 = vst [vmem:[#allocation107_spill] sm:$0xff] %v13595_v2  ;;  %17985 = vst [vmem:[#allocation110_spill] sm:$0xff] %v13609_v18  ;;  %v13630_v48 = vsub.f32 %v13370_v13, %v17989_v46  ;;  %v17998_v13 = vand.u32 4294901760, %v13400_v1  ;;  %9099 = vmatpush1.bf16.msra.mxu0 %v13595_v2  ;;  %v18004_v60 = vand.u32 4294901760, %v13402_v11 }
 0x29d   :  { %17988 = vst [vmem:[#allocation114_spill] sm:$0xff] %v13625_v42  ;;  %17992 = vst [vmem:[#allocation117_spill] sm:$0xff] %v13635_v27  ;;  %v13644_v62 = vsub.f32 %v13374_v56, %v17994_v59  ;;  %v13649_v12 = vsub.f32 %v13398_v31, %v17996_v35  ;;  %v8462_v27 = vpack.c.bf16 %v18000_v45, %v17999_v33  ;;  %v18001_v59 = vand.u32 4294901760, %v13543_v3 }
 0x29e   :  { %17990 = vst [vmem:[#allocation258_spill] sm:$0xff] %v13630_v48  ;;  %v13654_v46 = vsub.f32 %v13400_v1, %v17998_v13  ;;  %v8464_v56 = vpack.c.bf16 %v17836_v6, %v17834_v39  ;;  %v18002_v31 = vand.u32 4294901760, %v13545_v63  ;;  %v13671_v13 = vld [vmem:[#allocation2 + $0x7b0] sm:$0xff]  ;;  %v13676_v33 = vsub.f32 %v13402_v11, %v18004_v60  ;;  %9101 = vmatprep.subr.bf16.mxu0 %v13609_v18 }
 0x29f   :  { %17995 = vst [vmem:[#allocation126_spill] sm:$0xff] %v13644_v62  ;;  %17997 = vst [vmem:[#allocation127_spill] sm:$0xff] %v13649_v12  ;;  %v18006_v39 = vand.u32 4294901760, %v13567_v16  ;;  %v18007_v6 = vand.u32 4294901760, %v13569_v15  ;;  %v18009_v1 = vand.u32 4294901760, %v13404_v30  ;;  %v18011_v11 = vand.u32 4294901760, %v13428_v47  ;;  %8463 = vmatpush1.bf16.msra.mxu1 %v8462_v27 }
 0x2a0   :  { %v13665_v35 = vpack.c.bf16 %v18002_v31, %v18001_v59  ;;  %18005 = vst [vmem:[#allocation131_spill] sm:$0xff] %v13676_v33  ;;  %v18013_v18 = vand.u32 4294901760, %v13430_v61  ;;  %v18015_v59 = vld [vmem:[#allocation178_spill] sm:$0xff]  ;;  %8465 = vmatprep.subr.bf16.mxu1 %v8464_v56  ;;  %v8468_v27 = vpack.c.bf16 %v17842_v43, %v17840_v24  ;;  %v18023_v31 = vld [vmem:[#allocation192_spill] sm:$0xff]  ;;  %v18024_v33 = vld [vmem:[#allocation193_spill] sm:$0xff]  ;;  %v18025_v56 = vand.u32 4294901760, %v13637_v22 }
 0x2a1   :  { %v13683_v45 = vpack.c.bf16 %v18007_v6, %v18006_v39  ;;  %v13690_v12 = vsub.f32 %v13404_v30, %v18009_v1  ;;  %v13695_v60 = vsub.f32 %v13428_v47, %v18011_v11  ;;  %v13702_v39 = vld [vmem:[#allocation2 + $0x7c8] sm:$0xff]  ;;  %v13704_v6 = vld [vmem:[#allocation2 + $0x7d8] sm:$0xff]  ;;  %v13711_v11 = vld [vmem:[#allocation2 + $0x7c0] sm:$0xff]  ;;  %v18032_v43 = vand.u32 4294901760, %v13669_v23 }
 0x2a2   :  { %18003 = vst [vmem:[#allocation264_spill] sm:$0xff] %v13665_v35  ;;  %v13700_v2 = vsub.f32 %v13430_v61, %v18013_v18  ;;  %v18016_v30 = vld [vmem:[#allocation179_spill] sm:$0xff]  ;;  %v13716_v61 = vand.u32 4294901760, %v13138_v41  ;;  %v18018_v18 = vand.u32 4294901760, %v13432_v34  ;;  %9103 = vmatpush1.bf16.msra.mxu0 %v13665_v35  ;;  %v18031_v24 = vld [vmem:[#allocation206_spill] sm:$0xff] }
 0x2a3   :  { %18008 = vst [vmem:[#allocation135_spill] sm:$0xff] %v13683_v45  ;;  %18010 = vst [vmem:[#allocation268_spill] sm:$0xff] %v13690_v12  ;;  %v8466_v1 = vpack.c.bf16 %v18016_v30, %v18015_v59  ;;  %v18020_v59 = vand.u32 4294901760, %v13613_v52  ;;  %v18021_v30 = vand.u32 4294901760, %v13615_v19  ;;  %9105 = vmatprep.subr.bf16.mxu0 %v13683_v45  ;;  %v13748_v45 = vld [vmem:[#allocation2 + $0x7e8] sm:$0xff]  ;;  %v13765_v12 = vld [vmem:[#allocation2 + $0x7f0] sm:$0xff] }
 0x2a4   :  { %18012 = vst [vmem:[#allocation267_spill] sm:$0xff] %v13695_v60  ;;  %18014 = vst [vmem:[#allocation138_spill] sm:$0xff] %v13700_v2  ;;  %v13713_v60 = vld [vmem:[#allocation2 + $0x7d0] sm:$0xff]  ;;  %v13721_v2 = vsub.f32 %v13432_v34, %v18018_v18  ;;  %v8470_v34 = vpack.c.bf16 %v18024_v33, %v18023_v31  ;;  %v18026_v18 = vand.u32 4294901760, %v13639_v38  ;;  %v13750_v33 = vld [vmem:[#allocation2 + $0x7f8] sm:$0xff]  ;;  %v18029_v31 = vand.u32 4294901760, %v13439_v4 }
 0x2a5   :  { %18017 = vst [vmem:[#allocation141_spill] sm:$0xff] %v13716_v61  ;;  %v13730_v47 = vpack.c.bf16 %v18021_v30, %v18020_v59  ;;  %v8472_v59 = vpack.c.bf16 %v17851_v49, %v17849_v50  ;;  %18028 = vst [vmem:[#allocation152_spill] sm:$0xff] %v13748_v45  ;;  %8467 = vmatpush1.bf16.msra.mxu1 %v8466_v1  ;;  %v18033_v50 = vand.u32 4294901760, %v13671_v13  ;;  %v13763_v30 = vld [vmem:[#allocation2 + $0x7e0] sm:$0xff]  ;;  %v18038_v1 = vand.u32 4294901760, %v13444_v44 }
 0x2a6   :  { %18019 = vst [vmem:[#allocation270_spill] sm:$0xff] %v13721_v2  ;;  %v13740_v35 = vpack.c.bf16 %v18026_v18, %v18025_v56  ;;  %v4361_v56 = vsub.f32 %v13439_v4, %v18029_v31  ;;  %v18030_v18 = vld [vmem:[#allocation205_spill] sm:$0xff]  ;;  %18035 = vst [vmem:[#allocation159_spill] sm:$0xff] %v13763_v30  ;;  %v13769_v38 = vsub.f32 %v13138_v41, %v13716_v61  ;;  %8469 = vmatprep.subr.bf16.mxu1 %v8468_v27  ;;  %v18060_v4 = vld [vmem:[#allocation19_spill] sm:$0xff] }
 0x2a7   :  { %18022 = vst [vmem:[#allocation144_spill] sm:$0xff] %v13730_v47  ;;  %v8474_v2 = vpack.c.bf16 %v18031_v24, %v18030_v18  ;;  %v13761_v49 = vpack.c.bf16 %v18033_v50, %v18032_v43  ;;  %18036 = vst [vmem:[#allocation163_spill] sm:$0xff] %v13765_v12  ;;  %9107 = vmatpush1.bf16.msra.mxu0 %v13730_v47  ;;  %v4373_v24 = vsub.f32 %v13444_v44, %v18038_v1 }
 0x2a8   :  { %18027 = vst [vmem:[#allocation149_spill] sm:$0xff] %v13740_v35  ;;  %18037 = vst [vmem:[#allocation168_spill] sm:$0xff] %v13769_v38  ;;  %9109 = vmatprep.subr.bf16.mxu0 %v13740_v35  ;;  %v8476_v41 = vpack.c.bf16 %v17857_v7, %v17855_v25  ;;  %v18039_v31 = vand.u32 4294901760, %v13702_v39  ;;  %v18040_v27 = vand.u32 4294901760, %v13704_v6  ;;  %v18042_v43 = vand.u32 4294901760, %v13711_v11 }
 0x2a9   :  { %18034 = vst [vmem:[#allocation156_spill] sm:$0xff] %v13761_v49  ;;  %v18043_v18 = vand.u32 4294901760, %v13713_v60  ;;  %v4362_v7 = vand.u32 4294901760, %v4361_v56  ;;  %8471 = vmatpush1.bf16.msra.mxu1 %v8470_v34  ;;  %v18047_v34 = vand.u32 4294901760, %v13485_v10  ;;  %v18048_v44 = vand.u32 4294901760, %v13490_v40 }
 0x2aa   :  { %v13786_v47 = vpack.c.bf16 %v18040_v27, %v18039_v31  ;;  %v18045_v31 = vand.u32 4294901760, %v13462_v0  ;;  %8473 = vmatprep.subr.bf16.mxu1 %v8472_v59  ;;  %v18049_v1 = vand.u32 4294901760, %v13434_v58  ;;  %v18050_v59 = vand.u32 4294901760, %v13748_v45 }
 0x2ab   :  { %v13794_v50 = vpack.c.bf16 %v18043_v18, %v18042_v43  ;;  %9111 = vmatpush1.bf16.msra.mxu0 %v13761_v49  ;;  %v4374_v43 = vand.u32 4294901760, %v4373_v24  ;;  %v18046_v18 = vand.u32 4294901760, %v13480_v54  ;;  %v4385_v56 = vsub.f32 %v13485_v10, %v18047_v34  ;;  %v18053_v34 = vld [vmem:[#allocation16_spill] sm:$0xff]  ;;  %v18054_v10 = vld [vmem:[#allocation214_spill] sm:$0xff] }
 0x2ac   :  { %18041 = vst [vmem:[#allocation169_spill] sm:$0xff] %v13786_v47  ;;  %v4367_v27 = vsub.f32 %v13462_v0, %v18045_v31  ;;  %v4397_v31 = vsub.f32 %v13490_v40, %v18048_v44  ;;  %v13817_v61 = vsub.f32 %v13434_v58, %v18049_v1  ;;  %9113 = vmatprep.subr.bf16.mxu0 %v13786_v47  ;;  %v18051_v24 = vand.u32 4294901760, %v13750_v33  ;;  %v18059_v47 = vld [vmem:[#allocation212_spill] sm:$0xff] }
 0x2ad   :  { %18044 = vst [vmem:[#allocation173_spill] sm:$0xff] %v13794_v50  ;;  %v4379_v25 = vsub.f32 %v13480_v54, %v18046_v18  ;;  %v18055_v54 = vld [vmem:[#allocation215_spill] sm:$0xff]  ;;  %v18056_v40 = vand.u32 4294901760, %v13763_v30  ;;  %v18057_v58 = vand.u32 4294901760, %v13765_v12  ;;  %8475 = vmatpush1.bf16.msra.mxu1 %v8474_v2  ;;  %v18062_v49 = vand.u32 4294901760, %v13231_v14  ;;  %v18084_v30 = vld [vmem:[#allocation222_spill] sm:$0xff] }
 0x2ae   :  { %v13824_v18 = vpack.c.bf16 %v18051_v24, %v18050_v59  ;;  %v8478_v44 = vpack.c.bf16 %v18055_v54, %v18054_v10  ;;  %v18061_v59 = vand.u32 4294901760, %v13769_v38  ;;  %v4368_v35 = vand.u32 4294901760, %v4367_v27  ;;  %8477 = vmatprep.subr.bf16.mxu1 %v8476_v41  ;;  %v18072_v41 = vld [vmem:[#allocation209_spill] sm:$0xff] }
 0x2af   :  { %v13834_v1 = vpack.c.bf16 %v18057_v58, %v18056_v40  ;;  %v4391_v10 = vsub.f32 %v13231_v14, %v18062_v49  ;;  %v18063_v54 = vand.u32 4294901760, %v13233_v51  ;;  %9115 = vmatpush1.bf16.msra.mxu0 %v13794_v50  ;;  %v9120_v40 = vpack.c.bf16 %v4374_v43, %v4362_v7 }
 0x2b0   :  { %18052 = vst [vmem:[#allocation177_spill] sm:$0xff] %v13824_v18  ;;  %v4350_v24 = vsub.f32 %v13769_v38, %v18061_v59  ;;  %v4380_v58 = vand.u32 4294901760, %v4379_v25  ;;  %v4386_v45 = vand.u32 4294901760, %v4385_v56  ;;  %v4398_v2 = vand.u32 4294901760, %v4397_v31  ;;  %9117 = vmatprep.subr.bf16.mxu0 %v13824_v18  ;;  %v18066_v38 = vld [vmem:[#allocation245_spill] sm:$0xff] }
 0x2b1   :  { %18058 = vst [vmem:[#allocation180_spill] sm:$0xff] %v13834_v1  ;;  %v4403_v12 = vsub.f32 %v13233_v51, %v18063_v54  ;;  %v18064_v59 = vand.u32 4294901760, %v13248_v21  ;;  %v18065_v0 = vand.u32 4294901760, %v18053_v34  ;;  %v18067_v54 = vand.u32 4294901760, %v13473_v28  ;;  %8479 = vmatpush1.bf16.msra.mxu1 %v8478_v44  ;;  %v18074_v51 = vld [vmem:[#allocation31_spill] sm:$0xff] }
 0x2b2   :  { %v18069_v7 = vand.u32 4294901760, %v18059_v47  ;;  %v18070_v56 = vand.u32 4294901760, %v18060_v4  ;;  %v4392_v14 = vand.u32 4294901760, %v4391_v10  ;;  %v18076_v44 = vand.u32 4294901760, %v18066_v38 }
 0x2b3   :  { %v4409_v27 = vsub.f32 %v13248_v21, %v18064_v59  ;;  %v4421_v49 = vsub.f32 %v18053_v34, %v18065_v0  ;;  %v13860_v25 = vsub.f32 %v13473_v28, %v18067_v54  ;;  %v18071_v59 = vld [vmem:[#allocation26_spill] sm:$0xff]  ;;  %v4351_v0 = vand.u32 4294901760, %v4350_v24  ;;  %v18073_v34 = vld [vmem:[#allocation217_spill] sm:$0xff]  ;;  %9119 = vmatpush1.bf16.msra.mxu0 %v13834_v1 }
 0x2b4   :  { %v4415_v43 = vsub.f32 %v18059_v47, %v18069_v7  ;;  %v4427_v31 = vsub.f32 %v18060_v4, %v18070_v56  ;;  %v16343_v18 = vand.u32 4294901760, %v18071_v59  ;;  %v4404_v50 = vand.u32 4294901760, %v4403_v12  ;;  %8481 = vmatprep.subr.bf16.mxu1 %v18073_v34  ;;  %v18075_v47 = vld [vmem:[#allocation196_spill] sm:$0xff]  ;;  %9121 = vmatprep.subr.bf16.mxu0 %v9120_v40 }
 0x2b5   :  { %18068 = vst [vmem:[#allocation183_spill] sm:$0xff] %v13860_v25  ;;  %v9122_v28 = vpack.c.bf16 %v4380_v58, %v4368_v35  ;;  %v9124_v54 = vpack.c.bf16 %v4398_v2, %v4386_v45  ;;  %v16344_v7 = vand.u32 4294901760, %v18074_v51  ;;  %v4410_v56 = vand.u32 4294901760, %v4409_v27  ;;  %v18078_v34 = vld [vmem:[#allocation280_spill] sm:$0xff]  ;;  %v18079_v58 = vld [vmem:[#allocation75_spill] sm:$0xff] }
 0x2b6   :  { %v4422_v4 = vand.u32 4294901760, %v4421_v49  ;;  %v4433_v24 = vsub.f32 %v18066_v38, %v18076_v44  ;;  %v18077_v12 = vand.u32 4294901760, %v13504_v32  ;;  %2380 = vmatmul.mubr.f32.vlgmr.msra.gmra.mrb[0].mxu1 %v18078_v34  ;;  %v4416_v21 = vand.u32 4294901760, %v4415_v43  ;;  %v18082_v49 = vld [vmem:[#allocation221_spill] sm:$0xff]  ;;  %4352 = vmatmul.mubr.f32.vlgmr.msra.gmra.mrb[0].mxu0 %v4351_v0 }
 0x2b7   :  { %v4428_v35 = vand.u32 4294901760, %v4427_v31  ;;  %v4439_v45 = vsub.f32 %v18071_v59, %v16343_v18  ;;  %v18080_v2 = vand.u32 4294901760, %v13475_v37  ;;  %8483 = vmatpush1.bf16.msra.mxu1 %v18082_v49  ;;  %v9126_v44 = vpack.c.bf16 %v4404_v50, %v4392_v14  ;;  %9123 = vmatpush1.bf16.msra.mxu0 %v9122_v28  ;;  %v18087_v31 = vld [vmem:[#allocation279_spill] sm:$0xff] }
 0x2b8   :  { %v4445_v10 = vsub.f32 %v13504_v32, %v18077_v12  ;;  %v18083_v12 = vand.u32 4294901760, %v18072_v41  ;;  %8485 = vmatprep.subr.bf16.mxu1 %v18084_v30  ;;  %v4457_v18 = vsub.f32 %v18074_v51, %v16344_v7  ;;  %v18086_v50 = vand.u32 4294901760, %v13497_v55  ;;  %9125 = vmatprep.subr.bf16.mxu0 %v9124_v54  ;;  %v18092_v54 = vld [vmem:[#allocation223_spill] sm:$0xff] }
 0x2b9   :  { %v13888_v27 = vsub.f32 %v13475_v37, %v18080_v2  ;;  %v18085_v37 = vand.u32 4294901760, %v18075_v47  ;;  %v9128_v30 = vpack.c.bf16 %v4422_v4, %v4410_v56  ;;  %v4434_v28 = vand.u32 4294901760, %v4433_v24 }
 0x2ba   :  { %v4451_v43 = vsub.f32 %v18072_v41, %v18083_v12  ;;  %v13907_v49 = vsub.f32 %v13497_v55, %v18086_v50  ;;  %v4446_v12 = vand.u32 4294901760, %v4445_v10  ;;  %v18088_v40 = vand.u32 4294901760, %v18087_v31  ;;  %v18091_v55 = vld [vmem:[#allocation282_spill] sm:$0xff] }
 0x2bb   :  { %18081 = vst [vmem:[#allocation186_spill] sm:$0xff] %v13888_v27  ;;  %v4469_v2 = vsub.f32 %v18075_v47, %v18085_v37  ;;  %v18089_v7 = vand.u32 4294901760, %v13499_v9  ;;  %v9130_v0 = vpack.c.bf16 %v4428_v35, %v4416_v21  ;;  %v4440_v1 = vand.u32 4294901760, %v4439_v45  ;;  %4743 = vmatprep.mubr.f32.mxu0 %v18091_v55  ;;  %8487 = vmatpush1.bf16.msra.mxu1 %v18092_v54 }
 0x2bc   :  { %2517 = vmatprep.mubr.f32.mxu1 %v18088_v40  ;;  %v18090_v14 = vand.u32 4294901760, %v18079_v58  ;;  %v4452_v4 = vand.u32 4294901760, %v4451_v43  ;;  %v18093_v56 = vand.u32 4294901760, %v13514_v26  ;;  %9127 = vmatpush1.bf16.msra.mxu0 %v9126_v44  ;;  %v4458_v21 = vand.u32 4294901760, %v4457_v18 }
 0x2bd   :  { %v13914_v37 = vsub.f32 %v13499_v9, %v18089_v7  ;;  %v18094_v7 = vld [vmem:[#allocation224_spill] sm:$0xff]  ;;  %v4470_v35 = vand.u32 4294901760, %v4469_v2  ;;  %v18095_v45 = vand.u32 4294901760, %v13532_v57  ;;  %v18096_v31 = vand.u32 4294901760, %v13550_v8  ;;  %9129 = vmatprep.subr.bf16.mxu0 %v9128_v30  ;;  %v18101_v9 = vld [vmem:[#allocation99_spill] sm:$0xff]  ;;  %v18102_v30 = vld [vmem:[#allocation225_spill] sm:$0xff] }
 0x2be   :  { %v4463_v51 = vsub.f32 %v18079_v58, %v18090_v14  ;;  %v4475_v24 = vsub.f32 %v13514_v26, %v18093_v56  ;;  %8489 = vmatprep.subr.bf16.mxu1 %v18094_v7  ;;  %v18097_v14 = vand.u32 4294901760, %v13543_v3  ;;  %v9132_v54 = vpack.c.bf16 %v4446_v12, %v4434_v28  ;;  %v18098_v56 = vld [vmem:[#allocation93_spill] sm:$0xff]  ;;  %v18105_v7 = vld [vmem:[#allocation226_spill] sm:$0xff] }
 0x2bf   :  { %v4481_v40 = vsub.f32 %v13532_v57, %v18095_v45  ;;  %v4493_v43 = vsub.f32 %v13550_v8, %v18096_v31  ;;  %v18099_v44 = vand.u32 4294901760, %v13545_v63  ;;  %v18100_v45 = vand.u32 4294901760, %v13567_v16  ;;  %8491 = vmatpush1.bf16.msra.mxu1 %v18102_v30 }
 0x2c0   :  { %v13936_v50 = vsub.f32 %v13543_v3, %v18097_v14  ;;  %v16348_v3 = vand.u32 4294901760, %v13584_v17  ;;  %v9134_v28 = vpack.c.bf16 %v4452_v4, %v4440_v1  ;;  %v4464_v12 = vand.u32 4294901760, %v4463_v51  ;;  %8493 = vmatprep.subr.bf16.mxu1 %v18105_v7  ;;  %9131 = vmatpush1.bf16.msra.mxu0 %v9130_v0 }
 0x2c1   :  { %v13943_v2 = vsub.f32 %v13545_v63, %v18099_v44  ;;  %v13948_v31 = vsub.f32 %v13567_v16, %v18100_v45  ;;  %v18103_v14 = vand.u32 4294901760, %v13555_v53  ;;  %v18104_v63 = vand.u32 4294901760, %v13560_v5  ;;  %9133 = vmatprep.subr.bf16.mxu0 %v9132_v54 }
 0x2c2   :  { %v9136_v16 = vpack.c.bf16 %v4470_v35, %v4458_v21  ;;  %v4476_v45 = vand.u32 4294901760, %v4475_v24  ;;  %v4482_v10 = vand.u32 4294901760, %v4481_v40  ;;  %v4494_v55 = vand.u32 4294901760, %v4493_v43  ;;  %v18114_v35 = vld [vmem:[#allocation117_spill] sm:$0xff] }
 0x2c3   :  { %v4487_v18 = vsub.f32 %v13555_v53, %v18103_v14  ;;  %v4499_v44 = vsub.f32 %v13560_v5, %v18104_v63  ;;  %v18106_v30 = vand.u32 4294901760, %v18098_v56  ;;  %v18107_v1 = vand.u32 4294901760, %v13574_v29  ;;  %v18113_v14 = vld [vmem:[#allocation228_spill] sm:$0xff] }
 0x2c4   :  { %v18108_v7 = vand.u32 4294901760, %v18101_v9  ;;  %v4523_v24 = vsub.f32 %v13584_v17, %v16348_v3  ;;  %v18109_v40 = vand.u32 4294901760, %v13569_v15  ;;  %v18111_v54 = vand.u32 4294901760, %v13613_v52  ;;  %9135 = vmatpush1.bf16.msra.mxu0 %v9134_v28 }
 0x2c5   :  { %v4505_v51 = vsub.f32 %v18098_v56, %v18106_v30  ;;  %v4517_v4 = vsub.f32 %v13574_v29, %v18107_v1  ;;  %v18112_v1 = vld [vmem:[#allocation227_spill] sm:$0xff]  ;;  %v4500_v63 = vand.u32 4294901760, %v4499_v44  ;;  %v9138_v3 = vpack.c.bf16 %v4476_v45, %v4464_v12  ;;  %9137 = vmatprep.subr.bf16.mxu0 %v9136_v16 }
 0x2c6   :  { %v4511_v0 = vsub.f32 %v18101_v9, %v18108_v7  ;;  %v13979_v43 = vsub.f32 %v13569_v15, %v18109_v40  ;;  %v13984_v30 = vsub.f32 %v13613_v52, %v18111_v54  ;;  %8495 = vmatpush1.bf16.msra.mxu1 %v18112_v1  ;;  %v4488_v7 = vand.u32 4294901760, %v4487_v18  ;;  %v18126_v1 = vld [vmem:[#allocation121_spill] sm:$0xff] }
 0x2c7   :  { %8497 = vmatprep.subr.bf16.mxu1 %v18113_v14  ;;  %v9140_v21 = vpack.c.bf16 %v4494_v55, %v4482_v10  ;;  %v16356_v17 = vand.u32 4294901760, %v18114_v35  ;;  %v16358_v9 = vand.u32 4294901760, %v13644_v62  ;;  %v4506_v15 = vand.u32 4294901760, %v4505_v51 }
 0x2c8   :  { %18110 = vst [vmem:[#allocation190_spill] sm:$0xff] %v13979_v43  ;;  %v4518_v40 = vand.u32 4294901760, %v4517_v4  ;;  %v18115_v29 = vand.u32 4294901760, %v13602_v36  ;;  %v18116_v54 = vand.u32 4294901760, %v13620_v20  ;;  %v4512_v44 = vand.u32 4294901760, %v4511_v0  ;;  %v18121_v4 = vld [vmem:[#allocation127_spill] sm:$0xff]  ;;  %9139 = vmatpush1.bf16.msra.mxu0 %v9138_v3 }
 0x2c9   :  { %v4524_v14 = vand.u32 4294901760, %v4523_v24  ;;  %v18117_v28 = vand.u32 4294901760, %v13625_v42  ;;  %v18118_v10 = vand.u32 4294901760, %v13630_v48  ;;  %v18119_v16 = vand.u32 4294901760, %v13615_v19  ;;  %v18122_v24 = vld [vmem:[#allocation61_spill] sm:$0xff]  ;;  %9141 = vmatprep.subr.bf16.mxu0 %v9140_v21 }
 0x2ca   :  { %v4529_v52 = vsub.f32 %v13602_v36, %v18115_v29  ;;  %v4541_v18 = vsub.f32 %v13620_v20, %v18116_v54  ;;  %v18120_v29 = vld [vmem:[#allocation55_spill] sm:$0xff]  ;;  %v9142_v51 = vpack.c.bf16 %v4500_v63, %v4488_v7  ;;  %v4553_v54 = vsub.f32 %v18114_v35, %v16356_v17 }
 0x2cb   :  { %v4535_v55 = vsub.f32 %v13625_v42, %v18117_v28  ;;  %v4547_v12 = vsub.f32 %v13630_v48, %v18118_v10  ;;  %v14005_v45 = vsub.f32 %v13615_v19, %v18119_v16  ;;  %8499 = vmatpush1.bf16.msra.mxu1 %v18120_v29  ;;  %v4565_v28 = vsub.f32 %v13644_v62, %v16358_v9  ;;  %v18123_v19 = vld [vmem:[#allocation131_spill] sm:$0xff]  ;;  %v18124_v16 = vld [vmem:[#allocation268_spill] sm:$0xff]  ;;  %v18129_v10 = vld [vmem:[#allocation62_spill] sm:$0xff] }
 0x2cc   :  { %8501 = vmatprep.subr.bf16.mxu1 %v18122_v24  ;;  %v18125_v63 = vand.u32 4294901760, %v13637_v22  ;;  %v9144_v24 = vpack.c.bf16 %v4518_v40, %v4506_v15  ;;  %v4530_v3 = vand.u32 4294901760, %v4529_v52  ;;  %v4542_v0 = vand.u32 4294901760, %v4541_v18  ;;  %v18132_v15 = vld [vmem:[#allocation267_spill] sm:$0xff]  ;;  %v18133_v52 = vld [vmem:[#allocation138_spill] sm:$0xff]  ;;  %9143 = vmatpush1.bf16.msra.mxu0 %v9142_v51 }
 0x2cd   :  { %v18127_v48 = vand.u32 4294901760, %v18126_v1  ;;  %v9146_v35 = vpack.c.bf16 %v4524_v14, %v4512_v44  ;;  %v4536_v9 = vand.u32 4294901760, %v4535_v55  ;;  %v4548_v62 = vand.u32 4294901760, %v4547_v12  ;;  %v18138_v18 = vld [vmem:[#allocation270_spill] sm:$0xff] }
 0x2ce   :  { %v14022_v7 = vsub.f32 %v13637_v22, %v18125_v63  ;;  %v18130_v29 = vand.u32 4294901760, %v18121_v4  ;;  %v18131_v22 = vand.u32 4294901760, %v13654_v46  ;;  %v18134_v63 = vld [vmem:[#allocation63_spill] sm:$0xff]  ;;  %v4566_v44 = vand.u32 4294901760, %v4565_v28  ;;  %9145 = vmatprep.subr.bf16.mxu0 %v9144_v24  ;;  %v18142_v24 = vld [vmem:[#allocation69_spill] sm:$0xff] }
 0x2cf   :  { %v14027_v17 = vsub.f32 %v18126_v1, %v18127_v48  ;;  %8503 = vmatpush1.bf16.msra.mxu1 %v18129_v10  ;;  %v4554_v48 = vand.u32 4294901760, %v4553_v54  ;;  %v18135_v14 = vand.u32 4294901760, %v18123_v19  ;;  %v18136_v12 = vand.u32 4294901760, %v18124_v16 }
 0x2d0   :  { %v4559_v42 = vsub.f32 %v18121_v4, %v18130_v29  ;;  %v4571_v21 = vsub.f32 %v13654_v46, %v18131_v22  ;;  %8505 = vmatprep.subr.bf16.mxu1 %v18134_v63  ;;  %v18137_v10 = vand.u32 4294901760, %v13669_v23  ;;  %v9148_v22 = vpack.c.bf16 %v4542_v0, %v4530_v3  ;;  %v18145_v63 = vld [vmem:[#allocation70_spill] sm:$0xff]  ;;  %9147 = vmatpush1.bf16.msra.mxu0 %v9146_v35 }
 0x2d1   :  { %18128 = vst [vmem:[#allocation194_spill] sm:$0xff] %v14027_v17  ;;  %v4577_v55 = vsub.f32 %v18123_v19, %v18135_v14  ;;  %v4589_v1 = vsub.f32 %v18124_v16, %v18136_v12  ;;  %v18139_v54 = vand.u32 4294901760, %v13671_v13  ;;  %v18141_v14 = vand.u32 4294901760, %v13702_v39 }
 0x2d2   :  { %v14048_v29 = vsub.f32 %v13669_v23, %v18137_v10  ;;  %v4560_v0 = vand.u32 4294901760, %v4559_v42  ;;  %v4572_v3 = vand.u32 4294901760, %v4571_v21  ;;  %v18143_v10 = vand.u32 4294901760, %v18132_v15  ;;  %9149 = vmatprep.subr.bf16.mxu0 %v9148_v22  ;;  %v18152_v22 = vld [vmem:[#allocation76_spill] sm:$0xff] }
 0x2d3   :  { %v14055_v28 = vsub.f32 %v13671_v13, %v18139_v54  ;;  %v14060_v12 = vsub.f32 %v13702_v39, %v18141_v14  ;;  %8507 = vmatpush1.bf16.msra.mxu1 %v18142_v24  ;;  %v18144_v13 = vand.u32 4294901760, %v18133_v52  ;;  %v9150_v39 = vpack.c.bf16 %v4548_v62, %v4536_v9 }
 0x2d4   :  { %v4583_v51 = vsub.f32 %v18132_v15, %v18143_v10  ;;  %8509 = vmatprep.subr.bf16.mxu1 %v18145_v63  ;;  %v9152_v14 = vpack.c.bf16 %v4566_v44, %v4554_v48  ;;  %v4578_v40 = vand.u32 4294901760, %v4577_v55  ;;  %v4590_v16 = vand.u32 4294901760, %v4589_v1 }
 0x2d5   :  { %18140 = vst [vmem:[#allocation198_spill] sm:$0xff] %v14055_v28  ;;  %v4595_v54 = vsub.f32 %v18133_v52, %v18144_v13  ;;  %v18146_v24 = vand.u32 4294901760, %v18138_v18  ;;  %v18147_v21 = vand.u32 4294901760, %v13817_v61  ;;  %v18148_v63 = vand.u32 4294901760, %v13704_v6  ;;  %9151 = vmatpush1.bf16.msra.mxu0 %v9150_v39 }
 0x2d6   :  { %v18149_v9 = vand.u32 4294901760, %v13711_v11  ;;  %v18150_v48 = vand.u32 4294901760, %v13860_v25  ;;  %v18151_v55 = vand.u32 4294901760, %v13888_v27  ;;  %v16368_v23 = vand.u32 4294901760, %v13948_v31  ;;  %9153 = vmatprep.subr.bf16.mxu0 %v9152_v14 }
 0x2d7   :  { %v4601_v42 = vsub.f32 %v18138_v18, %v18146_v24  ;;  %v4613_v10 = vsub.f32 %v13817_v61, %v18147_v21  ;;  %v14083_v62 = vsub.f32 %v13704_v6, %v18148_v63  ;;  %8511 = vmatpush1.bf16.msra.mxu1 %v18152_v22  ;;  %v9154_v24 = vpack.c.bf16 %v4572_v3, %v4560_v0  ;;  %v18153_v63 = vld [vmem:[#allocation78_spill] sm:$0xff] }
 0x2d8   :  { %v14088_v35 = vsub.f32 %v13711_v11, %v18149_v9  ;;  %v4607_v44 = vsub.f32 %v13860_v25, %v18150_v48  ;;  %v4619_v1 = vsub.f32 %v13888_v27, %v18151_v55  ;;  %v4584_v21 = vand.u32 4294901760, %v4583_v51  ;;  %8513 = vmatprep.subr.bf16.mxu1 %v18153_v63  ;;  %v18156_v63 = vld [vmem:[#allocation82_spill] sm:$0xff] }
 0x2d9   :  { %v4596_v13 = vand.u32 4294901760, %v4595_v54  ;;  %v16366_v6 = vand.u32 4294901760, %v13936_v50  ;;  %v9156_v11 = vpack.c.bf16 %v4590_v16, %v4578_v40  ;;  %v16367_v9 = vand.u32 4294901760, %v13943_v2  ;;  %9155 = vmatpush1.bf16.msra.mxu0 %v9154_v24 }
 0x2da   :  { %v4602_v25 = vand.u32 4294901760, %v4601_v42  ;;  %v4614_v55 = vand.u32 4294901760, %v4613_v10  ;;  %v18154_v22 = vand.u32 4294901760, %v13907_v49  ;;  %v18155_v0 = vand.u32 4294901760, %v13914_v37  ;;  %v18161_v10 = vld [vmem:[#allocation152_spill] sm:$0xff] }
 0x2db   :  { %v4608_v54 = vand.u32 4294901760, %v4607_v44  ;;  %v4620_v39 = vand.u32 4294901760, %v4619_v1  ;;  %v16371_v16 = vand.u32 4294901760, %v13984_v30  ;;  %8515 = vmatpush1.bf16.msra.mxu1 %v18156_v63  ;;  %v9158_v48 = vpack.c.bf16 %v4596_v13, %v4584_v21  ;;  %9157 = vmatprep.subr.bf16.mxu0 %v9156_v11 }
 0x2dc   :  { %v4625_v51 = vsub.f32 %v13907_v49, %v18154_v22  ;;  %v4637_v3 = vsub.f32 %v13914_v37, %v18155_v0  ;;  %v4631_v14 = vsub.f32 %v13936_v50, %v16366_v6  ;;  %v18157_v22 = vld [vmem:[#allocation87_spill] sm:$0xff]  ;;  %v4643_v44 = vsub.f32 %v13943_v2, %v16367_v9 }
 0x2dd   :  { %8517 = vmatprep.subr.bf16.mxu1 %v18157_v22  ;;  %v4649_v1 = vsub.f32 %v13948_v31, %v16368_v23  ;;  %v18158_v13 = vand.u32 4294901760, %v13979_v43  ;;  %v18159_v0 = vand.u32 4294901760, %v13713_v60  ;;  %v9160_v22 = vpack.c.bf16 %v4614_v55, %v4602_v25  ;;  %9159 = vmatpush1.bf16.msra.mxu0 %v9158_v48  ;;  %v18173_v48 = vld [vmem:[#allocation163_spill] sm:$0xff] }
 0x2de   :  { %v4626_v24 = vand.u32 4294901760, %v4625_v51  ;;  %v4638_v6 = vand.u32 4294901760, %v4637_v3  ;;  %v18162_v42 = vand.u32 4294901760, %v18161_v10  ;;  %v9162_v40 = vpack.c.bf16 %v4620_v39, %v4608_v54  ;;  %v18167_v39 = vld [vmem:[#allocation91_spill] sm:$0xff] }
 0x2df   :  { %v4661_v21 = vsub.f32 %v13979_v43, %v18158_v13  ;;  %v14129_v63 = vsub.f32 %v13713_v60, %v18159_v0  ;;  %v4655_v23 = vsub.f32 %v13984_v30, %v16371_v16  ;;  %v18163_v13 = vand.u32 4294901760, %v14005_v45  ;;  %v18164_v60 = vld [vmem:[#allocation90_spill] sm:$0xff]  ;;  %9161 = vmatprep.subr.bf16.mxu0 %v9160_v22 }
 0x2e0   :  { %v14134_v9 = vsub.f32 %v18161_v10, %v18162_v42  ;;  %8519 = vmatpush1.bf16.msra.mxu1 %v18164_v60  ;;  %v18165_v25 = vand.u32 4294901760, %v14022_v7  ;;  %v18166_v55 = vand.u32 4294901760, %v14027_v17  ;;  %v4632_v42 = vand.u32 4294901760, %v4631_v14 }
 0x2e1   :  { %18160 = vst [vmem:[#allocation201_spill] sm:$0xff] %v14129_v63  ;;  %v4667_v43 = vsub.f32 %v14005_v45, %v18163_v13  ;;  %8521 = vmatprep.subr.bf16.mxu1 %v18167_v39  ;;  %v4644_v10 = vand.u32 4294901760, %v4643_v44  ;;  %v4650_v0 = vand.u32 4294901760, %v4649_v1  ;;  %v4662_v13 = vand.u32 4294901760, %v4661_v21  ;;  %9163 = vmatpush1.bf16.msra.mxu0 %v9162_v40  ;;  %v18182_v40 = vld [vmem:[#allocation104_spill] sm:$0xff] }
 0x2e2   :  { %v4673_v11 = vsub.f32 %v14022_v7, %v18165_v25  ;;  %v4685_v51 = vsub.f32 %v14027_v17, %v18166_v55  ;;  %v18168_v60 = vand.u32 4294901760, %v13750_v33  ;;  %v9164_v25 = vpack.c.bf16 %v4638_v6, %v4626_v24  ;;  %v18170_v17 = vld [vmem:[#allocation159_spill] sm:$0xff] }
 0x2e3   :  { %v18171_v54 = vand.u32 4294901760, %v18170_v17  ;;  %v18174_v14 = vand.u32 4294901760, %v18173_v48  ;;  %v4656_v1 = vand.u32 4294901760, %v4655_v23  ;;  %v4668_v21 = vand.u32 4294901760, %v4667_v43 }
 0x2e4   :  { %v14155_v16 = vsub.f32 %v13750_v33, %v18168_v60  ;;  %v18176_v33 = vld [vmem:[#allocation97_spill] sm:$0xff]  ;;  %v4674_v22 = vand.u32 4294901760, %v4673_v11  ;;  %v4686_v6 = vand.u32 4294901760, %v4685_v51  ;;  %v18177_v24 = vand.u32 4294901760, %v14048_v29  ;;  %9165 = vmatprep.subr.bf16.mxu0 %v9164_v25 }
 0x2e5   :  { %v14162_v39 = vsub.f32 %v18170_v17, %v18171_v54  ;;  %v14167_v44 = vsub.f32 %v18173_v48, %v18174_v14  ;;  %8523 = vmatpush1.bf16.msra.mxu1 %v18176_v33  ;;  %v18178_v3 = vand.u32 4294901760, %v14055_v28  ;;  %v18179_v54 = vld [vmem:[#allocation103_spill] sm:$0xff]  ;;  %v9166_v55 = vpack.c.bf16 %v4644_v10, %v4632_v42 }
 0x2e6   :  { %18169 = vst [vmem:[#allocation204_spill] sm:$0xff] %v14155_v16  ;;  %v4679_v60 = vsub.f32 %v14048_v29, %v18177_v24  ;;  %8525 = vmatprep.subr.bf16.mxu1 %v18179_v54  ;;  %v9168_v48 = vpack.c.bf16 %v4662_v13, %v4650_v0  ;;  %v16376_v23 = vand.u32 4294901760, %v14088_v35  ;;  %v16374_v43 = vand.u32 4294901760, %v14129_v63  ;;  %v18183_v54 = vld [vmem:[#allocation105_spill] sm:$0xff] }
 0x2e7   :  { %18172 = vst [vmem:[#allocation207_spill] sm:$0xff] %v14162_v39  ;;  %18175 = vst [vmem:[#allocation8_spill] sm:$0xff] %v14167_v44  ;;  %v4691_v17 = vsub.f32 %v14055_v28, %v18178_v3  ;;  %v18180_v11 = vand.u32 4294901760, %v14060_v12  ;;  %v18181_v14 = vand.u32 4294901760, %v14083_v62  ;;  %v16375_v3 = vand.u32 4294901760, %v14134_v9  ;;  %9167 = vmatpush1.bf16.msra.mxu0 %v9166_v55 }
 0x2e8   :  { %v9170_v42 = vpack.c.bf16 %v4668_v21, %v4656_v1  ;;  %v9172_v10 = vpack.c.bf16 %v4686_v6, %v4674_v22  ;;  %v4680_v0 = vand.u32 4294901760, %v4679_v60  ;;  %v4703_v25 = vsub.f32 %v14088_v35, %v16376_v23  ;;  %9169 = vmatprep.subr.bf16.mxu0 %v9168_v48  ;;  %v18185_v60 = vld [vmem:[#allocation111_spill] sm:$0xff]  ;;  %v18187_v23 = vld [vmem:[#allocation118_spill] sm:$0xff] }
 0x2e9   :  { %v4697_v51 = vsub.f32 %v14060_v12, %v18180_v11  ;;  %v4709_v33 = vsub.f32 %v14083_v62, %v18181_v14  ;;  %8527 = vmatpush1.bf16.msra.mxu1 %v18182_v40  ;;  %v4692_v13 = vand.u32 4294901760, %v4691_v17  ;;  %v4715_v11 = vsub.f32 %v14129_v63, %v16374_v43  ;;  %v18186_v40 = vld [vmem:[#allocation112_spill] sm:$0xff] }
 0x2ea   :  { %8529 = vmatprep.subr.bf16.mxu1 %v18183_v54  ;;  %v16378_v14 = vand.u32 4294901760, %v14162_v39  ;;  %v16377_v24 = vand.u32 4294901760, %v14167_v44  ;;  %v4721_v22 = vsub.f32 %v14134_v9, %v16375_v3  ;;  %v18184_v55 = vand.u32 4294901760, %v14155_v16 }
 0x2eb   :  { %v4698_v1 = vand.u32 4294901760, %v4697_v51  ;;  %v4710_v21 = vand.u32 4294901760, %v4709_v33  ;;  %v9174_v17 = vpack.c.bf16 %v4692_v13, %v4680_v0  ;;  %9171 = vmatpush1.bf16.msra.mxu0 %v9170_v42  ;;  %v4704_v54 = vand.u32 4294901760, %v4703_v25  ;;  %v18188_v0 = vld [vmem:[#allocation120_spill] sm:$0xff] }
 0x2ec   :  { %v4733_v6 = vsub.f32 %v14155_v16, %v18184_v55  ;;  %v4716_v43 = vand.u32 4294901760, %v4715_v11  ;;  %v4727_v48 = vsub.f32 %v14162_v39, %v16378_v14  ;;  %v4739_v51 = vsub.f32 %v14167_v44, %v16377_v24  ;;  %9173 = vmatprep.subr.bf16.mxu0 %v9172_v10  ;;  %v18191_v10 = vld [vmem:[#allocation54_spill] sm:$0xff] }
 0x2ed   :  { %8531 = vmatpush1.bf16.msra.mxu1 %v18185_v60  ;;  %v9176_v33 = vpack.c.bf16 %v4710_v21, %v4698_v1  ;;  %v4722_v3 = vand.u32 4294901760, %v4721_v22  ;;  %v18189_v60 = vld [vmem:[#allocation124_spill] sm:$0xff]  ;;  %v18192_v1 = vld [vmem:[#allocation57_spill] sm:$0xff] }
 0x2ee   :  { %8533 = vmatprep.subr.bf16.mxu1 %v18186_v40  ;;  %v4734_v55 = vand.u32 4294901760, %v4733_v6  ;;  %v9178_v42 = vpack.c.bf16 %v4716_v43, %v4704_v54  ;;  %v4728_v13 = vand.u32 4294901760, %v4727_v48  ;;  %v4740_v25 = vand.u32 4294901760, %v4739_v51  ;;  %v18190_v40 = vld [vmem:[#allocation129_spill] sm:$0xff]  ;;  %v18193_v22 = vld [vmem:[#allocation132_spill] sm:$0xff]  ;;  %v18195_v6 = vld [vmem:[#allocation242_spill] sm:$0xff] }
 0x2ef   :  { %9175 = vmatpush1.bf16.msra.mxu0 %v9174_v17  ;;  %v9184_v21 = vpack.c.bf16 %v18192_v1, %v18191_v10  ;;  %v18196_v17 = vld [vmem:[#allocation68_spill] sm:$0xff]  ;;  %v18198_v48 = vand.u32 4294901760, %v18078_v34  ;;  %v18199_v51 = vld [vmem:[#allocation141_spill] sm:$0xff] }
 0x2f0   :  { %9177 = vmatprep.subr.bf16.mxu0 %v9176_v33  ;;  %v9180_v11 = vpack.c.bf16 %v4734_v55, %v4722_v3  ;;  %v9182_v24 = vpack.c.bf16 %v4740_v25, %v4728_v13  ;;  %v18197_v54 = vld [vmem:[#allocation72_spill] sm:$0xff]  ;;  %v18200_v33 = vld [vmem:[#allocation283_spill] sm:$0xff] }
 0x2f1   :  { %8535 = vmatpush1.bf16.msra.mxu1 %v18187_v23  ;;  %v18194_v23 = vld [vmem:[#allocation60_spill] sm:$0xff]  ;;  %v9188_v3 = vpack.c.bf16 %v18197_v54, %v18196_v17  ;;  %v18201_v55 = vld [vmem:[#allocation203_spill] sm:$0xff] }
 0x2f2   :  { %8537 = vmatprep.subr.bf16.mxu1 %v18188_v0  ;;  %v9186_v43 = vpack.c.bf16 %v18195_v6, %v18194_v23  ;;  %v18202_v0 = vld [vmem:[#allocation10_spill] sm:$0xff]  ;;  %v18205_v13 = vld [vmem:[#allocation15_spill] sm:$0xff]  ;;  %v18208_v34 = vld [vmem:[#allocation212_spill] sm:$0xff] }
 0x2f3   :  { %9179 = vmatpush1.bf16.msra.mxu0 %v9178_v42  ;;  %v18203_v42 = vpack.c.bf16 %v18201_v55, %v18202_v0 }
 0x2f4   :  { %9181 = vmatprep.subr.bf16.mxu0 %v9180_v11  ;;  %v9196_v11 = vpack.c.bf16 %v13504_v32, %v18066_v38 }
 0x2f5   :  { %8539 = vmatpush1.bf16.msra.mxu1 %v18189_v60  ;;  %v18207_v60 = vld [vmem:[#allocation19_spill] sm:$0xff] }
 0x2f6   :  { %8541 = vmatprep.subr.bf16.mxu1 %v18190_v40  ;;  %v18209_v40 = vpack.c.bf16 %v18207_v60, %v18208_v34 }
 0x2f7   :  { %9183 = vmatpush1.bf16.msra.mxu0 %v9182_v24  ;;  %v18204_v24 = vld [vmem:[#allocation16_spill] sm:$0xff] }
 0x2f8   :  { %9185 = vmatprep.subr.bf16.mxu0 %v9184_v21  ;;  %v18206_v25 = vpack.c.bf16 %v18204_v24, %v18205_v13  ;;  %v18210_v21 = vpack.c.bf16 %v18072_v41, %v18071_v59 }
 0x2f9   :  { %8543 = vmatpush1.bf16.msra.mxu1 %v18193_v22  ;;  %v9202_v22 = vpack.c.bf16 %v13514_v26, %v18079_v58  ;;  %v18217_v26 = vld [vmem:[#allocation258_spill] sm:$0xff] }
 0x2fa   :  { %4745 = vmatmul.mubr.f32.vlgmr.msra.gmra.mrb[0].mxu0 %v18199_v51  ;;  %v9212_v51 = vpack.c.bf16 %v13620_v20, %v13602_v36 }
 0x2fb   :  { %9187 = vmatpush1.bf16.msra.mxu0 %v9186_v43  ;;  %4945 = vmatprep.mubr.f32.mxu0 %v18200_v33  ;;  %v18211_v43 = vld [vmem:[#allocation31_spill] sm:$0xff] }
 0x2fc   :  { %2521 = vmatmul.mubr.f32.vlgmr.msra.gmra.mrb[0].mxu1 %v18198_v48  ;;  %9189 = vmatprep.subr.bf16.mxu0 %v9188_v3  ;;  %v18212_v3 = vpack.c.bf16 %v18075_v47, %v18211_v43  ;;  %v9204_v48 = vpack.c.bf16 %v13550_v8, %v13532_v57  ;;  %v18219_v57 = vld [vmem:[#allocation126_spill] sm:$0xff] }
 0x2ff   :  { %9191 = vmatpush1.bf16.msra.mxu0 %v18203_v42  ;;  %v9206_v42 = vpack.c.bf16 %v13560_v5, %v13555_v53 }
 0x300   :  { %9193 = vmatprep.subr.bf16.mxu0 %v18206_v25  ;;  %v18213_v25 = vld [vmem:[#allocation96_spill] sm:$0xff] }
 0x303   :  { %9195 = vmatpush1.bf16.msra.mxu0 %v18209_v40  ;;  %v18214_v40 = vld [vmem:[#allocation99_spill] sm:$0xff] }
 0x304   :  { %9197 = vmatprep.subr.bf16.mxu0 %v9196_v11  ;;  %v9208_v11 = vpack.c.bf16 %v18213_v25, %v18098_v56 }
 0x307   :  { %9199 = vmatpush1.bf16.msra.mxu0 %v18210_v21  ;;  %v18215_v21 = vld [vmem:[#allocation102_spill] sm:$0xff] }
 0x308   :  { %9201 = vmatprep.subr.bf16.mxu0 %v18212_v3  ;;  %v9210_v14 = vpack.c.bf16 %v18215_v21, %v18214_v40  ;;  %v18216_v3 = vld [vmem:[#allocation114_spill] sm:$0xff] }
 0x309   :  { %v9214_v8 = vpack.c.bf16 %v18217_v26, %v18216_v3 }
 0x30b   :  { %9203 = vmatpush1.bf16.msra.mxu0 %v9202_v22  ;;  %v18218_v22 = vld [vmem:[#allocation117_spill] sm:$0xff] }
 0x30c   :  { %9205 = vmatprep.subr.bf16.mxu0 %v9204_v48  ;;  %v9216_v5 = vpack.c.bf16 %v18219_v57, %v18218_v22  ;;  %v9218_v48 = vpack.c.bf16 %v13654_v46, %v18121_v4 }
 0x30f   :  { %9207 = vmatpush1.bf16.msra.mxu0 %v9206_v42  ;;  %v18220_v42 = vld [vmem:[#allocation268_spill] sm:$0xff] }
 0x310   :  { %9209 = vmatprep.subr.bf16.mxu0 %v9208_v11  ;;  %v9220_v21 = vpack.c.bf16 %v18220_v42, %v18123_v19  ;;  %v9222_v11 = vpack.c.bf16 %v18133_v52, %v18132_v15 }
 0x313   :  { %9211 = vmatpush1.bf16.msra.mxu0 %v9210_v14  ;;  %v9224_v14 = vpack.c.bf16 %v13817_v61, %v18138_v18 }
 0x314   :  { %9213 = vmatprep.subr.bf16.mxu0 %v9212_v51  ;;  %v18221_v51 = vld [vmem:[#allocation183_spill] sm:$0xff] }
 0x315   :  { %v9226_v57 = vpack.c.bf16 %v13888_v27, %v18221_v51 }
 0x317   :  { %9215 = vmatpush1.bf16.msra.mxu0 %v9214_v8  ;;  %v9228_v8 = vpack.c.bf16 %v13914_v37, %v13907_v49 }
 0x318   :  { %9217 = vmatprep.subr.bf16.mxu0 %v9216_v5  ;;  %v9230_v5 = vpack.c.bf16 %v13943_v2, %v13936_v50 }
 0x31b   :  { %9219 = vmatpush1.bf16.msra.mxu0 %v9218_v48  ;;  %v18222_v48 = vld [vmem:[#allocation190_spill] sm:$0xff] }
 0x31c   :  { %9221 = vmatprep.subr.bf16.mxu0 %v9220_v21  ;;  %v9232_v52 = vpack.c.bf16 %v18222_v48, %v13948_v31  ;;  %v9234_v21 = vpack.c.bf16 %v14005_v45, %v13984_v30 }
 0x31f   :  { %9223 = vmatpush1.bf16.msra.mxu0 %v9222_v11  ;;  %v18223_v11 = vld [vmem:[#allocation194_spill] sm:$0xff] }
 0x320   :  { %9225 = vmatprep.subr.bf16.mxu0 %v9224_v14  ;;  %v9236_v27 = vpack.c.bf16 %v18223_v11, %v14022_v7  ;;  %v9238_v14 = vpack.c.bf16 %v14055_v28, %v14048_v29  ;;  %v18226_v28 = vld [vmem:[#allocation189_spill] sm:$0xff] }
 0x323   :  { %9227 = vmatpush1.bf16.msra.mxu0 %v9226_v57  ;;  %v9240_v57 = vpack.c.bf16 %v14083_v62, %v14060_v12 }
 0x324   :  { %9229 = vmatprep.subr.bf16.mxu0 %v9228_v8  ;;  %v9242_v8 = vpack.c.bf16 %v14129_v63, %v14088_v35  ;;  %v18228_v63 = vld [vmem:[#allocation9_spill] sm:$0xff] }
 0x327   :  { %9231 = vmatpush1.bf16.msra.mxu0 %v9230_v5  ;;  %v9244_v5 = vpack.c.bf16 %v14155_v16, %v14134_v9  ;;  %v18230_v16 = vld [vmem:[#allocation13_spill] sm:$0xff] }
 0x328   :  { %9233 = vmatprep.subr.bf16.mxu0 %v9232_v52  ;;  %v9246_v52 = vpack.c.bf16 %v14167_v44, %v14162_v39  ;;  %v18232_v44 = vld [vmem:[#allocation25_spill] sm:$0xff] }
 0x32b   :  { %9235 = vmatpush1.bf16.msra.mxu0 %v9234_v21  ;;  %v18224_v21 = vld [vmem:[#allocation182_spill] sm:$0xff] }
 0x32c   :  { %9237 = vmatprep.subr.bf16.mxu0 %v9236_v27  ;;  %v18225_v27 = vld [vmem:[#allocation168_spill] sm:$0xff] }
 0x32f   :  { %9239 = vmatpush1.bf16.msra.mxu0 %v9238_v14  ;;  %v18227_v14 = vand.u32 4294901760, %v18200_v33  ;;  %v18237_v33 = vld [vmem:[#allocation40_spill] sm:$0xff] }
 0x330   :  { %9241 = vmatprep.subr.bf16.mxu0 %v9240_v57  ;;  %v18229_v57 = vld [vmem:[#allocation11_spill] sm:$0xff] }
 0x333   :  { %9243 = vmatpush1.bf16.msra.mxu0 %v9242_v8  ;;  %v18231_v8 = vld [vmem:[#allocation21_spill] sm:$0xff] }
 0x334   :  { %9245 = vmatprep.subr.bf16.mxu0 %v9244_v5  ;;  %v18233_v5 = vld [vmem:[#allocation293_spill] sm:$0xff] }
 0x337   :  { %9247 = vmatpush1.bf16.msra.mxu0 %v9246_v52  ;;  %v18234_v52 = vld [vmem:[#allocation29_spill] sm:$0xff] }
 0x338   :  { %9249 = vmatprep.subr.bf16.mxu0 %v18224_v21  ;;  %v18235_v21 = vld [vmem:[#allocation35_spill] sm:$0xff] }
 0x33a   :  { %4948 = vmatmul.mubr.f32.vlgmr.msra.gmra.mrb[0].mxu0 %v18225_v27 }
 0x33b   :  { %9251 = vmatpush1.bf16.msra.mxu0 %v18226_v28  ;;  %5085 = vmatprep.mubr.f32.mxu0 %v18227_v14  ;;  %v18236_v28 = vld [vmem:[#allocation36_spill] sm:$0xff]  ;;  %v18238_v14 = vld [vmem:[#allocation41_spill] sm:$0xff] }
 0x33c   :  { %9253 = vmatprep.subr.bf16.mxu0 %v18228_v63  ;;  %v18239_v63 = vld [vmem:[#allocation45_spill] sm:$0xff] }
 0x33f   :  { %9255 = vmatpush1.bf16.msra.mxu0 %v18229_v57  ;;  %v18240_v57 = vld [vmem:[#allocation46_spill] sm:$0xff] }
 0x340   :  { %9257 = vmatprep.subr.bf16.mxu0 %v18230_v16  ;;  %v18241_v16 = vld [vmem:[#allocation49_spill] sm:$0xff] }
 0x343   :  { %9259 = vmatpush1.bf16.msra.mxu0 %v18231_v8  ;;  %v18242_v8 = vld [vmem:[#allocation51_spill] sm:$0xff] }
 0x344   :  { %9261 = vmatprep.subr.bf16.mxu0 %v18232_v44  ;;  %v18243_v44 = vld [vmem:[#allocation239_spill] sm:$0xff] }
 0x347   :  { %9263 = vmatpush1.bf16.msra.mxu0 %v18233_v5  ;;  %v18244_v5 = vld [vmem:[#allocation65_spill] sm:$0xff] }
 0x348   :  { %9265 = vmatprep.subr.bf16.mxu0 %v18234_v52  ;;  %v18245_v52 = vld [vmem:[#allocation247_spill] sm:$0xff] }
 0x34b   :  { %9267 = vmatpush1.bf16.msra.mxu0 %v18235_v21  ;;  %v18246_v21 = vld [vmem:[#allocation85_spill] sm:$0xff] }
 0x34c   :  { %9269 = vmatprep.subr.bf16.mxu0 %v18236_v28  ;;  %v18247_v28 = vld [vmem:[#allocation107_spill] sm:$0xff] }
 0x34f   :  { %9271 = vmatpush1.bf16.msra.mxu0 %v18237_v33  ;;  %v18248_v33 = vld [vmem:[#allocation110_spill] sm:$0xff] }
 0x350   :  { %9273 = vmatprep.subr.bf16.mxu0 %v18238_v14  ;;  %v18249_v14 = vld [vmem:[#allocation264_spill] sm:$0xff] }
 0x353   :  { %9275 = vmatpush1.bf16.msra.mxu0 %v18239_v63  ;;  %v18250_v63 = vld [vmem:[#allocation135_spill] sm:$0xff] }
 0x354   :  { %9277 = vmatprep.subr.bf16.mxu0 %v18240_v57  ;;  %v18251_v57 = vld [vmem:[#allocation144_spill] sm:$0xff] }
 0x357   :  { %9279 = vmatpush1.bf16.msra.mxu0 %v18241_v16  ;;  %v18252_v16 = vld [vmem:[#allocation149_spill] sm:$0xff] }
 0x358   :  { %9281 = vmatprep.subr.bf16.mxu0 %v18242_v8  ;;  %v18253_v8 = vld [vmem:[#allocation156_spill] sm:$0xff] }
 0x35b   :  { %9283 = vmatpush1.bf16.msra.mxu0 %v18243_v44  ;;  %v18254_v44 = vld [vmem:[#allocation169_spill] sm:$0xff] }
 0x35c   :  { %9285 = vmatprep.subr.bf16.mxu0 %v18244_v5  ;;  %v18255_v5 = vld [vmem:[#allocation173_spill] sm:$0xff] }
 0x35f   :  { %9287 = vmatpush1.bf16.msra.mxu0 %v18245_v52  ;;  %v18256_v52 = vld [vmem:[#allocation177_spill] sm:$0xff] }
 0x360   :  { %9289 = vmatprep.subr.bf16.mxu0 %v18246_v21 }
 0x363   :  { %9291 = vmatpush1.bf16.msra.mxu0 %v18247_v28  ;;  %v18257_v28 = vand.u32 4294901760, %v18191_v10  ;;  %v18265_v10 = vand.u32 4294901760, %v18201_v55  ;;  %v18273_v55 = vand.u32 4294901760, %v18072_v41  ;;  %v18283_v41 = vand.u32 4294901760, %v18225_v27 }
 0x364   :  { %9293 = vmatprep.subr.bf16.mxu0 %v18248_v33  ;;  %v18258_v33 = vand.u32 4294901760, %v18192_v1  ;;  %v18267_v1 = vand.u32 4294901760, %v18204_v24  ;;  %v18275_v24 = vand.u32 4294901760, %v18075_v47  ;;  %v18285_v47 = vld [vmem:[#allocation89_spill] sm:$0xff]  ;;  %v18292_v27 = vand.u32 4294901760, %v13602_v36 }
 0x365   :  { %v18294_v36 = vand.u32 4294901760, %v18216_v3  ;;  %v18297_v3 = vand.u32 4294901760, %v18218_v22 }
 0x366   :  { %v9312_v21 = vpack.c.bf16 %v18258_v33, %v18257_v28  ;;  %v18266_v28 = vand.u32 4294901760, %v18205_v13  ;;  %v18274_v13 = vand.u32 4294901760, %v18211_v43  ;;  %v18284_v43 = vand.u32 4294901760, %v13555_v53 }
 0x367   :  { %9295 = vmatpush1.bf16.msra.mxu0 %v18249_v14  ;;  %v18259_v14 = vld [vmem:[#allocation180_spill] sm:$0xff]  ;;  %v18293_v53 = vand.u32 4294901760, %v13620_v20  ;;  %v18295_v20 = vand.u32 4294901760, %v18217_v26  ;;  %v14440_v26 = vld [vmem:[%s15399_s3 + $0x98] sm:$0xff] }
 0x368   :  { %9297 = vmatprep.subr.bf16.mxu0 %v18250_v63  ;;  %v18260_v63 = vand.u32 4294901760, %v18194_v23  ;;  %v9320_v33 = vpack.c.bf16 %v18267_v1, %v18266_v28  ;;  %v18268_v23 = vand.u32 4294901760, %v18208_v34  ;;  %v18277_v34 = vld [vmem:[#allocation79_spill] sm:$0xff]  ;;  %v18286_v1 = vand.u32 4294901760, %v18285_v47 }
 0x36b   :  { %9299 = vmatpush1.bf16.msra.mxu0 %v18251_v57  ;;  %v18261_v57 = vand.u32 4294901760, %v18195_v6 }
 0x36c   :  { %9301 = vmatprep.subr.bf16.mxu0 %v18252_v16 }
 0x36d   :  { %v9314_v16 = vpack.c.bf16 %v18261_v57, %v18260_v63  ;;  %v18269_v63 = vand.u32 4294901760, %v18207_v60  ;;  %v14362_v57 = vpack.c.bf16 %v18275_v24, %v18274_v13  ;;  %v18276_v60 = vand.u32 4294901760, %v18079_v58 }
 0x36e   :  { %v18287_v58 = vand.u32 4294901760, %v18098_v56  ;;  %v14400_v24 = vpack.c.bf16 %v18293_v53, %v18292_v27  ;;  %v14405_v56 = vld [vmem:[%s15399_s3 + $0x80] sm:$0xff] }
 0x36f   :  { %9303 = vmatpush1.bf16.msra.mxu0 %v18253_v8  ;;  %v18262_v8 = vand.u32 4294901760, %v18196_v17  ;;  %v9322_v6 = vpack.c.bf16 %v18269_v63, %v18268_v23  ;;  %v18270_v17 = vand.u32 4294901760, %v18066_v38  ;;  %v14382_v23 = vpack.c.bf16 %v18286_v1, %v18284_v43 }
 0x370   :  { %9305 = vmatprep.subr.bf16.mxu0 %v18254_v44  ;;  %v18263_v44 = vand.u32 4294901760, %v18197_v54  ;;  %v18288_v63 = vand.u32 4294901760, %v18213_v25  ;;  %v14410_v25 = vld [vmem:[%s15399_s3 + $0x88] sm:$0xff] }
 0x372   :  { %v9316_v39 = vpack.c.bf16 %v18263_v44, %v18262_v8  ;;  %v18271_v44 = vand.u32 4294901760, %v13504_v32  ;;  %v18278_v8 = vand.u32 4294901760, %v18277_v34  ;;  %v18279_v32 = vld [vmem:[#allocation84_spill] sm:$0xff]  ;;  %v18296_v34 = vld [vmem:[#allocation282_spill] sm:$0xff] }
 0x373   :  { %9307 = vmatpush1.bf16.msra.mxu0 %v18255_v5 }
 0x374   :  { %9309 = vmatprep.subr.bf16.mxu0 %v18256_v52  ;;  %v18264_v52 = vand.u32 4294901760, %v18202_v0  ;;  %v9324_v54 = vpack.c.bf16 %v18271_v44, %v18270_v17  ;;  %v18272_v0 = vand.u32 4294901760, %v18071_v59  ;;  %v14368_v38 = vpack.c.bf16 %v18278_v8, %v18276_v60 }
 0x375   :  { %v14388_v17 = vpack.c.bf16 %v18288_v63, %v18287_v58  ;;  %v18289_v44 = vand.u32 4294901760, %v18214_v40  ;;  %v14415_v40 = vld [vmem:[%s15399_s3] sm:$0xff]  ;;  %v14421_v60 = vpack.c.bf16 %v18295_v20, %v18294_v36  ;;  %v5593_v8 = vand.u32 4294901760, %v14405_v56  ;;  %v14454_v63 = vld [vmem:[%s15399_s3 + $0x10] sm:$0xff] }
 0x376   :  { %v9318_v5 = vpack.c.bf16 %v18265_v10, %v18264_v52  ;;  %v18280_v52 = vand.u32 4294901760, %v18279_v32  ;;  %v18281_v10 = vld [vmem:[#allocation249_spill] sm:$0xff]  ;;  %v5596_v32 = vand.u32 4294901760, %v14410_v25  ;;  %v16390_v58 = vand.u32 4294901760, %v14440_v26 }
 0x377   :  { %9311 = vmatpush1.bf16.msra.mxu0 %v18259_v14  ;;  %v18282_v59 = vand.u32 4294901760, %v18281_v10  ;;  %v16394_v10 = vand.u32 4294901760, %v14415_v40  ;;  %v14462_v22 = vsub.f32 %v14405_v56, %v5593_v8 }
 0x378   :  { %9313 = vmatprep.subr.bf16.mxu0 %v9312_v21  ;;  %v14356_v21 = vpack.c.bf16 %v18273_v55, %v18272_v0  ;;  %v18290_v0 = vld [vmem:[#allocation102_spill] sm:$0xff]  ;;  %v14486_v56 = vsub.f32 %v14440_v26, %v16390_v58 }
 0x379   :  { %v14374_v28 = vpack.c.bf16 %v18282_v59, %v18280_v52  ;;  %v18291_v55 = vand.u32 4294901760, %v18290_v0  ;;  %v14429_v52 = vld [vmem:[%s15399_s3 + $0x8] sm:$0xff]  ;;  %v18298_v59 = vld [vmem:[#allocation126_spill] sm:$0xff]  ;;  %18300 = vst [vmem:[#allocation213_spill] sm:$0xff] %v14462_v22  ;;  %v14470_v0 = vsub.f32 %v14415_v40, %v16394_v10  ;;  %v16396_v36 = vand.u32 4294901760, %v14462_v22 }
 0x37a   :  { %5089 = vmatmul.mubr.f32.vlgmr.msra.gmra.mrb[0].mxu0 %v18283_v41  ;;  %v18299_v41 = vand.u32 4294901760, %v18298_v59  ;;  %v16392_v47 = vand.u32 4294901760, %v14429_v52  ;;  %18305 = vst [vmem:[#allocation20_spill] sm:$0xff] %v14486_v56  ;;  %v14533_v10 = vld [vmem:[%s15399_s3 + $0xa8] sm:$0xff] }
 0x37b   :  { %v14394_v13 = vpack.c.bf16 %v18291_v55, %v18289_v44  ;;  %9315 = vmatpush1.bf16.msra.mxu0 %v9314_v16  ;;  %5352 = vmatprep.mubr.f32.mxu0 %v18296_v34  ;;  %v14435_v16 = vld [vmem:[%s15399_s3 + $0x90] sm:$0xff]  ;;  %v14465_v44 = vsub.f32 %v14410_v25, %v5596_v32  ;;  %18302 = vst [vmem:[#allocation12_spill] sm:$0xff] %v14470_v0  ;;  %v16393_v55 = vand.u32 4294901760, %v14454_v63  ;;  %v14544_v34 = vld [vmem:[%s15399_s3 + $0x20] sm:$0xff] }
 0x37c   :  { %9317 = vmatprep.subr.bf16.mxu0 %v9316_v39  ;;  %v14446_v43 = vpack.c.bf16 %v18299_v41, %v18297_v3  ;;  %v16391_v1 = vand.u32 4294901760, %v14435_v16  ;;  %v14459_v39 = vld [vmem:[%s15399_s3 + $0x18] sm:$0xff]  ;;  %v14476_v27 = vsub.f32 %v14429_v52, %v16392_v47  ;;  %v16400_v3 = vand.u32 4294901760, %v14470_v0 }
 0x37d   :  { %18301 = vst [vmem:[#allocation208_spill] sm:$0xff] %v14465_v44  ;;  %v16395_v25 = vand.u32 4294901760, %v14459_v39  ;;  %v16399_v20 = vand.u32 4294901760, %v14465_v44  ;;  %v14495_v59 = vsub.f32 %v14454_v63, %v16393_v55  ;;  %v5772_v47 = vsub.f32 %v14462_v22, %v16396_v36 }
 0x37e   :  { %18303 = vst [vmem:[#allocation294_spill] sm:$0xff] %v14476_v27  ;;  %v14481_v53 = vsub.f32 %v14435_v16, %v16391_v1  ;;  %v16401_v41 = vand.u32 4294901760, %v14476_v27  ;;  %v18307_v36 = vand.u32 4294901760, %v14486_v56 }
 0x37f   :  { %9319 = vmatpush1.bf16.msra.mxu0 %v9318_v5  ;;  %v14503_v5 = vsub.f32 %v14459_v39, %v16395_v25  ;;  %v5779_v55 = vsub.f32 %v14465_v44, %v16399_v20 }
 0x380   :  { %18304 = vst [vmem:[#allocation14_spill] sm:$0xff] %v14481_v53  ;;  %9321 = vmatprep.subr.bf16.mxu0 %v9320_v33  ;;  %v16404_v58 = vand.u32 4294901760, %v14481_v53  ;;  %v5660_v33 = vsub.f32 %v14470_v0, %v16400_v3  ;;  %v5667_v1 = vsub.f32 %v14476_v27, %v16401_v41  ;;  %v5793_v22 = vsub.f32 %v14486_v56, %v18307_v36  ;;  %v14528_v3 = vld [vmem:[%s15399_s3 + $0xa0] sm:$0xff] }
 0x381   :  { %18306 = vst [vmem:[#allocation24_spill] sm:$0xff] %v14503_v5  ;;  %v5773_v41 = vand.u32 4294901760, %v5772_v47  ;;  %v5780_v27 = vand.u32 4294901760, %v5779_v55  ;;  %v18309_v44 = vand.u32 4294901760, %v14503_v5 }
 0x382   :  { %v5786_v25 = vsub.f32 %v14481_v53, %v16404_v58  ;;  %v5661_v58 = vand.u32 4294901760, %v5660_v33  ;;  %v18308_v53 = vand.u32 4294901760, %v14495_v59  ;;  %v5668_v20 = vand.u32 4294901760, %v5667_v1 }
 0x383   :  { %9323 = vmatpush1.bf16.msra.mxu0 %v9322_v6  ;;  %v5794_v0 = vand.u32 4294901760, %v5793_v22  ;;  %v5681_v14 = vsub.f32 %v14503_v5, %v18309_v44  ;;  %v14549_v6 = vld [vmem:[%s15399_s3 + $0x28] sm:$0xff]  ;;  %v9472_v47 = vpack.c.bf16 %v5780_v27, %v5773_v41  ;;  %v16415_v1 = vand.u32 4294901760, %v14533_v10  ;;  %v14556_v22 = vld [vmem:[%s15399_s3 + $0xb0] sm:$0xff]  ;;  %v14561_v44 = vld [vmem:[%s15399_s3 + $0xb8] sm:$0xff] }
 0x384   :  { %v5674_v36 = vsub.f32 %v14495_v59, %v18308_v53  ;;  %9325 = vmatprep.subr.bf16.mxu0 %v9324_v54  ;;  %v5787_v56 = vand.u32 4294901760, %v5786_v25  ;;  %v16422_v54 = vand.u32 4294901760, %v14528_v3  ;;  %v9474_v53 = vpack.c.bf16 %v5668_v20, %v5661_v58 }
 0x385   :  { %v5682_v33 = vand.u32 4294901760, %v5681_v14  ;;  %v14563_v5 = vpack.c.bf16 %v5596_v32, %v5593_v8  ;;  %9473 = vmatprep.subr.bf16.mxu1 %v9472_v47  ;;  %v14574_v41 = vsub.f32 %v14533_v10, %v16415_v1  ;;  %v16417_v58 = vand.u32 4294901760, %v14549_v6  ;;  %v14581_v14 = vld [vmem:[%s15399_s3 + $0x30] sm:$0xff] }
 0x386   :  { %v5675_v55 = vand.u32 4294901760, %v5674_v36  ;;  %v9476_v25 = vpack.c.bf16 %v5794_v0, %v5787_v56  ;;  %v14569_v27 = vsub.f32 %v14528_v3, %v16422_v54  ;;  %v16421_v36 = vand.u32 4294901760, %v14544_v34  ;;  %9475 = vmatpush3.bf16.msra.mxu1 %v9474_v53 }
 0x387   :  { %9327 = vmatpush1.bf16.msra.mxu0 %v14356_v21  ;;  %v18310_v8 = vand.u32 4294901760, %v14415_v40  ;;  %v18311_v32 = vand.u32 4294901760, %v14429_v52  ;;  %v16416_v56 = vand.u32 4294901760, %v14556_v22  ;;  %v16418_v20 = vand.u32 4294901760, %v14561_v44  ;;  %v14607_v52 = vld [vmem:[%s15399_s3 + $0x38] sm:$0xff] }
 0x388   :  { %9329 = vmatprep.subr.bf16.mxu0 %v14362_v57  ;;  %v9478_v21 = vpack.c.bf16 %v5682_v33, %v5675_v55  ;;  %9477 = vmatprep.subr.bf16.mxu1 %v9476_v25  ;;  %v16419_v47 = vand.u32 4294901760, %v14569_v27  ;;  %v16420_v1 = vand.u32 4294901760, %v14574_v41  ;;  %v14597_v57 = vsub.f32 %v14544_v34, %v16421_v36 }
 0x389   :  { %v14588_v0 = vpack.c.bf16 %v18311_v32, %v18310_v8  ;;  %v14602_v40 = vsub.f32 %v14549_v6, %v16417_v58  ;;  %v14612_v55 = vsub.f32 %v14556_v22, %v16416_v56  ;;  %v14617_v53 = vsub.f32 %v14561_v44, %v16418_v20 }
 0x38a   :  { %18312 = vst [vmem:[#allocation30_spill] sm:$0xff] %v14597_v57  ;;  %v18316_v25 = vand.u32 4294901760, %v14435_v16  ;;  %v18317_v33 = vand.u32 4294901760, %v14440_v26  ;;  %v16423_v32 = vand.u32 4294901760, %v14581_v14  ;;  %v5800_v56 = vsub.f32 %v14569_v27, %v16419_v47  ;;  %9479 = vmatpush3.bf16.msra.mxu1 %v9478_v21 }
 0x38b   :  { %18313 = vst [vmem:[#allocation34_spill] sm:$0xff] %v14602_v40  ;;  %18314 = vst [vmem:[#allocation39_spill] sm:$0xff] %v14612_v55  ;;  %9331 = vmatpush1.bf16.msra.mxu0 %v14368_v38  ;;  %v5807_v58 = vsub.f32 %v14574_v41, %v16420_v1  ;;  %v16427_v20 = vand.u32 4294901760, %v14597_v57  ;;  %v16426_v16 = vand.u32 4294901760, %v14602_v40  ;;  %v16424_v26 = vand.u32 4294901760, %v14612_v55 }
 0x38c   :  { %18315 = vst [vmem:[#allocation44_spill] sm:$0xff] %v14617_v53  ;;  %v14623_v8 = vpack.c.bf16 %v18317_v33, %v18316_v25  ;;  %9333 = vmatprep.subr.bf16.mxu0 %v14374_v28  ;;  %v16425_v25 = vand.u32 4294901760, %v14617_v53  ;;  %v16428_v38 = vand.u32 4294901760, %v14607_v52  ;;  %v14642_v33 = vsub.f32 %v14581_v14, %v16423_v32 }
 0x38d   :  { %v5801_v47 = vand.u32 4294901760, %v5800_v56  ;;  %v5808_v1 = vand.u32 4294901760, %v5807_v58  ;;  %v5688_v36 = vsub.f32 %v14597_v57, %v16427_v20  ;;  %v5695_v28 = vsub.f32 %v14602_v40, %v16426_v16  ;;  %v14665_v56 = vld [vmem:[%s15399_s3 + $0xc0] sm:$0xff] }
 0x38e   :  { %v5814_v21 = vsub.f32 %v14612_v55, %v16424_v26  ;;  %v5821_v54 = vsub.f32 %v14617_v53, %v16425_v25  ;;  %v14660_v58 = vsub.f32 %v14607_v52, %v16428_v38  ;;  %v14670_v26 = vld [vmem:[%s15399_s3 + $0xc8] sm:$0xff]  ;;  %v18318_v32 = vand.u32 4294901760, %v14454_v63  ;;  %v14682_v55 = vld [vmem:[%s15399_s3 + $0x40] sm:$0xff] }
 0x38f   :  { %9335 = vmatpush1.bf16.msra.mxu0 %v14382_v23  ;;  %v9480_v25 = vpack.c.bf16 %v5808_v1, %v5801_v47  ;;  %v5689_v16 = vand.u32 4294901760, %v5688_v36  ;;  %v5696_v20 = vand.u32 4294901760, %v5695_v28  ;;  %v18319_v38 = vand.u32 4294901760, %v14459_v39  ;;  %v14692_v63 = vld [vmem:[%s15399_s3 + $0x48] sm:$0xff]  ;;  %v14705_v28 = vld [vmem:[%s15399_s3 + $0xd0] sm:$0xff] }
 0x390   :  { %9337 = vmatprep.subr.bf16.mxu0 %v14388_v17  ;;  %v5815_v40 = vand.u32 4294901760, %v5814_v21  ;;  %v5822_v57 = vand.u32 4294901760, %v5821_v54  ;;  %v18320_v23 = vand.u32 4294901760, %v14642_v33  ;;  %v16437_v36 = vand.u32 4294901760, %v14660_v58 }
 0x391   :  { %v14677_v53 = vpack.c.bf16 %v18319_v38, %v18318_v32  ;;  %9481 = vmatprep.subr.bf16.mxu1 %v9480_v25  ;;  %v9482_v39 = vpack.c.bf16 %v5696_v20, %v5689_v16  ;;  %v16445_v47 = vand.u32 4294901760, %v14665_v56  ;;  %v16438_v32 = vand.u32 4294901760, %v14670_v26  ;;  %v14710_v25 = vld [vmem:[%s15399_s3 + $0xd8] sm:$0xff] }
 0x392   :  { %v5702_v1 = vsub.f32 %v14642_v33, %v18320_v23  ;;  %v18321_v17 = vand.u32 4294901760, %v14528_v3  ;;  %v18322_v54 = vand.u32 4294901760, %v14533_v10  ;;  %v9484_v20 = vpack.c.bf16 %v5822_v57, %v5815_v40 }
 0x393   :  { %v5709_v3 = vsub.f32 %v14660_v58, %v16437_v36  ;;  %v16440_v10 = vand.u32 4294901760, %v14682_v55  ;;  %9339 = vmatpush1.bf16.msra.mxu0 %v14394_v13  ;;  %9483 = vmatpush3.bf16.msra.mxu1 %v9482_v39  ;;  %v14720_v21 = vsub.f32 %v14665_v56, %v16445_v47  ;;  %v14725_v23 = vsub.f32 %v14670_v26, %v16438_v32 }
 0x394   :  { %v14700_v38 = vpack.c.bf16 %v18322_v54, %v18321_v17  ;;  %v5703_v16 = vand.u32 4294901760, %v5702_v1  ;;  %v16439_v57 = vand.u32 4294901760, %v14692_v63  ;;  %v18324_v40 = vand.u32 4294901760, %v14544_v34  ;;  %9341 = vmatprep.subr.bf16.mxu0 %v14400_v24  ;;  %9485 = vmatprep.subr.bf16.mxu1 %v9484_v20 }
 0x395   :  { %18323 = vst [vmem:[#allocation50_spill] sm:$0xff] %v14725_v23  ;;  %v18325_v1 = vand.u32 4294901760, %v14549_v6  ;;  %v5710_v13 = vand.u32 4294901760, %v5709_v3  ;;  %v14738_v39 = vsub.f32 %v14682_v55, %v16440_v10  ;;  %v16441_v54 = vand.u32 4294901760, %v14705_v28 }
 0x396   :  { %v16442_v36 = vand.u32 4294901760, %v14710_v25  ;;  %v16443_v32 = vand.u32 4294901760, %v14720_v21  ;;  %v16444_v34 = vand.u32 4294901760, %v14725_v23  ;;  %v14747_v6 = vsub.f32 %v14692_v63, %v16439_v57 }
 0x397   :  { %v14732_v17 = vpack.c.bf16 %v18325_v1, %v18324_v40  ;;  %18326 = vst [vmem:[#allocation56_spill] sm:$0xff] %v14738_v39  ;;  %v9486_v24 = vpack.c.bf16 %v5710_v13, %v5703_v16  ;;  %v16446_v20 = vand.u32 4294901760, %v14738_v39  ;;  %v14753_v3 = vsub.f32 %v14705_v28, %v16441_v54  ;;  %9343 = vmatpush1.bf16.msra.mxu0 %v14421_v60 }
 0x398   :  { %18327 = vst [vmem:[#allocation64_spill] sm:$0xff] %v14747_v6  ;;  %v14758_v40 = vsub.f32 %v14710_v25, %v16442_v36  ;;  %v18329_v1 = vand.u32 4294901760, %v18121_v4  ;;  %v18330_v57 = vand.u32 4294901760, %v13654_v46  ;;  %v5828_v16 = vsub.f32 %v14720_v21, %v16443_v32  ;;  %9345 = vmatprep.subr.bf16.mxu0 %v14446_v43 }
 0x399   :  { %18328 = vst [vmem:[#allocation71_spill] sm:$0xff] %v14753_v3  ;;  %v5835_v13 = vsub.f32 %v14725_v23, %v16444_v34  ;;  %v16447_v54 = vand.u32 4294901760, %v14747_v6  ;;  %v18331_v36 = vand.u32 4294901760, %v18123_v19  ;;  %v18332_v60 = vand.u32 4294901760, %v18220_v42  ;;  %9487 = vmatpush3.bf16.msra.mxu1 %v9486_v24  ;;  %v18334_v24 = vld [vmem:[#allocation138_spill] sm:$0xff] }
 0x39a   :  { %v9346_v10 = vpack.c.bf16 %v18330_v57, %v18329_v1  ;;  %v5716_v46 = vsub.f32 %v14738_v39, %v16446_v20  ;;  %v16452_v57 = vand.u32 4294901760, %v14753_v3  ;;  %v16457_v1 = vand.u32 4294901760, %v14758_v40 }
 0x39b   :  { %v9348_v4 = vpack.c.bf16 %v18332_v60, %v18331_v36  ;;  %v5829_v32 = vand.u32 4294901760, %v5828_v16  ;;  %v5836_v34 = vand.u32 4294901760, %v5835_v13  ;;  %v5723_v43 = vsub.f32 %v14747_v6, %v16447_v54 }
 0x39c   :  { %v5717_v47 = vand.u32 4294901760, %v5716_v46  ;;  %v5842_v19 = vsub.f32 %v14753_v3, %v16452_v57  ;;  %v5849_v42 = vsub.f32 %v14758_v40, %v16457_v1  ;;  %9347 = vmatpush1.bf16.msra.mxu0 %v9346_v10  ;;  %v18333_v36 = vand.u32 4294901760, %v18132_v15  ;;  %v18339_v15 = vld [vmem:[#allocation186_spill] sm:$0xff] }
 0x39d   :  { %v18335_v60 = vand.u32 4294901760, %v18334_v24  ;;  %v9488_v13 = vpack.c.bf16 %v5836_v34, %v5829_v32  ;;  %v5724_v20 = vand.u32 4294901760, %v5723_v43  ;;  %9349 = vmatprep.subr.bf16.mxu0 %v9348_v4  ;;  %v18336_v54 = vand.u32 4294901760, %v18138_v18  ;;  %v18352_v4 = vld [vmem:[#allocation198_spill] sm:$0xff]  ;;  %v18357_v43 = vld [vmem:[#allocation201_spill] sm:$0xff] }
 0x39e   :  { %v18337_v46 = vand.u32 4294901760, %v13817_v61  ;;  %v5843_v39 = vand.u32 4294901760, %v5842_v19  ;;  %v5850_v57 = vand.u32 4294901760, %v5849_v42  ;;  %v18338_v10 = vand.u32 4294901760, %v18221_v51  ;;  %v18360_v42 = vld [vmem:[#allocation204_spill] sm:$0xff] }
 0x39f   :  { %v9350_v16 = vpack.c.bf16 %v18335_v60, %v18333_v36  ;;  %9489 = vmatprep.subr.bf16.mxu1 %v9488_v13  ;;  %v9490_v3 = vpack.c.bf16 %v5724_v20, %v5717_v47  ;;  %v18340_v1 = vand.u32 4294901760, %v18339_v15  ;;  %v18341_v32 = vand.u32 4294901760, %v13907_v49  ;;  %v18362_v60 = vld [vmem:[#allocation207_spill] sm:$0xff]  ;;  %v18364_v13 = vld [vmem:[#allocation8_spill] sm:$0xff]  ;;  %v18369_v15 = vld [vmem:[#allocation282_spill] sm:$0xff] }
 0x3a0   :  { %v9352_v6 = vpack.c.bf16 %v18337_v46, %v18336_v54  ;;  %v9492_v23 = vpack.c.bf16 %v5850_v57, %v5843_v39  ;;  %v18342_v18 = vand.u32 4294901760, %v13914_v37  ;;  %v18343_v61 = vand.u32 4294901760, %v13936_v50 }
 0x3a1   :  { %9351 = vmatpush1.bf16.msra.mxu0 %v9350_v16  ;;  %v9354_v24 = vpack.c.bf16 %v18340_v1, %v18338_v10  ;;  %9491 = vmatpush3.bf16.msra.mxu1 %v9490_v3  ;;  %v18344_v47 = vand.u32 4294901760, %v13943_v2  ;;  %v18345_v51 = vand.u32 4294901760, %v13948_v31  ;;  %v18346_v54 = vand.u32 4294901760, %v18222_v48  ;;  %v18368_v10 = vld [vmem:[#allocation189_spill] sm:$0xff] }
 0x3a2   :  { %9353 = vmatprep.subr.bf16.mxu0 %v9352_v6  ;;  %v9356_v34 = vpack.c.bf16 %v18342_v18, %v18341_v32  ;;  %9493 = vmatprep.subr.bf16.mxu1 %v9492_v23  ;;  %v18347_v6 = vand.u32 4294901760, %v13984_v30  ;;  %v18348_v49 = vand.u32 4294901760, %v14005_v45  ;;  %v18349_v23 = vand.u32 4294901760, %v14022_v7  ;;  %v18372_v32 = vld [vmem:[#allocation13_spill] sm:$0xff] }
 0x3a3   :  { %v9358_v39 = vpack.c.bf16 %v18344_v47, %v18343_v61  ;;  %v9360_v20 = vpack.c.bf16 %v18346_v54, %v18345_v51  ;;  %v18350_v50 = vand.u32 4294901760, %v18223_v11  ;;  %v18351_v2 = vand.u32 4294901760, %v14048_v29  ;;  %v18373_v18 = vld [vmem:[#allocation21_spill] sm:$0xff]  ;;  %v18378_v54 = vld [vmem:[#allocation36_spill] sm:$0xff] }
 0x3a4   :  { %v9362_v37 = vpack.c.bf16 %v18348_v49, %v18347_v6  ;;  %v18353_v31 = vand.u32 4294901760, %v18352_v4  ;;  %v18354_v48 = vand.u32 4294901760, %v14060_v12  ;;  %v18355_v30 = vand.u32 4294901760, %v14083_v62  ;;  %v18366_v62 = vld [vmem:[#allocation182_spill] sm:$0xff]  ;;  %v18375_v61 = vld [vmem:[#allocation293_spill] sm:$0xff]  ;;  %v18379_v6 = vld [vmem:[#allocation40_spill] sm:$0xff] }
 0x3a5   :  { %9355 = vmatpush1.bf16.msra.mxu0 %v9354_v24  ;;  %v9364_v3 = vpack.c.bf16 %v18350_v50, %v18349_v23  ;;  %v18356_v45 = vand.u32 4294901760, %v14088_v35  ;;  %v18358_v7 = vand.u32 4294901760, %v18357_v43  ;;  %v18359_v11 = vand.u32 4294901760, %v14134_v9  ;;  %v18367_v35 = vld [vmem:[#allocation141_spill] sm:$0xff]  ;;  %v18371_v24 = vld [vmem:[#allocation11_spill] sm:$0xff]  ;;  %v18382_v23 = vld [vmem:[#allocation46_spill] sm:$0xff] }
 0x3a6   :  { %9357 = vmatprep.subr.bf16.mxu0 %v9356_v34  ;;  %v9366_v57 = vpack.c.bf16 %v18353_v31, %v18351_v2  ;;  %v9368_v1 = vpack.c.bf16 %v18355_v30, %v18354_v48  ;;  %v18361_v29 = vand.u32 4294901760, %v18360_v42  ;;  %v18363_v16 = vand.u32 4294901760, %v18362_v60  ;;  %v18370_v9 = vld [vmem:[#allocation9_spill] sm:$0xff]  ;;  %v18385_v2 = vld [vmem:[#allocation239_spill] sm:$0xff]  ;;  %v18390_v30 = vld [vmem:[#allocation110_spill] sm:$0xff] }
 0x3a7   :  { %v9370_v19 = vpack.c.bf16 %v18358_v7, %v18356_v45  ;;  %v18365_v12 = vand.u32 4294901760, %v18364_v13  ;;  %v18374_v34 = vld [vmem:[#allocation25_spill] sm:$0xff]  ;;  %v18387_v31 = vld [vmem:[#allocation247_spill] sm:$0xff]  ;;  %v18393_v43 = vld [vmem:[#allocation144_spill] sm:$0xff] }
 0x3a8   :  { %v9372_v36 = vpack.c.bf16 %v18361_v29, %v18359_v11  ;;  %v18376_v47 = vld [vmem:[#allocation29_spill] sm:$0xff]  ;;  %v18389_v48 = vld [vmem:[#allocation107_spill] sm:$0xff] }
 0x3a9   :  { %9359 = vmatpush1.bf16.msra.mxu0 %v9358_v39  ;;  %v9374_v46 = vpack.c.bf16 %v18365_v12, %v18363_v16  ;;  %v18377_v39 = vld [vmem:[#allocation35_spill] sm:$0xff]  ;;  %v18380_v49 = vld [vmem:[#allocation41_spill] sm:$0xff] }
 0x3aa   :  { %9361 = vmatprep.subr.bf16.mxu0 %v9360_v20  ;;  %v18383_v50 = vld [vmem:[#allocation49_spill] sm:$0xff]  ;;  %v18392_v45 = vld [vmem:[#allocation135_spill] sm:$0xff] }
 0x3ab   :  { %v18386_v4 = vld [vmem:[#allocation65_spill] sm:$0xff]  ;;  %v14896_v16 = vld [vmem:[%s15399_s3 + $0x58] sm:$0xff] }
 0x3ac   :  { %v18394_v7 = vld [vmem:[#allocation149_spill] sm:$0xff]  ;;  %v5578_v12 = vand.u32 4294901760, %v14896_v16 }
 0x3ad   :  { %9363 = vmatpush1.bf16.msra.mxu0 %v9362_v37  ;;  %v18381_v37 = vld [vmem:[#allocation45_spill] sm:$0xff] }
 0x3ae   :  { %9365 = vmatprep.subr.bf16.mxu0 %v9364_v3  ;;  %v18384_v3 = vld [vmem:[#allocation51_spill] sm:$0xff]  ;;  %v18396_v11 = vld [vmem:[#allocation169_spill] sm:$0xff] }
 0x3af   :  { %v18397_v42 = vld [vmem:[#allocation173_spill] sm:$0xff] }
 0x3b0   :  { %v18398_v29 = vld [vmem:[#allocation177_spill] sm:$0xff] }
 0x3b1   :  { %9367 = vmatpush1.bf16.msra.mxu0 %v9366_v57  ;;  %v18388_v57 = vld [vmem:[#allocation85_spill] sm:$0xff] }
 0x3b2   :  { %9369 = vmatprep.subr.bf16.mxu0 %v9368_v1  ;;  %v18391_v1 = vld [vmem:[#allocation264_spill] sm:$0xff]  ;;  %v14891_v60 = vld [vmem:[%s15399_s3 + $0x50] sm:$0xff] }
 0x3b3   :  { %v5575_v13 = vand.u32 4294901760, %v14891_v60 }
 0x3b5   :  { %9371 = vmatpush1.bf16.msra.mxu0 %v9370_v19  ;;  %v18395_v19 = vld [vmem:[#allocation156_spill] sm:$0xff] }
 0x3b6   :  { %9373 = vmatprep.subr.bf16.mxu0 %v9372_v36  ;;  %v18399_v36 = vld [vmem:[#allocation180_spill] sm:$0xff] }
 0x3b9   :  { %9375 = vmatpush1.bf16.msra.mxu0 %v9374_v46  ;;  %v14903_v46 = vsub.f32 %v14891_v60, %v5575_v13 }
 0x3ba   :  { %9377 = vmatprep.subr.bf16.mxu0 %v18366_v62  ;;  %v14908_v62 = vsub.f32 %v14896_v16, %v5578_v12 }
 0x3bc   :  { %5354 = vmatmul.mubr.f32.vlgmr.msra.gmra.mrb[0].mxu0 %v18367_v35 }
 0x3bd   :  { %9379 = vmatpush1.bf16.msra.mxu0 %v18368_v10  ;;  %5489 = vmatprep.mubr.f32.mxu0 %v18369_v15  ;;  %v14918_v10 = vld [vmem:[%s15399_s3 + $0xe8] sm:$0xff] }
 0x3be   :  { %9381 = vmatprep.subr.bf16.mxu0 %v18370_v9  ;;  %v5632_v9 = vand.u32 4294901760, %v14918_v10 }
 0x3c1   :  { %9383 = vmatpush1.bf16.msra.mxu0 %v18371_v24  ;;  %v14925_v24 = vld [vmem:[%s15399_s3 + $0x60] sm:$0xff] }
 0x3c2   :  { %9385 = vmatprep.subr.bf16.mxu0 %v18372_v32  ;;  %v14930_v32 = vld [vmem:[%s15399_s3 + $0x68] sm:$0xff] }
 0x3c5   :  { %9387 = vmatpush1.bf16.msra.mxu0 %v18373_v18  ;;  %v16463_v18 = vand.u32 4294901760, %v14903_v46 }
 0x3c6   :  { %9389 = vmatprep.subr.bf16.mxu0 %v18374_v34  ;;  %v16462_v34 = vand.u32 4294901760, %v14908_v62 }
 0x3c9   :  { %9391 = vmatpush1.bf16.msra.mxu0 %v18375_v61  ;;  %v5581_v61 = vand.u32 4294901760, %v14925_v24 }
 0x3ca   :  { %9393 = vmatprep.subr.bf16.mxu0 %v18376_v47  ;;  %v5584_v47 = vand.u32 4294901760, %v14930_v32 }
 0x3cc   :  { %v15077_v16 = vpack.c.bf16 %v5584_v47, %v5581_v61 }
 0x3cd   :  { %9395 = vmatpush1.bf16.msra.mxu0 %v18377_v39 }
 0x3ce   :  { %9397 = vmatprep.subr.bf16.mxu0 %v18378_v54  ;;  %v14944_v54 = vsub.f32 %v14918_v10, %v5632_v9  ;;  %v9526_v10 = vpack.c.bf16 %v14908_v62, %v14903_v46 }
 0x3cf   :  { %v14855_v51 = vpop.f32.mrb[0].mxu1 }
 0x3d0   :  { %v14858_v20 = vpop.f32.mrb[1].mxu1 }
 0x3d1   :  { %9399 = vmatpush1.bf16.msra.mxu0 %v18379_v6  ;;  %v5730_v6 = vsub.f32 %v14903_v46, %v16463_v18 }
 0x3d2   :  { %9401 = vmatprep.subr.bf16.mxu0 %v18380_v49  ;;  %v5737_v49 = vsub.f32 %v14908_v62, %v16462_v34 }
 0x3d5   :  { %9403 = vmatpush1.bf16.msra.mxu0 %v18381_v37  ;;  %v14955_v37 = vsub.f32 %v14925_v24, %v5581_v61  ;;  %v18413_v61 = vld [vmem:[#allocation191_spill] sm:$0xff] }
 0x3d6   :  { %9405 = vmatprep.subr.bf16.mxu0 %v18382_v23  ;;  %v14960_v23 = vsub.f32 %v14930_v32, %v5584_v47  ;;  %v305_v47 = vld [vmem:[%s15398_s2] sm:$0x3] }
 0x3d9   :  { %9407 = vmatpush1.bf16.msra.mxu0 %v18383_v50  ;;  %v14965_v50 = vld [vmem:[%s15399_s3 + $0xf0] sm:$0xff] }
 0x3da   :  { %9409 = vmatprep.subr.bf16.mxu0 %v18384_v3  ;;  %v14970_v3 = vld [vmem:[%s15399_s3 + $0xf8] sm:$0xff] }
 0x3dd   :  { %9411 = vmatpush1.bf16.msra.mxu0 %v18385_v2 }
 0x3de   :  { %9413 = vmatprep.subr.bf16.mxu0 %v18386_v4  ;;  %v16458_v4 = vand.u32 4294901760, %v14944_v54 }
 0x3e1   :  { %9415 = vmatpush1.bf16.msra.mxu0 %v18387_v31  ;;  %v5635_v31 = vand.u32 4294901760, %v14965_v50 }
 0x3e2   :  { %9417 = vmatprep.subr.bf16.mxu0 %v18388_v57  ;;  %v5638_v57 = vand.u32 4294901760, %v14970_v3 }
 0x3e5   :  { %9419 = vmatpush1.bf16.msra.mxu0 %v18389_v48  ;;  %v5731_v48 = vand.u32 4294901760, %v5730_v6 }
 0x3e6   :  { %9421 = vmatprep.subr.bf16.mxu0 %v18390_v30  ;;  %v5738_v30 = vand.u32 4294901760, %v5737_v49 }
 0x3e8   :  { %v9494_v49 = vpack.c.bf16 %v5738_v30, %v5731_v48 }
 0x3e9   :  { %9423 = vmatpush1.bf16.msra.mxu0 %v18391_v1  ;;  %v16460_v1 = vand.u32 4294901760, %v14955_v37 }
 0x3ea   :  { %9425 = vmatprep.subr.bf16.mxu0 %v18392_v45  ;;  %v16461_v45 = vand.u32 4294901760, %v14960_v23  ;;  %9495 = vmatpush3.bf16.msra.mxu1 %v9494_v49 }
 0x3ed   :  { %9427 = vmatpush1.bf16.msra.mxu0 %v18393_v43 }
 0x3ee   :  { %9429 = vmatprep.subr.bf16.mxu0 %v18394_v7  ;;  %v5863_v7 = vsub.f32 %v14944_v54, %v16458_v4  ;;  %v5744_v4 = vsub.f32 %v14955_v37, %v16460_v1 }
 0x3f0   :  { %v5864_v48 = vand.u32 4294901760, %v5863_v7 }
 0x3f1   :  { %9431 = vmatpush1.bf16.msra.mxu0 %v18395_v19  ;;  %v14985_v19 = vsub.f32 %v14965_v50, %v5635_v31  ;;  %v5751_v50 = vsub.f32 %v14960_v23, %v16461_v45 }
 0x3f2   :  { %9433 = vmatprep.subr.bf16.mxu0 %v18396_v11  ;;  %v14988_v11 = vsub.f32 %v14970_v3, %v5638_v57  ;;  %v5520_v3 = vld [vmem:[%s15399_s3 + $0x78] sm:$0xff] }
 0x3f3   :  { %v16464_v30 = vand.u32 4294901760, %v14985_v19  ;;  %v5752_v1 = vand.u32 4294901760, %v5751_v50 }
 0x3f4   :  { %v16467_v45 = vand.u32 4294901760, %v14988_v11  ;;  %v9532_v24 = vpack.c.bf16 %v14988_v11, %v14985_v19 }
 0x3f5   :  { %9435 = vmatpush1.bf16.msra.mxu0 %v18397_v42  ;;  %v5519_v42 = vld [vmem:[%s15399_s3 + $0x70] sm:$0xff] }
 0x3f6   :  { %9437 = vmatprep.subr.bf16.mxu0 %v18398_v29  ;;  %v18400_v29 = vand.u32 4294901760, %v14556_v22  ;;  %v18403_v22 = vand.u32 4294901760, %v14607_v52  ;;  %v5587_v34 = vand.u32 4294901760, %v5519_v42  ;;  %v5590_v52 = vand.u32 4294901760, %v5520_v3 }
 0x3f8   :  { %v15030_v50 = vsub.f32 %v5519_v42, %v5587_v34 }
 0x3f9   :  { %9439 = vmatpush1.bf16.msra.mxu0 %v18399_v36  ;;  %v18401_v36 = vand.u32 4294901760, %v14561_v44 }
 0x3fa   :  { %9441 = vmatprep.subr.bf16.mxu0 %v14563_v5 }
 0x3fb   :  { %v14997_v6 = vpack.c.bf16 %v18401_v36, %v18400_v29  ;;  %v5745_v36 = vand.u32 4294901760, %v5744_v4  ;;  %v5877_v4 = vsub.f32 %v14988_v11, %v16467_v45 }
 0x3fc   :  { %5491 = vmatmul.mubr.f32.vlgmr.msra.gmra.mrb[0].mxu0 %v18367_v35  ;;  %v14913_v35 = vld [vmem:[%s15399_s3 + $0xe0] sm:$0xff]  ;;  %s7454_s3 = sshll.u32 %s9859_s1, 4  ;;  %s7455_s3 = int_to_ptr.vmem [resolvable:$true] %s7454_s3 }
 0x3fd   :  { %9443 = vmatpush3.bf16.msra.mxu0 %v14588_v0  ;;  %v5629_v15 = vand.u32 4294901760, %v14913_v35  ;;  %v9498_v49 = vpack.c.bf16 %v5752_v1, %v5745_v36  ;;  %v16466_v1 = vand.u32 4294901760, %v15030_v50  ;;  %s9826_s23 = scalar_lea.vmem %s7455_s3, 32  ;;  %p9831_p9 = scmp.lt.s32.totalorder %s7455_s3, %s7455_s3 }
 0x3fe   :  { %9445 = vmatprep.subr.bf16.mxu0 %v14623_v8  ;;  %p9827_p8 = scmp.ne.s32.totalorder %s7455_s3, %s9826_s23  ;;  %p9832_p10 = scmp.lt.s32.totalorder %s9826_s23, %s9826_s23 }
 0x3ff   :  { %v14939_v39 = vsub.f32 %v14913_v35, %v5629_v15  ;;  %v15083_v35 = vpack.c.bf16 %v5590_v52, %v5587_v34  ;;  %v309_v34 = vsub.s32 0, %v18413_v61 }
 0x400   :  { %p9833_p11 = por %p9832_p10, %p9831_p9 }
 0x401   :  { %9447 = vmatpush3.bf16.msra.mxu0 %v14677_v53  ;;  %v16459_v2 = vand.u32 4294901760, %v14939_v39 }
 0x402   :  { %9449 = vmatprep.subr.bf16.mxu0 %v14700_v38  ;;  %p9834_p12 = pnand %p9833_p11, %p9827_p8 }
 0x403   :  { %v5856_v43 = vsub.f32 %v14939_v39, %v16459_v2  ;;  %v18402_v2 = vand.u32 4294901760, %v14581_v14  ;;  %v5870_v14 = vsub.f32 %v14985_v19, %v16464_v30 }
 0x405   :  { %9451 = vmatpush3.bf16.msra.mxu0 %v14732_v17  ;;  %v15012_v44 = vpack.c.bf16 %v18403_v22, %v18402_v2  ;;  %v5857_v29 = vand.u32 4294901760, %v5856_v43  ;;  %v18404_v2 = vand.u32 4294901760, %v14665_v56  ;;  %v18405_v43 = vand.u32 4294901760, %v14670_v26 }
 0x406   :  { %9453 = vmatprep.subr.bf16.mxu0 %v14997_v6  ;;  %v18406_v22 = vand.u32 4294901760, %v14682_v55  ;;  %v5871_v30 = vand.u32 4294901760, %v5870_v14  ;;  %v15038_v56 = vsub.f32 %v5520_v3, %v5590_v52  ;;  %v5878_v26 = vand.u32 4294901760, %v5877_v4 }
 0x407   :  { %v9496_v18 = vpack.c.bf16 %v5864_v48, %v5857_v29  ;;  %v15025_v7 = vpack.c.bf16 %v18405_v43, %v18404_v2  ;;  %v18407_v29 = vand.u32 4294901760, %v14692_v63  ;;  %v18409_v55 = vand.u32 4294901760, %v14705_v28  ;;  %v18411_v43 = vld [vmem:[#allocation213_spill] sm:$0xff] }
 0x408   :  { %18408 = vst [vmem:[#allocation77_spill] sm:$0xff] %v15038_v56  ;;  %v16465_v42 = vand.u32 4294901760, %v15038_v56  ;;  %v18410_v63 = vand.u32 4294901760, %v14710_v25  ;;  %v5758_v3 = vsub.f32 %v15030_v50, %v16466_v1  ;;  %v15060_v2 = vpack.c.bf16 %v5578_v12, %v5575_v13  ;;  %v18422_v1 = vld [vmem:[#allocation39_spill] sm:$0xff] }
 0x409   :  { %9455 = vmatpush3.bf16.msra.mxu0 %v15012_v44  ;;  %9497 = vmatprep.subr.bf16.mxu1 %v9496_v18  ;;  %v15036_v48 = vpack.c.bf16 %v18407_v29, %v18406_v22  ;;  %v9500_v18 = vpack.c.bf16 %v5878_v26, %v5871_v30  ;;  %v15067_v25 = vpack.c.bf16 %v5632_v9, %v5629_v15 }
 0x40a   :  { %9457 = vmatprep.subr.bf16.mxu0 %v15025_v7  ;;  %9499 = vmatpush3.bf16.msra.mxu1 %v9498_v49  ;;  %v15048_v36 = vpack.c.bf16 %v18410_v63, %v18409_v55  ;;  %v5765_v14 = vsub.f32 %v15038_v56, %v16465_v42  ;;  %v5759_v28 = vand.u32 4294901760, %v5758_v3  ;;  %v18412_v49 = vld [vmem:[#allocation208_spill] sm:$0xff]  ;;  %v15079_v12 = vpack.c.bf16 %v5638_v57, %v5635_v31 }
 0x40b   :  { %9501 = vmatprep.subr.bf16.mxu1 %v9500_v18  ;;  %v9504_v60 = vpack.c.bf16 %v18412_v49, %v18411_v43  ;;  %v9528_v15 = vpack.c.bf16 %v14944_v54, %v14939_v39  ;;  %v9530_v9 = vpack.c.bf16 %v14960_v23, %v14955_v37  ;;  %v9534_v32 = vpack.c.bf16 %v15038_v56, %v15030_v50 }
 0x40c   :  { %v5766_v30 = vand.u32 4294901760, %v5765_v14  ;;  %v313_v31 = vsub.s32 1, %v18413_v61  ;;  %v310_v57 = vrot.slane %v305_v47, %v309_v34  ;;  %v18415_v34 = vld [vmem:[#allocation12_spill] sm:$0xff] }
 0x40d   :  { %9459 = vmatpush3.bf16.msra.mxu0 %v15036_v48 }
 0x40e   :  { %9461 = vmatprep.subr.bf16.mxu0 %v15048_v36  ;;  %v9502_v13 = vpack.c.bf16 %v5766_v30, %v5759_v28  ;;  %v314_v52 = vrot.slane %v305_v47, %v313_v31  ;;  %v9722_v4 = vadd.f32 %v14855_v51, %v310_v57  ;;  %v18416_v51 = vld [vmem:[#allocation294_spill] sm:$0xff]  ;;  %v18418_v57 = vld [vmem:[#allocation20_spill] sm:$0xff] }
 0x40f   :  { %v9506_v47 = vpack.c.bf16 %v18416_v51, %v18415_v34  ;;  %v18417_v31 = vld [vmem:[#allocation14_spill] sm:$0xff] }
 0x410   :  { %9503 = vmatpush3.bf16.msra.mxu1 %v9502_v13  ;;  %v9724_v22 = vadd.f32 %v14858_v20, %v314_v52  ;;  %v9508_v52 = vpack.c.bf16 %v18418_v57, %v18417_v31 }
 0x411   :  { %9463 = vmatpush3.bf16.msra.mxu0 %v15060_v2  ;;  %9505 = vmatprep.subr.bf16.mxu1 %v9504_v60 }
 0x412   :  { %9465 = vmatprep.subr.bf16.mxu0 %v15067_v25 }
 0x415   :  { %9467 = vmatpush3.bf16.msra.mxu0 %v15077_v16 }
 0x416   :  { %9469 = vmatprep.subr.bf16.mxu0 %v15079_v12 }
 0x419   :  { %9471 = vmatpush3.bf16.msra.mxu0 %v15083_v35 }
 0x4cf   :  { %v5492_v29 = vpop.f32.mrb[0].mxu0 }
 0x4d0   :  { %v9723_v26 = vadd.f32 %v9722_v4, %v5492_v29  ;;  %v5494_v18 = vpop.f32.mrb[1].mxu0  ;;  %v18419_v29 = vld [vmem:[#allocation24_spill] sm:$0xff] }
 0x4d1   :  { %v9725_v55 = vadd.f32 %v9724_v22, %v5494_v18 }
 0x4d2   :  { %vm5497_vm0 = vcmp.ge.f32.partialorder %v9723_v26, 0.0  ;;  %v5499_v63 = vmul.f32 0.2, %v9723_v26 }
 0x4d3   :  { %vm5498_vm1 = vcmp.ge.f32.partialorder %v9725_v55, 0.0  ;;  %v5500_v3 = vmul.f32 0.2, %v9725_v55 }
 0x4d4   :  { %v5501_v14 = vsel %vm5497_vm0, %v9723_v26, %v5499_v63  ;;  %v9510_v26 = vpack.c.bf16 %v18419_v29, %v14495_v59 }
 0x4d5   :  { %v5503_v28 = vmul.f32 1.4142135, %v5501_v14  ;;  %v5502_v30 = vsel %vm5498_vm1, %v9725_v55, %v5500_v3  ;;  %v9512_v55 = vpack.c.bf16 %v14574_v41, %v14569_v27 }
 0x4d6   :  { %v5504_v60 = vmul.f32 1.4142135, %v5502_v30  ;;  %v18421_v30 = vld [vmem:[#allocation34_spill] sm:$0xff] }
 0x4d7   :  { %v15103_v13 = vand.u32 4294901760, %v5503_v28 }
 0x4d8   :  { %v15105_v61 = vand.u32 4294901760, %v5504_v60 }
 0x4d9   :  { %18414 = vst [vmem:[#allocation83_spill] sm:$0xff] %v15103_v13  ;;  %v5647_v20 = vsub.f32 %v5503_v28, %v15103_v13  ;;  %v18420_v28 = vld [vmem:[#allocation30_spill] sm:$0xff] }
 0x4da   :  { %5881 = vmatprep.mubr.f32.mxu1 %v15105_v61  ;;  %v5641_v4 = vsub.f32 %v5504_v60, %v15105_v61  ;;  %v9514_v60 = vpack.c.bf16 %v18421_v30, %v18420_v28 }
 0x4db   :  { %5883 = vmatmul.mubr.f32.vlgmr.msra.gmra.mrb[2].mxu1 %v15103_v13  ;;  %v5648_v22 = vand.u32 4294901760, %v5647_v20  ;;  %v18424_v13 = vld [vmem:[#allocation50_spill] sm:$0xff] }
 0x4dc   :  { %9507 = vmatpush3.bf16.msra.mxu1 %v9506_v47  ;;  %6018 = vmatprep.mubr.f32.mxu1 %v5641_v4  ;;  %v5642_v18 = vand.u32 4294901760, %v5641_v4  ;;  %v18423_v47 = vld [vmem:[#allocation44_spill] sm:$0xff] }
 0x4dd   :  { %9509 = vmatprep.subr.bf16.mxu1 %v9508_v52  ;;  %v5649_v63 = vsub.f32 %v5647_v20, %v5648_v22  ;;  %v9516_v45 = vpack.c.bf16 %v18423_v47, %v18422_v1  ;;  %v9518_v52 = vpack.c.bf16 %v14660_v58, %v14642_v33 }
 0x4de   :  { %v5643_v3 = vsub.f32 %v5641_v4, %v5642_v18  ;;  %v9520_v4 = vpack.c.bf16 %v18424_v13, %v14720_v21 }
 0x4df   :  { %v5650_v42 = vand.u32 4294901760, %v5649_v63 }
 0x4e0   :  { %9511 = vmatpush3.bf16.msra.mxu1 %v9510_v26  ;;  %v5644_v14 = vand.u32 4294901760, %v5643_v3  ;;  %v18425_v26 = vld [vmem:[#allocation56_spill] sm:$0xff] }
 0x4e1   :  { %9513 = vmatprep.subr.bf16.mxu1 %v9512_v55  ;;  %v18426_v3 = vld [vmem:[#allocation64_spill] sm:$0xff]  ;;  %v18427_v55 = vld [vmem:[#allocation71_spill] sm:$0xff] }
 0x4e2   :  { %5645 = vmatprep.mubr.f32.mxu0 %v5644_v14  ;;  %v9522_v56 = vpack.c.bf16 %v18426_v3, %v18425_v26  ;;  %v9524_v63 = vpack.c.bf16 %v14758_v40, %v18427_v55 }
 0x4e3   :  { %5651 = vmatmul.mubr.f32.vlgmr.msra.gmra.mrb[2].mxu0 %v5650_v42 }
 0x4e4   :  { %9515 = vmatpush3.bf16.msra.mxu1 %v9514_v60  ;;  %v18440_v60 = vand.u32 4294901760, %v18422_v1  ;;  %v18447_v1 = vand.u32 4294901760, %v18426_v3  ;;  %v18454_v3 = vand.u32 4294901760, %v14955_v37 }
 0x4e5   :  { %9517 = vmatprep.subr.bf16.mxu1 %v9516_v45  ;;  %v18428_v45 = vand.u32 4294901760, %v18411_v43  ;;  %v18434_v43 = vand.u32 4294901760, %v14495_v59  ;;  %v18441_v59 = vand.u32 4294901760, %v18423_v47  ;;  %v18448_v47 = vand.u32 4294901760, %v18427_v55 }
 0x4e6   :  { %v18455_v55 = vand.u32 4294901760, %v14960_v23 }
 0x4e8   :  { %9519 = vmatpush3.bf16.msra.mxu1 %v9518_v52  ;;  %v9580_v52 = vpack.c.bf16 %v18441_v59, %v18440_v60 }
 0x4e9   :  { %9521 = vmatprep.subr.bf16.mxu1 %v9520_v4 }
 0x4ec   :  { %9523 = vmatpush3.bf16.msra.mxu1 %v9522_v56  ;;  %v18429_v56 = vand.u32 4294901760, %v18412_v49  ;;  %v18435_v49 = vand.u32 4294901760, %v18419_v29  ;;  %v18442_v29 = vand.u32 4294901760, %v14642_v33  ;;  %v18449_v33 = vand.u32 4294901760, %v14758_v40 }
 0x4ed   :  { %9525 = vmatprep.subr.bf16.mxu1 %v9524_v63  ;;  %v18456_v40 = vand.u32 4294901760, %v14985_v19  ;;  %v9856_v19 = vmov 0.0|0.0  }
 0x4ee   :  { %v9568_v42 = vpack.c.bf16 %v18429_v56, %v18428_v45  ;;  %v9588_v56 = vpack.c.bf16 %v18449_v33, %v18448_v47 }
 0x4f0   :  { %9527 = vmatpush3.bf16.msra.mxu1 %v9526_v10  ;;  %v18430_v10 = vand.u32 4294901760, %v18415_v34  ;;  %v18436_v34 = vand.u32 4294901760, %v14569_v27  ;;  %v18443_v27 = vand.u32 4294901760, %v14660_v58  ;;  %v18450_v58 = vand.u32 4294901760, %v14903_v46 }
 0x4f1   :  { %9529 = vmatprep.subr.bf16.mxu1 %v9528_v15  ;;  %v18431_v15 = vand.u32 4294901760, %v18416_v51  ;;  %v18437_v51 = vand.u32 4294901760, %v14574_v41  ;;  %v18444_v41 = vand.u32 4294901760, %v14720_v21  ;;  %v18451_v21 = vand.u32 4294901760, %v14908_v62 }
 0x4f2   :  { %v9582_v4 = vpack.c.bf16 %v18443_v27, %v18442_v29  ;;  %v18457_v46 = vand.u32 4294901760, %v14988_v11  ;;  %v18458_v62 = vand.u32 4294901760, %v15030_v50  ;;  %v6412_v11 = vld [vmem:[%s15401_s5 + $0x10] sm:$0xff]  ;;  %v9858_v29 = vmov 0.0  }
 0x4f3   :  { %v9576_v14 = vpack.c.bf16 %v18437_v51, %v18436_v34  ;;  %v6416_v51 = vld [vmem:[%s15401_s5 + $0x30] sm:$0xff] }
 0x4f4   :  { %9531 = vmatpush3.bf16.msra.mxu1 %v9530_v9  ;;  %v9570_v9 = vpack.c.bf16 %v18431_v15, %v18430_v10  ;;  %v9594_v15 = vpack.c.bf16 %v18455_v55, %v18454_v3  ;;  %v6448_v59 = vand.u32 4294901760, %v6416_v51 }
 0x4f5   :  { %9533 = vmatprep.subr.bf16.mxu1 %v9532_v24  ;;  %v18432_v24 = vand.u32 4294901760, %v18417_v31  ;;  %v18438_v31 = vand.u32 4294901760, %v18420_v28  ;;  %v18445_v28 = vand.u32 4294901760, %v18424_v13  ;;  %v18452_v13 = vand.u32 4294901760, %v14939_v39 }
 0x4f7   :  { %v9584_v63 = vpack.c.bf16 %v18445_v28, %v18444_v41  ;;  %v15289_v28 = vsub.f32 %v6416_v51, %v6448_v59 }
 0x4f8   :  { %9535 = vmatpush3.bf16.msra.mxu1 %v9534_v32  ;;  %v18433_v32 = vand.u32 4294901760, %v18418_v57  ;;  %v18439_v57 = vand.u32 4294901760, %v18421_v30  ;;  %v18446_v30 = vand.u32 4294901760, %v18425_v26  ;;  %v18453_v26 = vand.u32 4294901760, %v14944_v54  ;;  %v18461_v54 = vld [vmem:[#allocation83_spill] sm:$0xff] }
 0x4f9   :  { %9537 = vmatprep.subr.bf16.mxu1 %v14563_v5 }
 0x4fa   :  { %v9586_v45 = vpack.c.bf16 %v18447_v1, %v18446_v30  ;;  %v9592_v10 = vpack.c.bf16 %v18453_v26, %v18452_v13 }
 0x4fb   :  { %6021 = vmatmul.mubr.f32.vlgmr.msra.gmra.mrb[4].mxu1 %v5647_v20  ;;  %v9572_v20 = vpack.c.bf16 %v18433_v32, %v18432_v24  ;;  %v18459_v24 = vld [vmem:[#allocation77_spill] sm:$0xff] }
 0x4fc   :  { %9539 = vmatpush3.bf16.msra.mxu1 %v14588_v0  ;;  %6125 = vmatprep.mubr.f32.mxu1 %v5642_v18  ;;  %v9574_v18 = vpack.c.bf16 %v18435_v49, %v18434_v43  ;;  %v18460_v39 = vand.u32 4294901760, %v18459_v24 }
 0x4fd   :  { %9541 = vmatprep.subr.bf16.mxu1 %v14623_v8 }
 0x4fe   :  { %v9598_v32 = vpack.c.bf16 %v18460_v39, %v18458_v62  ;;  %v6557_v62 = vand.u32 4294901760, %v15289_v28 }
 0x500   :  { %9543 = vmatpush3.bf16.msra.mxu1 %v14677_v53 }
 0x501   :  { %9545 = vmatprep.subr.bf16.mxu1 %v14700_v38 }
 0x504   :  { %9547 = vmatpush3.bf16.msra.mxu1 %v14732_v17 }
 0x505   :  { %9549 = vmatprep.subr.bf16.mxu1 %v14997_v6 }
 0x508   :  { %9551 = vmatpush3.bf16.msra.mxu1 %v15012_v44 }
 0x509   :  { %9553 = vmatprep.subr.bf16.mxu1 %v15025_v7 }
 0x50c   :  { %9555 = vmatpush3.bf16.msra.mxu1 %v15036_v48 }
 0x50d   :  { %9557 = vmatprep.subr.bf16.mxu1 %v15048_v36 }
 0x510   :  { %9559 = vmatpush3.bf16.msra.mxu1 %v15060_v2 }
 0x511   :  { %9561 = vmatprep.subr.bf16.mxu1 %v15067_v25 }
 0x514   :  { %9563 = vmatpush3.bf16.msra.mxu1 %v15077_v16 }
 0x515   :  { %9565 = vmatprep.subr.bf16.mxu1 %v15079_v12 }
 0x518   :  { %9567 = vmatpush3.bf16.msra.mxu1 %v15083_v35 }
 0x519   :  { %9569 = vmatprep.subr.bf16.mxu1 %v9568_v42  ;;  %v9590_v42 = vpack.c.bf16 %v18451_v21, %v18450_v58 }
 0x51b   :  { %6129 = vmatmul.mubr.f32.vlgmr.msra.gmra.mrb[6].mxu1 %v5648_v22  ;;  %v9578_v22 = vpack.c.bf16 %v18439_v57, %v18438_v31 }
 0x51c   :  { %9571 = vmatpush3.bf16.msra.mxu1 %v9570_v9  ;;  %6295 = vmatprep.mubr.f32.mxu1 %v15105_v61  ;;  %v9596_v9 = vpack.c.bf16 %v18457_v46, %v18456_v40 }
 0x51d   :  { %9573 = vmatprep.subr.bf16.mxu1 %v9572_v20 }
 0x520   :  { %9575 = vmatpush3.bf16.msra.mxu1 %v9574_v18 }
 0x521   :  { %9577 = vmatprep.subr.bf16.mxu1 %v9576_v14  ;;  %v6417_v14 = vld [vmem:[%s15401_s5 + $0x38] sm:$0xff] }
 0x524   :  { %9579 = vmatpush3.bf16.msra.mxu1 %v9578_v22 }
 0x525   :  { %9581 = vmatprep.subr.bf16.mxu1 %v9580_v52  ;;  %v6451_v52 = vand.u32 4294901760, %v6417_v14 }
 0x527   :  { %v15287_v41 = vpack.c.bf16 %v6451_v52, %v6448_v59 }
 0x528   :  { %9583 = vmatpush3.bf16.msra.mxu1 %v9582_v4 }
 0x529   :  { %9585 = vmatprep.subr.bf16.mxu1 %v9584_v63  ;;  %v15291_v63 = vsub.f32 %v6417_v14, %v6451_v52 }
 0x52b   :  { %v6564_v24 = vand.u32 4294901760, %v15291_v63 }
 0x52c   :  { %9587 = vmatpush3.bf16.msra.mxu1 %v9586_v45 }
 0x52d   :  { %9589 = vmatprep.subr.bf16.mxu1 %v9588_v56 }
 0x530   :  { %9591 = vmatpush3.bf16.msra.mxu1 %v9590_v42 }
 0x531   :  { %9593 = vmatprep.subr.bf16.mxu1 %v9592_v10 }
 0x534   :  { %9595 = vmatpush3.bf16.msra.mxu1 %v9594_v15 }
 0x535   :  { %9597 = vmatprep.subr.bf16.mxu1 %v9596_v9 }
 0x538   :  { %9599 = vmatpush3.bf16.msra.mxu1 %v9598_v32  ;;  %v6558_v32 = vsub.f32 %v15289_v28, %v6557_v62 }
 0x539   :  { %9601 = vmatprep.subr.bf16.mxu1 %v14563_v5 }
 0x53b   :  { %6297 = vmatmul.mubr.f32.vlgmr.msra.gmra.mrb[8].mxu1 %v18461_v54 }
 0x53c   :  { %9603 = vmatpush3.bf16.msra.mxu1 %v14588_v0  ;;  %6399 = vmatprep.mubr.f32.mxu1 %v15105_v61 }
 0x53d   :  { %9605 = vmatprep.subr.bf16.mxu1 %v14623_v8  ;;  %v6410_v8 = vld [vmem:[%s15401_s5] sm:$0xff] }
 0x540   :  { %9607 = vmatpush3.bf16.msra.mxu1 %v14677_v53 }
 0x541   :  { %9609 = vmatprep.subr.bf16.mxu1 %v14700_v38  ;;  %v6411_v38 = vld [vmem:[%s15401_s5 + $0x8] sm:$0xff] }
 0x542   :  { %v6433_v37 = vand.u32 4294901760, %v6411_v38 }
 0x544   :  { %9611 = vmatpush3.bf16.msra.mxu1 %v14732_v17  ;;  %v6430_v17 = vand.u32 4294901760, %v6410_v8  ;;  %v15263_v18 = vsub.f32 %v6411_v38, %v6433_v37 }
 0x545   :  { %9613 = vmatprep.subr.bf16.mxu1 %v14997_v6  ;;  %v6413_v6 = vld [vmem:[%s15401_s5 + $0x18] sm:$0xff] }
 0x546   :  { %v15237_v23 = vpack.c.bf16 %v6433_v37, %v6430_v17  ;;  %v6439_v50 = vand.u32 4294901760, %v6413_v6  ;;  %v15261_v49 = vsub.f32 %v6410_v8, %v6430_v17  ;;  %v6522_v4 = vand.u32 4294901760, %v15263_v18 }
 0x548   :  { %9615 = vmatpush3.bf16.msra.mxu1 %v15012_v44  ;;  %v15273_v31 = vsub.f32 %v6413_v6, %v6439_v50  ;;  %v6515_v27 = vand.u32 4294901760, %v15261_v49  ;;  %v6523_v1 = vsub.f32 %v15263_v18, %v6522_v4 }
 0x549   :  { %9617 = vmatprep.subr.bf16.mxu1 %v15025_v7  ;;  %v6436_v7 = vand.u32 4294901760, %v6412_v11 }
 0x54a   :  { %v6516_v30 = vsub.f32 %v15261_v49, %v6515_v27  ;;  %v6536_v47 = vand.u32 4294901760, %v15273_v31  ;;  %v6524_v56 = vand.u32 4294901760, %v6523_v1 }
 0x54b   :  { %v15265_v34 = vsub.f32 %v6412_v11, %v6436_v7  ;;  %v9657_v11 = vpack.c.bf16 %v15263_v18, %v15261_v49 }
 0x54c   :  { %9619 = vmatpush3.bf16.msra.mxu1 %v15036_v48  ;;  %v7463_v48 = vld [vmem:[%s15400_s4] ss:$0 sm:$0xff]  ;;  %v6517_v33 = vand.u32 4294901760, %v6516_v30  ;;  %v6537_v21 = vsub.f32 %v15273_v31, %v6536_v47 }
 0x54d   :  { %9621 = vmatprep.subr.bf16.mxu1 %v15048_v36  ;;  %v6529_v45 = vand.u32 4294901760, %v15265_v34  ;;  %v9660_v6 = vpack.c.bf16 %v15273_v31, %v15265_v34 }
 0x54e   :  { %v9645_v42 = vpack.c.bf16 %v6524_v56, %v6517_v33  ;;  %v6538_v26 = vand.u32 4294901760, %v6537_v21 }
 0x54f   :  { %v6530_v58 = vsub.f32 %v15265_v34, %v6529_v45 }
 0x550   :  { %9623 = vmatpush3.bf16.msra.mxu1 %v15060_v2 }
 0x551   :  { %9625 = vmatprep.subr.bf16.mxu1 %v15067_v25  ;;  %v15251_v25 = vpack.c.bf16 %v6439_v50, %v6436_v7  ;;  %v6531_v13 = vand.u32 4294901760, %v6530_v58  ;;  %v9666_v7 = vpack.c.bf16 %v15291_v63, %v15289_v28 }
 0x553   :  { %v9648_v55 = vpack.c.bf16 %v6538_v26, %v6531_v13 }
 0x554   :  { %9627 = vmatpush3.bf16.msra.mxu1 %v15077_v16  ;;  %v6414_v16 = vld [vmem:[%s15401_s5 + $0x20] sm:$0xff] }
 0x555   :  { %9629 = vmatprep.subr.bf16.mxu1 %v15079_v12  ;;  %v6415_v12 = vld [vmem:[%s15401_s5 + $0x28] sm:$0xff]  ;;  %v6442_v61 = vand.u32 4294901760, %v6414_v16 }
 0x556   :  { %v6445_v20 = vand.u32 4294901760, %v6415_v12 }
 0x557   :  { %v15277_v22 = vsub.f32 %v6414_v16, %v6442_v61  ;;  %v9681_v16 = vpack.c.bf16 %v6522_v4, %v6515_v27 }
 0x558   :  { %9631 = vmatpush3.bf16.msra.mxu1 %v15083_v35  ;;  %v15275_v57 = vpack.c.bf16 %v6445_v20, %v6442_v61  ;;  %v15279_v60 = vsub.f32 %v6415_v12, %v6445_v20  ;;  %v9684_v12 = vpack.c.bf16 %v6536_v47, %v6529_v45  ;;  %v9690_v61 = vpack.c.bf16 %v6564_v24, %v6557_v62 }
 0x559   :  { %9632 = vmatprep.subr.bf16.mxu1 %v9856_v19  ;;  %v6543_v10 = vand.u32 4294901760, %v15277_v22 }
 0x55a   :  { %v6550_v3 = vand.u32 4294901760, %v15279_v60 }
 0x55b   :  { %6401 = vmatmul.mubr.f32.vlgmr.msra.gmra.mrb[10].mxu1 %v18461_v54  ;;  %v6544_v15 = vsub.f32 %v15277_v22, %v6543_v10  ;;  %v6565_v54 = vsub.f32 %v15291_v63, %v6564_v24 }
 0x55c   :  { %9634 = vmatpush3.bf16.msra.mxu1 %v15237_v23  ;;  %7764 = vmatprep.mubr.msk.f32.mxu1 %vm9857_vm2, %v9858_v29  ;;  %v6551_v40 = vsub.f32 %v15279_v60, %v6550_v3 }
 0x55d   :  { %9635 = vmatprep.subr.bf16.mxu1 %v9856_v19  ;;  %v6545_v46 = vand.u32 4294901760, %v6544_v15 }
 0x55e   :  { %v6552_v9 = vand.u32 4294901760, %v6551_v40 }
 0x560   :  { %9637 = vmatpush3.bf16.msra.mxu1 %v15251_v25  ;;  %v9651_v39 = vpack.c.bf16 %v6552_v9, %v6545_v46 }
 0x561   :  { %9638 = vmatprep.subr.bf16.mxu1 %v9856_v19 }
 0x564   :  { %9640 = vmatpush3.bf16.msra.mxu1 %v15275_v57 }
 0x565   :  { %9641 = vmatprep.subr.bf16.mxu1 %v9856_v19 }
 0x568   :  { %9643 = vmatpush3.bf16.msra.mxu1 %v15287_v41 }
 0x569   :  { %9644 = vmatprep.subr.bf16.mxu1 %v9856_v19 }
 0x5ae   :  { %v7533_v5 = vpop.f32.mrb[2].mxu1 }
 0x5af   :  { %v7534_v0 = vpop.f32.mrb[3].mxu1 }
 0x5b0   :  { %v7535_v53 = vadd.f32 %v7534_v0, %v7533_v5  ;;  %v6559_v0 = vand.u32 4294901760, %v6558_v32 }
 0x5b6   :  { %v7498_v44 = vpop.f32.mrb[2].mxu0 }
 0x5b7   :  { %v7499_v36 = vpop.f32.mrb[3].mxu0 }
 0x5b8   :  { %v7500_v2 = vadd.f32 %v7499_v36, %v7498_v44  ;;  %v9663_v44 = vpack.c.bf16 %v15279_v60, %v15277_v22 }
 0x5ba   :  { %v5653_v35 = vadd.f32 %v7500_v2, %v7463_v48 }
 0x5bc   :  { %v5885_v43 = vadd.f32 %v7535_v53, %v5653_v35  ;;  %v6566_v53 = vand.u32 4294901760, %v6565_v54  ;;  %v9687_v35 = vpack.c.bf16 %v6550_v3, %v6543_v10 }
 0x5be   :  { %v9654_v17 = vpack.c.bf16 %v6566_v53, %v6559_v0 }
 0x5ce   :  { %v7568_v5 = vpop.f32.mrb[4].mxu1 }
 0x5cf   :  { %v7569_v8 = vpop.f32.mrb[5].mxu1 }
 0x5d0   :  { %v7570_v38 = vadd.f32 %v7569_v8, %v7568_v5  ;;  %v7465_v8 = vld [vmem:[%s15404_s8] ss:$0 sm:$0xff] }
 0x5d2   :  { %v6023_v37 = vadd.f32 %v7570_v38, %v5885_v43 }
 0x5ee   :  { %v7603_v50 = vpop.f32.mrb[6].mxu1 }
 0x5ef   :  { %v7604_v48 = vpop.f32.mrb[7].mxu1 }
 0x5f0   :  { %v7605_v36 = vadd.f32 %v7604_v48, %v7603_v50 }
 0x5f2   :  { %v6131_v2 = vadd.f32 %v7605_v36, %v6023_v37 }
 0x60e   :  { %v7638_v20 = vpop.f32.mrb[8].mxu1 }
 0x60f   :  { %v7639_v43 = vpop.f32.mrb[9].mxu1 }
 0x610   :  { %v7640_v49 = vadd.f32 %v7639_v43, %v7638_v20 }
 0x612   :  { %v6299_v18 = vadd.f32 %v7640_v49, %v6131_v2 }
 0x62e   :  { %v7673_v51 = vpop.f32.mrb[10].mxu1 }
 0x62f   :  { %v7674_v34 = vpop.f32.mrb[11].mxu1 }
 0x630   :  { %v7675_v14 = vadd.f32 %v7674_v34, %v7673_v51 }
 0x632   :  { %v6403_v31 = vadd.f32 %v7675_v14, %v6299_v18 }
 0x634   :  { %vm6406_vm3 = vcmp.ge.f32.partialorder %v6403_v31, 0.0  ;;  %v6407_v22 = vmul.f32 0.2, %v6403_v31 }
 0x636   :  { %v6408_v60 = vsel %vm6406_vm3, %v6403_v31, %v6407_v22 }
 0x637   :  { %v6409_v59 = vmul.f32 1.4142135, %v6408_v60 }
 0x639   :  { %v6427_v52 = vsel %vm6425_vm4, %v6409_v59, 0 }
 0x63a   :  { %v6502_v28 = vand.u32 4294901760, %v6427_v52 }
 0x63c   :  { %v6503_v63 = vsub.f32 %v6427_v52, %v6502_v28 }
 0x63e   :  { %v6504_v27 = vand.u32 4294901760, %v6503_v63 }
 0x640   :  { %v6505_v4 = vsub.f32 %v6503_v63, %v6504_v27 }
 0x642   :  { %v6506_v30 = vand.u32 4294901760, %v6505_v4 }
 0x644   :  { %7765 = vmatmul.mubr.f32.vlgmr.msra.gmra.mrb[12].mxu1 %v6506_v30 }
 0x645   :  { %9646 = vmatpush3.bf16.msra.mxu1 %v9645_v42  ;;  %7783 = vmatprep.mubr.msk.f32.mxu1 %vm9857_vm2, %v9858_v29 }
 0x646   :  { %9647 = vmatprep.subr.bf16.mxu1 %v9856_v19 }
 0x649   :  { %9649 = vmatpush3.bf16.msra.mxu1 %v9648_v55  ;;  %v7464_v55 = vld [vmem:[%s15402_s6] ss:$0 sm:$0xff] }
 0x64a   :  { %9650 = vmatprep.subr.bf16.mxu1 %v9856_v19 }
 0x64d   :  { %9652 = vmatpush3.bf16.msra.mxu1 %v9651_v39 }
 0x64e   :  { %9653 = vmatprep.subr.bf16.mxu1 %v9856_v19 }
 0x651   :  { %9655 = vmatpush3.bf16.msra.mxu1 %v9654_v17 }
 0x652   :  { %9656 = vmatprep.subr.bf16.mxu1 %v9856_v19 }
 0x654   :  { %7784 = vmatmul.mubr.f32.vlgmr.msra.gmra.mrb[12].mxu1 %v6502_v28 }
 0x655   :  { %9658 = vmatpush3.bf16.msra.mxu1 %v9657_v11  ;;  %7802 = vmatprep.mubr.msk.f32.mxu1 %vm9857_vm2, %v9858_v29 }
 0x656   :  { %9659 = vmatprep.subr.bf16.mxu1 %v9856_v19 }
 0x659   :  { %9661 = vmatpush3.bf16.msra.mxu1 %v9660_v6 }
 0x65a   :  { %9662 = vmatprep.subr.bf16.mxu1 %v9856_v19 }
 0x65d   :  { %9664 = vmatpush3.bf16.msra.mxu1 %v9663_v44 }
 0x65e   :  { %9665 = vmatprep.subr.bf16.mxu1 %v9856_v19 }
 0x661   :  { %9667 = vmatpush3.bf16.msra.mxu1 %v9666_v7 }
 0x662   :  { %9668 = vmatprep.subr.bf16.mxu1 %v9856_v19 }
 0x664   :  { %7803 = vmatmul.mubr.f32.vlgmr.msra.gmra.mrb[12].mxu1 %v6503_v63 }
 0x665   :  { %9670 = vmatpush3.bf16.msra.mxu1 %v15237_v23  ;;  %7821 = vmatprep.mubr.msk.f32.mxu1 %vm9857_vm2, %v9858_v29 }
 0x666   :  { %9671 = vmatprep.subr.bf16.mxu1 %v9856_v19 }
 0x669   :  { %9673 = vmatpush3.bf16.msra.mxu1 %v15251_v25 }
 0x66a   :  { %9674 = vmatprep.subr.bf16.mxu1 %v9856_v19 }
 0x66d   :  { %9676 = vmatpush3.bf16.msra.mxu1 %v15275_v57 }
 0x66e   :  { %9677 = vmatprep.subr.bf16.mxu1 %v9856_v19 }
 0x671   :  { %9679 = vmatpush3.bf16.msra.mxu1 %v15287_v41 }
 0x672   :  { %9680 = vmatprep.subr.bf16.mxu1 %v9856_v19 }
 0x674   :  { %7822 = vmatmul.mubr.f32.vlgmr.msra.gmra.mrb[12].mxu1 %v6504_v27 }
 0x675   :  { %9682 = vmatpush3.bf16.msra.mxu1 %v9681_v16  ;;  %7840 = vmatprep.mubr.msk.f32.mxu1 %vm9857_vm2, %v9858_v29 }
 0x676   :  { %9683 = vmatprep.subr.bf16.mxu1 %v9856_v19 }
 0x679   :  { %9685 = vmatpush3.bf16.msra.mxu1 %v9684_v12 }
 0x67a   :  { %9686 = vmatprep.subr.bf16.mxu1 %v9856_v19 }
 0x67d   :  { %9688 = vmatpush3.bf16.msra.mxu1 %v9687_v35 }
 0x67e   :  { %9689 = vmatprep.subr.bf16.mxu1 %v9856_v19 }
 0x681   :  { %9691 = vmatpush3.bf16.msra.mxu1 %v9690_v61 }
 0x682   :  { %9692 = vmatprep.subr.bf16.mxu1 %v9856_v19 }
 0x684   :  { %7841 = vmatmul.mubr.f32.vlgmr.msra.gmra.mrb[12].mxu1 %v6502_v28 }
 0x685   :  { %9694 = vmatpush3.bf16.msra.mxu1 %v15237_v23  ;;  %7859 = vmatprep.mubr.msk.f32.mxu1 %vm9857_vm2, %v9858_v29  ;;  %v6970_v23 = vld [vmem:[%s15403_s7] sm:$0xff] }
 0x686   :  { %9695 = vmatprep.subr.bf16.mxu1 %v9856_v19  ;;  %v6984_v1 = vand.u32 4294901760, %v6970_v23 }
 0x688   :  { %v7062_v47 = vsub.f32 %v6970_v23, %v6984_v1 }
 0x689   :  { %9697 = vmatpush3.bf16.msra.mxu1 %v15251_v25  ;;  %v6971_v25 = vld [vmem:[%s15403_s7 + $0x8] sm:$0xff] }
 0x68a   :  { %9698 = vmatprep.subr.bf16.mxu1 %v9856_v19 }
 0x68d   :  { %9700 = vmatpush3.bf16.msra.mxu1 %v15275_v57  ;;  %v6987_v57 = vand.u32 4294901760, %v6971_v25 }
 0x68e   :  { %9701 = vmatprep.subr.bf16.mxu1 %v9856_v19 }
 0x68f   :  { %v9705_v45 = vpack.c.bf16 %v6987_v57, %v6984_v1  ;;  %v7069_v33 = vsub.f32 %v6971_v25, %v6987_v57 }
 0x691   :  { %9703 = vmatpush3.bf16.msra.mxu1 %v15287_v41  ;;  %v7063_v41 = vand.u32 4294901760, %v7062_v47  ;;  %v7070_v56 = vand.u32 4294901760, %v7069_v33  ;;  %v9711_v10 = vpack.c.bf16 %v7069_v33, %v7062_v47 }
 0x692   :  { %9704 = vmatprep.subr.bf16.mxu1 %v9856_v19 }
 0x693   :  { %v7064_v58 = vsub.f32 %v7062_v47, %v7063_v41  ;;  %v7071_v21 = vsub.f32 %v7069_v33, %v7070_v56  ;;  %v9717_v3 = vpack.c.bf16 %v7070_v56, %v7063_v41 }
 0x694   :  { %7860 = vmatmul.mubr.f32.vlgmr.msra.gmra.mrb[12].mxu1 %v6502_v28 }
 0x695   :  { %7866 = vmatprep.mubr.msk.f32.mxu1 %vm9857_vm2, %v9858_v29  ;;  %9706 = vmatpush3.bf16.msra.mxu1 %v9705_v45  ;;  %v7065_v42 = vand.u32 4294901760, %v7064_v58  ;;  %v7072_v13 = vand.u32 4294901760, %v7071_v21 }
 0x696   :  { %9707 = vmatprep.subr.bf16.mxu1 %v9856_v19 }
 0x697   :  { %v9708_v26 = vpack.c.bf16 %v7072_v13, %v7065_v42 }
 0x767   :  { %v6962_v15 = vpop.f32.mrb[12].mxu1 }
 0x768   :  { %v9726_v40 = vadd.f32 %v7464_v55, %v6962_v15  ;;  %v7861_v46 = vpop.f32.mrb[13].mxu1 }
 0x76a   :  { %vm6966_vm5 = vcmp.ge.f32.partialorder %v9726_v40, 0.0  ;;  %v6967_v9 = vmul.f32 0.2, %v9726_v40 }
 0x76c   :  { %v6968_v62 = vsel %vm6966_vm5, %v9726_v40, %v6967_v9 }
 0x76d   :  { %v6969_v24 = vmul.f32 1.4142135, %v6968_v62 }
 0x76f   :  { %v6981_v39 = vsel %vm6979_vm6, %v6969_v24, 0 }
 0x770   :  { %v7050_v32 = vand.u32 4294901760, %v6981_v39 }
 0x772   :  { %v7051_v54 = vsub.f32 %v6981_v39, %v7050_v32 }
 0x774   :  { %v7052_v5 = vand.u32 4294901760, %v7051_v54 }
 0x776   :  { %v7053_v0 = vsub.f32 %v7051_v54, %v7052_v5 }
 0x778   :  { %v7054_v53 = vand.u32 4294901760, %v7053_v0 }
 0x77a   :  { %7867 = vmatmul.mubr.f32.vlgmr.msra.gmra.mrb[14].mxu1 %v7054_v53 }
 0x77b   :  { %9709 = vmatpush3.bf16.msra.mxu1 %v9708_v26  ;;  %7873 = vmatprep.mubr.msk.f32.mxu1 %vm9857_vm2, %v9858_v29 }
 0x77c   :  { %9710 = vmatprep.subr.bf16.mxu1 %v9856_v19 }
 0x782   :  { %7874 = vmatmul.mubr.f32.vlgmr.msra.gmra.mrb[14].mxu1 %v7050_v32 }
 0x783   :  { %9712 = vmatpush3.bf16.msra.mxu1 %v9711_v10  ;;  %7880 = vmatprep.mubr.msk.f32.mxu1 %vm9857_vm2, %v9858_v29 }
 0x784   :  { %9713 = vmatprep.subr.bf16.mxu1 %v9856_v19 }
 0x78a   :  { %7881 = vmatmul.mubr.f32.vlgmr.msra.gmra.mrb[14].mxu1 %v7051_v54 }
 0x78b   :  { %9715 = vmatpush3.bf16.msra.mxu1 %v9705_v45  ;;  %7887 = vmatprep.mubr.msk.f32.mxu1 %vm9857_vm2, %v9858_v29 }
 0x78c   :  { %9716 = vmatprep.subr.bf16.mxu1 %v9856_v19 }
 0x792   :  { %7888 = vmatmul.mubr.f32.vlgmr.msra.gmra.mrb[14].mxu1 %v7052_v5 }
 0x793   :  { %9718 = vmatpush3.bf16.msra.mxu1 %v9717_v3  ;;  %7894 = vmatprep.mubr.msk.f32.mxu1 %vm9857_vm2, %v9858_v29 }
 0x794   :  { %9719 = vmatprep.subr.bf16.mxu1 %v9856_v19 }
 0x79a   :  { %7895 = vmatmul.mubr.f32.vlgmr.msra.gmra.mrb[14].mxu1 %v7050_v32 }
 0x79b   :  { %9721 = vmatpush3.bf16.msra.mxu1 %v9705_v45  ;;  %7901 = vmatprep.mubr.msk.f32.mxu1 %vm9857_vm2, %v9858_v29 }
 0x7a2   :  { %7902 = vmatmul.mubr.f32.vlgmr.msra.gmra.mrb[14].mxu1 %v7050_v32 }
 0x875   :  { %v7438_v38 = vpop.f32.mrb[14].mxu1 }
 0x876   :  { %v9727_v17 = vadd.f32 %v7465_v8, %v7438_v38  ;;  %v7903_v37 = vpop.f32.mrb[15].mxu1 }
 0x878   :  { %vm7442_vm7 = vcmp.ge.f32.partialorder %v9727_v17, 0.0  ;;  %v7443_v11 = vmul.f32 0.2, %v9727_v17 }
 0x87a   :  { %v7444_v6 = vsel %vm7442_vm7, %v9727_v17, %v7443_v11 }
 0x87b   :  { %v7445_v19 = vmul.f32 1.4142135, %v7444_v6 }
 0x87d   :  { %7447 = vst.msk [vmem:[#allocation5] sm:$0x3] %vm7446_vm8, %v7445_v19 }
 0x87e   :  { %9837 = shalt.err (!%p9834_p12)
}
 0x87f   :  { %s9838_s24 = scalar_lea.hbm %s15405_s9, 32 }
 0x880   :  { %p9839_p13 = scmp.ne.s32.totalorder %s15405_s9, %s9838_s24  ;;  %p9842_p0 = scmp.lt.u32.totalorder %s9838_s24, %s15405_s9 }
 0x882   :  { %p9844_p1 = pnand %p9842_p0, %p9839_p13 }
 0x884   :  { %9847 = shalt.err (!%p9844_p1)
}
 0x885   :  { %7457 = dma.vmem_to_hbm [thread:$0]  %s7455_s3, 32, %s15405_s9, [#allocation4]  }
 0x886   :  { %9850 = dma.done.wait [#allocation4], 32  }
 0x887   :  { %9851 = vsyncadd [#allocation4], 4294967264 }
 0x888   :  { %7461 = vsyncpa [#allocation3], 1 }
 0x889   :  { %7462 = vsyncpa [#allocation4], 1 }

</bundles_post_ra>
